<compile_context>
chip_gen: v7x
topology: tpu7x:2x2x1
jax: 0.10.0
libtpu: 0.0.40
codegen_flags: <defaults>
</compile_context>

<pallas_src>
import numpy as np
import jax
import jax.numpy as jnp
from jax.experimental import pallas as pl
from jax.experimental.pallas import tpu as pltpu


# ----------------------------- static geometry ------------------------------
_H0 = 28                  # input spatial size
_K = 5                    # conv kernel size
_C1, _C2 = 6, 16          # conv output channels
_P1 = 12                  # pool1 output spatial ((28-5+1)//2)
_P2 = 4                   # pool2 output spatial ((12-5+1)//2)
_ROW1 = _P1 * _C1         # 72 lanes per pool1 row
_N1 = _P1 * _P1 * _C1     # 864 real pool1 lanes
_N1P = 896                # pool1 lanes padded to 7*128 (lane-dense)
_N2 = _P2 * _P2 * _C2     # 256 pool2 lanes (already 2*128)
_NFC = 128                # padded FC output lanes
_NOUT = 10


# ------------------------------ parameters ----------------------------------
def init_params(key):
    ks = jax.random.split(key, 10)
    scale = 0.1
    return {
        "conv1_w": scale * jax.random.normal(ks[0], (6, 1, 5, 5), jnp.float32),
        "conv1_b": scale * jax.random.normal(ks[1], (6,), jnp.float32),
        "conv2_w": scale * jax.random.normal(ks[2], (16, 6, 5, 5), jnp.float32),
        "conv2_b": scale * jax.random.normal(ks[3], (16,), jnp.float32),
        "fc1_w": scale * jax.random.normal(ks[4], (256, 120), jnp.float32),
        "fc1_b": scale * jax.random.normal(ks[5], (120,), jnp.float32),
        "fc2_w": scale * jax.random.normal(ks[6], (120, 84), jnp.float32),
        "fc2_b": scale * jax.random.normal(ks[7], (84,), jnp.float32),
        "fc3_w": scale * jax.random.normal(ks[8], (84, 10), jnp.float32),
        "fc3_b": scale * jax.random.normal(ks[9], (10,), jnp.float32),
    }


def prepare_kernel_params(params):
    """One-time host-side conversion of torch-layout params into what the fused kernel
    consumes: four pre-shifted Toeplitz matrices per conv stage (pool offset baked into
    the rows), lane-padded / permuted FC weights, bf16 weights + f32 biases."""
    w1 = np.asarray(params["conv1_w"], np.float32)   # (6,1,5,5)
    b1 = np.asarray(params["conv1_b"], np.float32)
    w2 = np.asarray(params["conv2_w"], np.float32)   # (16,6,5,5)
    b2 = np.asarray(params["conv2_b"], np.float32)

    offsets = ((0, 0), (0, 1), (1, 0), (1, 1))       # 2x2 max-pool window offsets

    # Stage 1 (conv1 + ReLU + pool1): rows index the flattened 28x28 input
    # (lane = hi*28 + wi); cols index pool1 output as (h, w, c), padded to 896 lanes.
    W1 = np.zeros((4, _H0 * _H0, _N1P), np.float32)
    for n, (dy, dx) in enumerate(offsets):
        for ho in range(_P1):
            for wo in range(_P1):
                for o in range(_C1):
                    col = (ho * _P1 + wo) * _C1 + o
                    for ki in range(_K):
                        for kj in range(_K):
                            t = (2 * ho + dy + ki) * _H0 + (2 * wo + dx + kj)
                            W1[n, t, col] = w1[o, 0, ki, kj]
    B1 = np.zeros((1, _N1P), np.float32)
    B1[0, :_N1] = np.tile(b1, _P1 * _P1)

    # Stage 2 (conv2 + ReLU + pool2): rows index flattened pool1 output
    # (lane = hi*72 + wi*6 + ci; pad rows 864..895 stay zero); cols = pool2 (h, w, c).
    W2 = np.zeros((4, _N1P, _N2), np.float32)
    for n, (dy, dx) in enumerate(offsets):
        for ho in range(_P2):
            for wo in range(_P2):
                for o in range(_C2):
                    col = (ho * _P2 + wo) * _C2 + o
                    for ci in range(_C1):
                        for ki in range(_K):
                            for kj in range(_K):
                                t = (2 * ho + dy + ki) * _ROW1 + (2 * wo + dx + kj) * _C1 + ci
                                W2[n, t, col] = w2[o, ci, ki, kj]
    B2 = np.tile(b2, _P2 * _P2)[None, :]             # (1, 256)

    # fc1: permute rows from torch's NCHW flatten order (c*16 + h*4 + w) to the kernel's
    # (h*64 + w*16 + c) activation layout; pad output lanes 120 -> 128.
    perm = np.array([o * (_P2 * _P2) + a * _P2 + b
                     for a in range(_P2) for b in range(_P2) for o in range(_C2)],
                    np.int32)
    Wf1 = np.zeros((_N2, _NFC), np.float32)
    Wf1[:, :120] = np.asarray(params["fc1_w"], np.float32)[perm, :]
    Bf1 = np.zeros((1, _NFC), np.float32)
    Bf1[0, :120] = np.asarray(params["fc1_b"], np.float32)
    # fc2: rows padded to 128 (zeros), output lanes 84 -> 128.
    Wf2 = np.zeros((_NFC, _NFC), np.float32)
    Wf2[:120, :84] = np.asarray(params["fc2_w"], np.float32)
    Bf2 = np.zeros((1, _NFC), np.float32)
    Bf2[0, :84] = np.asarray(params["fc2_b"], np.float32)
    # fc3: rows padded to 128, output lanes 10 -> 128 (unmasked final store).
    Wf3 = np.zeros((_NFC, _NFC), np.float32)
    Wf3[:84, :_NOUT] = np.asarray(params["fc3_w"], np.float32)
    Bf3 = np.zeros((1, _NFC), np.float32)
    Bf3[0, :_NOUT] = np.asarray(params["fc3_b"], np.float32)

    bf16 = jnp.bfloat16
    return {
        "w1": jnp.asarray(W1, bf16), "b1": jnp.asarray(B1),
        "w2": jnp.asarray(W2, bf16), "b2": jnp.asarray(B2),
        "wf1": jnp.asarray(Wf1, bf16), "bf1": jnp.asarray(Bf1),
        "wf2": jnp.asarray(Wf2, bf16), "bf2": jnp.asarray(Bf2),
        "wf3": jnp.asarray(Wf3, bf16), "bf3": jnp.asarray(Bf3),
    }


_ARG_ORDER = ("w1", "b1", "w2", "b2", "wf1", "bf1", "wf2", "bf2", "wf3", "bf3")


# ------------------------------ fused kernel ---------------------------------
def _lenet_fused_kernel(x_ref, w1_ref, b1_ref, w2_ref, b2_ref,
                        wf1_ref, bf1_ref, wf2_ref, bf2_ref, wf3_ref, bf3_ref,
                        o_ref):
    x = x_ref[...]                                                  # (TB, 784) bf16

    # Stage 1: conv1 + ReLU + 2x2 maxpool as 4 pre-shifted bf16 matmuls + elementwise max.
    m1 = jnp.dot(x, w1_ref[0], preferred_element_type=jnp.float32)
    for n in range(1, 4):
        m1 = jnp.maximum(m1, jnp.dot(x, w1_ref[n], preferred_element_type=jnp.float32))
    # Bias-add + single ReLU hoisted out of the pool max (bias common, ReLU monotone).
    h1 = jnp.maximum(m1 + b1_ref[...], 0.0).astype(jnp.bfloat16)    # (TB, 896)

    # Stage 2: conv2 + ReLU + 2x2 maxpool, same trick on the flat (h, w, c) layout.
    m2 = jnp.dot(h1, w2_ref[0], preferred_element_type=jnp.float32)
    for n in range(1, 4):
        m2 = jnp.maximum(m2, jnp.dot(h1, w2_ref[n], preferred_element_type=jnp.float32))
    h2 = jnp.maximum(m2 + b2_ref[...], 0.0).astype(jnp.bfloat16)    # (TB, 256)

    # FC tail: all output lanes padded to 128, so every intermediate is lane-dense.
    h3 = jnp.maximum(jnp.dot(h2, wf1_ref[...], preferred_element_type=jnp.float32)
                     + bf1_ref[...], 0.0).astype(jnp.bfloat16)      # (TB, 128)
    h4 = jnp.maximum(jnp.dot(h3, wf2_ref[...], preferred_element_type=jnp.float32)
                     + bf2_ref[...], 0.0).astype(jnp.bfloat16)      # (TB, 128)
    o_ref[...] = jnp.maximum(jnp.dot(h4, wf3_ref[...], preferred_element_type=jnp.float32)
                             + bf3_ref[...], 0.0)                   # (TB, 128) f32


# ------------------------------ forward wrapper ------------------------------
def _pick_batch_tile(batch):
    """Batch tile: multiple of 16 (bf16 sublane packing), up to 256 rows (full MXU M on
    v6e/v7x), and >=2 grid steps when the batch allows so v7x's two TensorCores both get
    work under dimension_semantics=("parallel",)."""
    b16 = ((batch + 15) // 16) * 16
    if b16 <= 32:
        return b16
    tb = ((b16 // 2 + 15) // 16) * 16
    return min(256, tb)


def _const_spec(arr):
    """BlockSpec for a grid-constant (whole-array) operand.  Weights never change across
    grid steps, so request single buffering to halve their resident VMEM (matters on
    v7x's 64 MiB VMEM); fall back gracefully if pipeline_mode is unavailable."""
    idx = lambda i, _z=(0,) * arr.ndim: _z
    try:
        return pl.BlockSpec(arr.shape, idx, pipeline_mode=pl.Buffered(1))
    except (TypeError, AttributeError):
        return pl.BlockSpec(arr.shape, idx)


@jax.jit
def net_forward(kparams, x_nchw):
    """Forward pass of Net.  x: (B, 1, 28, 28) float32 -> (B, 10) float32."""
    B = x_nchw.shape[0]
    TB = _pick_batch_tile(B)
    B_pad = ((B + TB - 1) // TB) * TB

    # Flatten NCHW -> (B, 784) and feed the MXU bf16 (accumulation stays f32 in-kernel).
    xf = x_nchw.reshape(B, _H0 * _H0).astype(jnp.bfloat16)
    if B_pad != B:
        xf = jnp.pad(xf, ((0, B_pad - B), (0, 0)))

    weight_args = [kparams[k] for k in _ARG_ORDER]
    weight_specs = [_const_spec(a) for a in weight_args]

    # Advisory cost estimate for XLA's scheduler.
    flops = 2 * B_pad * (4 * _H0 * _H0 * _N1P + 4 * _N1P * _N2
                         + _N2 * _NFC + _NFC * _NFC + _NFC * _NFC)
    weight_bytes = sum(int(np.prod(a.shape)) * jnp.dtype(a.dtype).itemsize
                       for a in weight_args)
    bytes_accessed = B_pad * _H0 * _H0 * 2 + weight_bytes + B_pad * _NFC * 4

    out = pl.pallas_call(
        _lenet_fused_kernel,
        out_shape=jax.ShapeDtypeStruct((B_pad, _NFC), jnp.float32),
        grid_spec=pltpu.PrefetchScalarGridSpec(
            num_scalar_prefetch=0,
            grid=(B_pad // TB,),
            in_specs=[pl.BlockSpec((TB, _H0 * _H0), lambda i: (i, 0))] + weight_specs,
            out_specs=pl.BlockSpec((TB, _NFC), lambda i: (i, 0)),
        ),
        compiler_params=pltpu.CompilerParams(
            dimension_semantics=("parallel",),
            # Explicit scoped-VMEM budget: above v5e's 16 MiB default, below v7x's
            # 64 MiB physical.  Resident footprint (bf16 weights + tiles) is ~10-20 MiB.
            vmem_limit_bytes=48 * 1024 * 1024),
        cost_estimate=pl.CostEstimate(flops=flops, transcendentals=0,
                                      bytes_accessed=bytes_accessed),
    )(xf, *weight_args)
    return out[:B, :_NOUT]


# --------------------------- pure-JAX reference ------------------------------
def reference_forward(params, x):
    dn = ("NCHW", "OIHW", "NCHW")
    y = jax.lax.conv_general_dilated(x, params["conv1_w"], (1, 1), "VALID",
                                     dimension_numbers=dn)
    y = jnp.maximum(y + params["conv1_b"][None, :, None, None], 0.0)
    y = jax.lax.reduce_window(y, -jnp.inf, jax.lax.max,
                              (1, 1, 2, 2), (1, 1, 2, 2), "VALID")
    y = jax.lax.conv_general_dilated(y, params["conv2_w"], (1, 1), "VALID",
                                     dimension_numbers=dn)
    y = jnp.maximum(y + params["conv2_b"][None, :, None, None], 0.0)
    y = jax.lax.reduce_window(y, -jnp.inf, jax.lax.max,
                              (1, 1, 2, 2), (1, 1, 2, 2), "VALID")
    y = y.reshape(y.shape[0], -1)                    # torch .view on NCHW: (C,H,W) order
    y = jnp.maximum(y @ params["fc1_w"] + params["fc1_b"], 0.0)
    y = jnp.maximum(y @ params["fc2_w"] + params["fc2_b"], 0.0)
    y = jnp.maximum(y @ params["fc3_w"] + params["fc3_b"], 0.0)
    return y


if __name__ == "__main__":
    key = jax.random.PRNGKey(0)
    k_param, k_x = jax.random.split(key)
    params = init_params(k_param)
    kparams = prepare_kernel_params(params)          # one-time host-side weight prep

    # MNIST-shaped input (fc1 expects 256 = 16*4*4 -> input must be 28x28)
    x = jax.random.normal(k_x, (2, 1, 28, 28), jnp.float32)

    y = net_forward(kparams, x)
    y = jax.block_until_ready(y)

    assert y.shape == (2, 10), y.shape
    assert bool(jnp.all(y >= 0.0))                   # final ReLU
    y_ref = reference_forward(params, x)
    # bf16 MXU operands with f32 accumulation -> loosened (but meaningful) tolerance.
    np.testing.assert_allclose(np.asarray(y), np.asarray(y_ref), rtol=5e-2, atol=5e-2)
    print("KERNEL_OK")
</pallas_src>

<mosaic_0001>
module attributes {stable_mosaic.version = 11 : i64} {
  func.func @_lenet_fused_kernel(%arg0: i32, %arg1: memref<16x784xbf16, #tpu.memory_space<vmem>>, %arg2: memref<4x784x896xbf16, #tpu.memory_space<vmem>>, %arg3: memref<1x896xf32, #tpu.memory_space<vmem>>, %arg4: memref<4x896x256xbf16, #tpu.memory_space<vmem>>, %arg5: memref<1x256xf32, #tpu.memory_space<vmem>>, %arg6: memref<256x128xbf16, #tpu.memory_space<vmem>>, %arg7: memref<1x128xf32, #tpu.memory_space<vmem>>, %arg8: memref<128x128xbf16, #tpu.memory_space<vmem>>, %arg9: memref<1x128xf32, #tpu.memory_space<vmem>>, %arg10: memref<128x128xbf16, #tpu.memory_space<vmem>>, %arg11: memref<1x128xf32, #tpu.memory_space<vmem>>, %arg12: memref<16x128xf32, #tpu.memory_space<vmem>>) attributes {dimension_semantics = [#tpu.dimension_semantics<parallel>], iteration_bounds = array<i64: 1>, scalar_prefetch = 0 : i64, scratch_operands = 0 : i64, tpu.core_type = #tpu.core_type<tc>, window_params = [{transform_indices = @transform_0, window_bounds = array<i64: 16, 784>}, {pipeline_mode = #tpu.pipeline_mode<synchronous>, transform_indices = @transform_1, window_bounds = array<i64: 4, 784, 896>}, {pipeline_mode = #tpu.pipeline_mode<synchronous>, transform_indices = @transform_2, window_bounds = array<i64: 1, 896>}, {pipeline_mode = #tpu.pipeline_mode<synchronous>, transform_indices = @transform_3, window_bounds = array<i64: 4, 896, 256>}, {pipeline_mode = #tpu.pipeline_mode<synchronous>, transform_indices = @transform_4, window_bounds = array<i64: 1, 256>}, {pipeline_mode = #tpu.pipeline_mode<synchronous>, transform_indices = @transform_5, window_bounds = array<i64: 256, 128>}, {pipeline_mode = #tpu.pipeline_mode<synchronous>, transform_indices = @transform_6, window_bounds = array<i64: 1, 128>}, {pipeline_mode = #tpu.pipeline_mode<synchronous>, transform_indices = @transform_7, window_bounds = array<i64: 128, 128>}, {pipeline_mode = #tpu.pipeline_mode<synchronous>, transform_indices = @transform_8, window_bounds = array<i64: 1, 128>}, {pipeline_mode = #tpu.pipeline_mode<synchronous>, transform_indices = @transform_9, window_bounds = array<i64: 128, 128>}, {pipeline_mode = #tpu.pipeline_mode<synchronous>, transform_indices = @transform_10, window_bounds = array<i64: 1, 128>}, {transform_indices = @transform_11, window_bounds = array<i64: 16, 128>}]} {
    %c0 = arith.constant 0 : index
    %c0_0 = arith.constant 0 : index
    %0 = vector.load %arg1[%c0, %c0_0] : memref<16x784xbf16, #tpu.memory_space<vmem>>, vector<16x784xbf16>
    %c0_1 = arith.constant 0 : index
    %c0_2 = arith.constant 0 : index
    %c0_3 = arith.constant 0 : index
    %1 = vector.load %arg2[%c0_1, %c0_2, %c0_3] : memref<4x784x896xbf16, #tpu.memory_space<vmem>>, vector<1x784x896xbf16>
    %2 = vector.shape_cast %1 : vector<1x784x896xbf16> to vector<784x896xbf16>
    %cst = arith.constant dense<0.000000e+00> : vector<16x896xf32>
    %3 = tpu.matmul %0, %2, %cst {dimension_numbers = #tpu.dot_dimension_numbers<[1], [0], [0], [1], [0, 0, 1, 1], [], []>} : vector<16x784xbf16>, vector<784x896xbf16>, vector<16x896xf32> -> vector<16x896xf32>
    %c1 = arith.constant 1 : index
    %c0_4 = arith.constant 0 : index
    %c0_5 = arith.constant 0 : index
    %4 = vector.load %arg2[%c1, %c0_4, %c0_5] : memref<4x784x896xbf16, #tpu.memory_space<vmem>>, vector<1x784x896xbf16>
    %5 = vector.shape_cast %4 : vector<1x784x896xbf16> to vector<784x896xbf16>
    %cst_6 = arith.constant dense<0.000000e+00> : vector<16x896xf32>
    %6 = tpu.matmul %0, %5, %cst_6 {dimension_numbers = #tpu.dot_dimension_numbers<[1], [0], [0], [1], [0, 0, 1, 1], [], []>} : vector<16x784xbf16>, vector<784x896xbf16>, vector<16x896xf32> -> vector<16x896xf32>
    %7 = arith.maximumf %3, %6 : vector<16x896xf32>
    %c2 = arith.constant 2 : index
    %c0_7 = arith.constant 0 : index
    %c0_8 = arith.constant 0 : index
    %8 = vector.load %arg2[%c2, %c0_7, %c0_8] : memref<4x784x896xbf16, #tpu.memory_space<vmem>>, vector<1x784x896xbf16>
    %9 = vector.shape_cast %8 : vector<1x784x896xbf16> to vector<784x896xbf16>
    %cst_9 = arith.constant dense<0.000000e+00> : vector<16x896xf32>
    %10 = tpu.matmul %0, %9, %cst_9 {dimension_numbers = #tpu.dot_dimension_numbers<[1], [0], [0], [1], [0, 0, 1, 1], [], []>} : vector<16x784xbf16>, vector<784x896xbf16>, vector<16x896xf32> -> vector<16x896xf32>
    %11 = arith.maximumf %7, %10 : vector<16x896xf32>
    %c3 = arith.constant 3 : index
    %c0_10 = arith.constant 0 : index
    %c0_11 = arith.constant 0 : index
    %12 = vector.load %arg2[%c3, %c0_10, %c0_11] : memref<4x784x896xbf16, #tpu.memory_space<vmem>>, vector<1x784x896xbf16>
    %13 = vector.shape_cast %12 : vector<1x784x896xbf16> to vector<784x896xbf16>
    %cst_12 = arith.constant dense<0.000000e+00> : vector<16x896xf32>
    %14 = tpu.matmul %0, %13, %cst_12 {dimension_numbers = #tpu.dot_dimension_numbers<[1], [0], [0], [1], [0, 0, 1, 1], [], []>} : vector<16x784xbf16>, vector<784x896xbf16>, vector<16x896xf32> -> vector<16x896xf32>
    %15 = arith.maximumf %11, %14 : vector<16x896xf32>
    %c0_13 = arith.constant 0 : index
    %c0_14 = arith.constant 0 : index
    %16 = vector.load %arg3[%c0_13, %c0_14] : memref<1x896xf32, #tpu.memory_space<vmem>>, vector<1x896xf32>
    %17 = vector.broadcast %16 : vector<1x896xf32> to vector<16x896xf32>
    %18 = arith.addf %15, %17 : vector<16x896xf32>
    %cst_15 = arith.constant 0.000000e+00 : f32
    %19 = vector.broadcast %cst_15 : f32 to vector<16x896xf32>
    %20 = arith.maximumf %18, %19 : vector<16x896xf32>
    %21 = arith.truncf %20 : vector<16x896xf32> to vector<16x896xbf16>
    %c0_16 = arith.constant 0 : index
    %c0_17 = arith.constant 0 : index
    %c0_18 = arith.constant 0 : index
    %22 = vector.load %arg4[%c0_16, %c0_17, %c0_18] : memref<4x896x256xbf16, #tpu.memory_space<vmem>>, vector<1x896x256xbf16>
    %23 = vector.shape_cast %22 : vector<1x896x256xbf16> to vector<896x256xbf16>
    %cst_19 = arith.constant dense<0.000000e+00> : vector<16x256xf32>
    %24 = tpu.matmul %21, %23, %cst_19 {dimension_numbers = #tpu.dot_dimension_numbers<[1], [0], [0], [1], [0, 0, 1, 1], [], []>} : vector<16x896xbf16>, vector<896x256xbf16>, vector<16x256xf32> -> vector<16x256xf32>
    %c1_20 = arith.constant 1 : index
    %c0_21 = arith.constant 0 : index
    %c0_22 = arith.constant 0 : index
    %25 = vector.load %arg4[%c1_20, %c0_21, %c0_22] : memref<4x896x256xbf16, #tpu.memory_space<vmem>>, vector<1x896x256xbf16>
    %26 = vector.shape_cast %25 : vector<1x896x256xbf16> to vector<896x256xbf16>
    %cst_23 = arith.constant dense<0.000000e+00> : vector<16x256xf32>
    %27 = tpu.matmul %21, %26, %cst_23 {dimension_numbers = #tpu.dot_dimension_numbers<[1], [0], [0], [1], [0, 0, 1, 1], [], []>} : vector<16x896xbf16>, vector<896x256xbf16>, vector<16x256xf32> -> vector<16x256xf32>
    %28 = arith.maximumf %24, %27 : vector<16x256xf32>
    %c2_24 = arith.constant 2 : index
    %c0_25 = arith.constant 0 : index
    %c0_26 = arith.constant 0 : index
    %29 = vector.load %arg4[%c2_24, %c0_25, %c0_26] : memref<4x896x256xbf16, #tpu.memory_space<vmem>>, vector<1x896x256xbf16>
    %30 = vector.shape_cast %29 : vector<1x896x256xbf16> to vector<896x256xbf16>
    %cst_27 = arith.constant dense<0.000000e+00> : vector<16x256xf32>
    %31 = tpu.matmul %21, %30, %cst_27 {dimension_numbers = #tpu.dot_dimension_numbers<[1], [0], [0], [1], [0, 0, 1, 1], [], []>} : vector<16x896xbf16>, vector<896x256xbf16>, vector<16x256xf32> -> vector<16x256xf32>
    %32 = arith.maximumf %28, %31 : vector<16x256xf32>
    %c3_28 = arith.constant 3 : index
    %c0_29 = arith.constant 0 : index
    %c0_30 = arith.constant 0 : index
    %33 = vector.load %arg4[%c3_28, %c0_29, %c0_30] : memref<4x896x256xbf16, #tpu.memory_space<vmem>>, vector<1x896x256xbf16>
    %34 = vector.shape_cast %33 : vector<1x896x256xbf16> to vector<896x256xbf16>
    %cst_31 = arith.constant dense<0.000000e+00> : vector<16x256xf32>
    %35 = tpu.matmul %21, %34, %cst_31 {dimension_numbers = #tpu.dot_dimension_numbers<[1], [0], [0], [1], [0, 0, 1, 1], [], []>} : vector<16x896xbf16>, vector<896x256xbf16>, vector<16x256xf32> -> vector<16x256xf32>
    %36 = arith.maximumf %32, %35 : vector<16x256xf32>
    %c0_32 = arith.constant 0 : index
    %c0_33 = arith.constant 0 : index
    %37 = vector.load %arg5[%c0_32, %c0_33] : memref<1x256xf32, #tpu.memory_space<vmem>>, vector<1x256xf32>
    %38 = vector.broadcast %37 : vector<1x256xf32> to vector<16x256xf32>
    %39 = arith.addf %36, %38 : vector<16x256xf32>
    %cst_34 = arith.constant 0.000000e+00 : f32
    %40 = vector.broadcast %cst_34 : f32 to vector<16x256xf32>
    %41 = arith.maximumf %39, %40 : vector<16x256xf32>
    %42 = arith.truncf %41 : vector<16x256xf32> to vector<16x256xbf16>
    %c0_35 = arith.constant 0 : index
    %c0_36 = arith.constant 0 : index
    %43 = vector.load %arg6[%c0_35, %c0_36] : memref<256x128xbf16, #tpu.memory_space<vmem>>, vector<256x128xbf16>
    %cst_37 = arith.constant dense<0.000000e+00> : vector<16x128xf32>
    %44 = tpu.matmul %42, %43, %cst_37 {dimension_numbers = #tpu.dot_dimension_numbers<[1], [0], [0], [1], [0, 0, 1, 1], [], []>} : vector<16x256xbf16>, vector<256x128xbf16>, vector<16x128xf32> -> vector<16x128xf32>
    %c0_38 = arith.constant 0 : index
    %c0_39 = arith.constant 0 : index
    %45 = vector.load %arg7[%c0_38, %c0_39] : memref<1x128xf32, #tpu.memory_space<vmem>>, vector<1x128xf32>
    %46 = vector.broadcast %45 : vector<1x128xf32> to vector<16x128xf32>
    %47 = arith.addf %44, %46 : vector<16x128xf32>
    %cst_40 = arith.constant 0.000000e+00 : f32
    %48 = vector.broadcast %cst_40 : f32 to vector<16x128xf32>
    %49 = arith.maximumf %47, %48 : vector<16x128xf32>
    %50 = arith.truncf %49 : vector<16x128xf32> to vector<16x128xbf16>
    %c0_41 = arith.constant 0 : index
    %c0_42 = arith.constant 0 : index
    %51 = vector.load %arg8[%c0_41, %c0_42] : memref<128x128xbf16, #tpu.memory_space<vmem>>, vector<128x128xbf16>
    %cst_43 = arith.constant dense<0.000000e+00> : vector<16x128xf32>
    %52 = tpu.matmul %50, %51, %cst_43 {dimension_numbers = #tpu.dot_dimension_numbers<[1], [0], [0], [1], [0, 0, 1, 1], [], []>} : vector<16x128xbf16>, vector<128x128xbf16>, vector<16x128xf32> -> vector<16x128xf32>
    %c0_44 = arith.constant 0 : index
    %c0_45 = arith.constant 0 : index
    %53 = vector.load %arg9[%c0_44, %c0_45] : memref<1x128xf32, #tpu.memory_space<vmem>>, vector<1x128xf32>
    %54 = vector.broadcast %53 : vector<1x128xf32> to vector<16x128xf32>
    %55 = arith.addf %52, %54 : vector<16x128xf32>
    %cst_46 = arith.constant 0.000000e+00 : f32
    %56 = vector.broadcast %cst_46 : f32 to vector<16x128xf32>
    %57 = arith.maximumf %55, %56 : vector<16x128xf32>
    %58 = arith.truncf %57 : vector<16x128xf32> to vector<16x128xbf16>
    %c0_47 = arith.constant 0 : index
    %c0_48 = arith.constant 0 : index
    %59 = vector.load %arg10[%c0_47, %c0_48] : memref<128x128xbf16, #tpu.memory_space<vmem>>, vector<128x128xbf16>
    %cst_49 = arith.constant dense<0.000000e+00> : vector<16x128xf32>
    %60 = tpu.matmul %58, %59, %cst_49 {dimension_numbers = #tpu.dot_dimension_numbers<[1], [0], [0], [1], [0, 0, 1, 1], [], []>} : vector<16x128xbf16>, vector<128x128xbf16>, vector<16x128xf32> -> vector<16x128xf32>
    %c0_50 = arith.constant 0 : index
    %c0_51 = arith.constant 0 : index
    %61 = vector.load %arg11[%c0_50, %c0_51] : memref<1x128xf32, #tpu.memory_space<vmem>>, vector<1x128xf32>
    %62 = vector.broadcast %61 : vector<1x128xf32> to vector<16x128xf32>
    %63 = arith.addf %60, %62 : vector<16x128xf32>
    %cst_52 = arith.constant 0.000000e+00 : f32
    %64 = vector.broadcast %cst_52 : f32 to vector<16x128xf32>
    %65 = arith.maximumf %63, %64 : vector<16x128xf32>
    %c0_53 = arith.constant 0 : index
    %c0_54 = arith.constant 0 : index
    %66 = vector.load %arg12[%c0_53, %c0_54] : memref<16x128xf32, #tpu.memory_space<vmem>>, vector<16x128xf32>
    tpu.vector_store %arg12[%c0_53, %c0_54], %65 {strides = array<i32>} : memref<16x128xf32, #tpu.memory_space<vmem>>, vector<16x128xf32>,
    return
  }
  func.func @transform_0(%arg0: i32) -> (i32, i32) {
    %c0_i32 = arith.constant 0 : i32
    %c0_i32_0 = arith.constant 0 : i32
    return %arg0, %c0_i32 : i32, i32
  }
  func.func @transform_1(%arg0: i32) -> (i32, i32, i32) {
    %c0_i32 = arith.constant 0 : i32
    %c0_i32_0 = arith.constant 0 : i32
    %c0_i32_1 = arith.constant 0 : i32
    %c0_i32_2 = arith.constant 0 : i32
    return %c0_i32, %c0_i32_0, %c0_i32_1 : i32, i32, i32
  }
  func.func @transform_2(%arg0: i32) -> (i32, i32) {
    %c0_i32 = arith.constant 0 : i32
    %c0_i32_0 = arith.constant 0 : i32
    %c0_i32_1 = arith.constant 0 : i32
    return %c0_i32, %c0_i32_0 : i32, i32
  }
  func.func @transform_3(%arg0: i32) -> (i32, i32, i32) {
    %c0_i32 = arith.constant 0 : i32
    %c0_i32_0 = arith.constant 0 : i32
    %c0_i32_1 = arith.constant 0 : i32
    %c0_i32_2 = arith.constant 0 : i32
    return %c0_i32, %c0_i32_0, %c0_i32_1 : i32, i32, i32
  }
  func.func @transform_4(%arg0: i32) -> (i32, i32) {
    %c0_i32 = arith.constant 0 : i32
    %c0_i32_0 = arith.constant 0 : i32
    %c0_i32_1 = arith.constant 0 : i32
    return %c0_i32, %c0_i32_0 : i32, i32
  }
  func.func @transform_5(%arg0: i32) -> (i32, i32) {
    %c0_i32 = arith.constant 0 : i32
    %c0_i32_0 = arith.constant 0 : i32
    %c0_i32_1 = arith.constant 0 : i32
    return %c0_i32, %c0_i32_0 : i32, i32
  }
  func.func @transform_6(%arg0: i32) -> (i32, i32) {
    %c0_i32 = arith.constant 0 : i32
    %c0_i32_0 = arith.constant 0 : i32
    %c0_i32_1 = arith.constant 0 : i32
    return %c0_i32, %c0_i32_0 : i32, i32
  }
  func.func @transform_7(%arg0: i32) -> (i32, i32) {
    %c0_i32 = arith.constant 0 : i32
    %c0_i32_0 = arith.constant 0 : i32
    %c0_i32_1 = arith.constant 0 : i32
    return %c0_i32, %c0_i32_0 : i32, i32
  }
  func.func @transform_8(%arg0: i32) -> (i32, i32) {
    %c0_i32 = arith.constant 0 : i32
    %c0_i32_0 = arith.constant 0 : i32
    %c0_i32_1 = arith.constant 0 : i32
    return %c0_i32, %c0_i32_0 : i32, i32
  }
  func.func @transform_9(%arg0: i32) -> (i32, i32) {
    %c0_i32 = arith.constant 0 : i32
    %c0_i32_0 = arith.constant 0 : i32
    %c0_i32_1 = arith.constant 0 : i32
    return %c0_i32, %c0_i32_0 : i32, i32
  }
  func.func @transform_10(%arg0: i32) -> (i32, i32) {
    %c0_i32 = arith.constant 0 : i32
    %c0_i32_0 = arith.constant 0 : i32
    %c0_i32_1 = arith.constant 0 : i32
    return %c0_i32, %c0_i32_0 : i32, i32
  }
  func.func @transform_11(%arg0: i32) -> (i32, i32) {
    %c0_i32 = arith.constant 0 : i32
    %c0_i32_0 = arith.constant 0 : i32
    return %arg0, %c0_i32 : i32, i32
  }
}

</mosaic_0001>

<bundles_post_ra>
// kernel: net_forward.1
= control target key start
LH: loop header
LB: loop body
LE: loop exit
PB: predicated region body
PF: predicated region fallthrough
CT: control target
= control target key end

     0   :  { %16 = vsyncpa [#allocation3], 0  ;;  %s21843_s0 = inlined_call_operand.vmem [shape: bf16[16,784], index: 0, kind: input, shape index: {}]   ;;  %s21844_s1 = inlined_call_operand.hbm [shape: bf16[4,784,896], index: 1, kind: input, shape index: {}]   ;;  %s21845_s2 = inlined_call_operand.hbm [shape: f32[1,896], index: 2, kind: input, shape index: {}]   ;;  %s21846_s3 = inlined_call_operand.hbm [shape: bf16[4,896,256], index: 3, kind: input, shape index: {}]   ;;  %s21847_s4 = inlined_call_operand.hbm [shape: f32[1,256], index: 4, kind: input, shape index: {}]   ;;  %s21848_s5 = inlined_call_operand.hbm [shape: bf16[256,128], index: 5, kind: input, shape index: {}]   ;;  %s21849_s6 = inlined_call_operand.hbm [shape: f32[1,128], index: 6, kind: input, shape index: {}]   ;;  %s21850_s7 = inlined_call_operand.hbm [shape: bf16[128,128], index: 7, kind: input, shape index: {}]   ;;  %s21851_s8 = inlined_call_operand.hbm [shape: f32[1,128], index: 8, kind: input, shape index: {}]   ;;  %s21852_s9 = inlined_call_operand.hbm [shape: bf16[128,128], index: 9, kind: input, shape index: {}]   ;;  %s21853_s10 = inlined_call_operand.hbm [shape: f32[1,128], index: 10, kind: input, shape index: {}]   ;;  %s21854_s11 = inlined_call_operand.vmem [shape: f32[16,128], index: 11, kind: output, shape index: {}]  }
   0x1   :  { %17 = vsyncpa [#allocation5], 0 }
   0x2   :  { %18 = vsyncpa [#allocation8], 0 }
   0x3   :  { %19 = vsyncpa [#allocation11], 0 }
   0x4   :  { %20 = vsyncpa [#allocation14], 0 }
   0x5   :  { %21 = vsyncpa [#allocation17], 0  ;;  %s20922_s17 = smov [#allocation4]   ;;  %s20923_s19 = smov [#allocation7]  }
   0x6   :  { %s42_s18 = sshll.u32 %s20922_s17, 4  ;;  %s64_s20 = sshll.u32 %s20923_s19, 4  ;;  %s43_s18 = int_to_ptr.vmem [resolvable:$true] %s42_s18  ;;  %s65_s20 = int_to_ptr.vmem [resolvable:$true] %s64_s20 }
   0x7   :  { %s20690_s23 = scalar_lea.hbm %s21845_s2, 112 }
   0x8   :  { %p20691_p0 = scmp.ne.s32.totalorder %s21845_s2, %s20690_s23  ;;  %p20694_p1 = scmp.lt.u32.totalorder %s20690_s23, %s21845_s2 }
   0xa   :  { %p20696_p2 = pnand %p20694_p1, %p20691_p0 }
   0xc   :  { %20699 = shalt.err (!%p20696_p2)
}
   0xd   :  { %s20700_s28 = scalar_lea.vmem %s43_s18, 112  ;;  %s20704_s29 = scalar_lea.vmem %s43_s18, 128 }
   0xe   :  { %p20701_p3 = scmp.ne.s32.totalorder %s43_s18, %s20700_s28  ;;  %p20705_p4 = scmp.lt.s32.totalorder %s43_s18, %s43_s18 }
   0xf   :  { %p20706_p5 = scmp.lt.s32.totalorder %s20704_s29, %s20700_s28 }
  0x11   :  { %p20707_p6 = por %p20706_p5, %p20705_p4 }
  0x13   :  { %p20708_p7 = pnand %p20707_p6, %p20701_p3 }
  0x15   :  { %20711 = shalt.err (!%p20708_p7)
}
  0x16   :  { %45 = dma.hbm_to_vmem [thread:$0]  %s21845_s2, 112, %s43_s18, [#allocation5]  }
  0x17   :  { %s20712_s15 = scalar_lea.hbm %s21847_s4, 32 }
  0x18   :  { %p20713_p8 = scmp.ne.s32.totalorder %s21847_s4, %s20712_s15  ;;  %p20716_p9 = scmp.lt.u32.totalorder %s20712_s15, %s21847_s4 }
  0x1a   :  { %p20718_p10 = pnand %p20716_p9, %p20713_p8 }
  0x1c   :  { %20721 = shalt.err (!%p20718_p10)
}
  0x1d   :  { %s20722_s22 = scalar_lea.vmem %s65_s20, 32  ;;  %p20727_p12 = scmp.lt.s32.totalorder %s65_s20, %s65_s20 }
  0x1e   :  { %p20723_p11 = scmp.ne.s32.totalorder %s65_s20, %s20722_s22  ;;  %p20728_p13 = scmp.lt.s32.totalorder %s20722_s22, %s20722_s22 }
  0x20   :  { %p20729_p0 = por %p20728_p13, %p20727_p12 }
  0x22   :  { %p20730_p1 = pnand %p20729_p0, %p20723_p11 }
  0x24   :  { %20733 = shalt.err (!%p20730_p1)
}
  0x25   :  { %67 = dma.hbm_to_vmem [thread:$0]  %s21847_s4, 32, %s65_s20, [#allocation8]  }
  0x26   :  { %s20924_s23 = smov [#allocation10]   ;;  %s20925_s25 = smov [#allocation13]  }
  0x27   :  { %s86_s24 = sshll.u32 %s20924_s23, 4  ;;  %s108_s26 = sshll.u32 %s20925_s25, 4  ;;  %s87_s24 = int_to_ptr.vmem [resolvable:$true] %s86_s24  ;;  %s109_s26 = int_to_ptr.vmem [resolvable:$true] %s108_s26 }
  0x28   :  { %s20734_s29 = scalar_lea.hbm %s21849_s6, 16 }
  0x29   :  { %p20735_p2 = scmp.ne.s32.totalorder %s21849_s6, %s20734_s29  ;;  %p20738_p3 = scmp.lt.u32.totalorder %s20734_s29, %s21849_s6 }
  0x2b   :  { %p20740_p4 = pnand %p20738_p3, %p20735_p2 }
  0x2d   :  { %20743 = shalt.err (!%p20740_p4)
}
  0x2e   :  { %s20744_s4 = scalar_lea.vmem %s87_s24, 16  ;;  %s20748_s20 = scalar_lea.vmem %s87_s24, 32 }
  0x2f   :  { %p20745_p5 = scmp.ne.s32.totalorder %s87_s24, %s20744_s4  ;;  %p20749_p6 = scmp.lt.s32.totalorder %s87_s24, %s87_s24 }
  0x30   :  { %p20750_p7 = scmp.lt.s32.totalorder %s20748_s20, %s20744_s4 }
  0x32   :  { %p20751_p8 = por %p20750_p7, %p20749_p6 }
  0x34   :  { %p20752_p9 = pnand %p20751_p8, %p20745_p5 }
  0x36   :  { %20755 = shalt.err (!%p20752_p9)
}
  0x37   :  { %89 = dma.hbm_to_vmem [thread:$0]  %s21849_s6, 16, %s87_s24, [#allocation11]  }
  0x38   :  { %s20756_s21 = scalar_lea.hbm %s21851_s8, 16 }
  0x39   :  { %p20757_p10 = scmp.ne.s32.totalorder %s21851_s8, %s20756_s21  ;;  %p20760_p11 = scmp.lt.u32.totalorder %s20756_s21, %s21851_s8 }
  0x3b   :  { %p20762_p12 = pnand %p20760_p11, %p20757_p10 }
  0x3d   :  { %20765 = shalt.err (!%p20762_p12)
}
  0x3e   :  { %s20766_s25 = scalar_lea.vmem %s109_s26, 16  ;;  %s20770_s27 = scalar_lea.vmem %s109_s26, 32 }
  0x3f   :  { %p20767_p13 = scmp.ne.s32.totalorder %s109_s26, %s20766_s25  ;;  %p20771_p0 = scmp.lt.s32.totalorder %s109_s26, %s109_s26 }
  0x40   :  { %p20772_p1 = scmp.lt.s32.totalorder %s20770_s27, %s20766_s25 }
  0x42   :  { %p20773_p2 = por %p20772_p1, %p20771_p0 }
  0x44   :  { %p20774_p3 = pnand %p20773_p2, %p20767_p13 }
  0x46   :  { %20777 = shalt.err (!%p20774_p3)
}
  0x47   :  { %111 = dma.hbm_to_vmem [thread:$0]  %s21851_s8, 16, %s109_s26, [#allocation14]  }
  0x48   :  { %s20926_s28 = smov [#allocation2]   ;;  %s20778_s13 = scalar_lea.hbm %s21844_s1, 175616 }
  0x49   :  { %s29_s29 = sshll.u32 %s20926_s28, 4  ;;  %p20779_p4 = scmp.ne.s32.totalorder %s21844_s1, %s20778_s13  ;;  %s30_s29 = int_to_ptr.vmem [resolvable:$true] %s29_s29 }
  0x4a   :  { %p20782_p5 = scmp.lt.u32.totalorder %s20778_s13, %s21844_s1 }
  0x4c   :  { %p20784_p6 = pnand %p20782_p5, %p20779_p4 }
  0x4e   :  { %20787 = shalt.err (!%p20784_p6)
}
  0x4f   :  { %s20788_s16 = scalar_lea.vmem %s30_s29, 175616  ;;  %p20793_p8 = scmp.lt.s32.totalorder %s30_s29, %s30_s29 }
  0x50   :  { %p20789_p7 = scmp.ne.s32.totalorder %s30_s29, %s20788_s16  ;;  %p20794_p9 = scmp.lt.s32.totalorder %s20788_s16, %s20788_s16 }
  0x52   :  { %p20795_p10 = por %p20794_p9, %p20793_p8 }
  0x54   :  { %p20796_p11 = pnand %p20795_p10, %p20789_p7 }
  0x56   :  { %20799 = shalt.err (!%p20796_p11)
}
  0x57   :  { %s20927_s8 = smov 448   ;;  %s20928_s26 = smov 28  }
  0x58   :  { %35 = dma.hbm_to_vmem [thread:$0]  %s21844_s1, 175616, %s30_s29, [#allocation3], %s20927_s8, %s20927_s8, %s20928_s26  }
  0x59   :  { %s20929_s21 = smov [#allocation6]   ;;  %s20800_s23 = scalar_lea.hbm %s21846_s3, 57344 }
  0x5a   :  { %s51_s22 = sshll.u32 %s20929_s21, 4  ;;  %p20801_p12 = scmp.ne.s32.totalorder %s21846_s3, %s20800_s23  ;;  %s52_s22 = int_to_ptr.vmem [resolvable:$true] %s51_s22 }
  0x5b   :  { %p20804_p13 = scmp.lt.u32.totalorder %s20800_s23, %s21846_s3 }
  0x5d   :  { %p20806_p0 = pnand %p20804_p13, %p20801_p12 }
  0x5f   :  { %20809 = shalt.err (!%p20806_p0)
}
  0x60   :  { %s20810_s28 = scalar_lea.vmem %s52_s22, 57344  ;;  %p20815_p2 = scmp.lt.s32.totalorder %s52_s22, %s52_s22 }
  0x61   :  { %p20811_p1 = scmp.ne.s32.totalorder %s52_s22, %s20810_s28  ;;  %p20816_p3 = scmp.lt.s32.totalorder %s20810_s28, %s20810_s28 }
  0x63   :  { %p20817_p4 = por %p20816_p3, %p20815_p2 }
  0x65   :  { %p20818_p5 = pnand %p20817_p4, %p20811_p1 }
  0x67   :  { %20821 = shalt.err (!%p20818_p5)
}
  0x68   :  { %s20930_s1 = smov 128   ;;  %s20931_s29 = smov 8  }
  0x69   :  { %57 = dma.hbm_to_vmem [thread:$0]  %s21846_s3, 57344, %s52_s22, [#allocation5], %s20930_s1, %s20930_s1, %s20931_s29  }
  0x6a   :  { %s20932_s13 = smov [#allocation9]   ;;  %s20822_s15 = scalar_lea.hbm %s21848_s5, 2048 }
  0x6b   :  { %s73_s14 = sshll.u32 %s20932_s13, 4  ;;  %p20823_p6 = scmp.ne.s32.totalorder %s21848_s5, %s20822_s15  ;;  %s74_s14 = int_to_ptr.vmem [resolvable:$true] %s73_s14 }
  0x6c   :  { %p20826_p7 = scmp.lt.u32.totalorder %s20822_s15, %s21848_s5 }
  0x6e   :  { %p20828_p8 = pnand %p20826_p7, %p20823_p6 }
  0x70   :  { %20831 = shalt.err (!%p20828_p8)
}
  0x71   :  { %s20832_s19 = scalar_lea.vmem %s74_s14, 2048  ;;  %p20837_p10 = scmp.lt.s32.totalorder %s74_s14, %s74_s14 }
  0x72   :  { %p20833_p9 = scmp.ne.s32.totalorder %s74_s14, %s20832_s19  ;;  %p20838_p11 = scmp.lt.s32.totalorder %s20832_s19, %s20832_s19 }
  0x74   :  { %p20839_p12 = por %p20838_p11, %p20837_p10 }
  0x76   :  { %p20840_p13 = pnand %p20839_p12, %p20833_p9 }
  0x78   :  { %20843 = shalt.err (!%p20840_p13)
}
  0x79   :  { %s20933_s3 = smov 64   ;;  %s20934_s21 = smov 4  }
  0x7a   :  { %79 = dma.hbm_to_vmem [thread:$0]  %s21848_s5, 2048, %s74_s14, [#allocation8], %s20933_s3, %s20933_s3, %s20934_s21  }
  0x7b   :  { %s20935_s18 = smov [#allocation12]   ;;  %s20936_s25 = smov [#allocation15]  }
  0x7c   :  { %s95_s23 = sshll.u32 %s20935_s18, 4  ;;  %s117_s27 = sshll.u32 %s20936_s25, 4  ;;  %s96_s23 = int_to_ptr.vmem [resolvable:$true] %s95_s23  ;;  %s118_s27 = int_to_ptr.vmem [resolvable:$true] %s117_s27 }
  0x7d   :  { %s20844_s28 = scalar_lea.hbm %s21850_s7, 1024 }
  0x7e   :  { %p20845_p0 = scmp.ne.s32.totalorder %s21850_s7, %s20844_s28  ;;  %p20848_p1 = scmp.lt.u32.totalorder %s20844_s28, %s21850_s7 }
  0x80   :  { %p20850_p2 = pnand %p20848_p1, %p20845_p0 }
  0x82   :  { %20853 = shalt.err (!%p20850_p2)
}
  0x83   :  { %s20854_s5 = scalar_lea.vmem %s96_s23, 1024  ;;  %p20859_p4 = scmp.lt.s32.totalorder %s96_s23, %s96_s23 }
  0x84   :  { %p20855_p3 = scmp.ne.s32.totalorder %s96_s23, %s20854_s5  ;;  %p20860_p5 = scmp.lt.s32.totalorder %s20854_s5, %s20854_s5 }
  0x86   :  { %p20861_p6 = por %p20860_p5, %p20859_p4 }
  0x88   :  { %p20862_p7 = pnand %p20861_p6, %p20855_p3 }
  0x8a   :  { %20865 = shalt.err (!%p20862_p7)
}
  0x8b   :  { %101 = dma.hbm_to_vmem [thread:$0]  %s21850_s7, 1024, %s96_s23, [#allocation11], %s20933_s3, %s20933_s3, %s20934_s21  }
  0x8c   :  { %s20866_s15 = scalar_lea.hbm %s21852_s9, 1024 }
  0x8d   :  { %p20867_p8 = scmp.ne.s32.totalorder %s21852_s9, %s20866_s15  ;;  %p20870_p9 = scmp.lt.u32.totalorder %s20866_s15, %s21852_s9 }
  0x8f   :  { %p20872_p10 = pnand %p20870_p9, %p20867_p8 }
  0x91   :  { %20875 = shalt.err (!%p20872_p10)
}
  0x92   :  { %s20876_s19 = scalar_lea.vmem %s118_s27, 1024  ;;  %p20881_p12 = scmp.lt.s32.totalorder %s118_s27, %s118_s27 }
  0x93   :  { %p20877_p11 = scmp.ne.s32.totalorder %s118_s27, %s20876_s19  ;;  %p20882_p13 = scmp.lt.s32.totalorder %s20876_s19, %s20876_s19 }
  0x95   :  { %p20883_p0 = por %p20882_p13, %p20881_p12 }
  0x97   :  { %p20884_p1 = pnand %p20883_p0, %p20877_p11 }
  0x99   :  { %20887 = shalt.err (!%p20884_p1)
}
  0x9a   :  { %123 = dma.hbm_to_vmem [thread:$0]  %s21852_s9, 1024, %s118_s27, [#allocation14], %s20933_s3, %s20933_s3, %s20934_s21  }
  0x9b   :  { %s20937_s2 = smov [#allocation16]   ;;  %s20888_s6 = scalar_lea.hbm %s21853_s10, 16 }
  0x9c   :  { %s130_s18 = sshll.u32 %s20937_s2, 4  ;;  %p20889_p2 = scmp.ne.s32.totalorder %s21853_s10, %s20888_s6  ;;  %s131_s18 = int_to_ptr.vmem [resolvable:$true] %s130_s18 }
  0x9d   :  { %p20892_p3 = scmp.lt.u32.totalorder %s20888_s6, %s21853_s10 }
  0x9f   :  { %p20894_p4 = pnand %p20892_p3, %p20889_p2 }
  0xa1   :  { %20897 = shalt.err (!%p20894_p4)
}
  0xa2   :  { %s20898_s30 = scalar_lea.vmem %s131_s18, 16  ;;  %s20902_s9 = scalar_lea.vmem %s131_s18, 32 }
  0xa3   :  { %p20899_p5 = scmp.ne.s32.totalorder %s131_s18, %s20898_s30  ;;  %p20903_p6 = scmp.lt.s32.totalorder %s131_s18, %s131_s18 }
  0xa4   :  { %p20904_p7 = scmp.lt.s32.totalorder %s20902_s9, %s20898_s30 }
  0xa6   :  { %p20905_p8 = por %p20904_p7, %p20903_p6 }
  0xa8   :  { %p20906_p9 = pnand %p20905_p8, %p20899_p5 }
  0xaa   :  { %20909 = shalt.err (!%p20906_p9)
}
  0xab   :  { %133 = dma.hbm_to_vmem [thread:$0]  %s21853_s10, 16, %s131_s18, [#allocation17]  }
  0xac   :  { %20910 = dma.done.wait [#allocation3], 175616  }
  0xad   :  { %20911 = vsyncadd [#allocation3], 4294791680 }
  0xae   :  { %20912 = dma.done.wait [#allocation5], 57456  }
  0xaf   :  { %20913 = vsyncadd [#allocation5], 4294909840 }
  0xb0   :  { %20914 = dma.done.wait [#allocation8], 2080  }
  0xb1   :  { %20915 = vsyncadd [#allocation8], 4294965216 }
  0xb2   :  { %20916 = dma.done.wait [#allocation11], 1040  }
  0xb3   :  { %20917 = vsyncadd [#allocation11], 4294966256 }
  0xb4   :  { %20918 = dma.done.wait [#allocation14], 1040  }
  0xb5   :  { %20919 = vsyncadd [#allocation14], 4294966256 }
  0xb6   :  { %20920 = dma.done.wait [#allocation17], 16  }
  0xb7   :  { %20921 = vsyncadd [#allocation17], 4294967280  ;;  %v20938_v0 = vmov 0   ;;  %v17971_v1 = vld [vmem:[#allocation2 + $0x4] ss:$28 sps:$4 sm:$0xff]   ;;  %vm2364_vm0 = vcmask 130048  }
  0xb8   :  { %2529 = vmatprep.mubr.bf16.mxu1 %v20938_v0  ;;  %v17973_v2 = vld [vmem:[#allocation2 + $0xa84] ss:$28 sps:$4 sm:$0xff]   ;;  %2368 = vmatprep.subr.bf16.mxu0 %v17971_v1  ;;  %v17977_v5 = vld [vmem:[#allocation2 + $0x3c] ss:$28 sps:$4 sm:$0xff]   ;;  %v17982_v8 = vld [vmem:[#allocation2 + $0xc] ss:$28 sps:$4 sm:$0xff]  }
  0xb9   :  { %v17975_v3 = vld [vmem:[#allocation2] ss:$28 sps:$4 sm:$0xff]   ;;  %2497 = vmatprep.subr.bf16.mxu1 %v17973_v2  ;;  %v17979_v6 = vld [vmem:[%s21843_s0 + $0x18] ss:$28 sps:$4 sm:$0xff]   ;;  %v17980_v7 = vld [vmem:[#allocation2 + $0x8] ss:$28 sps:$4 sm:$0xff]  }
  0xba   :  { %v17976_v4 = vld [vmem:[#allocation2 + $0xa80] ss:$28 sps:$4 sm:$0xff]   ;;  %2369 = vmatpush1.bf16.msra.mxu0 %v17975_v3  ;;  %v17983_v9 = vld [vmem:[#allocation2 + $0x38] ss:$28 sps:$4 sm:$0xff]   ;;  %v17989_v13 = vld [vmem:[#allocation2 + $0x70] ss:$28 sps:$4 sm:$0xff]  }
  0xbb   :  { %2498 = vmatpush1.bf16.msra.mxu1 %v17976_v4  ;;  %2370 = vmatprep.subr.bf16.mxu0 %v17977_v5  ;;  %v17984_v10 = vld [vmem:[#allocation2 + $0x74] ss:$28 sps:$4 sm:$0xff]   ;;  %v17986_v11 = vld [vmem:[#allocation2 + $0x40] ss:$28 sps:$4 sm:$0xff]   ;;  %v17990_v14 = vld [vmem:[#allocation2 + $0xac] ss:$28 sps:$4 sm:$0xff]  }
  0xbc   :  { %2540 = vmatprep.subr.bf16.mxu1 %v17982_v8  ;;  %v17988_v12 = vld [vmem:[#allocation2 + $0x44] ss:$28 sps:$4 sm:$0xff]   ;;  %v17992_v15 = vld [vmem:[#allocation2 + $0x78] ss:$28 sps:$4 sm:$0xff]   ;;  %v17998_v20 = vld [vmem:[#allocation2 + $0xb0] ss:$28 sps:$4 sm:$0xff]  }
  0xbd   :  { %v17994_v16 = vld [vmem:[#allocation2 + $0x7c] ss:$28 sps:$4 sm:$0xff]   ;;  %v17995_v17 = vld [vmem:[#allocation2 + $0xa8] ss:$28 sps:$4 sm:$0xff]   ;;  %v18000_v19 = vld [vmem:[#allocation2 + $0xb4] ss:$28 sps:$4 sm:$0xff]  }
  0xbe   :  { %15856 = vmatmul.mubr.msk.bf16.vlgmr.msra.gmra.mrb[0].mxu1 %vm2364_vm0, %v17979_v6  ;;  %2371 = vmatpush1.bf16.msra.mxu0 %v17983_v9  ;;  %v17996_v18 = vld [vmem:[#allocation2 + $0xe4] ss:$28 sps:$4 sm:$0xff]   ;;  %v18002_v22 = vld [vmem:[#allocation2 + $0x11c] ss:$28 sps:$4 sm:$0xff]   ;;  %v18006_v23 = vld [vmem:[#allocation2 + $0xec] ss:$28 sps:$4 sm:$0xff]  }
  0xbf   :  { %2541 = vmatpush1.bf16.msra.mxu1 %v17980_v7  ;;  %2372 = vmatprep.subr.bf16.mxu0 %v17984_v10  ;;  %v18001_v21 = vld [vmem:[#allocation2 + $0xe0] ss:$28 sps:$4 sm:$0xff]   ;;  %v18004_v24 = vld [vmem:[#allocation2 + $0xe8] ss:$28 sps:$4 sm:$0xff]   ;;  %v18007_v25 = vld [vmem:[#allocation2 + $0x118] ss:$28 sps:$4 sm:$0xff]  }
  0xc0   :  { %2542 = vmatprep.subr.bf16.mxu1 %v17988_v12  ;;  %v18008_v26 = vld [vmem:[#allocation2 + $0x154] ss:$28 sps:$4 sm:$0xff]   ;;  %v18012_v27 = vld [vmem:[#allocation2 + $0x124] ss:$28 sps:$4 sm:$0xff]   ;;  %v18014_v30 = vld [vmem:[#allocation2 + $0x18c] ss:$28 sps:$4 sm:$0xff]  }
  0xc1   :  { %v18010_v28 = vld [vmem:[#allocation2 + $0x120] ss:$28 sps:$4 sm:$0xff]   ;;  %v18013_v29 = vld [vmem:[#allocation2 + $0x150] ss:$28 sps:$4 sm:$0xff]   ;;  %v18016_v32 = vld [vmem:[#allocation2 + $0x158] ss:$28 sps:$4 sm:$0xff]  }
  0xc2   :  { %2373 = vmatpush1.bf16.msra.mxu0 %v17989_v13  ;;  %v18018_v31 = vld [vmem:[#allocation2 + $0x15c] ss:$28 sps:$4 sm:$0xff]   ;;  %v18019_v33 = vld [vmem:[#allocation2 + $0x188] ss:$28 sps:$4 sm:$0xff]   ;;  %v18024_v35 = vld [vmem:[#allocation2 + $0x194] ss:$28 sps:$4 sm:$0xff]  }
  0xc3   :  { %2543 = vmatpush1.bf16.msra.mxu1 %v17986_v11  ;;  %2374 = vmatprep.subr.bf16.mxu0 %v17990_v14  ;;  %v18020_v34 = vld [vmem:[#allocation2 + $0x1c4] ss:$28 sps:$4 sm:$0xff]   ;;  %v18022_v36 = vld [vmem:[#allocation2 + $0x190] ss:$28 sps:$4 sm:$0xff]   ;;  %v18026_v38 = vld [vmem:[#allocation2 + $0x1fc] ss:$28 sps:$4 sm:$0xff]  }
  0xc4   :  { %2544 = vmatprep.subr.bf16.mxu1 %v17994_v16  ;;  %v18025_v37 = vld [vmem:[#allocation2 + $0x1c0] ss:$28 sps:$4 sm:$0xff]   ;;  %v18030_v39 = vld [vmem:[#allocation2 + $0x1cc] ss:$28 sps:$4 sm:$0xff]   ;;  %v18031_v41 = vld [vmem:[#allocation2 + $0x1f8] ss:$28 sps:$4 sm:$0xff]  }
  0xc5   :  { %v18028_v40 = vld [vmem:[#allocation2 + $0x1c8] ss:$28 sps:$4 sm:$0xff]   ;;  %v18032_v42 = vld [vmem:[#allocation2 + $0x234] ss:$28 sps:$4 sm:$0xff]   ;;  %v18034_v44 = vld [vmem:[#allocation2 + $0x200] ss:$28 sps:$4 sm:$0xff]  }
  0xc6   :  { %2375 = vmatpush1.bf16.msra.mxu0 %v17995_v17  ;;  %v18036_v43 = vld [vmem:[#allocation2 + $0x204] ss:$28 sps:$4 sm:$0xff]   ;;  %v18037_v45 = vld [vmem:[#allocation2 + $0x230] ss:$28 sps:$4 sm:$0xff]   ;;  %v18042_v47 = vld [vmem:[#allocation2 + $0x23c] ss:$28 sps:$4 sm:$0xff]  }
  0xc7   :  { %2545 = vmatpush1.bf16.msra.mxu1 %v17992_v15  ;;  %2376 = vmatprep.subr.bf16.mxu0 %v17996_v18  ;;  %v18038_v46 = vld [vmem:[#allocation2 + $0x26c] ss:$28 sps:$4 sm:$0xff]   ;;  %v18040_v48 = vld [vmem:[#allocation2 + $0x238] ss:$28 sps:$4 sm:$0xff]   ;;  %v18068_v50 = vld [vmem:[%s21843_s0 + $0x4] ss:$28 sps:$4 sm:$0xff]  }
  0xc8   :  { %2546 = vmatprep.subr.bf16.mxu1 %v18000_v19  ;;  %v18043_v49 = vld [vmem:[#allocation2 + $0x268] ss:$28 sps:$4 sm:$0xff]   ;;  %v18048_v52 = vld [vmem:[#allocation2 + $0x274] ss:$28 sps:$4 sm:$0xff]   ;;  %2400 = vmatprep.mubr.bf16.mxu0 %v18068_v50  ;;  %v18049_v54 = vld [vmem:[#allocation2 + $0x2a0] ss:$28 sps:$4 sm:$0xff]  }
  0xc9   :  { %v18044_v51 = vld [vmem:[#allocation2 + $0x2a4] ss:$28 sps:$4 sm:$0xff]   ;;  %2572 = vmatprep.mubr.bf16.mxu1 %v18068_v50  ;;  %v18046_v53 = vld [vmem:[#allocation2 + $0x270] ss:$28 sps:$4 sm:$0xff]   ;;  %v18050_v55 = vld [vmem:[#allocation2 + $0x2dc] ss:$28 sps:$4 sm:$0xff]  }
  0xca   :  { %2377 = vmatpush1.bf16.msra.mxu0 %v18001_v21  ;;  %v18054_v56 = vld [vmem:[#allocation2 + $0x2ac] ss:$28 sps:$4 sm:$0xff]   ;;  %v18055_v58 = vld [vmem:[#allocation2 + $0x2d8] ss:$28 sps:$4 sm:$0xff]   ;;  %v18060_v60 = vld [vmem:[#allocation2 + $0x2e4] ss:$28 sps:$4 sm:$0xff]  }
  0xcb   :  { %2547 = vmatpush1.bf16.msra.mxu1 %v17998_v20  ;;  %2378 = vmatprep.subr.bf16.mxu0 %v18002_v22  ;;  %v18052_v57 = vld [vmem:[#allocation2 + $0x2a8] ss:$28 sps:$4 sm:$0xff]   ;;  %v18056_v59 = vld [vmem:[#allocation2 + $0x314] ss:$28 sps:$4 sm:$0xff]   ;;  %v18058_v61 = vld [vmem:[#allocation2 + $0x2e0] ss:$28 sps:$4 sm:$0xff]  }
  0xcc   :  { %2548 = vmatprep.subr.bf16.mxu1 %v18006_v23  ;;  %v18061_v62 = vld [vmem:[#allocation2 + $0x310] ss:$28 sps:$4 sm:$0xff]   ;;  %v18066_v1 = vld [vmem:[#allocation2 + $0x31c] ss:$28 sps:$4 sm:$0xff]   ;;  %v18067_v3 = vld [vmem:[#allocation2 + $0x348] ss:$28 sps:$4 sm:$0xff]  }
  0xcd   :  { %v18062_v63 = vld [vmem:[#allocation2 + $0x34c] ss:$28 sps:$4 sm:$0xff]   ;;  %v18064_v2 = vld [vmem:[#allocation2 + $0x318] ss:$28 sps:$4 sm:$0xff]   ;;  %v18072_v4 = vld [vmem:[#allocation2 + $0x384] ss:$28 sps:$4 sm:$0xff]  }
  0xce   :  { %2379 = vmatpush1.bf16.msra.mxu0 %v18007_v25  ;;  %v18075_v5 = vld [vmem:[#allocation2 + $0x354] ss:$28 sps:$4 sm:$0xff]   ;;  %v18070_v6 = vld [vmem:[#allocation2 + $0x380] ss:$28 sps:$4 sm:$0xff]   ;;  %v18082_v10 = vld [vmem:[#allocation2 + $0x38c] ss:$28 sps:$4 sm:$0xff]  }
  0xcf   :  { %2549 = vmatpush1.bf16.msra.mxu1 %v18004_v24  ;;  %2380 = vmatprep.subr.bf16.mxu0 %v18008_v26  ;;  %v18076_v7 = vld [vmem:[%s21843_s0] ss:$28 sps:$4 sm:$0xff]   ;;  %v18073_v8 = vld [vmem:[#allocation2 + $0x350] ss:$28 sps:$4 sm:$0xff]   ;;  %v18077_v11 = vld [vmem:[#allocation2 + $0x3b8] ss:$28 sps:$4 sm:$0xff]  }
  0xd0   :  { %2550 = vmatprep.subr.bf16.mxu1 %v18012_v27  ;;  %v18079_v9 = vld [vmem:[#allocation2 + $0x3bc] ss:$28 sps:$4 sm:$0xff]   ;;  %v18080_v12 = vld [vmem:[#allocation2 + $0x388] ss:$28 sps:$4 sm:$0xff]   ;;  %v18085_v13 = vld [vmem:[#allocation2 + $0x3f4] ss:$28 sps:$4 sm:$0xff]  }
  0xd1   :  { %v18088_v14 = vld [vmem:[#allocation2 + $0x3c4] ss:$28 sps:$4 sm:$0xff]   ;;  %v18083_v15 = vld [vmem:[#allocation2 + $0x3f0] ss:$28 sps:$4 sm:$0xff]   ;;  %v18094_v18 = vld [vmem:[#allocation2 + $0x3fc] ss:$28 sps:$4 sm:$0xff]  }
  0xd2   :  { %2381 = vmatpush1.bf16.msra.mxu0 %v18013_v29  ;;  %v18086_v16 = vld [vmem:[#allocation2 + $0x3c0] ss:$28 sps:$4 sm:$0xff]   ;;  %v18091_v17 = vld [vmem:[#allocation2 + $0x42c] ss:$28 sps:$4 sm:$0xff]   ;;  %v18092_v20 = vld [vmem:[#allocation2 + $0x3f8] ss:$28 sps:$4 sm:$0xff]  }
  0xd3   :  { %2551 = vmatpush1.bf16.msra.mxu1 %v18010_v28  ;;  %2382 = vmatprep.subr.bf16.mxu0 %v18014_v30  ;;  %v18089_v19 = vld [vmem:[#allocation2 + $0x428] ss:$28 sps:$4 sm:$0xff]   ;;  %v18100_v22 = vld [vmem:[#allocation2 + $0x434] ss:$28 sps:$4 sm:$0xff]   ;;  %v18095_v23 = vld [vmem:[#allocation2 + $0x460] ss:$28 sps:$4 sm:$0xff]  }
  0xd4   :  { %2552 = vmatprep.subr.bf16.mxu1 %v18018_v31  ;;  %v18097_v21 = vld [vmem:[#allocation2 + $0x464] ss:$28 sps:$4 sm:$0xff]   ;;  %v18098_v24 = vld [vmem:[#allocation2 + $0x430] ss:$28 sps:$4 sm:$0xff]   ;;  %v18103_v25 = vld [vmem:[#allocation2 + $0x49c] ss:$28 sps:$4 sm:$0xff]  }
  0xd5   :  { %v18106_v26 = vld [vmem:[#allocation2 + $0x46c] ss:$28 sps:$4 sm:$0xff]   ;;  %v18101_v27 = vld [vmem:[#allocation2 + $0x498] ss:$28 sps:$4 sm:$0xff]   ;;  %v18112_v30 = vld [vmem:[#allocation2 + $0x4a4] ss:$28 sps:$4 sm:$0xff]  }
  0xd6   :  { %2383 = vmatpush1.bf16.msra.mxu0 %v18019_v33  ;;  %v18104_v28 = vld [vmem:[#allocation2 + $0x468] ss:$28 sps:$4 sm:$0xff]   ;;  %v18109_v29 = vld [vmem:[#allocation2 + $0x4d4] ss:$28 sps:$4 sm:$0xff]   ;;  %vm20940_vm1 = vmmov 0  }
  0xd7   :  { %2553 = vmatpush1.bf16.msra.mxu1 %v18016_v32  ;;  %2384 = vmatprep.subr.bf16.mxu0 %v18020_v34  ;;  %v18107_v31 = vld [vmem:[#allocation2 + $0x4d0] ss:$28 sps:$4 sm:$0xff]   ;;  %v18110_v32 = vld [vmem:[#allocation2 + $0x4a0] ss:$28 sps:$4 sm:$0xff]  }
  0xd8   :  { %2554 = vmatprep.subr.bf16.mxu1 %v18024_v35  ;;  %v18167_v33 = vld [vmem:[%s21843_s0 + $0xc] ss:$28 sps:$4 sm:$0xff]   ;;  %v18118_v35 = vld [vmem:[#allocation2 + $0x4dc] ss:$28 sps:$4 sm:$0xff]  }
  0xd9   :  { %v18115_v34 = vld [vmem:[#allocation2 + $0x50c] ss:$28 sps:$4 sm:$0xff]  }
  0xda   :  { %2385 = vmatpush1.bf16.msra.mxu0 %v18025_v37  ;;  %v18116_v37 = vld [vmem:[#allocation2 + $0x4d8] ss:$28 sps:$4 sm:$0xff]   ;;  %v18139_v50 = vld [vmem:[#allocation2 + $0x5ec] ss:$28 sps:$4 sm:$0xff]  }
  0xdb   :  { %2555 = vmatpush1.bf16.msra.mxu1 %v18022_v36  ;;  %2386 = vmatprep.subr.bf16.mxu0 %v18026_v38  ;;  %v18113_v36 = vld [vmem:[#allocation2 + $0x508] ss:$28 sps:$4 sm:$0xff]  }
  0xdc   :  { %2556 = vmatprep.subr.bf16.mxu1 %v18030_v39  ;;  %v18121_v38 = vld [vmem:[#allocation2 + $0x544] ss:$28 sps:$4 sm:$0xff]   ;;  %v18124_v39 = vld [vmem:[#allocation2 + $0x514] ss:$28 sps:$4 sm:$0xff]  }
  0xde   :  { %2387 = vmatpush1.bf16.msra.mxu0 %v18031_v41  ;;  %v18122_v41 = vld [vmem:[#allocation2 + $0x510] ss:$28 sps:$4 sm:$0xff]  }
  0xdf   :  { %2557 = vmatpush1.bf16.msra.mxu1 %v18028_v40  ;;  %2388 = vmatprep.subr.bf16.mxu0 %v18032_v42  ;;  %v18119_v40 = vld [vmem:[#allocation2 + $0x540] ss:$28 sps:$4 sm:$0xff]  }
  0xe0   :  { %2558 = vmatprep.subr.bf16.mxu1 %v18036_v43  ;;  %v18127_v42 = vld [vmem:[#allocation2 + $0x57c] ss:$28 sps:$4 sm:$0xff]   ;;  %v18130_v43 = vld [vmem:[#allocation2 + $0x54c] ss:$28 sps:$4 sm:$0xff]  }
  0xe2   :  { %2389 = vmatpush1.bf16.msra.mxu0 %v18037_v45  ;;  %v18128_v45 = vld [vmem:[#allocation2 + $0x548] ss:$28 sps:$4 sm:$0xff]  }
  0xe3   :  { %2559 = vmatpush1.bf16.msra.mxu1 %v18034_v44  ;;  %2390 = vmatprep.subr.bf16.mxu0 %v18038_v46  ;;  %v18125_v44 = vld [vmem:[#allocation2 + $0x578] ss:$28 sps:$4 sm:$0xff]  }
  0xe4   :  { %2560 = vmatprep.subr.bf16.mxu1 %v18042_v47  ;;  %v18133_v46 = vld [vmem:[#allocation2 + $0x5b4] ss:$28 sps:$4 sm:$0xff]   ;;  %v18136_v47 = vld [vmem:[#allocation2 + $0x584] ss:$28 sps:$4 sm:$0xff]  }
  0xe6   :  { %2391 = vmatpush1.bf16.msra.mxu0 %v18043_v49  ;;  %v18134_v49 = vld [vmem:[#allocation2 + $0x580] ss:$28 sps:$4 sm:$0xff]  }
  0xe7   :  { %2561 = vmatpush1.bf16.msra.mxu1 %v18040_v48  ;;  %2392 = vmatprep.subr.bf16.mxu0 %v18044_v51  ;;  %v18131_v48 = vld [vmem:[#allocation2 + $0x5b0] ss:$28 sps:$4 sm:$0xff]   ;;  %v18142_v51 = vld [vmem:[#allocation2 + $0x5bc] ss:$28 sps:$4 sm:$0xff]  }
  0xe8   :  { %2562 = vmatprep.subr.bf16.mxu1 %v18048_v52  ;;  %v18137_v52 = vld [vmem:[#allocation2 + $0x5e8] ss:$28 sps:$4 sm:$0xff]  }
  0xea   :  { %2393 = vmatpush1.bf16.msra.mxu0 %v18049_v54  ;;  %v18145_v54 = vld [vmem:[#allocation2 + $0x624] ss:$28 sps:$4 sm:$0xff]  }
  0xeb   :  { %2563 = vmatpush1.bf16.msra.mxu1 %v18046_v53  ;;  %2394 = vmatprep.subr.bf16.mxu0 %v18050_v55  ;;  %v18140_v53 = vld [vmem:[#allocation2 + $0x5b8] ss:$28 sps:$4 sm:$0xff]  }
  0xec   :  { %2564 = vmatprep.subr.bf16.mxu1 %v18054_v56  ;;  %v18148_v55 = vld [vmem:[#allocation2 + $0x5f4] ss:$28 sps:$4 sm:$0xff]   ;;  %v18143_v56 = vld [vmem:[#allocation2 + $0x620] ss:$28 sps:$4 sm:$0xff]  }
  0xee   :  { %2395 = vmatpush1.bf16.msra.mxu0 %v18055_v58  ;;  %v18151_v58 = vld [vmem:[#allocation2 + $0x65c] ss:$28 sps:$4 sm:$0xff]  }
  0xef   :  { %2565 = vmatpush1.bf16.msra.mxu1 %v18052_v57  ;;  %2396 = vmatprep.subr.bf16.mxu0 %v18056_v59  ;;  %v18146_v57 = vld [vmem:[#allocation2 + $0x5f0] ss:$28 sps:$4 sm:$0xff]  }
  0xf0   :  { %2566 = vmatprep.subr.bf16.mxu1 %v18060_v60  ;;  %v18154_v59 = vld [vmem:[#allocation2 + $0x62c] ss:$28 sps:$4 sm:$0xff]   ;;  %v18149_v60 = vld [vmem:[#allocation2 + $0x658] ss:$28 sps:$4 sm:$0xff]  }
  0xf2   :  { %2397 = vmatpush1.bf16.msra.mxu0 %v18061_v62  ;;  %v18157_v62 = vld [vmem:[#allocation2 + $0x694] ss:$28 sps:$4 sm:$0xff]  }
  0xf3   :  { %2567 = vmatpush1.bf16.msra.mxu1 %v18058_v61  ;;  %2398 = vmatprep.subr.bf16.mxu0 %v18062_v63  ;;  %v18152_v61 = vld [vmem:[#allocation2 + $0x628] ss:$28 sps:$4 sm:$0xff]  }
  0xf4   :  { %2568 = vmatprep.subr.bf16.mxu1 %v18066_v1  ;;  %v18160_v63 = vld [vmem:[#allocation2 + $0x664] ss:$28 sps:$4 sm:$0xff]   ;;  %v18155_v1 = vld [vmem:[#allocation2 + $0x690] ss:$28 sps:$4 sm:$0xff]  }
  0xf6   :  { %2399 = vmatpush1.bf16.msra.mxu0 %v18067_v3  ;;  %v18163_v3 = vld [vmem:[#allocation2 + $0x6cc] ss:$28 sps:$4 sm:$0xff]  }
  0xf7   :  { %2569 = vmatpush1.bf16.msra.mxu1 %v18064_v2  ;;  %2411 = vmatprep.subr.bf16.mxu0 %v18072_v4  ;;  %v18158_v2 = vld [vmem:[#allocation2 + $0x660] ss:$28 sps:$4 sm:$0xff]  }
  0xf8   :  { %2570 = vmatprep.subr.bf16.mxu1 %v18075_v5  ;;  %v18166_v4 = vld [vmem:[#allocation2 + $0x69c] ss:$28 sps:$4 sm:$0xff]   ;;  %v18161_v5 = vld [vmem:[#allocation2 + $0x6c8] ss:$28 sps:$4 sm:$0xff]  }
  0xf9   :  { %2401 = vmatmul.mubr.bf16.vlgmr.msra.gmra.mrb[0].mxu0 %v18076_v7 }
  0xfa   :  { %2412 = vmatpush1.bf16.msra.mxu0 %v18070_v6  ;;  %2443 = vmatprep.mubr.bf16.mxu0 %v18167_v33  ;;  %v18164_v6 = vld [vmem:[#allocation2 + $0x698] ss:$28 sps:$4 sm:$0xff]  }
  0xfb   :  { %2571 = vmatpush1.bf16.msra.mxu1 %v18073_v8  ;;  %2413 = vmatprep.subr.bf16.mxu0 %v18079_v9  ;;  %v18174_v8 = vld [vmem:[#allocation2 + $0x6d4] ss:$28 sps:$4 sm:$0xff]   ;;  %v18169_v9 = vld [vmem:[#allocation2 + $0x700] ss:$28 sps:$4 sm:$0xff]  }
  0xfc   :  { %2583 = vmatprep.subr.bf16.mxu1 %v18082_v10  ;;  %v18175_v10 = vld [vmem:[%s21843_s0 + $0x8] ss:$28 sps:$4 sm:$0xff]  }
  0xfe   :  { %2573 = vmatmul.mubr.bf16.vlgmr.msra.gmra.mrb[4].mxu1 %v18076_v7  ;;  %2414 = vmatpush1.bf16.msra.mxu0 %v18077_v11  ;;  %v18171_v7 = vld [vmem:[#allocation2 + $0x704] ss:$28 sps:$4 sm:$0xff]   ;;  %v18172_v11 = vld [vmem:[#allocation2 + $0x6d0] ss:$28 sps:$4 sm:$0xff]  }
  0xff   :  { %2584 = vmatpush1.bf16.msra.mxu1 %v18080_v12  ;;  %2415 = vmatprep.subr.bf16.mxu0 %v18085_v13  ;;  %v18178_v12 = vld [vmem:[#allocation2 + $0x73c] ss:$28 sps:$4 sm:$0xff]   ;;  %v18181_v13 = vld [vmem:[#allocation2 + $0x70c] ss:$28 sps:$4 sm:$0xff]  }
 0x100   :  { %2585 = vmatprep.subr.bf16.mxu1 %v18088_v14  ;;  %2615 = vmatprep.mubr.bf16.mxu1 %v18167_v33  ;;  %v18176_v14 = vld [vmem:[#allocation2 + $0x738] ss:$28 sps:$4 sm:$0xff]  }
 0x101   :  { %v18208_v33 = vld [vmem:[#allocation2 + $0x854] ss:$28 sps:$4 sm:$0xff]  }
 0x102   :  { %2416 = vmatpush1.bf16.msra.mxu0 %v18083_v15  ;;  %v18179_v15 = vld [vmem:[#allocation2 + $0x708] ss:$28 sps:$4 sm:$0xff]  }
 0x103   :  { %2586 = vmatpush1.bf16.msra.mxu1 %v18086_v16  ;;  %2417 = vmatprep.subr.bf16.mxu0 %v18091_v17  ;;  %v18184_v16 = vld [vmem:[#allocation2 + $0x774] ss:$28 sps:$4 sm:$0xff]  }
 0x104   :  { %2587 = vmatprep.subr.bf16.mxu1 %v18094_v18  ;;  %v18266_v17 = vld [vmem:[%s21843_s0 + $0x14] ss:$28 sps:$4 sm:$0xff]   ;;  %v18187_v18 = vld [vmem:[#allocation2 + $0x744] ss:$28 sps:$4 sm:$0xff]  }
 0x106   :  { %2418 = vmatpush1.bf16.msra.mxu0 %v18089_v19  ;;  %v18182_v19 = vld [vmem:[#allocation2 + $0x770] ss:$28 sps:$4 sm:$0xff]  }
 0x107   :  { %2588 = vmatpush1.bf16.msra.mxu1 %v18092_v20  ;;  %2419 = vmatprep.subr.bf16.mxu0 %v18097_v21  ;;  %v18185_v20 = vld [vmem:[#allocation2 + $0x740] ss:$28 sps:$4 sm:$0xff]   ;;  %v18190_v21 = vld [vmem:[#allocation2 + $0x7ac] ss:$28 sps:$4 sm:$0xff]  }
 0x108   :  { %2589 = vmatprep.subr.bf16.mxu1 %v18100_v22  ;;  %v18193_v22 = vld [vmem:[#allocation2 + $0x77c] ss:$28 sps:$4 sm:$0xff]  }
 0x10a   :  { %2420 = vmatpush1.bf16.msra.mxu0 %v18095_v23  ;;  %v18188_v23 = vld [vmem:[#allocation2 + $0x7a8] ss:$28 sps:$4 sm:$0xff]  }
 0x10b   :  { %2590 = vmatpush1.bf16.msra.mxu1 %v18098_v24  ;;  %2421 = vmatprep.subr.bf16.mxu0 %v18103_v25  ;;  %v18191_v24 = vld [vmem:[#allocation2 + $0x778] ss:$28 sps:$4 sm:$0xff]   ;;  %v18196_v25 = vld [vmem:[#allocation2 + $0x7e4] ss:$28 sps:$4 sm:$0xff]  }
 0x10c   :  { %2591 = vmatprep.subr.bf16.mxu1 %v18106_v26  ;;  %v18199_v26 = vld [vmem:[#allocation2 + $0x7b4] ss:$28 sps:$4 sm:$0xff]  }
 0x10e   :  { %2422 = vmatpush1.bf16.msra.mxu0 %v18101_v27  ;;  %v18194_v27 = vld [vmem:[#allocation2 + $0x7e0] ss:$28 sps:$4 sm:$0xff]  }
 0x10f   :  { %2592 = vmatpush1.bf16.msra.mxu1 %v18104_v28  ;;  %2423 = vmatprep.subr.bf16.mxu0 %v18109_v29  ;;  %v18197_v28 = vld [vmem:[#allocation2 + $0x7b0] ss:$28 sps:$4 sm:$0xff]   ;;  %v18202_v29 = vld [vmem:[#allocation2 + $0x81c] ss:$28 sps:$4 sm:$0xff]  }
 0x110   :  { %2593 = vmatprep.subr.bf16.mxu1 %v18112_v30  ;;  %v18205_v30 = vld [vmem:[#allocation2 + $0x7ec] ss:$28 sps:$4 sm:$0xff]  }
 0x112   :  { %2424 = vmatpush1.bf16.msra.mxu0 %v18107_v31  ;;  %v18200_v31 = vld [vmem:[#allocation2 + $0x818] ss:$28 sps:$4 sm:$0xff]  }
 0x113   :  { %2594 = vmatpush1.bf16.msra.mxu1 %v18110_v32  ;;  %2425 = vmatprep.subr.bf16.mxu0 %v18115_v34  ;;  %v18203_v32 = vld [vmem:[#allocation2 + $0x7e8] ss:$28 sps:$4 sm:$0xff]  }
 0x114   :  { %2595 = vmatprep.subr.bf16.mxu1 %v18118_v35  ;;  %v18211_v34 = vld [vmem:[#allocation2 + $0x824] ss:$28 sps:$4 sm:$0xff]   ;;  %v18206_v35 = vld [vmem:[#allocation2 + $0x850] ss:$28 sps:$4 sm:$0xff]  }
 0x116   :  { %2426 = vmatpush1.bf16.msra.mxu0 %v18113_v36  ;;  %v18209_v36 = vld [vmem:[#allocation2 + $0x820] ss:$28 sps:$4 sm:$0xff]  }
 0x117   :  { %2596 = vmatpush1.bf16.msra.mxu1 %v18116_v37  ;;  %2427 = vmatprep.subr.bf16.mxu0 %v18121_v38  ;;  %v18214_v37 = vld [vmem:[#allocation2 + $0x88c] ss:$28 sps:$4 sm:$0xff]   ;;  %v18217_v38 = vld [vmem:[#allocation2 + $0x85c] ss:$28 sps:$4 sm:$0xff]  }
 0x118   :  { %2597 = vmatprep.subr.bf16.mxu1 %v18124_v39  ;;  %v18212_v39 = vld [vmem:[#allocation2 + $0x888] ss:$28 sps:$4 sm:$0xff]  }
 0x11a   :  { %2428 = vmatpush1.bf16.msra.mxu0 %v18119_v40  ;;  %v18215_v40 = vld [vmem:[#allocation2 + $0x858] ss:$28 sps:$4 sm:$0xff]  }
 0x11b   :  { %2598 = vmatpush1.bf16.msra.mxu1 %v18122_v41  ;;  %2429 = vmatprep.subr.bf16.mxu0 %v18127_v42  ;;  %v18220_v41 = vld [vmem:[#allocation2 + $0x8c4] ss:$28 sps:$4 sm:$0xff]   ;;  %v18223_v42 = vld [vmem:[#allocation2 + $0x894] ss:$28 sps:$4 sm:$0xff]  }
 0x11c   :  { %2599 = vmatprep.subr.bf16.mxu1 %v18130_v43  ;;  %v18218_v43 = vld [vmem:[#allocation2 + $0x8c0] ss:$28 sps:$4 sm:$0xff]  }
 0x11e   :  { %2430 = vmatpush1.bf16.msra.mxu0 %v18125_v44  ;;  %v18221_v44 = vld [vmem:[#allocation2 + $0x890] ss:$28 sps:$4 sm:$0xff]  }
 0x11f   :  { %2600 = vmatpush1.bf16.msra.mxu1 %v18128_v45  ;;  %2431 = vmatprep.subr.bf16.mxu0 %v18133_v46  ;;  %v18226_v45 = vld [vmem:[#allocation2 + $0x8fc] ss:$28 sps:$4 sm:$0xff]   ;;  %v18229_v46 = vld [vmem:[#allocation2 + $0x8cc] ss:$28 sps:$4 sm:$0xff]  }
 0x120   :  { %2601 = vmatprep.subr.bf16.mxu1 %v18136_v47  ;;  %v18224_v47 = vld [vmem:[#allocation2 + $0x8f8] ss:$28 sps:$4 sm:$0xff]  }
 0x122   :  { %2432 = vmatpush1.bf16.msra.mxu0 %v18131_v48  ;;  %v18227_v48 = vld [vmem:[#allocation2 + $0x8c8] ss:$28 sps:$4 sm:$0xff]  }
 0x123   :  { %2602 = vmatpush1.bf16.msra.mxu1 %v18134_v49  ;;  %2433 = vmatprep.subr.bf16.mxu0 %v18139_v50  ;;  %v18232_v49 = vld [vmem:[#allocation2 + $0x934] ss:$28 sps:$4 sm:$0xff]   ;;  %v18235_v50 = vld [vmem:[#allocation2 + $0x904] ss:$28 sps:$4 sm:$0xff]  }
 0x124   :  { %2603 = vmatprep.subr.bf16.mxu1 %v18142_v51  ;;  %v18230_v51 = vld [vmem:[#allocation2 + $0x930] ss:$28 sps:$4 sm:$0xff]  }
 0x126   :  { %2434 = vmatpush1.bf16.msra.mxu0 %v18137_v52  ;;  %v18233_v52 = vld [vmem:[#allocation2 + $0x900] ss:$28 sps:$4 sm:$0xff]  }
 0x127   :  { %2604 = vmatpush1.bf16.msra.mxu1 %v18140_v53  ;;  %2435 = vmatprep.subr.bf16.mxu0 %v18145_v54  ;;  %v18238_v53 = vld [vmem:[#allocation2 + $0x96c] ss:$28 sps:$4 sm:$0xff]   ;;  %v18241_v54 = vld [vmem:[#allocation2 + $0x93c] ss:$28 sps:$4 sm:$0xff]  }
 0x128   :  { %2605 = vmatprep.subr.bf16.mxu1 %v18148_v55  ;;  %v18236_v55 = vld [vmem:[#allocation2 + $0x968] ss:$28 sps:$4 sm:$0xff]  }
 0x12a   :  { %2436 = vmatpush1.bf16.msra.mxu0 %v18143_v56  ;;  %v18239_v56 = vld [vmem:[#allocation2 + $0x938] ss:$28 sps:$4 sm:$0xff]  }
 0x12b   :  { %2606 = vmatpush1.bf16.msra.mxu1 %v18146_v57  ;;  %2437 = vmatprep.subr.bf16.mxu0 %v18151_v58  ;;  %v18244_v57 = vld [vmem:[#allocation2 + $0x9a4] ss:$28 sps:$4 sm:$0xff]   ;;  %v18247_v58 = vld [vmem:[#allocation2 + $0x974] ss:$28 sps:$4 sm:$0xff]  }
 0x12c   :  { %2607 = vmatprep.subr.bf16.mxu1 %v18154_v59  ;;  %v18242_v59 = vld [vmem:[#allocation2 + $0x9a0] ss:$28 sps:$4 sm:$0xff]  }
 0x12e   :  { %2438 = vmatpush1.bf16.msra.mxu0 %v18149_v60  ;;  %v18245_v60 = vld [vmem:[#allocation2 + $0x970] ss:$28 sps:$4 sm:$0xff]  }
 0x12f   :  { %2608 = vmatpush1.bf16.msra.mxu1 %v18152_v61  ;;  %2439 = vmatprep.subr.bf16.mxu0 %v18157_v62  ;;  %v18250_v61 = vld [vmem:[#allocation2 + $0x9dc] ss:$28 sps:$4 sm:$0xff]   ;;  %v18253_v62 = vld [vmem:[#allocation2 + $0x9ac] ss:$28 sps:$4 sm:$0xff]  }
 0x130   :  { %2609 = vmatprep.subr.bf16.mxu1 %v18160_v63  ;;  %v18248_v63 = vld [vmem:[#allocation2 + $0x9d8] ss:$28 sps:$4 sm:$0xff]  }
 0x132   :  { %2440 = vmatpush1.bf16.msra.mxu0 %v18155_v1  ;;  %v18251_v1 = vld [vmem:[#allocation2 + $0x9a8] ss:$28 sps:$4 sm:$0xff]  }
 0x133   :  { %2610 = vmatpush1.bf16.msra.mxu1 %v18158_v2  ;;  %2441 = vmatprep.subr.bf16.mxu0 %v18163_v3  ;;  %v18256_v2 = vld [vmem:[#allocation2 + $0xa14] ss:$28 sps:$4 sm:$0xff]   ;;  %v18259_v3 = vld [vmem:[#allocation2 + $0x9e4] ss:$28 sps:$4 sm:$0xff]  }
 0x134   :  { %2611 = vmatprep.subr.bf16.mxu1 %v18166_v4  ;;  %v18254_v4 = vld [vmem:[#allocation2 + $0xa10] ss:$28 sps:$4 sm:$0xff]  }
 0x136   :  { %2442 = vmatpush1.bf16.msra.mxu0 %v18161_v5  ;;  %v18257_v5 = vld [vmem:[#allocation2 + $0x9e0] ss:$28 sps:$4 sm:$0xff]  }
 0x137   :  { %2612 = vmatpush1.bf16.msra.mxu1 %v18164_v6  ;;  %2454 = vmatprep.subr.bf16.mxu0 %v18171_v7  ;;  %v18262_v6 = vld [vmem:[#allocation2 + $0xa4c] ss:$28 sps:$4 sm:$0xff]   ;;  %v18265_v7 = vld [vmem:[#allocation2 + $0xa1c] ss:$28 sps:$4 sm:$0xff]  }
 0x138   :  { %2613 = vmatprep.subr.bf16.mxu1 %v18174_v8  ;;  %v18260_v8 = vld [vmem:[#allocation2 + $0xa48] ss:$28 sps:$4 sm:$0xff]  }
 0x139   :  { %2444 = vmatmul.mubr.bf16.vlgmr.msra.gmra.mrb[0].mxu0 %v18175_v10 }
 0x13a   :  { %2455 = vmatpush1.bf16.msra.mxu0 %v18169_v9  ;;  %2486 = vmatprep.mubr.bf16.mxu0 %v18266_v17  ;;  %v18263_v9 = vld [vmem:[#allocation2 + $0xa18] ss:$28 sps:$4 sm:$0xff]  }
 0x13b   :  { %2614 = vmatpush1.bf16.msra.mxu1 %v18172_v11  ;;  %2456 = vmatprep.subr.bf16.mxu0 %v18178_v12  ;;  %v18274_v11 = vld [vmem:[#allocation2 + $0x14] ss:$28 sps:$4 sm:$0xff]  }
 0x13c   :  { %2626 = vmatprep.subr.bf16.mxu1 %v18181_v13  ;;  %v21153_v12 = vld [vmem:[%s21843_s0 + $0x10] ss:$28 sps:$4 sm:$0xff]  }
 0x13d   :  { %v18269_v13 = vld [vmem:[#allocation2 + $0xa50] ss:$28 sps:$4 sm:$0xff]  }
 0x13e   :  { %2616 = vmatmul.mubr.bf16.vlgmr.msra.gmra.mrb[4].mxu1 %v18175_v10  ;;  %2457 = vmatpush1.bf16.msra.mxu0 %v18176_v14  ;;  %v18271_v10 = vld [vmem:[#allocation2 + $0xa54] ss:$28 sps:$4 sm:$0xff]  }
 0x13f   :  { %2627 = vmatpush1.bf16.msra.mxu1 %v18179_v15  ;;  %2458 = vmatprep.subr.bf16.mxu0 %v18184_v16  ;;  %v18272_v14 = vld [vmem:[#allocation2 + $0x10] ss:$28 sps:$4 sm:$0xff]  }
 0x140   :  { %2628 = vmatprep.subr.bf16.mxu1 %v18187_v18  ;;  %2658 = vmatprep.mubr.bf16.mxu1 %v18266_v17  ;;  %v18277_v15 = vld [vmem:[#allocation2 + $0xa8c] ss:$28 sps:$4 sm:$0xff]  }
 0x141   :  { %v18280_v16 = vld [vmem:[#allocation2 + $0x4c] ss:$28 sps:$4 sm:$0xff]  }
 0x142   :  { %2459 = vmatpush1.bf16.msra.mxu0 %v18182_v19  ;;  %v18275_v17 = vld [vmem:[#allocation2 + $0xa88] ss:$28 sps:$4 sm:$0xff]  }
 0x143   :  { %2629 = vmatpush1.bf16.msra.mxu1 %v18185_v20  ;;  %2460 = vmatprep.subr.bf16.mxu0 %v18190_v21  ;;  %v18278_v18 = vld [vmem:[#allocation2 + $0x48] ss:$28 sps:$4 sm:$0xff]   ;;  %v18292_v20 = vld [vmem:[#allocation2 + $0xa94] ss:$28 sps:$4 sm:$0xff]  }
 0x144   :  { %2630 = vmatprep.subr.bf16.mxu1 %v18193_v22  ;;  %v18283_v19 = vld [vmem:[#allocation2 + $0x84] ss:$28 sps:$4 sm:$0xff]  }
 0x145   :  { %v21159_v21 = vld [vmem:[%s21843_s0 + $0x4] ss:$28 sps:$4 sm:$0xff]  }
 0x146   :  { %2461 = vmatpush1.bf16.msra.mxu0 %v18188_v23  ;;  %v18281_v22 = vld [vmem:[#allocation2 + $0x80] ss:$28 sps:$4 sm:$0xff]  }
 0x147   :  { %2631 = vmatpush1.bf16.msra.mxu1 %v18191_v24  ;;  %2462 = vmatprep.subr.bf16.mxu0 %v18196_v25  ;;  %v18286_v23 = vld [vmem:[#allocation2 + $0xbc] ss:$28 sps:$4 sm:$0xff]   ;;  %v18289_v25 = vld [vmem:[#allocation2 + $0xf4] ss:$28 sps:$4 sm:$0xff]  }
 0x148   :  { %2632 = vmatprep.subr.bf16.mxu1 %v18199_v26  ;;  %v18284_v24 = vld [vmem:[#allocation2 + $0xb8] ss:$28 sps:$4 sm:$0xff]   ;;  %v18287_v26 = vld [vmem:[#allocation2 + $0xf0] ss:$28 sps:$4 sm:$0xff]  }
 0x14a   :  { %2463 = vmatpush1.bf16.msra.mxu0 %v18194_v27  ;;  %v18290_v27 = vld [vmem:[#allocation2 + $0xa90] ss:$28 sps:$4 sm:$0xff]  }
 0x14b   :  { %2633 = vmatpush1.bf16.msra.mxu1 %v18197_v28  ;;  %2464 = vmatprep.subr.bf16.mxu0 %v18202_v29  ;;  %v18295_v28 = vld [vmem:[#allocation2 + $0x12c] ss:$28 sps:$4 sm:$0xff]   ;;  %v18296_v29 = vld [vmem:[#allocation2 + $0x1d8] ss:$28 sps:$4 sm:$0xff]  }
 0x14c   :  { %2634 = vmatprep.subr.bf16.mxu1 %v18205_v30  ;;  %v21167_v30 = vld [vmem:[%s21843_s0 + $0x18] ss:$28 sps:$4 sm:$0xff]  }
 0x14e   :  { %2465 = vmatpush1.bf16.msra.mxu0 %v18200_v31  ;;  %v18293_v31 = vld [vmem:[#allocation2 + $0x128] ss:$28 sps:$4 sm:$0xff]  }
 0x14f   :  { %2635 = vmatpush1.bf16.msra.mxu1 %v18203_v32  ;;  %2466 = vmatprep.subr.bf16.mxu0 %v18208_v33  ;;  %v18299_v32 = vld [vmem:[#allocation2 + $0x164] ss:$28 sps:$4 sm:$0xff]  }
 0x150   :  { %2636 = vmatprep.subr.bf16.mxu1 %v18211_v34  ;;  %v18297_v33 = vld [vmem:[#allocation2 + $0x160] ss:$28 sps:$4 sm:$0xff]   ;;  %v18300_v34 = vld [vmem:[#allocation2 + $0x18] ss:$28 sps:$4 sm:$0xff]  }
 0x152   :  { %2467 = vmatpush1.bf16.msra.mxu0 %v18206_v35  ;;  %v18301_v35 = vld [vmem:[#allocation2 + $0x210] ss:$28 sps:$4 sm:$0xff]  }
 0x153   :  { %2637 = vmatpush1.bf16.msra.mxu1 %v18209_v36  ;;  %2468 = vmatprep.subr.bf16.mxu0 %v18214_v37  ;;  %v18304_v36 = vld [vmem:[#allocation2 + $0x19c] ss:$28 sps:$4 sm:$0xff]  }
 0x154   :  { %2638 = vmatprep.subr.bf16.mxu1 %v18217_v38  ;;  %v18302_v38 = vld [vmem:[#allocation2 + $0x198] ss:$28 sps:$4 sm:$0xff]  }
 0x156   :  { %2469 = vmatpush1.bf16.msra.mxu0 %v18212_v39 }
 0x157   :  { %2639 = vmatpush1.bf16.msra.mxu1 %v18215_v40  ;;  %2470 = vmatprep.subr.bf16.mxu0 %v18220_v41  ;;  %v18305_v40 = vld [vmem:[#allocation2 + $0x50] ss:$28 sps:$4 sm:$0xff]  }
 0x158   :  { %2640 = vmatprep.subr.bf16.mxu1 %v18223_v42  ;;  %v18306_v42 = vld [vmem:[#allocation2 + $0x248] ss:$28 sps:$4 sm:$0xff]  }
 0x15a   :  { %2471 = vmatpush1.bf16.msra.mxu0 %v18218_v43  ;;  %v18309_v43 = vld [vmem:[#allocation2 + $0x1d4] ss:$28 sps:$4 sm:$0xff]  }
 0x15b   :  { %2641 = vmatpush1.bf16.msra.mxu1 %v18221_v44  ;;  %2472 = vmatprep.subr.bf16.mxu0 %v18226_v45  ;;  %v18307_v45 = vld [vmem:[#allocation2 + $0x1d0] ss:$28 sps:$4 sm:$0xff]  }
 0x15c   :  { %2642 = vmatprep.subr.bf16.mxu1 %v18229_v46  ;;  %v18310_v46 = vld [vmem:[#allocation2 + $0x88] ss:$28 sps:$4 sm:$0xff]  }
 0x15e   :  { %2473 = vmatpush1.bf16.msra.mxu0 %v18224_v47  ;;  %v18311_v47 = vld [vmem:[#allocation2 + $0x280] ss:$28 sps:$4 sm:$0xff]  }
 0x15f   :  { %2643 = vmatpush1.bf16.msra.mxu1 %v18227_v48  ;;  %2474 = vmatprep.subr.bf16.mxu0 %v18232_v49  ;;  %v18314_v48 = vld [vmem:[#allocation2 + $0x20c] ss:$28 sps:$4 sm:$0xff]  }
 0x160   :  { %2644 = vmatprep.subr.bf16.mxu1 %v18235_v50  ;;  %v18312_v49 = vld [vmem:[#allocation2 + $0x208] ss:$28 sps:$4 sm:$0xff]   ;;  %v18315_v50 = vld [vmem:[#allocation2 + $0xc0] ss:$28 sps:$4 sm:$0xff]  }
 0x162   :  { %2475 = vmatpush1.bf16.msra.mxu0 %v18230_v51  ;;  %v18316_v51 = vld [vmem:[#allocation2 + $0x2b8] ss:$28 sps:$4 sm:$0xff]  }
 0x163   :  { %2645 = vmatpush1.bf16.msra.mxu1 %v18233_v52  ;;  %2476 = vmatprep.subr.bf16.mxu0 %v18238_v53  ;;  %v18319_v52 = vld [vmem:[#allocation2 + $0x244] ss:$28 sps:$4 sm:$0xff]  }
 0x164   :  { %2646 = vmatprep.subr.bf16.mxu1 %v18241_v54  ;;  %v18317_v53 = vld [vmem:[#allocation2 + $0x240] ss:$28 sps:$4 sm:$0xff]   ;;  %v18320_v54 = vld [vmem:[#allocation2 + $0xf8] ss:$28 sps:$4 sm:$0xff]  }
 0x166   :  { %2477 = vmatpush1.bf16.msra.mxu0 %v18236_v55  ;;  %v18321_v55 = vld [vmem:[#allocation2 + $0x2f0] ss:$28 sps:$4 sm:$0xff]  }
 0x167   :  { %2647 = vmatpush1.bf16.msra.mxu1 %v18239_v56  ;;  %2478 = vmatprep.subr.bf16.mxu0 %v18244_v57  ;;  %v18324_v56 = vld [vmem:[#allocation2 + $0x27c] ss:$28 sps:$4 sm:$0xff]  }
 0x168   :  { %2648 = vmatprep.subr.bf16.mxu1 %v18247_v58  ;;  %v18322_v57 = vld [vmem:[#allocation2 + $0x278] ss:$28 sps:$4 sm:$0xff]   ;;  %v18325_v58 = vld [vmem:[#allocation2 + $0x130] ss:$28 sps:$4 sm:$0xff]  }
 0x16a   :  { %2479 = vmatpush1.bf16.msra.mxu0 %v18242_v59  ;;  %v18326_v59 = vld [vmem:[#allocation2 + $0x328] ss:$28 sps:$4 sm:$0xff]  }
 0x16b   :  { %2649 = vmatpush1.bf16.msra.mxu1 %v18245_v60  ;;  %2480 = vmatprep.subr.bf16.mxu0 %v18250_v61  ;;  %v18329_v60 = vld [vmem:[#allocation2 + $0x2b4] ss:$28 sps:$4 sm:$0xff]  }
 0x16c   :  { %2650 = vmatprep.subr.bf16.mxu1 %v18253_v62  ;;  %v18327_v61 = vld [vmem:[#allocation2 + $0x2b0] ss:$28 sps:$4 sm:$0xff]   ;;  %v18330_v62 = vld [vmem:[#allocation2 + $0x168] ss:$28 sps:$4 sm:$0xff]  }
 0x16e   :  { %2481 = vmatpush1.bf16.msra.mxu0 %v18248_v63  ;;  %v18331_v63 = vld [vmem:[#allocation2 + $0x360] ss:$28 sps:$4 sm:$0xff]  }
 0x16f   :  { %2651 = vmatpush1.bf16.msra.mxu1 %v18251_v1  ;;  %2482 = vmatprep.subr.bf16.mxu0 %v18256_v2  ;;  %v18334_v1 = vld [vmem:[#allocation2 + $0x2ec] ss:$28 sps:$4 sm:$0xff]  }
 0x170   :  { %2652 = vmatprep.subr.bf16.mxu1 %v18259_v3  ;;  %v18332_v2 = vld [vmem:[#allocation2 + $0x2e8] ss:$28 sps:$4 sm:$0xff]   ;;  %v18335_v3 = vld [vmem:[#allocation2 + $0x1a0] ss:$28 sps:$4 sm:$0xff]  }
 0x172   :  { %2483 = vmatpush1.bf16.msra.mxu0 %v18254_v4  ;;  %v18336_v4 = vld [vmem:[#allocation2 + $0x558] ss:$28 sps:$4 sm:$0xff]  }
 0x173   :  { %2653 = vmatpush1.bf16.msra.mxu1 %v18257_v5  ;;  %2484 = vmatprep.subr.bf16.mxu0 %v18262_v6  ;;  %v18339_v5 = vld [vmem:[#allocation2 + $0x324] ss:$28 sps:$4 sm:$0xff]  }
 0x174   :  { %2654 = vmatprep.subr.bf16.mxu1 %v18265_v7  ;;  %v18337_v6 = vld [vmem:[#allocation2 + $0x320] ss:$28 sps:$4 sm:$0xff]   ;;  %v18340_v7 = vld [vmem:[#allocation2 + $0x398] ss:$28 sps:$4 sm:$0xff]  }
 0x176   :  { %2485 = vmatpush1.bf16.msra.mxu0 %v18260_v8  ;;  %v18341_v8 = vld [vmem:[#allocation2 + $0x590] ss:$28 sps:$4 sm:$0xff]  }
 0x177   :  { %2655 = vmatpush1.bf16.msra.mxu1 %v18263_v9  ;;  %2712 = vmatprep.subr.bf16.mxu0 %v18274_v11  ;;  %v18344_v9 = vld [vmem:[#allocation2 + $0x35c] ss:$28 sps:$4 sm:$0xff]  }
 0x178   :  { %2656 = vmatprep.subr.bf16.mxu1 %v18271_v10  ;;  %v20647_v10 = vld [vmem:[%s21843_s0] ss:$28 sps:$4 sm:$0xff]   ;;  %v18342_v11 = vld [vmem:[#allocation2 + $0x358] ss:$28 sps:$4 sm:$0xff]  }
 0x179   :  { %2487 = vmatmul.mubr.bf16.vlgmr.msra.gmra.mrb[0].mxu0 %v21153_v12 }
 0x17a   :  { %2713 = vmatpush1.bf16.msra.mxu0 %v18272_v14  ;;  %2744 = vmatprep.mubr.bf16.mxu0 %v21159_v21  ;;  %v18346_v14 = vld [vmem:[#allocation2 + $0x5c8] ss:$28 sps:$4 sm:$0xff]  }
 0x17b   :  { %2657 = vmatpush1.bf16.msra.mxu1 %v18269_v13  ;;  %2714 = vmatprep.subr.bf16.mxu0 %v18280_v16  ;;  %v18345_v13 = vld [vmem:[#allocation2 + $0x3d0] ss:$28 sps:$4 sm:$0xff]  }
 0x17c   :  { %2669 = vmatprep.subr.bf16.mxu1 %v18277_v15  ;;  %v18349_v15 = vld [vmem:[#allocation2 + $0x394] ss:$28 sps:$4 sm:$0xff]   ;;  %v20648_v16 = vld [vmem:[%s21843_s0 + $0xc] ss:$28 sps:$4 sm:$0xff]  }
 0x17e   :  { %2659 = vmatmul.mubr.bf16.vlgmr.msra.gmra.mrb[4].mxu1 %v21153_v12  ;;  %2715 = vmatpush1.bf16.msra.mxu0 %v18278_v18  ;;  %v18350_v18 = vld [vmem:[#allocation2 + $0x408] ss:$28 sps:$4 sm:$0xff]  }
 0x17f   :  { %2670 = vmatpush1.bf16.msra.mxu1 %v18275_v17  ;;  %2716 = vmatprep.subr.bf16.mxu0 %v18283_v19  ;;  %v18347_v17 = vld [vmem:[#allocation2 + $0x390] ss:$28 sps:$4 sm:$0xff]   ;;  %v18351_v19 = vld [vmem:[#allocation2 + $0x600] ss:$28 sps:$4 sm:$0xff]  }
 0x180   :  { %2701 = vmatprep.mubr.bf16.mxu1 %v20938_v0  ;;  %2841 = vmatprep.subr.bf16.mxu1 %v18292_v20  ;;  %v18354_v20 = vld [vmem:[#allocation2 + $0x3cc] ss:$28 sps:$4 sm:$0xff]  }
 0x182   :  { %2717 = vmatpush1.bf16.msra.mxu0 %v18281_v22  ;;  %v18352_v22 = vld [vmem:[#allocation2 + $0x3c8] ss:$28 sps:$4 sm:$0xff]  }
 0x183   :  { %2718 = vmatprep.subr.bf16.mxu0 %v18286_v23  ;;  %v18355_v23 = vld [vmem:[#allocation2 + $0x440] ss:$28 sps:$4 sm:$0xff]  }
 0x186   :  { %2719 = vmatpush1.bf16.msra.mxu0 %v18284_v24  ;;  %v18356_v24 = vld [vmem:[#allocation2 + $0x638] ss:$28 sps:$4 sm:$0xff]  }
 0x187   :  { %2720 = vmatprep.subr.bf16.mxu0 %v18289_v25  ;;  %v18359_v25 = vld [vmem:[#allocation2 + $0x404] ss:$28 sps:$4 sm:$0xff]  }
 0x18a   :  { %15857 = vmatmul.mubr.msk.bf16.vlgmr.msra.gmra.mrb[4].mxu1 %vm2364_vm0, %v21167_v30  ;;  %2721 = vmatpush1.bf16.msra.mxu0 %v18287_v26  ;;  %v18357_v26 = vld [vmem:[#allocation2 + $0x400] ss:$28 sps:$4 sm:$0xff]  }
 0x18b   :  { %2842 = vmatpush1.bf16.msra.mxu1 %v18290_v27  ;;  %2722 = vmatprep.subr.bf16.mxu0 %v18295_v28  ;;  %v18360_v27 = vld [vmem:[#allocation2 + $0x478] ss:$28 sps:$4 sm:$0xff]   ;;  %v18361_v28 = vld [vmem:[#allocation2 + $0x670] ss:$28 sps:$4 sm:$0xff]  }
 0x18c   :  { %2873 = vmatprep.mubr.bf16.mxu1 %v20938_v0  ;;  %17384 = vmatprep.subr.bf16.mxu1 %v18296_v29  ;;  %v18364_v29 = vld [vmem:[#allocation2 + $0x43c] ss:$28 sps:$4 sm:$0xff]  }
 0x18e   :  { %2723 = vmatpush1.bf16.msra.mxu0 %v18293_v31  ;;  %v18362_v31 = vld [vmem:[#allocation2 + $0x438] ss:$28 sps:$4 sm:$0xff]  }
 0x18f   :  { %2724 = vmatprep.subr.bf16.mxu0 %v18299_v32  ;;  %v18365_v32 = vld [vmem:[#allocation2 + $0x4b0] ss:$28 sps:$4 sm:$0xff]  }
 0x191   :  { %v21172_v37 = vpop.f32.mrb[0].mxu1 }
 0x192   :  { %v21174_v39 = vpop.f32.mrb[1].mxu1  ;;  %15858 = vmatmul.mubr.msk.bf16.vlgmr.msra.gmra.mrb[8].mxu1 %vm2364_vm0, %v21167_v30  ;;  %2725 = vmatpush1.bf16.msra.mxu0 %v18297_v33  ;;  %v18366_v33 = vld [vmem:[#allocation2 + $0x6a8] ss:$28 sps:$4 sm:$0xff]  }
 0x193   :  { %17385 = vmatpush3.bf16.msra.mxu1 %v18300_v34  ;;  %v21178_v41 = vpop.f32.mrb[2].mxu1  ;;  %2726 = vmatprep.subr.bf16.mxu0 %v18304_v36  ;;  %v18369_v34 = vld [vmem:[#allocation2 + $0x474] ss:$28 sps:$4 sm:$0xff]   ;;  %v18370_v36 = vld [vmem:[#allocation2 + $0x4e8] ss:$28 sps:$4 sm:$0xff]  }
 0x194   :  { %v21180_v44 = vpop.f32.mrb[3].mxu1  ;;  %17386 = vmatprep.subr.bf16.mxu1 %v18301_v35  ;;  %2916 = vmatprep.mubr.bf16.mxu1 %v21159_v21  ;;  %v18367_v35 = vld [vmem:[#allocation2 + $0x470] ss:$28 sps:$4 sm:$0xff]  }
 0x196   :  { %2727 = vmatpush1.bf16.msra.mxu0 %v18302_v38  ;;  %v18371_v38 = vld [vmem:[#allocation2 + $0x6e0] ss:$28 sps:$4 sm:$0xff]  }
 0x197   :  { %17387 = vmatpush3.bf16.msra.mxu1 %v18305_v40  ;;  %2728 = vmatprep.subr.bf16.mxu0 %v18309_v43  ;;  %v18374_v40 = vld [vmem:[#allocation2 + $0x4ac] ss:$28 sps:$4 sm:$0xff]   ;;  %v18375_v43 = vld [vmem:[#allocation2 + $0x520] ss:$28 sps:$4 sm:$0xff]  }
 0x198   :  { %17388 = vmatprep.subr.bf16.mxu1 %v18306_v42  ;;  %v18372_v42 = vld [vmem:[#allocation2 + $0x4a8] ss:$28 sps:$4 sm:$0xff]  }
 0x19a   :  { %2729 = vmatpush1.bf16.msra.mxu0 %v18307_v45  ;;  %v18376_v45 = vld [vmem:[#allocation2 + $0x8d8] ss:$28 sps:$4 sm:$0xff]  }
 0x19b   :  { %17389 = vmatpush3.bf16.msra.mxu1 %v18310_v46  ;;  %2730 = vmatprep.subr.bf16.mxu0 %v18314_v48  ;;  %v18379_v46 = vld [vmem:[#allocation2 + $0x4e4] ss:$28 sps:$4 sm:$0xff]   ;;  %v18380_v48 = vld [vmem:[#allocation2 + $0x718] ss:$28 sps:$4 sm:$0xff]  }
 0x19c   :  { %17390 = vmatprep.subr.bf16.mxu1 %v18311_v47  ;;  %v18377_v47 = vld [vmem:[#allocation2 + $0x4e0] ss:$28 sps:$4 sm:$0xff]  }
 0x19e   :  { %2731 = vmatpush1.bf16.msra.mxu0 %v18312_v49  ;;  %v18381_v49 = vld [vmem:[#allocation2 + $0x910] ss:$28 sps:$4 sm:$0xff]  }
 0x19f   :  { %17391 = vmatpush3.bf16.msra.mxu1 %v18315_v50  ;;  %2732 = vmatprep.subr.bf16.mxu0 %v18319_v52  ;;  %v18384_v50 = vld [vmem:[#allocation2 + $0x51c] ss:$28 sps:$4 sm:$0xff]  }
 0x1a0   :  { %17392 = vmatprep.subr.bf16.mxu1 %v18316_v51  ;;  %v21192_v51 = vld [vmem:[%s21843_s0 + $0x8] ss:$28 sps:$4 sm:$0xff]   ;;  %v18382_v52 = vld [vmem:[#allocation2 + $0x518] ss:$28 sps:$4 sm:$0xff]  }
 0x1a2   :  { %2733 = vmatpush1.bf16.msra.mxu0 %v18317_v53  ;;  %v18385_v53 = vld [vmem:[#allocation2 + $0x750] ss:$28 sps:$4 sm:$0xff]  }
 0x1a3   :  { %17393 = vmatpush3.bf16.msra.mxu1 %v18320_v54  ;;  %2734 = vmatprep.subr.bf16.mxu0 %v18324_v56  ;;  %v18386_v54 = vld [vmem:[#allocation2 + $0x948] ss:$28 sps:$4 sm:$0xff]   ;;  %v21198_v56 = vld [vmem:[%s21843_s0 + $0x14] ss:$28 sps:$4 sm:$0xff]  }
 0x1a4   :  { %17394 = vmatprep.subr.bf16.mxu1 %v18321_v55  ;;  %v18389_v55 = vld [vmem:[#allocation2 + $0x554] ss:$28 sps:$4 sm:$0xff]  }
 0x1a6   :  { %2735 = vmatpush1.bf16.msra.mxu0 %v18322_v57  ;;  %v18387_v57 = vld [vmem:[#allocation2 + $0x550] ss:$28 sps:$4 sm:$0xff]  }
 0x1a7   :  { %17395 = vmatpush3.bf16.msra.mxu1 %v18325_v58  ;;  %2736 = vmatprep.subr.bf16.mxu0 %v18329_v60  ;;  %v18390_v58 = vld [vmem:[#allocation2 + $0x788] ss:$28 sps:$4 sm:$0xff]  }
 0x1a8   :  { %17396 = vmatprep.subr.bf16.mxu1 %v18326_v59  ;;  %v18391_v59 = vld [vmem:[#allocation2 + $0x980] ss:$28 sps:$4 sm:$0xff]   ;;  %v18394_v60 = vld [vmem:[#allocation2 + $0x58c] ss:$28 sps:$4 sm:$0xff]  }
 0x1aa   :  { %2737 = vmatpush1.bf16.msra.mxu0 %v18327_v61  ;;  %v18392_v61 = vld [vmem:[#allocation2 + $0x588] ss:$28 sps:$4 sm:$0xff]  }
 0x1ab   :  { %17397 = vmatpush3.bf16.msra.mxu1 %v18330_v62  ;;  %2738 = vmatprep.subr.bf16.mxu0 %v18334_v1  ;;  %v18395_v62 = vld [vmem:[#allocation2 + $0x7c0] ss:$28 sps:$4 sm:$0xff]  }
 0x1ac   :  { %17398 = vmatprep.subr.bf16.mxu1 %v18331_v63  ;;  %v18396_v63 = vld [vmem:[#allocation2 + $0x9b8] ss:$28 sps:$4 sm:$0xff]   ;;  %v18399_v1 = vld [vmem:[#allocation2 + $0x5c4] ss:$28 sps:$4 sm:$0xff]  }
 0x1ae   :  { %2739 = vmatpush1.bf16.msra.mxu0 %v18332_v2  ;;  %v18397_v2 = vld [vmem:[#allocation2 + $0x5c0] ss:$28 sps:$4 sm:$0xff]  }
 0x1af   :  { %17399 = vmatpush3.bf16.msra.mxu1 %v18335_v3  ;;  %2740 = vmatprep.subr.bf16.mxu0 %v18339_v5  ;;  %v18400_v3 = vld [vmem:[#allocation2 + $0x7f8] ss:$28 sps:$4 sm:$0xff]  }
 0x1b0   :  { %17406 = vmatprep.subr.bf16.mxu1 %v18336_v4  ;;  %v18401_v4 = vld [vmem:[#allocation2 + $0x9f0] ss:$28 sps:$4 sm:$0xff]   ;;  %v18404_v5 = vld [vmem:[#allocation2 + $0x5fc] ss:$28 sps:$4 sm:$0xff]  }
 0x1b2   :  { %2917 = vmatmul.mubr.bf16.vlgmr.msra.gmra.mrb[12].mxu1 %v20647_v10  ;;  %2741 = vmatpush1.bf16.msra.mxu0 %v18337_v6  ;;  %v18402_v6 = vld [vmem:[#allocation2 + $0x5f8] ss:$28 sps:$4 sm:$0xff]  }
 0x1b3   :  { %17407 = vmatpush3.bf16.msra.mxu1 %v18340_v7  ;;  %2742 = vmatprep.subr.bf16.mxu0 %v18344_v9  ;;  %v18405_v7 = vld [vmem:[#allocation2 + $0x830] ss:$28 sps:$4 sm:$0xff]  }
 0x1b4   :  { %17408 = vmatprep.subr.bf16.mxu1 %v18341_v8  ;;  %2957 = vmatprep.mubr.bf16.mxu1 %v20648_v16  ;;  %v18406_v8 = vld [vmem:[#allocation2 + $0xa28] ss:$28 sps:$4 sm:$0xff]   ;;  %v18409_v9 = vld [vmem:[#allocation2 + $0x634] ss:$28 sps:$4 sm:$0xff]  }
 0x1b6   :  { %2743 = vmatpush1.bf16.msra.mxu0 %v18342_v11  ;;  %v18410_v11 = vld [vmem:[#allocation2 + $0x868] ss:$28 sps:$4 sm:$0xff]  }
 0x1b7   :  { %17409 = vmatpush3.bf16.msra.mxu1 %v18345_v13  ;;  %2755 = vmatprep.subr.bf16.mxu0 %v18349_v15  ;;  %v18411_v13 = vld [vmem:[#allocation2 + $0xa60] ss:$28 sps:$4 sm:$0xff]   ;;  %v18412_v15 = vld [vmem:[#allocation2 + $0x668] ss:$28 sps:$4 sm:$0xff]  }
 0x1b8   :  { %17410 = vmatprep.subr.bf16.mxu1 %v18346_v14  ;;  %v18414_v14 = vld [vmem:[#allocation2 + $0x66c] ss:$28 sps:$4 sm:$0xff]  }
 0x1b9   :  { %2745 = vmatmul.mubr.bf16.vlgmr.msra.gmra.mrb[4].mxu0 %v20647_v10  ;;  %v18407_v10 = vld [vmem:[#allocation2 + $0x630] ss:$28 sps:$4 sm:$0xff]  }
 0x1ba   :  { %2756 = vmatpush1.bf16.msra.mxu0 %v18347_v17  ;;  %2787 = vmatprep.mubr.bf16.mxu0 %v20648_v16  ;;  %v18415_v16 = vld [vmem:[#allocation2 + $0x8a0] ss:$28 sps:$4 sm:$0xff]  }
 0x1bb   :  { %17411 = vmatpush3.bf16.msra.mxu1 %v18350_v18  ;;  %2757 = vmatprep.subr.bf16.mxu0 %v18354_v20  ;;  %v18418_v17 = vld [vmem:[#allocation2 + $0x6a4] ss:$28 sps:$4 sm:$0xff]   ;;  %v18422_v20 = vld [vmem:[#allocation2 + $0x6dc] ss:$28 sps:$4 sm:$0xff]  }
 0x1bc   :  { %17412 = vmatprep.subr.bf16.mxu1 %v18351_v19  ;;  %v18416_v18 = vld [vmem:[#allocation2 + $0x6a0] ss:$28 sps:$4 sm:$0xff]   ;;  %v18419_v19 = vld [vmem:[#allocation2 + $0xa98] ss:$28 sps:$4 sm:$0xff]  }
 0x1be   :  { %2758 = vmatpush1.bf16.msra.mxu0 %v18352_v22  ;;  %v18425_v22 = vld [vmem:[#allocation2 + $0xabc] ss:$28 sps:$4 sm:$0xff]  }
 0x1bf   :  { %17413 = vmatpush3.bf16.msra.mxu1 %v18355_v23  ;;  %2759 = vmatprep.subr.bf16.mxu0 %v18359_v25  ;;  %v20939_v23 = vmov 0.0   ;;  %v18428_v25 = vld [vmem:[#allocation2 + $0x714] ss:$28 sps:$4 sm:$0xff]  }
 0x1c0   :  { %17414 = vmatprep.subr.bf16.mxu1 %v18356_v24  ;;  %v18420_v24 = vld [vmem:[#allocation2 + $0x6d8] ss:$28 sps:$4 sm:$0xff]  }
 0x1c2   :  { %2760 = vmatpush1.bf16.msra.mxu0 %v18357_v26  ;;  %v18423_v26 = vld [vmem:[#allocation2 + $0xab8] ss:$28 sps:$4 sm:$0xff]  }
 0x1c3   :  { %17415 = vmatpush3.bf16.msra.mxu1 %v18360_v27  ;;  %2761 = vmatprep.subr.bf16.mxu0 %v18364_v29  ;;  %v18426_v27 = vld [vmem:[#allocation2 + $0x710] ss:$28 sps:$4 sm:$0xff]  }
 0x1c4   :  { %17416 = vmatprep.subr.bf16.mxu1 %v18361_v28  ;;  %v18431_v28 = vld [vmem:[#allocation2 + $0xaf4] ss:$28 sps:$4 sm:$0xff]   ;;  %v18434_v29 = vld [vmem:[#allocation2 + $0x74c] ss:$28 sps:$4 sm:$0xff]  }
 0x1c6   :  { %2762 = vmatpush1.bf16.msra.mxu0 %v18362_v31  ;;  %v18432_v31 = vld [vmem:[#allocation2 + $0x748] ss:$28 sps:$4 sm:$0xff]  }
 0x1c7   :  { %17417 = vmatpush3.bf16.msra.mxu1 %v18365_v32  ;;  %2763 = vmatprep.subr.bf16.mxu0 %v18369_v34  ;;  %v18437_v32 = vld [vmem:[#allocation2 + $0xb2c] ss:$28 sps:$4 sm:$0xff]  }
 0x1c8   :  { %17418 = vmatprep.subr.bf16.mxu1 %v18366_v33  ;;  %v18440_v33 = vld [vmem:[#allocation2 + $0x784] ss:$28 sps:$4 sm:$0xff]  }
 0x1c9   :  { %v18435_v34 = vld [vmem:[#allocation2 + $0xb28] ss:$28 sps:$4 sm:$0xff]  }
 0x1ca   :  { %2764 = vmatpush1.bf16.msra.mxu0 %v18367_v35  ;;  %v18438_v35 = vld [vmem:[#allocation2 + $0x780] ss:$28 sps:$4 sm:$0xff]  }
 0x1cb   :  { %17419 = vmatpush3.bf16.msra.mxu1 %v18370_v36  ;;  %2765 = vmatprep.subr.bf16.mxu0 %v18374_v40  ;;  %v18443_v36 = vld [vmem:[#allocation2 + $0xb64] ss:$28 sps:$4 sm:$0xff]   ;;  %v18444_v40 = vld [vmem:[#allocation2 + $0x7b8] ss:$28 sps:$4 sm:$0xff]  }
 0x1cc   :  { %17420 = vmatprep.subr.bf16.mxu1 %v18371_v38  ;;  %v18441_v38 = vld [vmem:[#allocation2 + $0xb60] ss:$28 sps:$4 sm:$0xff]  }
 0x1ce   :  { %2766 = vmatpush1.bf16.msra.mxu0 %v18372_v42  ;;  %v18449_v42 = vld [vmem:[#allocation2 + $0xb9c] ss:$28 sps:$4 sm:$0xff]  }
 0x1cf   :  { %17421 = vmatpush3.bf16.msra.mxu1 %v18375_v43  ;;  %2767 = vmatprep.subr.bf16.mxu0 %v18379_v46  ;;  %v18452_v43 = vld [vmem:[#allocation2 + $0x7f4] ss:$28 sps:$4 sm:$0xff]  }
 0x1d0   :  { %17428 = vmatprep.subr.bf16.mxu1 %v18376_v45  ;;  %v18447_v45 = vld [vmem:[#allocation2 + $0xb98] ss:$28 sps:$4 sm:$0xff]  }
 0x1d1   :  { %v18455_v46 = vld [vmem:[#allocation2 + $0xbd4] ss:$28 sps:$4 sm:$0xff]  }
 0x1d2   :  { %2958 = vmatmul.mubr.bf16.vlgmr.msra.gmra.mrb[16].mxu1 %v21192_v51  ;;  %2768 = vmatpush1.bf16.msra.mxu0 %v18377_v47  ;;  %v18458_v47 = vld [vmem:[#allocation2 + $0x82c] ss:$28 sps:$4 sm:$0xff]  }
 0x1d3   :  { %17429 = vmatpush3.bf16.msra.mxu1 %v18380_v48  ;;  %2769 = vmatprep.subr.bf16.mxu0 %v18384_v50  ;;  %v18453_v48 = vld [vmem:[#allocation2 + $0xbd0] ss:$28 sps:$4 sm:$0xff]  }
 0x1d4   :  { %17430 = vmatprep.subr.bf16.mxu1 %v18381_v49  ;;  %2998 = vmatprep.mubr.bf16.mxu1 %v21198_v56  ;;  %v18456_v49 = vld [vmem:[#allocation2 + $0x828] ss:$28 sps:$4 sm:$0xff]  }
 0x1d5   :  { %v18461_v50 = vld [vmem:[#allocation2 + $0xc0c] ss:$28 sps:$4 sm:$0xff]  }
 0x1d6   :  { %2770 = vmatpush1.bf16.msra.mxu0 %v18382_v52  ;;  %v18459_v52 = vld [vmem:[#allocation2 + $0xc08] ss:$28 sps:$4 sm:$0xff]  }
 0x1d7   :  { %17431 = vmatpush3.bf16.msra.mxu1 %v18385_v53  ;;  %2771 = vmatprep.subr.bf16.mxu0 %v18389_v55  ;;  %v18462_v53 = vld [vmem:[#allocation2 + $0x860] ss:$28 sps:$4 sm:$0xff]  }
 0x1d8   :  { %17432 = vmatprep.subr.bf16.mxu1 %v18386_v54  ;;  %v18467_v54 = vld [vmem:[#allocation2 + $0xc44] ss:$28 sps:$4 sm:$0xff]   ;;  %v18470_v55 = vld [vmem:[#allocation2 + $0x89c] ss:$28 sps:$4 sm:$0xff]  }
 0x1da   :  { %2772 = vmatpush1.bf16.msra.mxu0 %v18387_v57  ;;  %v18468_v57 = vld [vmem:[#allocation2 + $0x898] ss:$28 sps:$4 sm:$0xff]  }
 0x1db   :  { %17433 = vmatpush3.bf16.msra.mxu1 %v18390_v58  ;;  %2773 = vmatprep.subr.bf16.mxu0 %v18394_v60  ;;  %v18473_v58 = vld [vmem:[#allocation2 + $0xc7c] ss:$28 sps:$4 sm:$0xff]  }
 0x1dc   :  { %17434 = vmatprep.subr.bf16.mxu1 %v18391_v59  ;;  %v18476_v59 = vld [vmem:[#allocation2 + $0x8d4] ss:$28 sps:$4 sm:$0xff]  }
 0x1dd   :  { %v18471_v60 = vld [vmem:[#allocation2 + $0xc78] ss:$28 sps:$4 sm:$0xff]  }
 0x1de   :  { %2774 = vmatpush1.bf16.msra.mxu0 %v18392_v61  ;;  %v18474_v61 = vld [vmem:[#allocation2 + $0x8d0] ss:$28 sps:$4 sm:$0xff]  }
 0x1df   :  { %17435 = vmatpush3.bf16.msra.mxu1 %v18395_v62  ;;  %2775 = vmatprep.subr.bf16.mxu0 %v18399_v1  ;;  %v18479_v62 = vld [vmem:[#allocation2 + $0xcb4] ss:$28 sps:$4 sm:$0xff]  }
 0x1e0   :  { %17436 = vmatprep.subr.bf16.mxu1 %v18396_v63  ;;  %v18482_v63 = vld [vmem:[#allocation2 + $0x90c] ss:$28 sps:$4 sm:$0xff]  }
 0x1e1   :  { %v18477_v1 = vld [vmem:[#allocation2 + $0xcb0] ss:$28 sps:$4 sm:$0xff]  }
 0x1e2   :  { %2776 = vmatpush1.bf16.msra.mxu0 %v18397_v2  ;;  %v18480_v2 = vld [vmem:[#allocation2 + $0x908] ss:$28 sps:$4 sm:$0xff]  }
 0x1e3   :  { %17437 = vmatpush3.bf16.msra.mxu1 %v18400_v3  ;;  %2777 = vmatprep.subr.bf16.mxu0 %v18404_v5  ;;  %v18485_v3 = vld [vmem:[#allocation2 + $0xcec] ss:$28 sps:$4 sm:$0xff]  }
 0x1e4   :  { %17438 = vmatprep.subr.bf16.mxu1 %v18401_v4  ;;  %v18488_v4 = vld [vmem:[#allocation2 + $0x944] ss:$28 sps:$4 sm:$0xff]  }
 0x1e5   :  { %v18483_v5 = vld [vmem:[#allocation2 + $0xce8] ss:$28 sps:$4 sm:$0xff]  }
 0x1e6   :  { %2778 = vmatpush1.bf16.msra.mxu0 %v18402_v6  ;;  %v18486_v6 = vld [vmem:[#allocation2 + $0x940] ss:$28 sps:$4 sm:$0xff]  }
 0x1e7   :  { %17439 = vmatpush3.bf16.msra.mxu1 %v18405_v7  ;;  %2779 = vmatprep.subr.bf16.mxu0 %v18409_v9  ;;  %v18491_v7 = vld [vmem:[#allocation2 + $0xd24] ss:$28 sps:$4 sm:$0xff]  }
 0x1e8   :  { %17440 = vmatprep.subr.bf16.mxu1 %v18406_v8  ;;  %v18494_v8 = vld [vmem:[#allocation2 + $0x97c] ss:$28 sps:$4 sm:$0xff]  }
 0x1e9   :  { %v18489_v9 = vld [vmem:[#allocation2 + $0xd20] ss:$28 sps:$4 sm:$0xff]  }
 0x1ea   :  { %2780 = vmatpush1.bf16.msra.mxu0 %v18407_v10  ;;  %v18492_v10 = vld [vmem:[#allocation2 + $0x978] ss:$28 sps:$4 sm:$0xff]  }
 0x1eb   :  { %17441 = vmatpush3.bf16.msra.mxu1 %v18410_v11  ;;  %2781 = vmatprep.subr.bf16.mxu0 %v18414_v14  ;;  %v18497_v11 = vld [vmem:[#allocation2 + $0xd5c] ss:$28 sps:$4 sm:$0xff]  }
 0x1ec   :  { %17442 = vmatprep.subr.bf16.mxu1 %v18411_v13  ;;  %v18500_v13 = vld [vmem:[#allocation2 + $0x9b4] ss:$28 sps:$4 sm:$0xff]  }
 0x1ed   :  { %v18495_v14 = vld [vmem:[#allocation2 + $0xd58] ss:$28 sps:$4 sm:$0xff]  }
 0x1ee   :  { %2782 = vmatpush1.bf16.msra.mxu0 %v18412_v15  ;;  %v18498_v15 = vld [vmem:[#allocation2 + $0x9b0] ss:$28 sps:$4 sm:$0xff]  }
 0x1ef   :  { %17443 = vmatpush3.bf16.msra.mxu1 %v18415_v16  ;;  %2783 = vmatprep.subr.bf16.mxu0 %v18418_v17  ;;  %v18503_v16 = vld [vmem:[#allocation2 + $0xd94] ss:$28 sps:$4 sm:$0xff]   ;;  %v18506_v17 = vld [vmem:[#allocation2 + $0x9ec] ss:$28 sps:$4 sm:$0xff]  }
 0x1f0   :  { %17696 = vmatprep.subr.bf16.mxu1 %v20939_v23 }
 0x1f2   :  { %2999 = vmatmul.mubr.bf16.vlgmr.msra.gmra.mrb[20].mxu1 %v21153_v12  ;;  %2784 = vmatpush1.bf16.msra.mxu0 %v18416_v18  ;;  %v18429_v12 = vld [vmem:[#allocation2 + $0xaf0] ss:$28 sps:$4 sm:$0xff]  }
 0x1f3   :  { %17697 = vmatpush3.bf16.msra.mxu1 %v18419_v19  ;;  %2785 = vmatprep.subr.bf16.mxu0 %v18422_v20  ;;  %v18501_v18 = vld [vmem:[#allocation2 + $0xd90] ss:$28 sps:$4 sm:$0xff]   ;;  %v18504_v19 = vld [vmem:[#allocation2 + $0x9e8] ss:$28 sps:$4 sm:$0xff]  }
 0x1f4   :  { %17698 = vmatprep.mubr.msk.bf16.mxu1 %vm20940_vm1, %v20939_v23  ;;  %5205 = vmatprep.subr.bf16.mxu1 %v18425_v22  ;;  %v18509_v20 = vld [vmem:[#allocation2 + $0xdcc] ss:$28 sps:$4 sm:$0xff]   ;;  %v18512_v22 = vld [vmem:[#allocation2 + $0xa24] ss:$28 sps:$4 sm:$0xff]  }
 0x1f6   :  { %2786 = vmatpush1.bf16.msra.mxu0 %v18420_v24  ;;  %v18507_v24 = vld [vmem:[#allocation2 + $0xdc8] ss:$28 sps:$4 sm:$0xff]  }
 0x1f7   :  { %2798 = vmatprep.subr.bf16.mxu0 %v18428_v25  ;;  %v18510_v25 = vld [vmem:[#allocation2 + $0xa20] ss:$28 sps:$4 sm:$0xff]  }
 0x1f9   :  { %2788 = vmatmul.mubr.bf16.vlgmr.msra.gmra.mrb[4].mxu0 %v21192_v51  ;;  %v18464_v51 = vld [vmem:[#allocation2 + $0x864] ss:$28 sps:$4 sm:$0xff]  }
 0x1fa   :  { %17699 = vmatmul.mubr.msk.bf16.vlgmr.msra.gmra.mrb[24].mxu1 %vm2364_vm0, %v21167_v30  ;;  %2799 = vmatpush1.bf16.msra.mxu0 %v18426_v27  ;;  %v18446_v30 = vld [vmem:[#allocation2 + $0x7bc] ss:$28 sps:$4 sm:$0xff]  }
 0x1fb   :  { %5206 = vmatpush1.bf16.msra.mxu1 %v18423_v26  ;;  %2800 = vmatprep.subr.bf16.mxu0 %v18434_v29  ;;  %v18515_v26 = vld [vmem:[#allocation2 + $0xe04] ss:$28 sps:$4 sm:$0xff]   ;;  %v18518_v27 = vld [vmem:[#allocation2 + $0xa5c] ss:$28 sps:$4 sm:$0xff]  }
 0x1fc   :  { %5207 = vmatprep.subr.bf16.mxu1 %v18431_v28  ;;  %5237 = vmatprep.mubr.bf16.mxu1 %v21159_v21  ;;  %v18450_v21 = vld [vmem:[#allocation2 + $0x7f0] ss:$28 sps:$4 sm:$0xff]   ;;  %v18513_v28 = vld [vmem:[#allocation2 + $0xe00] ss:$28 sps:$4 sm:$0xff]   ;;  %v18516_v29 = vld [vmem:[#allocation2 + $0xa58] ss:$28 sps:$4 sm:$0xff]  }
 0x1fd   :  { %2830 = vmatprep.mubr.bf16.mxu0 %v21198_v56  ;;  %v18465_v56 = vld [vmem:[#allocation2 + $0xc40] ss:$28 sps:$4 sm:$0xff]  }
 0x1fe   :  { %2801 = vmatpush1.bf16.msra.mxu0 %v18432_v31  ;;  %v18524_v31 = vld [vmem:[#allocation2 + $0xac4] ss:$28 sps:$4 sm:$0xff]  }
 0x1ff   :  { %5208 = vmatpush1.bf16.msra.mxu1 %v18429_v12  ;;  %2802 = vmatprep.subr.bf16.mxu0 %v18440_v33  ;;  %v18521_v12 = vld [vmem:[#allocation2 + $0xe3c] ss:$28 sps:$4 sm:$0xff]  }
 0x200   :  { %5209 = vmatprep.subr.bf16.mxu1 %v18437_v32  ;;  %v18519_v32 = vld [vmem:[#allocation2 + $0xe38] ss:$28 sps:$4 sm:$0xff]   ;;  %v18522_v33 = vld [vmem:[#allocation2 + $0xac0] ss:$28 sps:$4 sm:$0xff]  }
 0x202   :  { %2803 = vmatpush1.bf16.msra.mxu0 %v18438_v35  ;;  %v18530_v35 = vld [vmem:[#allocation2 + $0xafc] ss:$28 sps:$4 sm:$0xff]  }
 0x203   :  { %5210 = vmatpush1.bf16.msra.mxu1 %v18435_v34  ;;  %2804 = vmatprep.subr.bf16.mxu0 %v18446_v30  ;;  %v18527_v34 = vld [vmem:[#allocation2 + $0xe74] ss:$28 sps:$4 sm:$0xff]  }
 0x204   :  { %5211 = vmatprep.subr.bf16.mxu1 %v18443_v36  ;;  %v21213_v36 = vld [vmem:[%s21843_s0] ss:$28 sps:$4 sm:$0xff]   ;;  %v20652_v30 = vld [vmem:[%s21843_s0 + $0x10] ss:$28 sps:$4 sm:$0xff]  }
 0x206   :  { %2805 = vmatpush1.bf16.msra.mxu0 %v18444_v40  ;;  %v18528_v40 = vld [vmem:[#allocation2 + $0xaf8] ss:$28 sps:$4 sm:$0xff]  }
 0x207   :  { %5212 = vmatpush1.bf16.msra.mxu1 %v18441_v38  ;;  %2806 = vmatprep.subr.bf16.mxu0 %v18452_v43  ;;  %v18525_v38 = vld [vmem:[#allocation2 + $0xe70] ss:$28 sps:$4 sm:$0xff]  }
 0x208   :  { %5213 = vmatprep.subr.bf16.mxu1 %v18449_v42  ;;  %v18533_v42 = vld [vmem:[#allocation2 + $0xeac] ss:$28 sps:$4 sm:$0xff]   ;;  %v18536_v43 = vld [vmem:[#allocation2 + $0xb34] ss:$28 sps:$4 sm:$0xff]  }
 0x20a   :  { %2807 = vmatpush1.bf16.msra.mxu0 %v18450_v21  ;;  %v18534_v21 = vld [vmem:[#allocation2 + $0xb30] ss:$28 sps:$4 sm:$0xff]  }
 0x20b   :  { %5214 = vmatpush1.bf16.msra.mxu1 %v18447_v45  ;;  %2808 = vmatprep.subr.bf16.mxu0 %v18458_v47  ;;  %v18531_v45 = vld [vmem:[#allocation2 + $0xea8] ss:$28 sps:$4 sm:$0xff]  }
 0x20c   :  { %5215 = vmatprep.subr.bf16.mxu1 %v18455_v46  ;;  %v21222_v46 = vld [vmem:[%s21843_s0 + $0xc] ss:$28 sps:$4 sm:$0xff]   ;;  %v20654_v47 = vld [vmem:[%s21843_s0 + $0x4] ss:$28 sps:$4 sm:$0xff]  }
 0x20e   :  { %2809 = vmatpush1.bf16.msra.mxu0 %v18456_v49  ;;  %v18542_v49 = vld [vmem:[#allocation2 + $0xb6c] ss:$28 sps:$4 sm:$0xff]  }
 0x20f   :  { %5216 = vmatpush1.bf16.msra.mxu1 %v18453_v48  ;;  %2810 = vmatprep.subr.bf16.mxu0 %v18464_v51  ;;  %v18539_v48 = vld [vmem:[#allocation2 + $0xee4] ss:$28 sps:$4 sm:$0xff]  }
 0x210   :  { %5217 = vmatprep.subr.bf16.mxu1 %v18461_v50  ;;  %v18537_v50 = vld [vmem:[#allocation2 + $0xee0] ss:$28 sps:$4 sm:$0xff]   ;;  %v18540_v51 = vld [vmem:[#allocation2 + $0xb68] ss:$28 sps:$4 sm:$0xff]  }
 0x212   :  { %2811 = vmatpush1.bf16.msra.mxu0 %v18462_v53  ;;  %v18548_v53 = vld [vmem:[#allocation2 + $0xba4] ss:$28 sps:$4 sm:$0xff]  }
 0x213   :  { %5218 = vmatpush1.bf16.msra.mxu1 %v18459_v52  ;;  %2812 = vmatprep.subr.bf16.mxu0 %v18470_v55  ;;  %v18545_v52 = vld [vmem:[#allocation2 + $0xf1c] ss:$28 sps:$4 sm:$0xff]  }
 0x214   :  { %5219 = vmatprep.subr.bf16.mxu1 %v18467_v54  ;;  %v18543_v54 = vld [vmem:[#allocation2 + $0xf18] ss:$28 sps:$4 sm:$0xff]   ;;  %v18546_v55 = vld [vmem:[#allocation2 + $0xba0] ss:$28 sps:$4 sm:$0xff]  }
 0x216   :  { %2813 = vmatpush1.bf16.msra.mxu0 %v18468_v57  ;;  %v18554_v57 = vld [vmem:[#allocation2 + $0xbdc] ss:$28 sps:$4 sm:$0xff]  }
 0x217   :  { %5220 = vmatpush1.bf16.msra.mxu1 %v18465_v56  ;;  %2814 = vmatprep.subr.bf16.mxu0 %v18476_v59  ;;  %v18551_v56 = vld [vmem:[#allocation2 + $0xf54] ss:$28 sps:$4 sm:$0xff]  }
 0x218   :  { %5221 = vmatprep.subr.bf16.mxu1 %v18473_v58  ;;  %v18549_v58 = vld [vmem:[#allocation2 + $0xf50] ss:$28 sps:$4 sm:$0xff]   ;;  %v18552_v59 = vld [vmem:[#allocation2 + $0xbd8] ss:$28 sps:$4 sm:$0xff]  }
 0x21a   :  { %2815 = vmatpush1.bf16.msra.mxu0 %v18474_v61  ;;  %v18560_v61 = vld [vmem:[#allocation2 + $0xc14] ss:$28 sps:$4 sm:$0xff]  }
 0x21b   :  { %5222 = vmatpush1.bf16.msra.mxu1 %v18471_v60  ;;  %2816 = vmatprep.subr.bf16.mxu0 %v18482_v63  ;;  %v18557_v60 = vld [vmem:[#allocation2 + $0xf8c] ss:$28 sps:$4 sm:$0xff]  }
 0x21c   :  { %5223 = vmatprep.subr.bf16.mxu1 %v18479_v62  ;;  %v18555_v63 = vld [vmem:[#allocation2 + $0xf88] ss:$28 sps:$4 sm:$0xff]  }
 0x21e   :  { %2817 = vmatpush1.bf16.msra.mxu0 %v18480_v2 }
 0x21f   :  { %5224 = vmatpush1.bf16.msra.mxu1 %v18477_v1  ;;  %2818 = vmatprep.subr.bf16.mxu0 %v18488_v4 }
 0x220   :  { %5225 = vmatprep.subr.bf16.mxu1 %v18485_v3 }
 0x222   :  { %2819 = vmatpush1.bf16.msra.mxu0 %v18486_v6 }
 0x223   :  { %5226 = vmatpush1.bf16.msra.mxu1 %v18483_v5  ;;  %2820 = vmatprep.subr.bf16.mxu0 %v18494_v8  ;;  %v18558_v5 = vld [vmem:[#allocation2 + $0xc10] ss:$28 sps:$4 sm:$0xff]   ;;  %v18563_v8 = vld [vmem:[#allocation2 + $0xfc4] ss:$28 sps:$4 sm:$0xff]  }
 0x224   :  { %5227 = vmatprep.subr.bf16.mxu1 %v18491_v7 }
 0x226   :  { %2821 = vmatpush1.bf16.msra.mxu0 %v18492_v10 }
 0x227   :  { %5228 = vmatpush1.bf16.msra.mxu1 %v18489_v9  ;;  %2822 = vmatprep.subr.bf16.mxu0 %v18500_v13  ;;  %v18566_v9 = vld [vmem:[#allocation2 + $0xc4c] ss:$28 sps:$4 sm:$0xff]   ;;  %v18572_v13 = vld [vmem:[#allocation2 + $0xc84] ss:$28 sps:$4 sm:$0xff]  }
 0x228   :  { %5229 = vmatprep.subr.bf16.mxu1 %v18497_v11  ;;  %v18564_v11 = vld [vmem:[#allocation2 + $0xc48] ss:$28 sps:$4 sm:$0xff]  }
 0x22a   :  { %2823 = vmatpush1.bf16.msra.mxu0 %v18498_v15  ;;  %v18575_v15 = vld [vmem:[#allocation2 + $0x1034] ss:$28 sps:$4 sm:$0xff]  }
 0x22b   :  { %5230 = vmatpush1.bf16.msra.mxu1 %v18495_v14  ;;  %2824 = vmatprep.subr.bf16.mxu0 %v18506_v17  ;;  %v18570_v14 = vld [vmem:[#allocation2 + $0xc80] ss:$28 sps:$4 sm:$0xff]   ;;  %v18576_v17 = vld [vmem:[#allocation2 + $0xcb8] ss:$28 sps:$4 sm:$0xff]  }
 0x22c   :  { %5231 = vmatprep.subr.bf16.mxu1 %v18503_v16  ;;  %v18578_v16 = vld [vmem:[#allocation2 + $0xcbc] ss:$28 sps:$4 sm:$0xff]  }
 0x22e   :  { %2825 = vmatpush1.bf16.msra.mxu0 %v18504_v19  ;;  %v18584_v19 = vld [vmem:[#allocation2 + $0xcf4] ss:$28 sps:$4 sm:$0xff]  }
 0x22f   :  { %5232 = vmatpush1.bf16.msra.mxu1 %v18501_v18  ;;  %2826 = vmatprep.subr.bf16.mxu0 %v18512_v22  ;;  %v18581_v18 = vld [vmem:[#allocation2 + $0x106c] ss:$28 sps:$4 sm:$0xff]  }
 0x230   :  { %5233 = vmatprep.subr.bf16.mxu1 %v18509_v20 }
 0x232   :  { %2827 = vmatpush1.bf16.msra.mxu0 %v18510_v25  ;;  %v18579_v25 = vld [vmem:[#allocation2 + $0x1068] ss:$28 sps:$4 sm:$0xff]  }
 0x233   :  { %5234 = vmatpush1.bf16.msra.mxu1 %v18507_v24  ;;  %2828 = vmatprep.subr.bf16.mxu0 %v18518_v27 }
 0x234   :  { %5235 = vmatprep.subr.bf16.mxu1 %v18515_v26  ;;  %v18582_v26 = vld [vmem:[#allocation2 + $0xcf0] ss:$28 sps:$4 sm:$0xff]  }
 0x236   :  { %2829 = vmatpush1.bf16.msra.mxu0 %v18516_v29  ;;  %v18590_v29 = vld [vmem:[#allocation2 + $0xd2c] ss:$28 sps:$4 sm:$0xff]  }
 0x237   :  { %5236 = vmatpush1.bf16.msra.mxu1 %v18513_v28  ;;  %5377 = vmatprep.subr.bf16.mxu0 %v18524_v31  ;;  %v18587_v28 = vld [vmem:[#allocation2 + $0x10a4] ss:$28 sps:$4 sm:$0xff]  }
 0x238   :  { %5248 = vmatprep.subr.bf16.mxu1 %v18521_v12  ;;  %v18585_v12 = vld [vmem:[#allocation2 + $0x10a0] ss:$28 sps:$4 sm:$0xff]   ;;  %v18588_v31 = vld [vmem:[#allocation2 + $0xd28] ss:$28 sps:$4 sm:$0xff]  }
 0x239   :  { %2831 = vmatmul.mubr.bf16.vlgmr.msra.gmra.mrb[4].mxu0 %v20652_v30 }
 0x23a   :  { %5238 = vmatmul.mubr.bf16.vlgmr.msra.gmra.mrb[28].mxu1 %v21213_v36  ;;  %5378 = vmatpush1.bf16.msra.mxu0 %v18522_v33  ;;  %v18596_v33 = vld [vmem:[#allocation2 + $0xd64] ss:$28 sps:$4 sm:$0xff]  }
 0x23b   :  { %5249 = vmatpush1.bf16.msra.mxu1 %v18519_v32  ;;  %5379 = vmatprep.subr.bf16.mxu0 %v18530_v35  ;;  %v18593_v32 = vld [vmem:[#allocation2 + $0x10dc] ss:$28 sps:$4 sm:$0xff]  }
 0x23c   :  { %5250 = vmatprep.subr.bf16.mxu1 %v18527_v34  ;;  %5280 = vmatprep.mubr.bf16.mxu1 %v21222_v46 }
 0x23d   :  { %5409 = vmatprep.mubr.bf16.mxu0 %v20654_v47  ;;  %v18600_v47 = vld [vmem:[#allocation2 + $0xd98] ss:$28 sps:$4 sm:$0xff]  }
 0x23e   :  { %5380 = vmatpush1.bf16.msra.mxu0 %v18528_v40  ;;  %v18594_v40 = vld [vmem:[#allocation2 + $0xd60] ss:$28 sps:$4 sm:$0xff]  }
 0x23f   :  { %5251 = vmatpush1.bf16.msra.mxu1 %v18525_v38  ;;  %5381 = vmatprep.subr.bf16.mxu0 %v18536_v43  ;;  %v18591_v38 = vld [vmem:[#allocation2 + $0x10d8] ss:$28 sps:$4 sm:$0xff]  }
 0x240   :  { %5252 = vmatprep.subr.bf16.mxu1 %v18533_v42  ;;  %v18599_v43 = vld [vmem:[#allocation2 + $0x1114] ss:$28 sps:$4 sm:$0xff]  }
 0x242   :  { %5382 = vmatpush1.bf16.msra.mxu0 %v18534_v21  ;;  %v18597_v21 = vld [vmem:[#allocation2 + $0x1110] ss:$28 sps:$4 sm:$0xff]  }
 0x243   :  { %5253 = vmatpush1.bf16.msra.mxu1 %v18531_v45  ;;  %5383 = vmatprep.subr.bf16.mxu0 %v18542_v49  ;;  %v18602_v45 = vld [vmem:[#allocation2 + $0xd9c] ss:$28 sps:$4 sm:$0xff]   ;;  %v18608_v49 = vld [vmem:[#allocation2 + $0xdd4] ss:$28 sps:$4 sm:$0xff]  }
 0x244   :  { %5254 = vmatprep.subr.bf16.mxu1 %v18539_v48  ;;  %v18605_v48 = vld [vmem:[#allocation2 + $0x114c] ss:$28 sps:$4 sm:$0xff]  }
 0x246   :  { %5384 = vmatpush1.bf16.msra.mxu0 %v18540_v51  ;;  %v18606_v51 = vld [vmem:[#allocation2 + $0xdd0] ss:$28 sps:$4 sm:$0xff]  }
 0x247   :  { %5255 = vmatpush1.bf16.msra.mxu1 %v18537_v50  ;;  %5385 = vmatprep.subr.bf16.mxu0 %v18548_v53  ;;  %v18603_v50 = vld [vmem:[#allocation2 + $0x1148] ss:$28 sps:$4 sm:$0xff]  }
 0x248   :  { %5256 = vmatprep.subr.bf16.mxu1 %v18545_v52  ;;  %v18611_v52 = vld [vmem:[#allocation2 + $0x1184] ss:$28 sps:$4 sm:$0xff]   ;;  %v18614_v53 = vld [vmem:[#allocation2 + $0xe0c] ss:$28 sps:$4 sm:$0xff]  }
 0x24a   :  { %5386 = vmatpush1.bf16.msra.mxu0 %v18546_v55  ;;  %v18612_v55 = vld [vmem:[#allocation2 + $0xe08] ss:$28 sps:$4 sm:$0xff]  }
 0x24b   :  { %5257 = vmatpush1.bf16.msra.mxu1 %v18543_v54  ;;  %5387 = vmatprep.subr.bf16.mxu0 %v18554_v57  ;;  %v18609_v54 = vld [vmem:[#allocation2 + $0x1180] ss:$28 sps:$4 sm:$0xff]  }
 0x24c   :  { %5258 = vmatprep.subr.bf16.mxu1 %v18551_v56  ;;  %v2488_v62 = vpop.f32.mrb[0].mxu0  ;;  %v18617_v56 = vld [vmem:[#allocation2 + $0x11bc] ss:$28 sps:$4 sm:$0xff]   ;;  %v18620_v57 = vld [vmem:[#allocation2 + $0xe44] ss:$28 sps:$4 sm:$0xff]  }
 0x24d   :  { %v21229_v1 = vadd.f32 %v21172_v37, %v2488_v62  ;;  %v2490_v2 = vpop.f32.mrb[1].mxu0  ;;  %v18561_v37 = vld [vmem:[#allocation2 + $0xfc0] ss:$28 sps:$4 sm:$0xff]   ;;  %v18621_v62 = vld [vmem:[#allocation2 + $0x11f0] ss:$28 sps:$4 sm:$0xff]  }
 0x24e   :  { %v21232_v3 = vadd.f32 %v21174_v39, %v2490_v2  ;;  %v2492_v4 = vpop.f32.mrb[2].mxu0  ;;  %5388 = vmatpush1.bf16.msra.mxu0 %v18552_v59  ;;  %v18569_v39 = vld [vmem:[#allocation2 + $0xffc] ss:$28 sps:$4 sm:$0xff]   ;;  %v21259_v2 = vld [vmem:[%s21843_s0 + $0x8] ss:$28 sps:$4 sm:$0xff]  }
 0x24f   :  { %5259 = vmatpush1.bf16.msra.mxu1 %v18549_v58  ;;  %v21235_v6 = vadd.f32 %v21178_v41, %v2492_v4  ;;  %v2494_v7 = vpop.f32.mrb[3].mxu0  ;;  %5389 = vmatprep.subr.bf16.mxu0 %v18560_v61  ;;  %v18567_v41 = vld [vmem:[#allocation2 + $0xff8] ss:$28 sps:$4 sm:$0xff]   ;;  %v18618_v59 = vld [vmem:[#allocation2 + $0xe40] ss:$28 sps:$4 sm:$0xff]  }
 0x250   :  { %5260 = vmatprep.subr.bf16.mxu1 %v18557_v60  ;;  %v21238_v10 = vadd.f32 %v21180_v44, %v2494_v7  ;;  %v18573_v44 = vld [vmem:[#allocation2 + $0x1030] ss:$28 sps:$4 sm:$0xff]   ;;  %v18615_v58 = vld [vmem:[#allocation2 + $0x11b8] ss:$28 sps:$4 sm:$0xff]   ;;  %v18627_v7 = vld [vmem:[#allocation2 + $0x1228] ss:$28 sps:$4 sm:$0xff]  }
 0x251   :  { %v18623_v60 = vld [vmem:[#allocation2 + $0x11f4] ss:$28 sps:$4 sm:$0xff]   ;;  %v18626_v61 = vld [vmem:[#allocation2 + $0xe7c] ss:$28 sps:$4 sm:$0xff]   ;;  %v18629_v4 = vld [vmem:[#allocation2 + $0x122c] ss:$28 sps:$4 sm:$0xff]  }
 0x252   :  { %5390 = vmatpush1.bf16.msra.mxu0 %v18558_v5  ;;  %v18632_v5 = vld [vmem:[#allocation2 + $0xeb4] ss:$28 sps:$4 sm:$0xff]  }
 0x253   :  { %5261 = vmatpush1.bf16.msra.mxu1 %v18555_v63  ;;  %5391 = vmatprep.subr.bf16.mxu0 %v18566_v9  ;;  %v18624_v63 = vld [vmem:[#allocation2 + $0xe78] ss:$28 sps:$4 sm:$0xff]  }
 0x254   :  { %5262 = vmatprep.subr.bf16.mxu1 %v18563_v8  ;;  %v18630_v8 = vld [vmem:[#allocation2 + $0xeb0] ss:$28 sps:$4 sm:$0xff]  }
 0x255   :  { %v21266_v9 = vld [vmem:[%s21843_s0 + $0x14] ss:$28 sps:$4 sm:$0xff]  }
 0x256   :  { %5392 = vmatpush1.bf16.msra.mxu0 %v18564_v11  ;;  %v18633_v11 = vld [vmem:[#allocation2 + $0x1260] ss:$28 sps:$4 sm:$0xff]  }
 0x257   :  { %5263 = vmatpush1.bf16.msra.mxu1 %v18561_v37  ;;  %5393 = vmatprep.subr.bf16.mxu0 %v18572_v13  ;;  %v18638_v37 = vld [vmem:[#allocation2 + $0xeec] ss:$28 sps:$4 sm:$0xff]   ;;  %v18641_v13 = vld [vmem:[#allocation2 + $0x129c] ss:$28 sps:$4 sm:$0xff]  }
 0x258   :  { %5264 = vmatprep.subr.bf16.mxu1 %v18569_v39  ;;  %v18636_v39 = vld [vmem:[#allocation2 + $0xee8] ss:$28 sps:$4 sm:$0xff]  }
 0x25a   :  { %5394 = vmatpush1.bf16.msra.mxu0 %v18570_v14 }
 0x25b   :  { %5265 = vmatpush1.bf16.msra.mxu1 %v18567_v41  ;;  %5395 = vmatprep.subr.bf16.mxu0 %v18578_v16  ;;  %v18644_v41 = vld [vmem:[#allocation2 + $0xf24] ss:$28 sps:$4 sm:$0xff]   ;;  %v18639_v16 = vld [vmem:[#allocation2 + $0x1298] ss:$28 sps:$4 sm:$0xff]  }
 0x25c   :  { %5266 = vmatprep.subr.bf16.mxu1 %v18575_v15 }
 0x25d   :  { %v21240_v20 = vpop.f32.mrb[4].mxu1 }
 0x25e   :  { %v21242_v22 = vpop.f32.mrb[5].mxu1  ;;  %5396 = vmatpush1.bf16.msra.mxu0 %v18576_v17  ;;  %v18642_v17 = vld [vmem:[#allocation2 + $0xf20] ss:$28 sps:$4 sm:$0xff]  }
 0x25f   :  { %5267 = vmatpush1.bf16.msra.mxu1 %v18573_v44  ;;  %v21244_v24 = vpop.f32.mrb[6].mxu1  ;;  %5397 = vmatprep.subr.bf16.mxu0 %v18584_v19 }
 0x260   :  { %v21246_v27 = vpop.f32.mrb[7].mxu1  ;;  %5268 = vmatprep.subr.bf16.mxu1 %v18581_v18  ;;  %v18647_v18 = vld [vmem:[#allocation2 + $0x12d4] ss:$28 sps:$4 sm:$0xff]  }
 0x262   :  { %5398 = vmatpush1.bf16.msra.mxu0 %v18582_v26 }
 0x263   :  { %5269 = vmatpush1.bf16.msra.mxu1 %v18579_v25  ;;  %5399 = vmatprep.subr.bf16.mxu0 %v18590_v29  ;;  %v18650_v25 = vld [vmem:[#allocation2 + $0xf5c] ss:$28 sps:$4 sm:$0xff]  }
 0x264   :  { %5270 = vmatprep.subr.bf16.mxu1 %v18587_v28  ;;  %v18645_v28 = vld [vmem:[#allocation2 + $0x12d0] ss:$28 sps:$4 sm:$0xff]   ;;  %v18648_v29 = vld [vmem:[#allocation2 + $0xf58] ss:$28 sps:$4 sm:$0xff]  }
 0x265   :  { %v21248_v34 = vpop.f32.mrb[8].mxu1 }
 0x266   :  { %v21250_v35 = vpop.f32.mrb[9].mxu1  ;;  %5400 = vmatpush1.bf16.msra.mxu0 %v18588_v31  ;;  %v18656_v31 = vld [vmem:[#allocation2 + $0xf94] ss:$28 sps:$4 sm:$0xff]  }
 0x267   :  { %5271 = vmatpush1.bf16.msra.mxu1 %v18585_v12  ;;  %v21252_v30 = vpop.f32.mrb[10].mxu1  ;;  %5401 = vmatprep.subr.bf16.mxu0 %v18596_v33  ;;  %v18653_v12 = vld [vmem:[#allocation2 + $0x130c] ss:$28 sps:$4 sm:$0xff]  }
 0x268   :  { %v21254_v42 = vpop.f32.mrb[11].mxu1  ;;  %5272 = vmatprep.subr.bf16.mxu1 %v18593_v32  ;;  %v18651_v32 = vld [vmem:[#allocation2 + $0x1308] ss:$28 sps:$4 sm:$0xff]   ;;  %v18654_v33 = vld [vmem:[#allocation2 + $0xf90] ss:$28 sps:$4 sm:$0xff]  }
 0x26a   :  { %5402 = vmatpush1.bf16.msra.mxu0 %v18594_v40  ;;  %v18662_v40 = vld [vmem:[#allocation2 + $0xfcc] ss:$28 sps:$4 sm:$0xff]  }
 0x26b   :  { %5273 = vmatpush1.bf16.msra.mxu1 %v18591_v38  ;;  %5403 = vmatprep.subr.bf16.mxu0 %v18602_v45  ;;  %v18659_v38 = vld [vmem:[#allocation2 + $0x1344] ss:$28 sps:$4 sm:$0xff]  }
 0x26c   :  { %5274 = vmatprep.subr.bf16.mxu1 %v18599_v43  ;;  %v18657_v43 = vld [vmem:[#allocation2 + $0x1340] ss:$28 sps:$4 sm:$0xff]   ;;  %v18660_v45 = vld [vmem:[#allocation2 + $0xfc8] ss:$28 sps:$4 sm:$0xff]  }
 0x26e   :  { %5404 = vmatpush1.bf16.msra.mxu0 %v18600_v47  ;;  %v18668_v47 = vld [vmem:[#allocation2 + $0x1004] ss:$28 sps:$4 sm:$0xff]  }
 0x26f   :  { %5275 = vmatpush1.bf16.msra.mxu1 %v18597_v21  ;;  %5405 = vmatprep.subr.bf16.mxu0 %v18608_v49  ;;  %v18665_v21 = vld [vmem:[#allocation2 + $0x137c] ss:$28 sps:$4 sm:$0xff]  }
 0x270   :  { %5276 = vmatprep.subr.bf16.mxu1 %v18605_v48  ;;  %v18663_v48 = vld [vmem:[#allocation2 + $0x1378] ss:$28 sps:$4 sm:$0xff]   ;;  %v18666_v49 = vld [vmem:[#allocation2 + $0x1000] ss:$28 sps:$4 sm:$0xff]  }
 0x272   :  { %5406 = vmatpush1.bf16.msra.mxu0 %v18606_v51  ;;  %v18674_v51 = vld [vmem:[#allocation2 + $0x103c] ss:$28 sps:$4 sm:$0xff]  }
 0x273   :  { %5277 = vmatpush1.bf16.msra.mxu1 %v18603_v50  ;;  %5407 = vmatprep.subr.bf16.mxu0 %v18614_v53  ;;  %v18671_v50 = vld [vmem:[#allocation2 + $0x13b4] ss:$28 sps:$4 sm:$0xff]  }
 0x274   :  { %5278 = vmatprep.subr.bf16.mxu1 %v18611_v52  ;;  %v18669_v52 = vld [vmem:[#allocation2 + $0x13b0] ss:$28 sps:$4 sm:$0xff]   ;;  %v18672_v53 = vld [vmem:[#allocation2 + $0x1038] ss:$28 sps:$4 sm:$0xff]  }
 0x276   :  { %5408 = vmatpush1.bf16.msra.mxu0 %v18612_v55  ;;  %v18680_v55 = vld [vmem:[#allocation2 + $0x1074] ss:$28 sps:$4 sm:$0xff]  }
 0x277   :  { %5279 = vmatpush1.bf16.msra.mxu1 %v18609_v54  ;;  %5420 = vmatprep.subr.bf16.mxu0 %v18620_v57  ;;  %v18677_v54 = vld [vmem:[#allocation2 + $0x13ec] ss:$28 sps:$4 sm:$0xff]  }
 0x278   :  { %5291 = vmatprep.subr.bf16.mxu1 %v18617_v56  ;;  %v18675_v56 = vld [vmem:[#allocation2 + $0x13e8] ss:$28 sps:$4 sm:$0xff]   ;;  %v18678_v57 = vld [vmem:[#allocation2 + $0x1070] ss:$28 sps:$4 sm:$0xff]  }
 0x279   :  { %5410 = vmatmul.mubr.bf16.vlgmr.msra.gmra.mrb[8].mxu0 %v21213_v36  ;;  %v18635_v36 = vld [vmem:[#allocation2 + $0x1264] ss:$28 sps:$4 sm:$0xff]  }
 0x27a   :  { %5281 = vmatmul.mubr.bf16.vlgmr.msra.gmra.mrb[28].mxu1 %v21259_v2  ;;  %5421 = vmatpush1.bf16.msra.mxu0 %v18618_v59  ;;  %v18686_v59 = vld [vmem:[#allocation2 + $0x10ac] ss:$28 sps:$4 sm:$0xff]  }
 0x27b   :  { %5292 = vmatpush1.bf16.msra.mxu1 %v18615_v58  ;;  %5422 = vmatprep.subr.bf16.mxu0 %v18626_v61  ;;  %v18683_v58 = vld [vmem:[#allocation2 + $0x1424] ss:$28 sps:$4 sm:$0xff]  }
 0x27c   :  { %5293 = vmatprep.subr.bf16.mxu1 %v18623_v60  ;;  %5323 = vmatprep.mubr.bf16.mxu1 %v21266_v9  ;;  %v18681_v60 = vld [vmem:[#allocation2 + $0x1420] ss:$28 sps:$4 sm:$0xff]   ;;  %v18684_v61 = vld [vmem:[#allocation2 + $0x10a8] ss:$28 sps:$4 sm:$0xff]  }
 0x27d   :  { %5452 = vmatprep.mubr.bf16.mxu0 %v21222_v46 }
 0x27e   :  { %5423 = vmatpush1.bf16.msra.mxu0 %v18624_v63  ;;  %v18692_v63 = vld [vmem:[#allocation2 + $0x10e4] ss:$28 sps:$4 sm:$0xff]  }
 0x27f   :  { %5294 = vmatpush1.bf16.msra.mxu1 %v18621_v62  ;;  %5424 = vmatprep.subr.bf16.mxu0 %v18632_v5  ;;  %v18689_v62 = vld [vmem:[#allocation2 + $0x145c] ss:$28 sps:$4 sm:$0xff]  }
 0x280   :  { %5295 = vmatprep.subr.bf16.mxu1 %v18629_v4 }
 0x282   :  { %5425 = vmatpush1.bf16.msra.mxu0 %v18630_v8 }
 0x283   :  { %5296 = vmatpush1.bf16.msra.mxu1 %v18627_v7  ;;  %5426 = vmatprep.subr.bf16.mxu0 %v18638_v37  ;;  %v18687_v7 = vld [vmem:[#allocation2 + $0x1458] ss:$28 sps:$4 sm:$0xff]   ;;  %v18690_v37 = vld [vmem:[#allocation2 + $0x10e0] ss:$28 sps:$4 sm:$0xff]  }
 0x284   :  { %5297 = vmatprep.subr.bf16.mxu1 %v18635_v36 }
 0x285   :  { %v17400_v14 = vpop.f32.mrb[12].mxu1 }
 0x286   :  { %v17401_v15 = vpop.f32.mrb[13].mxu1  ;;  %5427 = vmatpush1.bf16.msra.mxu0 %v18636_v39 }
 0x287   :  { %v21270_v44 = vadd.f32 %v17401_v15, %v17400_v14  ;;  %5298 = vmatpush1.bf16.msra.mxu1 %v18633_v11  ;;  %v17403_v46 = vpop.f32.mrb[14].mxu1  ;;  %5428 = vmatprep.subr.bf16.mxu0 %v18644_v41  ;;  %v18695_v11 = vld [vmem:[#allocation2 + $0x1494] ss:$28 sps:$4 sm:$0xff]  }
 0x288   :  { %v17404_v19 = vpop.f32.mrb[15].mxu1  ;;  %5299 = vmatprep.subr.bf16.mxu1 %v18641_v13  ;;  %v18698_v13 = vld [vmem:[#allocation2 + $0x111c] ss:$28 sps:$4 sm:$0xff]   ;;  %v18693_v15 = vld [vmem:[#allocation2 + $0x1490] ss:$28 sps:$4 sm:$0xff]  }
 0x289   :  { %v21272_v26 = vadd.f32 %v17404_v19, %v17403_v46  ;;  %v18696_v46 = vld [vmem:[#allocation2 + $0x1118] ss:$28 sps:$4 sm:$0xff]   ;;  %v18699_v19 = vld [vmem:[#allocation2 + $0x14c8] ss:$28 sps:$4 sm:$0xff]  }
 0x28a   :  { %5429 = vmatpush1.bf16.msra.mxu0 %v18642_v17  ;;  %v18701_v17 = vld [vmem:[#allocation2 + $0x14cc] ss:$28 sps:$4 sm:$0xff]  }
 0x28b   :  { %5300 = vmatpush1.bf16.msra.mxu1 %v18639_v16  ;;  %5430 = vmatprep.subr.bf16.mxu0 %v18650_v25  ;;  %v18702_v25 = vld [vmem:[#allocation2 + $0x1150] ss:$28 sps:$4 sm:$0xff]  }
 0x28c   :  { %5301 = vmatprep.subr.bf16.mxu1 %v18647_v18  ;;  %v18704_v18 = vld [vmem:[#allocation2 + $0x1154] ss:$28 sps:$4 sm:$0xff]  }
 0x28e   :  { %5431 = vmatpush1.bf16.msra.mxu0 %v18648_v29  ;;  %v18710_v29 = vld [vmem:[#allocation2 + $0x118c] ss:$28 sps:$4 sm:$0xff]  }
 0x28f   :  { %5302 = vmatpush1.bf16.msra.mxu1 %v18645_v28  ;;  %5432 = vmatprep.subr.bf16.mxu0 %v18656_v31  ;;  %v18707_v28 = vld [vmem:[#allocation2 + $0x1504] ss:$28 sps:$4 sm:$0xff]  }
 0x290   :  { %5303 = vmatprep.subr.bf16.mxu1 %v18653_v12  ;;  %v18713_v12 = vld [vmem:[#allocation2 + $0x153c] ss:$28 sps:$4 sm:$0xff]   ;;  %v18716_v31 = vld [vmem:[#allocation2 + $0x11c4] ss:$28 sps:$4 sm:$0xff]  }
 0x292   :  { %5433 = vmatpush1.bf16.msra.mxu0 %v18654_v33  ;;  %v18714_v33 = vld [vmem:[#allocation2 + $0x11c0] ss:$28 sps:$4 sm:$0xff]  }
 0x293   :  { %5304 = vmatpush1.bf16.msra.mxu1 %v18651_v32  ;;  %5434 = vmatprep.subr.bf16.mxu0 %v18662_v40  ;;  %v18711_v32 = vld [vmem:[#allocation2 + $0x1538] ss:$28 sps:$4 sm:$0xff]   ;;  %v18725_v40 = vld [vmem:[#allocation2 + $0xacc] ss:$28 sps:$4 sm:$0xff]  }
 0x294   :  { %5305 = vmatprep.subr.bf16.mxu1 %v18659_v38  ;;  %v18719_v38 = vld [vmem:[#allocation2 + $0x11fc] ss:$28 sps:$4 sm:$0xff]  }
 0x296   :  { %5435 = vmatpush1.bf16.msra.mxu0 %v18660_v45  ;;  %v18717_v45 = vld [vmem:[#allocation2 + $0x11f8] ss:$28 sps:$4 sm:$0xff]  }
 0x297   :  { %5306 = vmatpush1.bf16.msra.mxu1 %v18657_v43  ;;  %5436 = vmatprep.subr.bf16.mxu0 %v18668_v47  ;;  %v21283_v43 = vld [vmem:[%s21843_s0 + $0x10] ss:$28 sps:$4 sm:$0xff]  }
 0x298   :  { %5307 = vmatprep.subr.bf16.mxu1 %v18665_v21  ;;  %v18722_v21 = vld [vmem:[#allocation2 + $0x1234] ss:$28 sps:$4 sm:$0xff]  }
 0x299   :  { %v18720_v47 = vld [vmem:[#allocation2 + $0x1230] ss:$28 sps:$4 sm:$0xff]  }
 0x29a   :  { %5437 = vmatpush1.bf16.msra.mxu0 %v18666_v49  ;;  %v18723_v49 = vld [vmem:[#allocation2 + $0xac8] ss:$28 sps:$4 sm:$0xff]  }
 0x29b   :  { %5308 = vmatpush1.bf16.msra.mxu1 %v18663_v48  ;;  %5438 = vmatprep.subr.bf16.mxu0 %v18674_v51  ;;  %v18728_v48 = vld [vmem:[#allocation2 + $0x126c] ss:$28 sps:$4 sm:$0xff]   ;;  %v18731_v51 = vld [vmem:[#allocation2 + $0xb04] ss:$28 sps:$4 sm:$0xff]  }
 0x29c   :  { %5309 = vmatprep.subr.bf16.mxu1 %v18671_v50  ;;  %v18726_v50 = vld [vmem:[#allocation2 + $0x1268] ss:$28 sps:$4 sm:$0xff]  }
 0x29e   :  { %5439 = vmatpush1.bf16.msra.mxu0 %v18672_v53  ;;  %v21292_v53 = vld [vmem:[%s21843_s0 + $0x18] ss:$28 sps:$4 sm:$0xff]  }
 0x29f   :  { %5310 = vmatpush1.bf16.msra.mxu1 %v18669_v52  ;;  %5440 = vmatprep.subr.bf16.mxu0 %v18680_v55  ;;  %v18734_v52 = vld [vmem:[#allocation2 + $0x12a4] ss:$28 sps:$4 sm:$0xff]  }
 0x2a0   :  { %5311 = vmatprep.subr.bf16.mxu1 %v18677_v54  ;;  %v18729_v54 = vld [vmem:[#allocation2 + $0xb00] ss:$28 sps:$4 sm:$0xff]  }
 0x2a2   :  { %5441 = vmatpush1.bf16.msra.mxu0 %v18678_v57  ;;  %v18732_v57 = vld [vmem:[#allocation2 + $0x12a0] ss:$28 sps:$4 sm:$0xff]  }
 0x2a3   :  { %5312 = vmatpush1.bf16.msra.mxu1 %v18675_v56  ;;  %5442 = vmatprep.subr.bf16.mxu0 %v18686_v59 }
 0x2a4   :  { %5313 = vmatprep.subr.bf16.mxu1 %v18683_v58  ;;  %v18737_v58 = vld [vmem:[#allocation2 + $0xb3c] ss:$28 sps:$4 sm:$0xff]  }
 0x2a5   :  { %v17422_v4 = vpop.f32.mrb[16].mxu1 }
 0x2a6   :  { %v17423_v5 = vpop.f32.mrb[17].mxu1  ;;  %5443 = vmatpush1.bf16.msra.mxu0 %v18684_v61 }
 0x2a7   :  { %v17424_v8 = vadd.f32 %v17423_v5, %v17422_v4  ;;  %5314 = vmatpush1.bf16.msra.mxu1 %v18681_v60  ;;  %v17425_v36 = vpop.f32.mrb[18].mxu1  ;;  %5444 = vmatprep.subr.bf16.mxu0 %v18692_v63  ;;  %v18740_v60 = vld [vmem:[#allocation2 + $0x12dc] ss:$28 sps:$4 sm:$0xff]   ;;  %v21300_v63 = vld [vmem:[%s21843_s0 + $0x4] ss:$28 sps:$4 sm:$0xff]  }
 0x2a8   :  { %v17426_v39 = vpop.f32.mrb[19].mxu1  ;;  %5315 = vmatprep.subr.bf16.mxu1 %v18689_v62  ;;  %v18735_v4 = vld [vmem:[#allocation2 + $0xb38] ss:$28 sps:$4 sm:$0xff]  }
 0x2a9   :  { %v21275_v41 = vadd.f32 %v17424_v8, %v21270_v44  ;;  %v17427_v14 = vadd.f32 %v17426_v39, %v17425_v36  ;;  %v18705_v44 = vld [vmem:[#allocation2 + $0x1500] ss:$28 sps:$4 sm:$0xff]   ;;  %v18743_v8 = vld [vmem:[#allocation2 + $0xb74] ss:$28 sps:$4 sm:$0xff]  }
 0x2aa   :  { %5445 = vmatpush1.bf16.msra.mxu0 %v18690_v37  ;;  %v18746_v36 = vld [vmem:[#allocation2 + $0x1314] ss:$28 sps:$4 sm:$0xff]  }
 0x2ab   :  { %v21278_v16 = vadd.f32 %v17427_v14, %v21272_v26  ;;  %5316 = vmatpush1.bf16.msra.mxu1 %v18687_v7  ;;  %5446 = vmatprep.subr.bf16.mxu0 %v18698_v13  ;;  %v18708_v26 = vld [vmem:[#allocation2 + $0x1188] ss:$28 sps:$4 sm:$0xff]   ;;  %v18738_v7 = vld [vmem:[#allocation2 + $0x12d8] ss:$28 sps:$4 sm:$0xff]   ;;  %v18741_v13 = vld [vmem:[#allocation2 + $0xb70] ss:$28 sps:$4 sm:$0xff]  }
 0x2ac   :  { %5317 = vmatprep.subr.bf16.mxu1 %v18695_v11  ;;  %v18744_v14 = vld [vmem:[#allocation2 + $0x1310] ss:$28 sps:$4 sm:$0xff]  }
 0x2ae   :  { %5447 = vmatpush1.bf16.msra.mxu0 %v18696_v46 }
 0x2af   :  { %5318 = vmatpush1.bf16.msra.mxu1 %v18693_v15  ;;  %5448 = vmatprep.subr.bf16.mxu0 %v18704_v18  ;;  %v18749_v15 = vld [vmem:[#allocation2 + $0xbac] ss:$28 sps:$4 sm:$0xff]  }
 0x2b0   :  { %5319 = vmatprep.subr.bf16.mxu1 %v18701_v17  ;;  %v18747_v18 = vld [vmem:[#allocation2 + $0xba8] ss:$28 sps:$4 sm:$0xff]  }
 0x2b2   :  { %5449 = vmatpush1.bf16.msra.mxu0 %v18702_v25  ;;  %v18755_v25 = vld [vmem:[#allocation2 + $0xbe4] ss:$28 sps:$4 sm:$0xff]  }
 0x2b3   :  { %5320 = vmatpush1.bf16.msra.mxu1 %v18699_v19  ;;  %5450 = vmatprep.subr.bf16.mxu0 %v18710_v29  ;;  %v18750_v19 = vld [vmem:[#allocation2 + $0x1348] ss:$28 sps:$4 sm:$0xff]   ;;  %v18753_v29 = vld [vmem:[#allocation2 + $0xbe0] ss:$28 sps:$4 sm:$0xff]  }
 0x2b4   :  { %5321 = vmatprep.subr.bf16.mxu1 %v18707_v28  ;;  %v18758_v28 = vld [vmem:[#allocation2 + $0x1384] ss:$28 sps:$4 sm:$0xff]  }
 0x2b6   :  { %5451 = vmatpush1.bf16.msra.mxu0 %v18708_v26  ;;  %v18761_v26 = vld [vmem:[#allocation2 + $0xc1c] ss:$28 sps:$4 sm:$0xff]  }
 0x2b7   :  { %5322 = vmatpush1.bf16.msra.mxu1 %v18705_v44  ;;  %5463 = vmatprep.subr.bf16.mxu0 %v18716_v31  ;;  %v18756_v44 = vld [vmem:[#allocation2 + $0x1380] ss:$28 sps:$4 sm:$0xff]   ;;  %v18759_v31 = vld [vmem:[#allocation2 + $0xc18] ss:$28 sps:$4 sm:$0xff]  }
 0x2b8   :  { %5334 = vmatprep.subr.bf16.mxu1 %v18713_v12  ;;  %v18764_v12 = vld [vmem:[#allocation2 + $0x13bc] ss:$28 sps:$4 sm:$0xff]  }
 0x2b9   :  { %5453 = vmatmul.mubr.bf16.vlgmr.msra.gmra.mrb[8].mxu0 %v21259_v2 }
 0x2ba   :  { %5324 = vmatmul.mubr.bf16.vlgmr.msra.gmra.mrb[28].mxu1 %v21283_v43  ;;  %5464 = vmatpush1.bf16.msra.mxu0 %v18714_v33  ;;  %v18767_v33 = vld [vmem:[#allocation2 + $0xc54] ss:$28 sps:$4 sm:$0xff]  }
 0x2bb   :  { %5335 = vmatpush1.bf16.msra.mxu1 %v18711_v32  ;;  %5465 = vmatprep.subr.bf16.mxu0 %v18719_v38  ;;  %v18762_v32 = vld [vmem:[#allocation2 + $0x13b8] ss:$28 sps:$4 sm:$0xff]  }
 0x2bc   :  { %5366 = vmatprep.mubr.bf16.mxu1 %v20938_v0  ;;  %5549 = vmatprep.subr.bf16.mxu1 %v18725_v40  ;;  %v18770_v38 = vld [vmem:[#allocation2 + $0x13f4] ss:$28 sps:$4 sm:$0xff]  }
 0x2bd   :  { %5495 = vmatprep.mubr.bf16.mxu0 %v21266_v9  ;;  %v18765_v40 = vld [vmem:[#allocation2 + $0xc50] ss:$28 sps:$4 sm:$0xff]  }
 0x2be   :  { %5466 = vmatpush1.bf16.msra.mxu0 %v18717_v45  ;;  %v18768_v45 = vld [vmem:[#allocation2 + $0x13f0] ss:$28 sps:$4 sm:$0xff]  }
 0x2bf   :  { %5467 = vmatprep.subr.bf16.mxu0 %v18722_v21  ;;  %v18773_v21 = vld [vmem:[#allocation2 + $0xc8c] ss:$28 sps:$4 sm:$0xff]  }
 0x2c2   :  { %5468 = vmatpush1.bf16.msra.mxu0 %v18720_v47  ;;  %v18776_v47 = vld [vmem:[#allocation2 + $0x142c] ss:$28 sps:$4 sm:$0xff]  }
 0x2c3   :  { %5469 = vmatprep.subr.bf16.mxu0 %v18728_v48  ;;  %v18771_v48 = vld [vmem:[#allocation2 + $0xc88] ss:$28 sps:$4 sm:$0xff]  }
 0x2c5   :  { %v17444_v2 = vpop.f32.mrb[20].mxu1 }
 0x2c6   :  { %16203 = vmatmul.mubr.msk.bf16.vlgmr.msra.gmra.mrb[28].mxu1 %vm2364_vm0, %v21292_v53  ;;  %v17445_v9 = vpop.f32.mrb[21].mxu1  ;;  %5470 = vmatpush1.bf16.msra.mxu0 %v18726_v50  ;;  %v18779_v50 = vld [vmem:[#allocation2 + $0xcc4] ss:$28 sps:$4 sm:$0xff]  }
 0x2c7   :  { %5550 = vmatpush1.bf16.msra.mxu1 %v18723_v49  ;;  %v17446_v55 = vadd.f32 %v17445_v9, %v17444_v2  ;;  %v17447_v56 = vpop.f32.mrb[22].mxu1  ;;  %5471 = vmatprep.subr.bf16.mxu0 %v18734_v52  ;;  %v18774_v49 = vld [vmem:[#allocation2 + $0x1428] ss:$28 sps:$4 sm:$0xff]   ;;  %v18777_v52 = vld [vmem:[#allocation2 + $0xcc0] ss:$28 sps:$4 sm:$0xff]  }
 0x2c8   :  { %v17448_v59 = vpop.f32.mrb[23].mxu1  ;;  %5551 = vmatprep.subr.bf16.mxu1 %v18731_v51  ;;  %5581 = vmatprep.mubr.bf16.mxu1 %v21300_v63  ;;  %v18782_v51 = vld [vmem:[#allocation2 + $0x1464] ss:$28 sps:$4 sm:$0xff]   ;;  %v18785_v9 = vld [vmem:[#allocation2 + $0xcfc] ss:$28 sps:$4 sm:$0xff]  }
 0x2c9   :  { %v17449_v61 = vadd.f32 %v17448_v59, %v17447_v56  ;;  %v3001_v62 = vadd.f32 %v17446_v55, %v21275_v41  ;;  %v18780_v2 = vld [vmem:[#allocation2 + $0x1460] ss:$28 sps:$4 sm:$0xff]   ;;  %v18783_v55 = vld [vmem:[#allocation2 + $0xcf8] ss:$28 sps:$4 sm:$0xff]   ;;  %v18789_v59 = vld [vmem:[#allocation2 + $0xd30] ss:$28 sps:$4 sm:$0xff]  }
 0x2ca   :  { %5472 = vmatpush1.bf16.msra.mxu0 %v18732_v57  ;;  %v18786_v56 = vld [vmem:[#allocation2 + $0x1498] ss:$28 sps:$4 sm:$0xff]  }
 0x2cb   :  { %5552 = vmatpush1.bf16.msra.mxu1 %v18729_v54  ;;  %v3004_v5 = vadd.f32 %v17449_v61, %v21278_v16  ;;  %5473 = vmatprep.subr.bf16.mxu0 %v18740_v60  ;;  %v18752_v16 = vld [vmem:[#allocation2 + $0x134c] ss:$28 sps:$4 sm:$0xff]   ;;  %v18788_v54 = vld [vmem:[#allocation2 + $0x149c] ss:$28 sps:$4 sm:$0xff]   ;;  %v18791_v57 = vld [vmem:[#allocation2 + $0xd34] ss:$28 sps:$4 sm:$0xff]  }
 0x2cc   :  { %5553 = vmatprep.subr.bf16.mxu1 %v18737_v58  ;;  %v18794_v58 = vld [vmem:[#allocation2 + $0x14d4] ss:$28 sps:$4 sm:$0xff]   ;;  %v18797_v61 = vld [vmem:[#allocation2 + $0xd6c] ss:$28 sps:$4 sm:$0xff]  }
 0x2cd   :  { %v3041_v37 = vpop.f32.mrb[24].mxu1  ;;  %v18792_v60 = vld [vmem:[#allocation2 + $0x14d0] ss:$28 sps:$4 sm:$0xff]  }
 0x2ce   :  { %v21304_v11 = vadd.f32 %v3041_v37, %v3001_v62  ;;  %v17700_v39 = vpop.f32.mrb[25].mxu1  ;;  %5474 = vmatpush1.bf16.msra.mxu0 %v18738_v7  ;;  %v18800_v62 = vld [vmem:[#allocation2 + $0x150c] ss:$28 sps:$4 sm:$0xff]   ;;  %v18803_v7 = vld [vmem:[#allocation2 + $0xda4] ss:$28 sps:$4 sm:$0xff]  }
 0x2cf   :  { %5554 = vmatpush1.bf16.msra.mxu1 %v18735_v4  ;;  %v3044_v41 = vpop.f32.mrb[26].mxu1  ;;  %5475 = vmatprep.subr.bf16.mxu0 %v18746_v36  ;;  %v18795_v4 = vld [vmem:[#allocation2 + $0xd68] ss:$28 sps:$4 sm:$0xff]   ;;  %v18801_v36 = vld [vmem:[#allocation2 + $0xda0] ss:$28 sps:$4 sm:$0xff]  }
 0x2d0   :  { %v21306_v46 = vadd.f32 %v3044_v41, %v3004_v5  ;;  %v17701_v17 = vpop.f32.mrb[27].mxu1  ;;  %5555 = vmatprep.subr.bf16.mxu1 %v18743_v8  ;;  %v18798_v5 = vld [vmem:[#allocation2 + $0x1508] ss:$28 sps:$4 sm:$0xff]   ;;  %v18806_v37 = vld [vmem:[#allocation2 + $0xddc] ss:$28 sps:$4 sm:$0xff]  }
 0x2d1   :  { %v18812_v8 = vld [vmem:[#allocation2 + $0x1544] ss:$28 sps:$4 sm:$0xff]   ;;  %v18804_v41 = vld [vmem:[#allocation2 + $0xdd8] ss:$28 sps:$4 sm:$0xff]   ;;  %v18815_v17 = vld [vmem:[#allocation2 + $0xe4c] ss:$28 sps:$4 sm:$0xff]  }
 0x2d2   :  { %5476 = vmatpush1.bf16.msra.mxu0 %v18744_v14  ;;  %v18810_v39 = vld [vmem:[#allocation2 + $0x1540] ss:$28 sps:$4 sm:$0xff]   ;;  %v18809_v14 = vld [vmem:[#allocation2 + $0xe14] ss:$28 sps:$4 sm:$0xff]  }
 0x2d3   :  { %5556 = vmatpush1.bf16.msra.mxu1 %v18741_v13  ;;  %5477 = vmatprep.subr.bf16.mxu0 %v18752_v16  ;;  %v18816_v13 = vld [vmem:[#allocation2 + $0xc90] ss:$28 sps:$4 sm:$0xff]   ;;  %v18813_v16 = vld [vmem:[#allocation2 + $0xe48] ss:$28 sps:$4 sm:$0xff]  }
 0x2d4   :  { %5557 = vmatprep.subr.bf16.mxu1 %v18749_v15  ;;  %v18807_v15 = vld [vmem:[#allocation2 + $0xe10] ss:$28 sps:$4 sm:$0xff]  }
 0x2d6   :  { %5478 = vmatpush1.bf16.msra.mxu0 %v18750_v19  ;;  %v18820_v19 = vld [vmem:[#allocation2 + $0xe84] ss:$28 sps:$4 sm:$0xff]  }
 0x2d7   :  { %5558 = vmatpush1.bf16.msra.mxu1 %v18747_v18  ;;  %5479 = vmatprep.subr.bf16.mxu0 %v18758_v28  ;;  %v18817_v18 = vld [vmem:[#allocation2 + $0xad0] ss:$28 sps:$4 sm:$0xff]   ;;  %v18818_v28 = vld [vmem:[#allocation2 + $0xe80] ss:$28 sps:$4 sm:$0xff]  }
 0x2d8   :  { %5559 = vmatprep.subr.bf16.mxu1 %v18755_v25  ;;  %v18821_v25 = vld [vmem:[#allocation2 + $0xcc8] ss:$28 sps:$4 sm:$0xff]  }
 0x2da   :  { %5480 = vmatpush1.bf16.msra.mxu0 %v18756_v44  ;;  %v18825_v44 = vld [vmem:[#allocation2 + $0xebc] ss:$28 sps:$4 sm:$0xff]  }
 0x2db   :  { %5560 = vmatpush1.bf16.msra.mxu1 %v18753_v29  ;;  %5481 = vmatprep.subr.bf16.mxu0 %v18764_v12  ;;  %v18822_v29 = vld [vmem:[#allocation2 + $0xb08] ss:$28 sps:$4 sm:$0xff]   ;;  %v18823_v12 = vld [vmem:[#allocation2 + $0xeb8] ss:$28 sps:$4 sm:$0xff]  }
 0x2dc   :  { %5561 = vmatprep.subr.bf16.mxu1 %v18761_v26  ;;  %v18826_v26 = vld [vmem:[#allocation2 + $0xd00] ss:$28 sps:$4 sm:$0xff]  }
 0x2de   :  { %5482 = vmatpush1.bf16.msra.mxu0 %v18762_v32  ;;  %v21322_v32 = vld [vmem:[%s21843_s0 + $0xc] ss:$28 sps:$4 sm:$0xff]  }
 0x2df   :  { %5562 = vmatpush1.bf16.msra.mxu1 %v18759_v31  ;;  %5483 = vmatprep.subr.bf16.mxu0 %v18770_v38  ;;  %v18827_v31 = vld [vmem:[#allocation2 + $0xb40] ss:$28 sps:$4 sm:$0xff]  }
 0x2e0   :  { %5563 = vmatprep.subr.bf16.mxu1 %v18767_v33  ;;  %v18831_v33 = vld [vmem:[#allocation2 + $0xd38] ss:$28 sps:$4 sm:$0xff]  }
 0x2e2   :  { %5484 = vmatpush1.bf16.msra.mxu0 %v18768_v45  ;;  %v18832_v45 = vld [vmem:[#allocation2 + $0xb78] ss:$28 sps:$4 sm:$0xff]  }
 0x2e3   :  { %5564 = vmatpush1.bf16.msra.mxu1 %v18765_v40  ;;  %5485 = vmatprep.subr.bf16.mxu0 %v18776_v47  ;;  %v18828_v40 = vld [vmem:[#allocation2 + $0xef0] ss:$28 sps:$4 sm:$0xff]  }
 0x2e4   :  { %5565 = vmatprep.subr.bf16.mxu1 %v18773_v21 }
 0x2e6   :  { %5486 = vmatpush1.bf16.msra.mxu0 %v18774_v49  ;;  %v18835_v49 = vld [vmem:[#allocation2 + $0xf2c] ss:$28 sps:$4 sm:$0xff]  }
 0x2e7   :  { %5566 = vmatpush1.bf16.msra.mxu1 %v18771_v48  ;;  %5487 = vmatprep.subr.bf16.mxu0 %v18782_v51 }
 0x2e8   :  { %5567 = vmatprep.subr.bf16.mxu1 %v18779_v50  ;;  %v18836_v50 = vld [vmem:[#allocation2 + $0xd70] ss:$28 sps:$4 sm:$0xff]  }
 0x2ea   :  { %5488 = vmatpush1.bf16.msra.mxu0 %v18780_v2 }
 0x2eb   :  { %5568 = vmatpush1.bf16.msra.mxu1 %v18777_v52  ;;  %5489 = vmatprep.subr.bf16.mxu0 %v18788_v54  ;;  %v18840_v54 = vld [vmem:[#allocation2 + $0xf64] ss:$28 sps:$4 sm:$0xff]  }
 0x2ec   :  { %5569 = vmatprep.subr.bf16.mxu1 %v18785_v9  ;;  %v18837_v9 = vld [vmem:[#allocation2 + $0xbb0] ss:$28 sps:$4 sm:$0xff]  }
 0x2ee   :  { %5490 = vmatpush1.bf16.msra.mxu0 %v18786_v56  ;;  %v18842_v56 = vld [vmem:[#allocation2 + $0xbe8] ss:$28 sps:$4 sm:$0xff]  }
 0x2ef   :  { %5570 = vmatpush1.bf16.msra.mxu1 %v18783_v55  ;;  %5491 = vmatprep.subr.bf16.mxu0 %v18794_v58  ;;  %v18838_v55 = vld [vmem:[#allocation2 + $0xf60] ss:$28 sps:$4 sm:$0xff]   ;;  %v18843_v58 = vld [vmem:[#allocation2 + $0xf98] ss:$28 sps:$4 sm:$0xff]  }
 0x2f0   :  { %5571 = vmatprep.subr.bf16.mxu1 %v18791_v57  ;;  %v18846_v57 = vld [vmem:[#allocation2 + $0xde0] ss:$28 sps:$4 sm:$0xff]  }
 0x2f2   :  { %5492 = vmatpush1.bf16.msra.mxu0 %v18792_v60  ;;  %v18851_v60 = vld [vmem:[#allocation2 + $0xe18] ss:$28 sps:$4 sm:$0xff]  }
 0x2f3   :  { %5572 = vmatpush1.bf16.msra.mxu1 %v18789_v59  ;;  %5493 = vmatprep.subr.bf16.mxu0 %v18800_v62  ;;  %v18847_v59 = vld [vmem:[#allocation2 + $0xc20] ss:$28 sps:$4 sm:$0xff]   ;;  %v18852_v62 = vld [vmem:[#allocation2 + $0xc58] ss:$28 sps:$4 sm:$0xff]  }
 0x2f4   :  { %5573 = vmatprep.subr.bf16.mxu1 %v18797_v61  ;;  %v18848_v61 = vld [vmem:[#allocation2 + $0xfd0] ss:$28 sps:$4 sm:$0xff]  }
 0x2f6   :  { %5494 = vmatpush1.bf16.msra.mxu0 %v18798_v5  ;;  %v18856_v5 = vld [vmem:[#allocation2 + $0x1010] ss:$28 sps:$4 sm:$0xff]  }
 0x2f7   :  { %5574 = vmatpush1.bf16.msra.mxu1 %v18795_v4  ;;  %5506 = vmatprep.subr.bf16.mxu0 %v18812_v8  ;;  %v18855_v4 = vld [vmem:[#allocation2 + $0x100c] ss:$28 sps:$4 sm:$0xff]  }
 0x2f8   :  { %5575 = vmatprep.subr.bf16.mxu1 %v18803_v7  ;;  %v18853_v7 = vld [vmem:[#allocation2 + $0x1008] ss:$28 sps:$4 sm:$0xff]   ;;  %v18857_v8 = vld [vmem:[#allocation2 + $0xe50] ss:$28 sps:$4 sm:$0xff]  }
 0x2f9   :  { %5496 = vmatmul.mubr.bf16.vlgmr.msra.gmra.mrb[8].mxu0 %v21283_v43  ;;  %v21313_v43 = vld [vmem:[%s21843_s0] ss:$28 sps:$4 sm:$0xff]  }
 0x2fa   :  { %5507 = vmatpush1.bf16.msra.mxu0 %v18810_v39  ;;  %5538 = vmatprep.mubr.bf16.mxu0 %v20938_v0  ;;  %v18858_v39 = vld [vmem:[#allocation2 + $0x1040] ss:$28 sps:$4 sm:$0xff]  }
 0x2fb   :  { %5576 = vmatpush1.bf16.msra.mxu1 %v18801_v36  ;;  %17452 = vmatprep.subr.bf16.mxu0 %v18816_v13  ;;  %v18860_v36 = vld [vmem:[#allocation2 + $0x1044] ss:$28 sps:$4 sm:$0xff]  }
 0x2fc   :  { %5577 = vmatprep.subr.bf16.mxu1 %v18806_v37  ;;  %v18861_v37 = vld [vmem:[#allocation2 + $0x1048] ss:$28 sps:$4 sm:$0xff]  }
 0x2fd   :  { %v18862_v13 = vld [vmem:[#allocation2 + $0xe88] ss:$28 sps:$4 sm:$0xff]  }
 0x2ff   :  { %5578 = vmatpush1.bf16.msra.mxu1 %v18804_v41  ;;  %v18865_v41 = vld [vmem:[#allocation2 + $0x107c] ss:$28 sps:$4 sm:$0xff]  }
 0x300   :  { %5579 = vmatprep.subr.bf16.mxu1 %v18809_v14  ;;  %v18866_v14 = vld [vmem:[#allocation2 + $0x1080] ss:$28 sps:$4 sm:$0xff]  }
 0x303   :  { %5580 = vmatpush1.bf16.msra.mxu1 %v18807_v15  ;;  %v18863_v15 = vld [vmem:[#allocation2 + $0x1078] ss:$28 sps:$4 sm:$0xff]  }
 0x304   :  { %5592 = vmatprep.subr.bf16.mxu1 %v18815_v17  ;;  %v18867_v17 = vld [vmem:[#allocation2 + $0xec0] ss:$28 sps:$4 sm:$0xff]  }
 0x305   :  { %16204 = vmatmul.mubr.msk.bf16.vlgmr.msra.gmra.mrb[8].mxu0 %vm2364_vm0, %v21292_v53  ;;  %v18830_v53 = vld [vmem:[#allocation2 + $0xef4] ss:$28 sps:$4 sm:$0xff]  }
 0x306   :  { %5582 = vmatmul.mubr.bf16.vlgmr.msra.gmra.mrb[32].mxu1 %v21313_v43  ;;  %17453 = vmatpush3.bf16.msra.mxu0 %v18817_v18  ;;  %v18871_v18 = vld [vmem:[#allocation2 + $0x10b8] ss:$28 sps:$4 sm:$0xff]  }
 0x307   :  { %5593 = vmatpush1.bf16.msra.mxu1 %v18813_v16  ;;  %17454 = vmatprep.subr.bf16.mxu0 %v18821_v25  ;;  %v18870_v16 = vld [vmem:[#allocation2 + $0x10b4] ss:$28 sps:$4 sm:$0xff]  }
 0x308   :  { %5594 = vmatprep.subr.bf16.mxu1 %v18820_v19  ;;  %5753 = vmatprep.mubr.bf16.mxu0 %v21300_v63  ;;  %v18868_v19 = vld [vmem:[#allocation2 + $0x10b0] ss:$28 sps:$4 sm:$0xff]   ;;  %v18872_v25 = vld [vmem:[#allocation2 + $0xef8] ss:$28 sps:$4 sm:$0xff]  }
 0x309   :  { %5624 = vmatprep.mubr.bf16.mxu1 %v21322_v32 }
 0x30a   :  { %17455 = vmatpush3.bf16.msra.mxu0 %v18822_v29  ;;  %v18873_v29 = vld [vmem:[#allocation2 + $0x10e8] ss:$28 sps:$4 sm:$0xff]  }
 0x30b   :  { %5595 = vmatpush1.bf16.msra.mxu1 %v18818_v28  ;;  %17456 = vmatprep.subr.bf16.mxu0 %v18826_v26  ;;  %v18876_v28 = vld [vmem:[#allocation2 + $0x10f0] ss:$28 sps:$4 sm:$0xff]   ;;  %v18880_v26 = vld [vmem:[#allocation2 + $0x1124] ss:$28 sps:$4 sm:$0xff]  }
 0x30c   :  { %5596 = vmatprep.subr.bf16.mxu1 %v18825_v44  ;;  %v2832_v38 = vpop.f32.mrb[4].mxu0  ;;  %v18877_v44 = vld [vmem:[#allocation2 + $0xf30] ss:$28 sps:$4 sm:$0xff]  }
 0x30d   :  { %v21326_v21 = vadd.f32 %v21248_v34, %v2832_v38  ;;  %v2834_v63 = vpop.f32.mrb[5].mxu0  ;;  %v18833_v34 = vld [vmem:[#allocation2 + $0xf28] ss:$28 sps:$4 sm:$0xff]   ;;  %v18883_v38 = vld [vmem:[#allocation2 + $0x1158] ss:$28 sps:$4 sm:$0xff]  }
 0x30e   :  { %v21329_v47 = vadd.f32 %v21250_v35, %v2834_v63  ;;  %17457 = vmatpush3.bf16.msra.mxu0 %v18827_v31  ;;  %v2836_v48 = vpop.f32.mrb[6].mxu0  ;;  %v18841_v35 = vld [vmem:[#allocation2 + $0xda8] ss:$28 sps:$4 sm:$0xff]   ;;  %v18878_v31 = vld [vmem:[#allocation2 + $0x1120] ss:$28 sps:$4 sm:$0xff]  }
 0x30f   :  { %5597 = vmatpush1.bf16.msra.mxu1 %v18823_v12  ;;  %v21332_v51 = vadd.f32 %v21252_v30, %v2836_v48  ;;  %v2838_v52 = vpop.f32.mrb[7].mxu0  ;;  %17458 = vmatprep.subr.bf16.mxu0 %v18831_v33  ;;  %v18845_v30 = vld [vmem:[#allocation2 + $0xf9c] ss:$28 sps:$4 sm:$0xff]   ;;  %v18881_v12 = vld [vmem:[#allocation2 + $0x1128] ss:$28 sps:$4 sm:$0xff]  }
 0x310   :  { %5598 = vmatprep.subr.bf16.mxu1 %v18830_v53  ;;  %v21335_v2 = vadd.f32 %v21254_v42, %v2838_v52  ;;  %v18850_v42 = vld [vmem:[#allocation2 + $0xfd4] ss:$28 sps:$4 sm:$0xff]   ;;  %v18885_v53 = vld [vmem:[#allocation2 + $0x115c] ss:$28 sps:$4 sm:$0xff]  }
 0x311   :  { %v18886_v33 = vld [vmem:[#allocation2 + $0x1160] ss:$28 sps:$4 sm:$0xff]   ;;  %v18891_v63 = vld [vmem:[#allocation2 + $0x1198] ss:$28 sps:$4 sm:$0xff]   ;;  %v18888_v48 = vld [vmem:[#allocation2 + $0x1190] ss:$28 sps:$4 sm:$0xff]  }
 0x312   :  { %17459 = vmatpush3.bf16.msra.mxu0 %v18832_v45  ;;  %v18890_v45 = vld [vmem:[#allocation2 + $0x1194] ss:$28 sps:$4 sm:$0xff]  }
 0x313   :  { %5599 = vmatpush1.bf16.msra.mxu1 %v18828_v40  ;;  %17460 = vmatprep.subr.bf16.mxu0 %v18836_v50  ;;  %v18887_v40 = vld [vmem:[#allocation2 + $0xfa0] ss:$28 sps:$4 sm:$0xff]   ;;  %v18895_v50 = vld [vmem:[#allocation2 + $0x11cc] ss:$28 sps:$4 sm:$0xff]  }
 0x314   :  { %5600 = vmatprep.subr.bf16.mxu1 %v18835_v49  ;;  %v18892_v49 = vld [vmem:[#allocation2 + $0xfd8] ss:$28 sps:$4 sm:$0xff]   ;;  %v18896_v52 = vld [vmem:[#allocation2 + $0x1390] ss:$28 sps:$4 sm:$0xff]  }
 0x316   :  { %17461 = vmatpush3.bf16.msra.mxu0 %v18837_v9  ;;  %v18897_v9 = vld [vmem:[#allocation2 + $0x11d0] ss:$28 sps:$4 sm:$0xff]  }
 0x317   :  { %5601 = vmatpush1.bf16.msra.mxu1 %v18833_v34  ;;  %17462 = vmatprep.subr.bf16.mxu0 %v18841_v35  ;;  %v18893_v34 = vld [vmem:[#allocation2 + $0x11c8] ss:$28 sps:$4 sm:$0xff]  }
 0x318   :  { %5602 = vmatprep.subr.bf16.mxu1 %v18840_v54  ;;  %v18900_v54 = vld [vmem:[#allocation2 + $0x1204] ss:$28 sps:$4 sm:$0xff]  }
 0x319   :  { %v18901_v35 = vld [vmem:[#allocation2 + $0x13c8] ss:$28 sps:$4 sm:$0xff]  }
 0x31a   :  { %17463 = vmatpush3.bf16.msra.mxu0 %v18842_v56  ;;  %v18898_v56 = vld [vmem:[#allocation2 + $0x1200] ss:$28 sps:$4 sm:$0xff]  }
 0x31b   :  { %5603 = vmatpush1.bf16.msra.mxu1 %v18838_v55  ;;  %17464 = vmatprep.subr.bf16.mxu0 %v18846_v57  ;;  %v20662_v55 = vld [vmem:[%s21843_s0 + $0x8] ss:$28 sps:$4 sm:$0xff]   ;;  %v18905_v57 = vld [vmem:[#allocation2 + $0x123c] ss:$28 sps:$4 sm:$0xff]  }
 0x31c   :  { %5604 = vmatprep.subr.bf16.mxu1 %v18845_v30  ;;  %v18902_v30 = vld [vmem:[#allocation2 + $0x1208] ss:$28 sps:$4 sm:$0xff]  }
 0x31e   :  { %17465 = vmatpush3.bf16.msra.mxu0 %v18847_v59  ;;  %v20663_v59 = vld [vmem:[%s21843_s0 + $0x14] ss:$28 sps:$4 sm:$0xff]  }
 0x31f   :  { %5605 = vmatpush1.bf16.msra.mxu1 %v18843_v58  ;;  %17466 = vmatprep.subr.bf16.mxu0 %v18851_v60  ;;  %v18906_v58 = vld [vmem:[#allocation2 + $0x1400] ss:$28 sps:$4 sm:$0xff]  }
 0x320   :  { %5606 = vmatprep.subr.bf16.mxu1 %v18850_v42  ;;  %v18903_v42 = vld [vmem:[#allocation2 + $0x1238] ss:$28 sps:$4 sm:$0xff]   ;;  %v18907_v60 = vld [vmem:[#allocation2 + $0x1240] ss:$28 sps:$4 sm:$0xff]  }
 0x322   :  { %17467 = vmatpush3.bf16.msra.mxu0 %v18852_v62  ;;  %v18911_v62 = vld [vmem:[#allocation2 + $0x1438] ss:$28 sps:$4 sm:$0xff]  }
 0x323   :  { %5607 = vmatpush1.bf16.msra.mxu1 %v18848_v61  ;;  %17474 = vmatprep.subr.bf16.mxu0 %v18856_v5  ;;  %v18910_v61 = vld [vmem:[#allocation2 + $0x1274] ss:$28 sps:$4 sm:$0xff]  }
 0x324   :  { %5608 = vmatprep.subr.bf16.mxu1 %v18855_v4  ;;  %v18908_v4 = vld [vmem:[#allocation2 + $0x1270] ss:$28 sps:$4 sm:$0xff]   ;;  %v18912_v5 = vld [vmem:[#allocation2 + $0x1278] ss:$28 sps:$4 sm:$0xff]  }
 0x325   :  { %5754 = vmatmul.mubr.bf16.vlgmr.msra.gmra.mrb[12].mxu0 %v21313_v43  ;;  %v18875_v43 = vld [vmem:[#allocation2 + $0x10ec] ss:$28 sps:$4 sm:$0xff]  }
 0x326   :  { %17475 = vmatpush3.bf16.msra.mxu0 %v18857_v8  ;;  %5794 = vmatprep.mubr.bf16.mxu0 %v21322_v32  ;;  %v18882_v32 = vld [vmem:[#allocation2 + $0xf68] ss:$28 sps:$4 sm:$0xff]   ;;  %v18916_v8 = vld [vmem:[#allocation2 + $0x1470] ss:$28 sps:$4 sm:$0xff]  }
 0x327   :  { %5609 = vmatpush1.bf16.msra.mxu1 %v18853_v7  ;;  %17476 = vmatprep.subr.bf16.mxu0 %v18861_v37  ;;  %v18915_v7 = vld [vmem:[#allocation2 + $0x12ac] ss:$28 sps:$4 sm:$0xff]  }
 0x328   :  { %5610 = vmatprep.subr.bf16.mxu1 %v18860_v36  ;;  %v18913_v36 = vld [vmem:[#allocation2 + $0x12a8] ss:$28 sps:$4 sm:$0xff]   ;;  %v18917_v37 = vld [vmem:[#allocation2 + $0x12b0] ss:$28 sps:$4 sm:$0xff]  }
 0x32a   :  { %17477 = vmatpush3.bf16.msra.mxu0 %v18862_v13  ;;  %v18921_v13 = vld [vmem:[#allocation2 + $0x14a8] ss:$28 sps:$4 sm:$0xff]  }
 0x32b   :  { %5611 = vmatpush1.bf16.msra.mxu1 %v18858_v39  ;;  %17478 = vmatprep.subr.bf16.mxu0 %v18866_v14  ;;  %v18920_v39 = vld [vmem:[#allocation2 + $0x12e4] ss:$28 sps:$4 sm:$0xff]  }
 0x32c   :  { %5612 = vmatprep.subr.bf16.mxu1 %v18865_v41  ;;  %v18918_v41 = vld [vmem:[#allocation2 + $0x12e0] ss:$28 sps:$4 sm:$0xff]   ;;  %v18922_v14 = vld [vmem:[#allocation2 + $0x12e8] ss:$28 sps:$4 sm:$0xff]  }
 0x32e   :  { %17479 = vmatpush3.bf16.msra.mxu0 %v18867_v17  ;;  %v18926_v17 = vld [vmem:[#allocation2 + $0x14e0] ss:$28 sps:$4 sm:$0xff]  }
 0x32f   :  { %5613 = vmatpush1.bf16.msra.mxu1 %v18863_v15  ;;  %17480 = vmatprep.subr.bf16.mxu0 %v18871_v18  ;;  %v18925_v15 = vld [vmem:[#allocation2 + $0x131c] ss:$28 sps:$4 sm:$0xff]  }
 0x330   :  { %5614 = vmatprep.subr.bf16.mxu1 %v18870_v16  ;;  %v18923_v16 = vld [vmem:[#allocation2 + $0x1318] ss:$28 sps:$4 sm:$0xff]   ;;  %v18927_v18 = vld [vmem:[#allocation2 + $0x1320] ss:$28 sps:$4 sm:$0xff]  }
 0x332   :  { %17481 = vmatpush3.bf16.msra.mxu0 %v18872_v25  ;;  %v18931_v25 = vld [vmem:[#allocation2 + $0x1518] ss:$28 sps:$4 sm:$0xff]  }
 0x333   :  { %5615 = vmatpush1.bf16.msra.mxu1 %v18868_v19  ;;  %17482 = vmatprep.subr.bf16.mxu0 %v18876_v28  ;;  %v18930_v19 = vld [vmem:[#allocation2 + $0x1354] ss:$28 sps:$4 sm:$0xff]  }
 0x334   :  { %5616 = vmatprep.subr.bf16.mxu1 %v18875_v43  ;;  %v18928_v43 = vld [vmem:[#allocation2 + $0x1350] ss:$28 sps:$4 sm:$0xff]   ;;  %v18932_v28 = vld [vmem:[#allocation2 + $0x1358] ss:$28 sps:$4 sm:$0xff]  }
 0x336   :  { %17483 = vmatpush3.bf16.msra.mxu0 %v18877_v44  ;;  %v18933_v44 = vld [vmem:[#allocation2 + $0x1388] ss:$28 sps:$4 sm:$0xff]  }
 0x337   :  { %5617 = vmatpush1.bf16.msra.mxu1 %v18873_v29  ;;  %17484 = vmatprep.subr.bf16.mxu0 %v18881_v12  ;;  %v18935_v29 = vld [vmem:[#allocation2 + $0x138c] ss:$28 sps:$4 sm:$0xff]  }
 0x338   :  { %5618 = vmatprep.subr.bf16.mxu1 %v18880_v26  ;;  %v18938_v26 = vld [vmem:[#allocation2 + $0x13c4] ss:$28 sps:$4 sm:$0xff]   ;;  %v18939_v12 = vld [vmem:[#allocation2 + $0x1550] ss:$28 sps:$4 sm:$0xff]  }
 0x33a   :  { %17485 = vmatpush3.bf16.msra.mxu0 %v18882_v32  ;;  %v21349_v32 = vld [vmem:[%s21843_s0 + $0x10] ss:$28 sps:$4 sm:$0xff]  }
 0x33b   :  { %5619 = vmatpush1.bf16.msra.mxu1 %v18878_v31  ;;  %17486 = vmatprep.subr.bf16.mxu0 %v18886_v33  ;;  %v18945_v31 = vld [vmem:[#allocation2 + $0x1574] ss:$28 sps:$4 sm:$0xff]   ;;  %v18942_v33 = vld [vmem:[#allocation2 + $0x13fc] ss:$28 sps:$4 sm:$0xff]  }
 0x33c   :  { %5620 = vmatprep.subr.bf16.mxu1 %v18885_v53  ;;  %v18936_v53 = vld [vmem:[#allocation2 + $0x13c0] ss:$28 sps:$4 sm:$0xff]  }
 0x33e   :  { %17487 = vmatpush3.bf16.msra.mxu0 %v18887_v40  ;;  %v18943_v40 = vld [vmem:[#allocation2 + $0x1570] ss:$28 sps:$4 sm:$0xff]  }
 0x33f   :  { %5621 = vmatpush1.bf16.msra.mxu1 %v18883_v38  ;;  %17488 = vmatprep.subr.bf16.mxu0 %v18891_v63  ;;  %v18940_v38 = vld [vmem:[#allocation2 + $0x13f8] ss:$28 sps:$4 sm:$0xff]   ;;  %v18951_v63 = vld [vmem:[#allocation2 + $0x15ac] ss:$28 sps:$4 sm:$0xff]  }
 0x340   :  { %5622 = vmatprep.subr.bf16.mxu1 %v18890_v45  ;;  %v18948_v45 = vld [vmem:[#allocation2 + $0x1434] ss:$28 sps:$4 sm:$0xff]  }
 0x342   :  { %17489 = vmatpush3.bf16.msra.mxu0 %v18892_v49  ;;  %v18946_v49 = vld [vmem:[#allocation2 + $0x1430] ss:$28 sps:$4 sm:$0xff]  }
 0x343   :  { %5623 = vmatpush1.bf16.msra.mxu1 %v18888_v48  ;;  %17496 = vmatprep.subr.bf16.mxu0 %v18896_v52  ;;  %v21357_v48 = vld [vmem:[%s21843_s0 + $0x18] ss:$28 sps:$4 sm:$0xff]   ;;  %v18954_v52 = vld [vmem:[#allocation2 + $0x146c] ss:$28 sps:$4 sm:$0xff]  }
 0x344   :  { %5635 = vmatprep.subr.bf16.mxu1 %v18895_v50  ;;  %v18949_v50 = vld [vmem:[#allocation2 + $0x15a8] ss:$28 sps:$4 sm:$0xff]  }
 0x345   :  { %5795 = vmatmul.mubr.bf16.vlgmr.msra.gmra.mrb[16].mxu0 %v20662_v55 }
 0x346   :  { %5625 = vmatmul.mubr.bf16.vlgmr.msra.gmra.mrb[32].mxu1 %v20662_v55  ;;  %17497 = vmatpush3.bf16.msra.mxu0 %v18897_v9  ;;  %v21364_v9 = vld [vmem:[%s21843_s0 + $0x4] ss:$28 sps:$4 sm:$0xff]  }
 0x347   :  { %5636 = vmatpush1.bf16.msra.mxu1 %v18893_v34  ;;  %17498 = vmatprep.subr.bf16.mxu0 %v18901_v35  ;;  %v18957_v34 = vld [vmem:[#allocation2 + $0x15e4] ss:$28 sps:$4 sm:$0xff]  }
 0x348   :  { %5637 = vmatprep.subr.bf16.mxu1 %v18900_v54  ;;  %5835 = vmatprep.mubr.bf16.mxu0 %v20663_v59  ;;  %v18952_v54 = vld [vmem:[#allocation2 + $0x1468] ss:$28 sps:$4 sm:$0xff]   ;;  %v18955_v35 = vld [vmem:[#allocation2 + $0x15e0] ss:$28 sps:$4 sm:$0xff]  }
 0x349   :  { %5667 = vmatprep.mubr.bf16.mxu1 %v20663_v59  ;;  %v18960_v55 = vld [vmem:[#allocation2 + $0x14a4] ss:$28 sps:$4 sm:$0xff]   ;;  %v18969_v59 = vld [vmem:[#allocation2 + $0x1654] ss:$28 sps:$4 sm:$0xff]  }
 0x34a   :  { %17499 = vmatpush3.bf16.msra.mxu0 %v18902_v30  ;;  %v18958_v30 = vld [vmem:[#allocation2 + $0x14a0] ss:$28 sps:$4 sm:$0xff]  }
 0x34b   :  { %5638 = vmatpush1.bf16.msra.mxu1 %v18898_v56  ;;  %17500 = vmatprep.subr.bf16.mxu0 %v18906_v58  ;;  %v18963_v56 = vld [vmem:[#allocation2 + $0x161c] ss:$28 sps:$4 sm:$0xff]  }
 0x34c   :  { %5639 = vmatprep.subr.bf16.mxu1 %v18905_v57  ;;  %v18961_v57 = vld [vmem:[#allocation2 + $0x1618] ss:$28 sps:$4 sm:$0xff]  }
 0x34d   :  { %v18966_v58 = vld [vmem:[#allocation2 + $0x14dc] ss:$28 sps:$4 sm:$0xff]  }
 0x34e   :  { %17501 = vmatpush3.bf16.msra.mxu0 %v18907_v60  ;;  %v18967_v60 = vld [vmem:[#allocation2 + $0x1650] ss:$28 sps:$4 sm:$0xff]  }
 0x34f   :  { %5640 = vmatpush1.bf16.msra.mxu1 %v18903_v42  ;;  %17502 = vmatprep.subr.bf16.mxu0 %v18911_v62  ;;  %v18964_v42 = vld [vmem:[#allocation2 + $0x14d8] ss:$28 sps:$4 sm:$0xff]   ;;  %v18975_v62 = vld [vmem:[#allocation2 + $0x168c] ss:$28 sps:$4 sm:$0xff]  }
 0x350   :  { %5641 = vmatprep.subr.bf16.mxu1 %v18910_v61  ;;  %v18972_v61 = vld [vmem:[#allocation2 + $0x1514] ss:$28 sps:$4 sm:$0xff]  }
 0x352   :  { %17503 = vmatpush3.bf16.msra.mxu0 %v18912_v5  ;;  %v18973_v5 = vld [vmem:[#allocation2 + $0x1688] ss:$28 sps:$4 sm:$0xff]  }
 0x353   :  { %5642 = vmatpush1.bf16.msra.mxu1 %v18908_v4  ;;  %17504 = vmatprep.subr.bf16.mxu0 %v18916_v8  ;;  %v18970_v4 = vld [vmem:[#allocation2 + $0x1510] ss:$28 sps:$4 sm:$0xff]   ;;  %v18981_v8 = vld [vmem:[#allocation2 + $0x16c4] ss:$28 sps:$4 sm:$0xff]  }
 0x354   :  { %5643 = vmatprep.subr.bf16.mxu1 %v18915_v7  ;;  %v18978_v7 = vld [vmem:[#allocation2 + $0x154c] ss:$28 sps:$4 sm:$0xff]  }
 0x356   :  { %17505 = vmatpush3.bf16.msra.mxu0 %v18917_v37  ;;  %v18979_v37 = vld [vmem:[#allocation2 + $0x16c0] ss:$28 sps:$4 sm:$0xff]  }
 0x357   :  { %5644 = vmatpush1.bf16.msra.mxu1 %v18913_v36  ;;  %17506 = vmatprep.subr.bf16.mxu0 %v18921_v13  ;;  %v18976_v36 = vld [vmem:[#allocation2 + $0x1548] ss:$28 sps:$4 sm:$0xff]   ;;  %v18990_v13 = vld [vmem:[#allocation2 + $0x157c] ss:$28 sps:$4 sm:$0xff]  }
 0x358   :  { %5645 = vmatprep.subr.bf16.mxu1 %v18920_v39  ;;  %v18984_v39 = vld [vmem:[#allocation2 + $0x16fc] ss:$28 sps:$4 sm:$0xff]  }
 0x35a   :  { %17507 = vmatpush3.bf16.msra.mxu0 %v18922_v14  ;;  %v18987_v14 = vld [vmem:[#allocation2 + $0x1734] ss:$28 sps:$4 sm:$0xff]  }
 0x35b   :  { %5646 = vmatpush1.bf16.msra.mxu1 %v18918_v41  ;;  %17508 = vmatprep.subr.bf16.mxu0 %v18926_v17  ;;  %v18982_v41 = vld [vmem:[#allocation2 + $0x16f8] ss:$28 sps:$4 sm:$0xff]   ;;  %v18993_v17 = vld [vmem:[#allocation2 + $0x176c] ss:$28 sps:$4 sm:$0xff]  }
 0x35c   :  { %5647 = vmatprep.subr.bf16.mxu1 %v18925_v15  ;;  %v18985_v15 = vld [vmem:[#allocation2 + $0x1730] ss:$28 sps:$4 sm:$0xff]  }
 0x35e   :  { %17509 = vmatpush3.bf16.msra.mxu0 %v18927_v18  ;;  %v18991_v18 = vld [vmem:[#allocation2 + $0x1768] ss:$28 sps:$4 sm:$0xff]  }
 0x35f   :  { %5648 = vmatpush1.bf16.msra.mxu1 %v18923_v16  ;;  %17510 = vmatprep.subr.bf16.mxu0 %v18931_v25  ;;  %v18988_v16 = vld [vmem:[#allocation2 + $0x1578] ss:$28 sps:$4 sm:$0xff]   ;;  %v18999_v25 = vld [vmem:[#allocation2 + $0x17a4] ss:$28 sps:$4 sm:$0xff]  }
 0x360   :  { %5649 = vmatprep.subr.bf16.mxu1 %v18930_v19  ;;  %v18996_v19 = vld [vmem:[#allocation2 + $0x15b4] ss:$28 sps:$4 sm:$0xff]  }
 0x362   :  { %17511 = vmatpush3.bf16.msra.mxu0 %v18932_v28  ;;  %v18997_v28 = vld [vmem:[#allocation2 + $0x17a0] ss:$28 sps:$4 sm:$0xff]  }
 0x363   :  { %5650 = vmatpush1.bf16.msra.mxu1 %v18928_v43  ;;  %17702 = vmatprep.subr.bf16.mxu0 %v20939_v23  ;;  %v18994_v43 = vld [vmem:[#allocation2 + $0x15b0] ss:$28 sps:$4 sm:$0xff]  }
 0x364   :  { %5651 = vmatprep.subr.bf16.mxu1 %v18935_v29  ;;  %v19002_v29 = vld [vmem:[#allocation2 + $0x15ec] ss:$28 sps:$4 sm:$0xff]  }
 0x365   :  { %5836 = vmatmul.mubr.bf16.vlgmr.msra.gmra.mrb[20].mxu0 %v21349_v32 }
 0x366   :  { %17703 = vmatpush3.bf16.msra.mxu0 %v18939_v12  ;;  %17704 = vmatprep.mubr.msk.bf16.mxu0 %vm20940_vm1, %v20939_v23  ;;  %v19003_v12 = vld [vmem:[#allocation2 + $0x17d8] ss:$28 sps:$4 sm:$0xff]  }
 0x367   :  { %5652 = vmatpush1.bf16.msra.mxu1 %v18933_v44  ;;  %8056 = vmatprep.subr.bf16.mxu0 %v18945_v31  ;;  %v19005_v44 = vld [vmem:[#allocation2 + $0x17dc] ss:$28 sps:$4 sm:$0xff]   ;;  %v19008_v31 = vld [vmem:[#allocation2 + $0x1624] ss:$28 sps:$4 sm:$0xff]  }
 0x368   :  { %5653 = vmatprep.subr.bf16.mxu1 %v18938_v26  ;;  %v19000_v26 = vld [vmem:[#allocation2 + $0x15e8] ss:$28 sps:$4 sm:$0xff]  }
 0x36b   :  { %5654 = vmatpush1.bf16.msra.mxu1 %v18936_v53 }
 0x36c   :  { %5655 = vmatprep.subr.bf16.mxu1 %v18942_v33 }
 0x36d   :  { %17705 = vmatmul.mubr.msk.bf16.vlgmr.msra.gmra.mrb[24].mxu0 %vm2364_vm0, %v21357_v48 }
 0x36e   :  { %8057 = vmatpush1.bf16.msra.mxu0 %v18943_v40  ;;  %8088 = vmatprep.mubr.bf16.mxu0 %v21364_v9  ;;  %v19006_v40 = vld [vmem:[#allocation2 + $0x1620] ss:$28 sps:$4 sm:$0xff]  }
 0x36f   :  { %5656 = vmatpush1.bf16.msra.mxu1 %v18940_v38  ;;  %8058 = vmatprep.subr.bf16.mxu0 %v18951_v63 }
 0x370   :  { %5657 = vmatprep.subr.bf16.mxu1 %v18948_v45 }
 0x372   :  { %8059 = vmatpush1.bf16.msra.mxu0 %v18949_v50 }
 0x373   :  { %5658 = vmatpush1.bf16.msra.mxu1 %v18946_v49  ;;  %8060 = vmatprep.subr.bf16.mxu0 %v18957_v34  ;;  %v19014_v49 = vld [vmem:[#allocation2 + $0x165c] ss:$28 sps:$4 sm:$0xff]   ;;  %v19017_v34 = vld [vmem:[#allocation2 + $0x184c] ss:$28 sps:$4 sm:$0xff]  }
 0x374   :  { %5659 = vmatprep.subr.bf16.mxu1 %v18954_v52 }
 0x376   :  { %8061 = vmatpush1.bf16.msra.mxu0 %v18955_v35  ;;  %v19015_v35 = vld [vmem:[#allocation2 + $0x1848] ss:$28 sps:$4 sm:$0xff]  }
 0x377   :  { %5660 = vmatpush1.bf16.msra.mxu1 %v18952_v54  ;;  %8062 = vmatprep.subr.bf16.mxu0 %v18963_v56  ;;  %v19012_v54 = vld [vmem:[#allocation2 + $0x1658] ss:$28 sps:$4 sm:$0xff]   ;;  %v19023_v56 = vld [vmem:[#allocation2 + $0x1884] ss:$28 sps:$4 sm:$0xff]  }
 0x378   :  { %5661 = vmatprep.subr.bf16.mxu1 %v18960_v55  ;;  %v19020_v55 = vld [vmem:[#allocation2 + $0x1694] ss:$28 sps:$4 sm:$0xff]  }
 0x37a   :  { %8063 = vmatpush1.bf16.msra.mxu0 %v18961_v57  ;;  %v19021_v57 = vld [vmem:[#allocation2 + $0x1880] ss:$28 sps:$4 sm:$0xff]  }
 0x37b   :  { %5662 = vmatpush1.bf16.msra.mxu1 %v18958_v30  ;;  %8064 = vmatprep.subr.bf16.mxu0 %v18969_v59  ;;  %v19018_v30 = vld [vmem:[#allocation2 + $0x1690] ss:$28 sps:$4 sm:$0xff]   ;;  %v19029_v59 = vld [vmem:[#allocation2 + $0x18bc] ss:$28 sps:$4 sm:$0xff]  }
 0x37c   :  { %5663 = vmatprep.subr.bf16.mxu1 %v18966_v58  ;;  %v19026_v58 = vld [vmem:[#allocation2 + $0x16cc] ss:$28 sps:$4 sm:$0xff]  }
 0x37e   :  { %8065 = vmatpush1.bf16.msra.mxu0 %v18967_v60  ;;  %v19027_v60 = vld [vmem:[#allocation2 + $0x18b8] ss:$28 sps:$4 sm:$0xff]  }
 0x37f   :  { %5664 = vmatpush1.bf16.msra.mxu1 %v18964_v42  ;;  %8066 = vmatprep.subr.bf16.mxu0 %v18975_v62  ;;  %v19024_v42 = vld [vmem:[#allocation2 + $0x16c8] ss:$28 sps:$4 sm:$0xff]   ;;  %v19035_v62 = vld [vmem:[#allocation2 + $0x18f4] ss:$28 sps:$4 sm:$0xff]  }
 0x380   :  { %5665 = vmatprep.subr.bf16.mxu1 %v18972_v61  ;;  %v19032_v61 = vld [vmem:[#allocation2 + $0x1704] ss:$28 sps:$4 sm:$0xff]  }
 0x382   :  { %8067 = vmatpush1.bf16.msra.mxu0 %v18973_v5  ;;  %v19033_v5 = vld [vmem:[#allocation2 + $0x18f0] ss:$28 sps:$4 sm:$0xff]  }
 0x383   :  { %5666 = vmatpush1.bf16.msra.mxu1 %v18970_v4  ;;  %8068 = vmatprep.subr.bf16.mxu0 %v18981_v8  ;;  %v19030_v4 = vld [vmem:[#allocation2 + $0x1700] ss:$28 sps:$4 sm:$0xff]   ;;  %v19041_v8 = vld [vmem:[#allocation2 + $0x192c] ss:$28 sps:$4 sm:$0xff]  }
 0x384   :  { %5678 = vmatprep.subr.bf16.mxu1 %v18978_v7  ;;  %v19038_v7 = vld [vmem:[#allocation2 + $0x173c] ss:$28 sps:$4 sm:$0xff]  }
 0x386   :  { %5668 = vmatmul.mubr.bf16.vlgmr.msra.gmra.mrb[32].mxu1 %v21349_v32  ;;  %8069 = vmatpush1.bf16.msra.mxu0 %v18979_v37  ;;  %v19011_v32 = vld [vmem:[#allocation2 + $0x1814] ss:$28 sps:$4 sm:$0xff]   ;;  %v19039_v37 = vld [vmem:[#allocation2 + $0x1928] ss:$28 sps:$4 sm:$0xff]  }
 0x387   :  { %5679 = vmatpush1.bf16.msra.mxu1 %v18976_v36  ;;  %8070 = vmatprep.subr.bf16.mxu0 %v18984_v39  ;;  %v19036_v36 = vld [vmem:[#allocation2 + $0x1738] ss:$28 sps:$4 sm:$0xff]   ;;  %v21391_v39 = vld [vmem:[%s21843_s0] ss:$28 sps:$4 sm:$0xff]  }
 0x388   :  { %5710 = vmatprep.mubr.bf16.mxu1 %v20938_v0  ;;  %8228 = vmatprep.subr.bf16.mxu1 %v18990_v13  ;;  %v19044_v13 = vld [vmem:[#allocation2 + $0x1774] ss:$28 sps:$4 sm:$0xff]  }
 0x38a   :  { %8071 = vmatpush1.bf16.msra.mxu0 %v18982_v41  ;;  %v19047_v41 = vld [vmem:[#allocation2 + $0x1964] ss:$28 sps:$4 sm:$0xff]  }
 0x38b   :  { %8072 = vmatprep.subr.bf16.mxu0 %v18987_v14  ;;  %v21397_v14 = vld [vmem:[%s21843_s0 + $0xc] ss:$28 sps:$4 sm:$0xff]  }
 0x38e   :  { %8073 = vmatpush1.bf16.msra.mxu0 %v18985_v15  ;;  %v19042_v15 = vld [vmem:[#allocation2 + $0x1770] ss:$28 sps:$4 sm:$0xff]  }
 0x38f   :  { %8074 = vmatprep.subr.bf16.mxu0 %v18993_v17  ;;  %v19045_v17 = vld [vmem:[#allocation2 + $0x1960] ss:$28 sps:$4 sm:$0xff]  }
 0x392   :  { %16205 = vmatmul.mubr.msk.bf16.vlgmr.msra.gmra.mrb[32].mxu1 %vm2364_vm0, %v21357_v48  ;;  %8075 = vmatpush1.bf16.msra.mxu0 %v18991_v18  ;;  %v19009_v48 = vld [vmem:[#allocation2 + $0x1810] ss:$28 sps:$4 sm:$0xff]   ;;  %v19053_v18 = vld [vmem:[#allocation2 + $0x199c] ss:$28 sps:$4 sm:$0xff]  }
 0x393   :  { %8229 = vmatpush1.bf16.msra.mxu1 %v18988_v16  ;;  %8076 = vmatprep.subr.bf16.mxu0 %v18999_v25  ;;  %v19050_v16 = vld [vmem:[#allocation2 + $0x17ac] ss:$28 sps:$4 sm:$0xff]   ;;  %v19051_v25 = vld [vmem:[#allocation2 + $0x1998] ss:$28 sps:$4 sm:$0xff]  }
 0x394   :  { %8230 = vmatprep.subr.bf16.mxu1 %v18996_v19  ;;  %8260 = vmatprep.mubr.bf16.mxu1 %v21364_v9  ;;  %v19048_v19 = vld [vmem:[#allocation2 + $0x17a8] ss:$28 sps:$4 sm:$0xff]  }
 0x396   :  { %8077 = vmatpush1.bf16.msra.mxu0 %v18997_v28  ;;  %v19059_v28 = vld [vmem:[#allocation2 + $0x19d4] ss:$28 sps:$4 sm:$0xff]  }
 0x397   :  { %8231 = vmatpush1.bf16.msra.mxu1 %v18994_v43  ;;  %8078 = vmatprep.subr.bf16.mxu0 %v19005_v44  ;;  %v19056_v43 = vld [vmem:[#allocation2 + $0x17e4] ss:$28 sps:$4 sm:$0xff]   ;;  %v19057_v44 = vld [vmem:[#allocation2 + $0x19d0] ss:$28 sps:$4 sm:$0xff]  }
 0x398   :  { %8232 = vmatprep.subr.bf16.mxu1 %v19002_v29  ;;  %v19054_v29 = vld [vmem:[#allocation2 + $0x17e0] ss:$28 sps:$4 sm:$0xff]  }
 0x399   :  { %v21372_v53 = vpop.f32.mrb[28].mxu1 }
 0x39a   :  { %v5885_v33 = vmax.f32 %v21229_v1, %v21372_v53  ;;  %v21376_v38 = vpop.f32.mrb[29].mxu1  ;;  %8079 = vmatpush1.bf16.msra.mxu0 %v19003_v12  ;;  %v19065_v12 = vld [vmem:[#allocation2 + $0x1a0c] ss:$28 sps:$4 sm:$0xff]  }
 0x39b   :  { %8233 = vmatpush1.bf16.msra.mxu1 %v19000_v26  ;;  %v5886_v45 = vmax.f32 %v21232_v3, %v21376_v38  ;;  %v21380_v63 = vpop.f32.mrb[30].mxu1  ;;  %8080 = vmatprep.subr.bf16.mxu0 %v19011_v32  ;;  %v19062_v26 = vld [vmem:[#allocation2 + $0x181c] ss:$28 sps:$4 sm:$0xff]   ;;  %v19063_v32 = vld [vmem:[#allocation2 + $0x1a08] ss:$28 sps:$4 sm:$0xff]  }
 0x39c   :  { %v5892_v50 = vmax.f32 %v21235_v6, %v21380_v63  ;;  %v21384_v52 = vpop.f32.mrb[31].mxu1  ;;  %8234 = vmatprep.subr.bf16.mxu1 %v19008_v31  ;;  %v19060_v31 = vld [vmem:[#allocation2 + $0x1818] ss:$28 sps:$4 sm:$0xff]   ;;  %v19525_v53 = vld [vmem:[#allocation2 + $0x248c] ss:$28 sps:$4 sm:$0xff]  }
 0x39d   :  { %v5893_v9 = vmax.f32 %v21238_v10, %v21384_v52  ;;  %v19523_v3 = vld [vmem:[#allocation2 + $0x2488] ss:$28 sps:$4 sm:$0xff]   ;;  %v19526_v38 = vld [vmem:[#allocation2 + $0x2110] ss:$28 sps:$4 sm:$0xff]   ;;  %v19529_v6 = vld [vmem:[#allocation2 + $0x24c0] ss:$28 sps:$4 sm:$0xff]  }
 0x39e   :  { %8081 = vmatpush1.bf16.msra.mxu0 %v19009_v48  ;;  %v19071_v48 = vld [vmem:[#allocation2 + $0x1a44] ss:$28 sps:$4 sm:$0xff]   ;;  %v19535_v10 = vld [vmem:[#allocation2 + $0x24f8] ss:$28 sps:$4 sm:$0xff]  }
 0x39f   :  { %8235 = vmatpush1.bf16.msra.mxu1 %v19006_v40  ;;  %8082 = vmatprep.subr.bf16.mxu0 %v19017_v34  ;;  %v19068_v40 = vld [vmem:[#allocation2 + $0x1854] ss:$28 sps:$4 sm:$0xff]   ;;  %v19069_v34 = vld [vmem:[#allocation2 + $0x1a40] ss:$28 sps:$4 sm:$0xff]   ;;  %v19532_v63 = vld [vmem:[#allocation2 + $0x2148] ss:$28 sps:$4 sm:$0xff]  }
 0x3a0   :  { %8236 = vmatprep.subr.bf16.mxu1 %v19014_v49  ;;  %v19066_v49 = vld [vmem:[#allocation2 + $0x1850] ss:$28 sps:$4 sm:$0xff]   ;;  %v19538_v52 = vld [vmem:[#allocation2 + $0x2180] ss:$28 sps:$4 sm:$0xff]  }
 0x3a2   :  { %8083 = vmatpush1.bf16.msra.mxu0 %v19015_v35  ;;  %v19077_v35 = vld [vmem:[#allocation2 + $0x1a7c] ss:$28 sps:$4 sm:$0xff]  }
 0x3a3   :  { %8237 = vmatpush1.bf16.msra.mxu1 %v19012_v54  ;;  %8084 = vmatprep.subr.bf16.mxu0 %v19023_v56  ;;  %v19074_v54 = vld [vmem:[#allocation2 + $0x188c] ss:$28 sps:$4 sm:$0xff]   ;;  %v19075_v56 = vld [vmem:[#allocation2 + $0x1a78] ss:$28 sps:$4 sm:$0xff]  }
 0x3a4   :  { %8238 = vmatprep.subr.bf16.mxu1 %v19020_v55  ;;  %v19072_v55 = vld [vmem:[#allocation2 + $0x1888] ss:$28 sps:$4 sm:$0xff]  }
 0x3a6   :  { %8085 = vmatpush1.bf16.msra.mxu0 %v19021_v57  ;;  %v19083_v57 = vld [vmem:[#allocation2 + $0x1ab4] ss:$28 sps:$4 sm:$0xff]  }
 0x3a7   :  { %8239 = vmatpush1.bf16.msra.mxu1 %v19018_v30  ;;  %8086 = vmatprep.subr.bf16.mxu0 %v19029_v59  ;;  %v19080_v30 = vld [vmem:[#allocation2 + $0x18c4] ss:$28 sps:$4 sm:$0xff]   ;;  %v19081_v59 = vld [vmem:[#allocation2 + $0x1ab0] ss:$28 sps:$4 sm:$0xff]  }
 0x3a8   :  { %8240 = vmatprep.subr.bf16.mxu1 %v19026_v58  ;;  %v19078_v58 = vld [vmem:[#allocation2 + $0x18c0] ss:$28 sps:$4 sm:$0xff]  }
 0x3aa   :  { %8087 = vmatpush1.bf16.msra.mxu0 %v19027_v60  ;;  %v19089_v60 = vld [vmem:[#allocation2 + $0x1aec] ss:$28 sps:$4 sm:$0xff]  }
 0x3ab   :  { %8241 = vmatpush1.bf16.msra.mxu1 %v19024_v42  ;;  %8099 = vmatprep.subr.bf16.mxu0 %v19035_v62  ;;  %v19086_v42 = vld [vmem:[#allocation2 + $0x18fc] ss:$28 sps:$4 sm:$0xff]   ;;  %v19087_v62 = vld [vmem:[#allocation2 + $0x1ae8] ss:$28 sps:$4 sm:$0xff]  }
 0x3ac   :  { %8242 = vmatprep.subr.bf16.mxu1 %v19032_v61  ;;  %v19084_v61 = vld [vmem:[#allocation2 + $0x18f8] ss:$28 sps:$4 sm:$0xff]  }
 0x3ad   :  { %8089 = vmatmul.mubr.bf16.vlgmr.msra.gmra.mrb[28].mxu0 %v21391_v39 }
 0x3ae   :  { %8100 = vmatpush1.bf16.msra.mxu0 %v19033_v5  ;;  %8131 = vmatprep.mubr.bf16.mxu0 %v21397_v14  ;;  %v19095_v5 = vld [vmem:[#allocation2 + $0x1b24] ss:$28 sps:$4 sm:$0xff]  }
 0x3af   :  { %8243 = vmatpush1.bf16.msra.mxu1 %v19030_v4  ;;  %8101 = vmatprep.subr.bf16.mxu0 %v19041_v8  ;;  %v19092_v4 = vld [vmem:[#allocation2 + $0x1934] ss:$28 sps:$4 sm:$0xff]   ;;  %v19093_v8 = vld [vmem:[#allocation2 + $0x1b20] ss:$28 sps:$4 sm:$0xff]  }
 0x3b0   :  { %8244 = vmatprep.subr.bf16.mxu1 %v19038_v7  ;;  %v19090_v7 = vld [vmem:[#allocation2 + $0x1930] ss:$28 sps:$4 sm:$0xff]  }
 0x3b2   :  { %8102 = vmatpush1.bf16.msra.mxu0 %v19039_v37  ;;  %v19101_v37 = vld [vmem:[#allocation2 + $0x1b5c] ss:$28 sps:$4 sm:$0xff]  }
 0x3b3   :  { %8245 = vmatpush1.bf16.msra.mxu1 %v19036_v36  ;;  %8103 = vmatprep.subr.bf16.mxu0 %v19047_v41  ;;  %v19098_v36 = vld [vmem:[#allocation2 + $0x196c] ss:$28 sps:$4 sm:$0xff]   ;;  %v19099_v41 = vld [vmem:[#allocation2 + $0x1b58] ss:$28 sps:$4 sm:$0xff]  }
 0x3b4   :  { %8246 = vmatprep.subr.bf16.mxu1 %v19044_v13  ;;  %v19096_v13 = vld [vmem:[#allocation2 + $0x1968] ss:$28 sps:$4 sm:$0xff]  }
 0x3b6   :  { %8104 = vmatpush1.bf16.msra.mxu0 %v19045_v17  ;;  %v19107_v17 = vld [vmem:[#allocation2 + $0x1b94] ss:$28 sps:$4 sm:$0xff]  }
 0x3b7   :  { %8247 = vmatpush1.bf16.msra.mxu1 %v19042_v15  ;;  %8105 = vmatprep.subr.bf16.mxu0 %v19053_v18  ;;  %v19104_v15 = vld [vmem:[#allocation2 + $0x19a4] ss:$28 sps:$4 sm:$0xff]   ;;  %v19105_v18 = vld [vmem:[#allocation2 + $0x1b90] ss:$28 sps:$4 sm:$0xff]  }
 0x3b8   :  { %8248 = vmatprep.subr.bf16.mxu1 %v19050_v16 }
 0x3ba   :  { %8106 = vmatpush1.bf16.msra.mxu0 %v19051_v25 }
 0x3bb   :  { %8249 = vmatpush1.bf16.msra.mxu1 %v19048_v19  ;;  %8107 = vmatprep.subr.bf16.mxu0 %v19059_v28  ;;  %v19110_v28 = vld [vmem:[#allocation2 + $0x19dc] ss:$28 sps:$4 sm:$0xff]  }
 0x3bc   :  { %8250 = vmatprep.subr.bf16.mxu1 %v19056_v43 }
 0x3be   :  { %8108 = vmatpush1.bf16.msra.mxu0 %v19057_v44 }
 0x3bf   :  { %8251 = vmatpush1.bf16.msra.mxu1 %v19054_v29  ;;  %8109 = vmatprep.subr.bf16.mxu0 %v19065_v12 }
 0x3c0   :  { %8252 = vmatprep.subr.bf16.mxu1 %v19062_v26  ;;  %v19113_v26 = vld [vmem:[#allocation2 + $0x1bcc] ss:$28 sps:$4 sm:$0xff]  }
 0x3c2   :  { %8110 = vmatpush1.bf16.msra.mxu0 %v19063_v32  ;;  %v19111_v32 = vld [vmem:[#allocation2 + $0x1bc8] ss:$28 sps:$4 sm:$0xff]  }
 0x3c3   :  { %8253 = vmatpush1.bf16.msra.mxu1 %v19060_v31  ;;  %8111 = vmatprep.subr.bf16.mxu0 %v19071_v48  ;;  %v19108_v31 = vld [vmem:[#allocation2 + $0x19d8] ss:$28 sps:$4 sm:$0xff]   ;;  %v19119_v48 = vld [vmem:[#allocation2 + $0x1c04] ss:$28 sps:$4 sm:$0xff]  }
 0x3c4   :  { %8254 = vmatprep.subr.bf16.mxu1 %v19068_v40  ;;  %v19116_v40 = vld [vmem:[#allocation2 + $0x1a14] ss:$28 sps:$4 sm:$0xff]  }
 0x3c6   :  { %8112 = vmatpush1.bf16.msra.mxu0 %v19069_v34  ;;  %v19117_v34 = vld [vmem:[#allocation2 + $0x1c00] ss:$28 sps:$4 sm:$0xff]  }
 0x3c7   :  { %8255 = vmatpush1.bf16.msra.mxu1 %v19066_v49  ;;  %8113 = vmatprep.subr.bf16.mxu0 %v19077_v35  ;;  %v19114_v49 = vld [vmem:[#allocation2 + $0x1a10] ss:$28 sps:$4 sm:$0xff]   ;;  %v19125_v35 = vld [vmem:[#allocation2 + $0x1c3c] ss:$28 sps:$4 sm:$0xff]  }
 0x3c8   :  { %8256 = vmatprep.subr.bf16.mxu1 %v19074_v54  ;;  %v19122_v54 = vld [vmem:[#allocation2 + $0x1a4c] ss:$28 sps:$4 sm:$0xff]  }
 0x3ca   :  { %8114 = vmatpush1.bf16.msra.mxu0 %v19075_v56  ;;  %v19123_v56 = vld [vmem:[#allocation2 + $0x1c38] ss:$28 sps:$4 sm:$0xff]  }
 0x3cb   :  { %8257 = vmatpush1.bf16.msra.mxu1 %v19072_v55  ;;  %8115 = vmatprep.subr.bf16.mxu0 %v19083_v57  ;;  %v19120_v55 = vld [vmem:[#allocation2 + $0x1a48] ss:$28 sps:$4 sm:$0xff]   ;;  %v19131_v57 = vld [vmem:[#allocation2 + $0x1c74] ss:$28 sps:$4 sm:$0xff]  }
 0x3cc   :  { %8258 = vmatprep.subr.bf16.mxu1 %v19080_v30  ;;  %v19128_v30 = vld [vmem:[#allocation2 + $0x1a84] ss:$28 sps:$4 sm:$0xff]  }
 0x3ce   :  { %8116 = vmatpush1.bf16.msra.mxu0 %v19081_v59  ;;  %v19129_v59 = vld [vmem:[#allocation2 + $0x1c70] ss:$28 sps:$4 sm:$0xff]  }
 0x3cf   :  { %8259 = vmatpush1.bf16.msra.mxu1 %v19078_v58  ;;  %8117 = vmatprep.subr.bf16.mxu0 %v19089_v60  ;;  %v19126_v58 = vld [vmem:[#allocation2 + $0x1a80] ss:$28 sps:$4 sm:$0xff]   ;;  %v19137_v60 = vld [vmem:[#allocation2 + $0x1cac] ss:$28 sps:$4 sm:$0xff]  }
 0x3d0   :  { %8271 = vmatprep.subr.bf16.mxu1 %v19086_v42  ;;  %v19134_v42 = vld [vmem:[#allocation2 + $0x1abc] ss:$28 sps:$4 sm:$0xff]  }
 0x3d2   :  { %8261 = vmatmul.mubr.bf16.vlgmr.msra.gmra.mrb[36].mxu1 %v21391_v39  ;;  %8118 = vmatpush1.bf16.msra.mxu0 %v19087_v62  ;;  %v19102_v39 = vld [vmem:[#allocation2 + $0x19a0] ss:$28 sps:$4 sm:$0xff]   ;;  %v19132_v62 = vld [vmem:[#allocation2 + $0x1ab8] ss:$28 sps:$4 sm:$0xff]  }
 0x3d3   :  { %8272 = vmatpush1.bf16.msra.mxu1 %v19084_v61  ;;  %8119 = vmatprep.subr.bf16.mxu0 %v19095_v5  ;;  %v21421_v61 = vld [vmem:[%s21843_s0 + $0x8] ss:$28 sps:$4 sm:$0xff]   ;;  %v19140_v5 = vld [vmem:[#allocation2 + $0x1af4] ss:$28 sps:$4 sm:$0xff]  }
 0x3d4   :  { %8273 = vmatprep.subr.bf16.mxu1 %v19092_v4  ;;  %8303 = vmatprep.mubr.bf16.mxu1 %v21397_v14  ;;  %v19135_v4 = vld [vmem:[#allocation2 + $0x1ca8] ss:$28 sps:$4 sm:$0xff]  }
 0x3d6   :  { %8120 = vmatpush1.bf16.msra.mxu0 %v19093_v8  ;;  %v21427_v8 = vld [vmem:[%s21843_s0 + $0x14] ss:$28 sps:$4 sm:$0xff]  }
 0x3d7   :  { %8274 = vmatpush1.bf16.msra.mxu1 %v19090_v7  ;;  %8121 = vmatprep.subr.bf16.mxu0 %v19101_v37  ;;  %v19143_v7 = vld [vmem:[#allocation2 + $0x1ce4] ss:$28 sps:$4 sm:$0xff]  }
 0x3d8   :  { %8275 = vmatprep.subr.bf16.mxu1 %v19098_v36  ;;  %v21402_v16 = vpop.f32.mrb[8].mxu0  ;;  %v19138_v36 = vld [vmem:[#allocation2 + $0x1af0] ss:$28 sps:$4 sm:$0xff]   ;;  %v19141_v37 = vld [vmem:[#allocation2 + $0x1ce0] ss:$28 sps:$4 sm:$0xff]  }
 0x3d9   :  { %v5887_v19 = vmax.f32 %v21240_v20, %v21402_v16  ;;  %v21406_v25 = vpop.f32.mrb[9].mxu0  ;;  %v19579_v20 = vld [vmem:[#allocation2 + $0x2684] ss:$28 sps:$4 sm:$0xff]   ;;  %v19582_v16 = vld [vmem:[#allocation2 + $0x230c] ss:$28 sps:$4 sm:$0xff]  }
 0x3da   :  { %8122 = vmatpush1.bf16.msra.mxu0 %v19099_v41  ;;  %v5888_v14 = vmax.f32 %v21242_v22, %v21406_v25  ;;  %v21410_v43 = vpop.f32.mrb[10].mxu0  ;;  %v19149_v41 = vld [vmem:[#allocation2 + $0x1d1c] ss:$28 sps:$4 sm:$0xff]   ;;  %v19580_v25 = vld [vmem:[#allocation2 + $0x2308] ss:$28 sps:$4 sm:$0xff]  }
 0x3db   :  { %8276 = vmatpush1.bf16.msra.mxu1 %v19096_v13  ;;  %v5894_v29 = vmax.f32 %v21244_v24, %v21410_v43  ;;  %v21414_v44 = vpop.f32.mrb[11].mxu0  ;;  %8123 = vmatprep.subr.bf16.mxu0 %v19107_v17  ;;  %v19146_v13 = vld [vmem:[#allocation2 + $0x1b2c] ss:$28 sps:$4 sm:$0xff]   ;;  %v19147_v17 = vld [vmem:[#allocation2 + $0x1d18] ss:$28 sps:$4 sm:$0xff]  }
 0x3dc   :  { %8277 = vmatprep.subr.bf16.mxu1 %v19104_v15  ;;  %v5895_v12 = vmax.f32 %v21246_v27, %v21414_v44  ;;  %v19144_v15 = vld [vmem:[#allocation2 + $0x1b28] ss:$28 sps:$4 sm:$0xff]   ;;  %v19583_v43 = vld [vmem:[#allocation2 + $0x26b8] ss:$28 sps:$4 sm:$0xff]   ;;  %v19589_v27 = vld [vmem:[#allocation2 + $0x26f0] ss:$28 sps:$4 sm:$0xff]  }
 0x3dd   :  { %v19588_v24 = vld [vmem:[#allocation2 + $0x2344] ss:$28 sps:$4 sm:$0xff]   ;;  %v19592_v44 = vld [vmem:[#allocation2 + $0x2378] ss:$28 sps:$4 sm:$0xff]  }
 0x3de   :  { %8124 = vmatpush1.bf16.msra.mxu0 %v19105_v18  ;;  %v19155_v18 = vld [vmem:[#allocation2 + $0x1d54] ss:$28 sps:$4 sm:$0xff]  }
 0x3df   :  { %8278 = vmatpush1.bf16.msra.mxu1 %v19102_v39  ;;  %8125 = vmatprep.subr.bf16.mxu0 %v19113_v26  ;;  %v19152_v39 = vld [vmem:[#allocation2 + $0x1b64] ss:$28 sps:$4 sm:$0xff]  }
 0x3e0   :  { %8279 = vmatprep.subr.bf16.mxu1 %v19110_v28  ;;  %v19150_v28 = vld [vmem:[#allocation2 + $0x1b60] ss:$28 sps:$4 sm:$0xff]  }
 0x3e2   :  { %8126 = vmatpush1.bf16.msra.mxu0 %v19111_v32 }
 0x3e3   :  { %8280 = vmatpush1.bf16.msra.mxu1 %v19108_v31  ;;  %8127 = vmatprep.subr.bf16.mxu0 %v19119_v48  ;;  %v19153_v31 = vld [vmem:[#allocation2 + $0x1d50] ss:$28 sps:$4 sm:$0xff]  }
 0x3e4   :  { %8281 = vmatprep.subr.bf16.mxu1 %v19116_v40  ;;  %v19158_v40 = vld [vmem:[#allocation2 + $0x1b9c] ss:$28 sps:$4 sm:$0xff]  }
 0x3e6   :  { %8128 = vmatpush1.bf16.msra.mxu0 %v19117_v34  ;;  %v19161_v34 = vld [vmem:[#allocation2 + $0x1d8c] ss:$28 sps:$4 sm:$0xff]  }
 0x3e7   :  { %8282 = vmatpush1.bf16.msra.mxu1 %v19114_v49  ;;  %8129 = vmatprep.subr.bf16.mxu0 %v19125_v35 }
 0x3e8   :  { %8283 = vmatprep.subr.bf16.mxu1 %v19122_v54 }
 0x3ea   :  { %8130 = vmatpush1.bf16.msra.mxu0 %v19123_v56  ;;  %v19159_v56 = vld [vmem:[#allocation2 + $0x1d88] ss:$28 sps:$4 sm:$0xff]  }
 0x3eb   :  { %8284 = vmatpush1.bf16.msra.mxu1 %v19120_v55  ;;  %8142 = vmatprep.subr.bf16.mxu0 %v19131_v57  ;;  %v19156_v55 = vld [vmem:[#allocation2 + $0x1b98] ss:$28 sps:$4 sm:$0xff]   ;;  %v19167_v57 = vld [vmem:[#allocation2 + $0x1dc4] ss:$28 sps:$4 sm:$0xff]  }
 0x3ec   :  { %8285 = vmatprep.subr.bf16.mxu1 %v19128_v30  ;;  %v19164_v30 = vld [vmem:[#allocation2 + $0x1bd4] ss:$28 sps:$4 sm:$0xff]  }
 0x3ed   :  { %8132 = vmatmul.mubr.bf16.vlgmr.msra.gmra.mrb[28].mxu0 %v21421_v61 }
 0x3ee   :  { %8143 = vmatpush1.bf16.msra.mxu0 %v19129_v59  ;;  %8174 = vmatprep.mubr.bf16.mxu0 %v21427_v8  ;;  %v19165_v59 = vld [vmem:[#allocation2 + $0x1dc0] ss:$28 sps:$4 sm:$0xff]  }
 0x3ef   :  { %8286 = vmatpush1.bf16.msra.mxu1 %v19126_v58  ;;  %8144 = vmatprep.subr.bf16.mxu0 %v19137_v60  ;;  %v19162_v58 = vld [vmem:[#allocation2 + $0x1bd0] ss:$28 sps:$4 sm:$0xff]   ;;  %v19173_v60 = vld [vmem:[#allocation2 + $0x1dfc] ss:$28 sps:$4 sm:$0xff]  }
 0x3f0   :  { %8287 = vmatprep.subr.bf16.mxu1 %v19134_v42  ;;  %v19170_v42 = vld [vmem:[#allocation2 + $0x1c0c] ss:$28 sps:$4 sm:$0xff]  }
 0x3f2   :  { %8145 = vmatpush1.bf16.msra.mxu0 %v19135_v4  ;;  %v19171_v4 = vld [vmem:[#allocation2 + $0x1df8] ss:$28 sps:$4 sm:$0xff]  }
 0x3f3   :  { %8288 = vmatpush1.bf16.msra.mxu1 %v19132_v62  ;;  %8146 = vmatprep.subr.bf16.mxu0 %v19143_v7  ;;  %v19168_v62 = vld [vmem:[#allocation2 + $0x1c08] ss:$28 sps:$4 sm:$0xff]   ;;  %v19179_v7 = vld [vmem:[#allocation2 + $0x1e34] ss:$28 sps:$4 sm:$0xff]  }
 0x3f4   :  { %8289 = vmatprep.subr.bf16.mxu1 %v19140_v5  ;;  %v19176_v5 = vld [vmem:[#allocation2 + $0x1c44] ss:$28 sps:$4 sm:$0xff]  }
 0x3f6   :  { %8147 = vmatpush1.bf16.msra.mxu0 %v19141_v37  ;;  %v19177_v37 = vld [vmem:[#allocation2 + $0x1e30] ss:$28 sps:$4 sm:$0xff]  }
 0x3f7   :  { %8290 = vmatpush1.bf16.msra.mxu1 %v19138_v36  ;;  %8148 = vmatprep.subr.bf16.mxu0 %v19149_v41  ;;  %v19174_v36 = vld [vmem:[#allocation2 + $0x1c40] ss:$28 sps:$4 sm:$0xff]   ;;  %v19185_v41 = vld [vmem:[#allocation2 + $0x1e6c] ss:$28 sps:$4 sm:$0xff]  }
 0x3f8   :  { %8291 = vmatprep.subr.bf16.mxu1 %v19146_v13  ;;  %v17468_v26 = vpop.f32.mrb[12].mxu0  ;;  %v19182_v13 = vld [vmem:[#allocation2 + $0x1c7c] ss:$28 sps:$4 sm:$0xff]  }
 0x3f9   :  { %v17469_v32 = vpop.f32.mrb[13].mxu0 }
 0x3fa   :  { %8149 = vmatpush1.bf16.msra.mxu0 %v19147_v17  ;;  %v21430_v48 = vadd.f32 %v17469_v32, %v17468_v26  ;;  %v17471_v49 = vpop.f32.mrb[14].mxu0  ;;  %v19183_v17 = vld [vmem:[#allocation2 + $0x1e68] ss:$28 sps:$4 sm:$0xff]   ;;  %v19189_v26 = vld [vmem:[#allocation2 + $0x1ea0] ss:$28 sps:$4 sm:$0xff]  }
 0x3fb   :  { %8292 = vmatpush1.bf16.msra.mxu1 %v19144_v15  ;;  %8150 = vmatprep.subr.bf16.mxu0 %v19155_v18  ;;  %v17472_v54 = vpop.f32.mrb[15].mxu0  ;;  %v19180_v15 = vld [vmem:[#allocation2 + $0x1c78] ss:$28 sps:$4 sm:$0xff]   ;;  %v19191_v18 = vld [vmem:[#allocation2 + $0x1ea4] ss:$28 sps:$4 sm:$0xff]  }
 0x3fc   :  { %8293 = vmatprep.subr.bf16.mxu1 %v19152_v39  ;;  %v21432_v35 = vadd.f32 %v17472_v54, %v17471_v49  ;;  %v19188_v39 = vld [vmem:[#allocation2 + $0x1cb4] ss:$28 sps:$4 sm:$0xff]   ;;  %v19197_v32 = vld [vmem:[#allocation2 + $0x1edc] ss:$28 sps:$4 sm:$0xff]  }
 0x3fd   :  { %v19195_v49 = vld [vmem:[#allocation2 + $0x1ed8] ss:$28 sps:$4 sm:$0xff]  }
 0x3fe   :  { %8151 = vmatpush1.bf16.msra.mxu0 %v19153_v31  ;;  %v19194_v31 = vld [vmem:[#allocation2 + $0x1cec] ss:$28 sps:$4 sm:$0xff]   ;;  %v19203_v54 = vld [vmem:[#allocation2 + $0x1f14] ss:$28 sps:$4 sm:$0xff]  }
 0x3ff   :  { %8294 = vmatpush1.bf16.msra.mxu1 %v19150_v28  ;;  %8152 = vmatprep.subr.bf16.mxu0 %v19161_v34  ;;  %v19186_v28 = vld [vmem:[#allocation2 + $0x1cb0] ss:$28 sps:$4 sm:$0xff]   ;;  %v19200_v34 = vld [vmem:[#allocation2 + $0x1d24] ss:$28 sps:$4 sm:$0xff]  }
 0x400   :  { %8295 = vmatprep.subr.bf16.mxu1 %v19158_v40  ;;  %v19192_v40 = vld [vmem:[#allocation2 + $0x1ce8] ss:$28 sps:$4 sm:$0xff]  }
 0x402   :  { %8153 = vmatpush1.bf16.msra.mxu0 %v19159_v56  ;;  %v19201_v56 = vld [vmem:[#allocation2 + $0x1f10] ss:$28 sps:$4 sm:$0xff]  }
 0x403   :  { %8296 = vmatpush1.bf16.msra.mxu1 %v19156_v55  ;;  %8154 = vmatprep.subr.bf16.mxu0 %v19167_v57  ;;  %v19198_v55 = vld [vmem:[#allocation2 + $0x1d20] ss:$28 sps:$4 sm:$0xff]  }
 0x404   :  { %8297 = vmatprep.subr.bf16.mxu1 %v19164_v30  ;;  %v19206_v57 = vld [vmem:[#allocation2 + $0x1d5c] ss:$28 sps:$4 sm:$0xff]  }
 0x406   :  { %8155 = vmatpush1.bf16.msra.mxu0 %v19165_v59 }
 0x407   :  { %8298 = vmatpush1.bf16.msra.mxu1 %v19162_v58  ;;  %8156 = vmatprep.subr.bf16.mxu0 %v19173_v60 }
 0x408   :  { %8299 = vmatprep.subr.bf16.mxu1 %v19170_v42 }
 0x40a   :  { %8157 = vmatpush1.bf16.msra.mxu0 %v19171_v4  ;;  %v19204_v4 = vld [vmem:[#allocation2 + $0x1d58] ss:$28 sps:$4 sm:$0xff]  }
 0x40b   :  { %8300 = vmatpush1.bf16.msra.mxu1 %v19168_v62  ;;  %8158 = vmatprep.subr.bf16.mxu0 %v19179_v7  ;;  %v19212_v7 = vld [vmem:[#allocation2 + $0x1d94] ss:$28 sps:$4 sm:$0xff]  }
 0x40c   :  { %8301 = vmatprep.subr.bf16.mxu1 %v19176_v5  ;;  %v19207_v5 = vld [vmem:[#allocation2 + $0x1f48] ss:$28 sps:$4 sm:$0xff]  }
 0x40e   :  { %8159 = vmatpush1.bf16.msra.mxu0 %v19177_v37  ;;  %v19215_v37 = vld [vmem:[#allocation2 + $0x1f84] ss:$28 sps:$4 sm:$0xff]  }
 0x40f   :  { %8302 = vmatpush1.bf16.msra.mxu1 %v19174_v36  ;;  %8160 = vmatprep.subr.bf16.mxu0 %v19185_v41  ;;  %v19213_v41 = vld [vmem:[#allocation2 + $0x1f80] ss:$28 sps:$4 sm:$0xff]  }
 0x410   :  { %8314 = vmatprep.subr.bf16.mxu1 %v19182_v13  ;;  %v19210_v13 = vld [vmem:[#allocation2 + $0x1d90] ss:$28 sps:$4 sm:$0xff]  }
 0x412   :  { %8304 = vmatmul.mubr.bf16.vlgmr.msra.gmra.mrb[36].mxu1 %v21421_v61  ;;  %8161 = vmatpush1.bf16.msra.mxu0 %v19183_v17  ;;  %v19216_v17 = vld [vmem:[#allocation2 + $0x1dc8] ss:$28 sps:$4 sm:$0xff]  }
 0x413   :  { %8315 = vmatpush1.bf16.msra.mxu1 %v19180_v15  ;;  %8162 = vmatprep.subr.bf16.mxu0 %v19191_v18  ;;  %v19218_v15 = vld [vmem:[#allocation2 + $0x1dcc] ss:$28 sps:$4 sm:$0xff]   ;;  %v19224_v18 = vld [vmem:[#allocation2 + $0x1e04] ss:$28 sps:$4 sm:$0xff]  }
 0x414   :  { %8316 = vmatprep.subr.bf16.mxu1 %v19188_v39  ;;  %8346 = vmatprep.mubr.bf16.mxu1 %v21427_v8  ;;  %v19209_v8 = vld [vmem:[#allocation2 + $0x1f4c] ss:$28 sps:$4 sm:$0xff]   ;;  %v19219_v39 = vld [vmem:[#allocation2 + $0x1fb8] ss:$28 sps:$4 sm:$0xff]  }
 0x416   :  { %8163 = vmatpush1.bf16.msra.mxu0 %v19189_v26  ;;  %v19227_v26 = vld [vmem:[#allocation2 + $0x1e3c] ss:$28 sps:$4 sm:$0xff]  }
 0x417   :  { %8317 = vmatpush1.bf16.msra.mxu1 %v19186_v28  ;;  %8164 = vmatprep.subr.bf16.mxu0 %v19197_v32  ;;  %v19222_v28 = vld [vmem:[#allocation2 + $0x1e00] ss:$28 sps:$4 sm:$0xff]  }
 0x418   :  { %8318 = vmatprep.subr.bf16.mxu1 %v19194_v31  ;;  %v17490_v61 = vpop.f32.mrb[16].mxu0  ;;  %v19231_v31 = vld [vmem:[#allocation2 + $0x1ff0] ss:$28 sps:$4 sm:$0xff]   ;;  %v19239_v32 = vld [vmem:[#allocation2 + $0x1584] ss:$28 sps:$4 sm:$0xff]  }
 0x419   :  { %v17491_v30 = vpop.f32.mrb[17].mxu0 }
 0x41a   :  { %8165 = vmatpush1.bf16.msra.mxu0 %v19195_v49  ;;  %v17492_v58 = vadd.f32 %v17491_v30, %v17490_v61  ;;  %v17493_v59 = vpop.f32.mrb[18].mxu0  ;;  %v19225_v49 = vld [vmem:[#allocation2 + $0x1e38] ss:$28 sps:$4 sm:$0xff]   ;;  %v19234_v61 = vld [vmem:[#allocation2 + $0x1ea8] ss:$28 sps:$4 sm:$0xff]  }
 0x41b   :  { %8319 = vmatpush1.bf16.msra.mxu1 %v19192_v40  ;;  %8166 = vmatprep.subr.bf16.mxu0 %v19203_v54  ;;  %v17494_v42 = vpop.f32.mrb[19].mxu0  ;;  %v21445_v40 = vld [vmem:[%s21843_s0 + $0x10] ss:$28 sps:$4 sm:$0xff]   ;;  %v19242_v30 = vld [vmem:[#allocation2 + $0x1ee4] ss:$28 sps:$4 sm:$0xff]  }
 0x41c   :  { %8320 = vmatprep.subr.bf16.mxu1 %v19200_v34  ;;  %v21437_v60 = vadd.f32 %v17492_v58, %v21430_v48  ;;  %v17495_v62 = vadd.f32 %v17494_v42, %v17493_v59  ;;  %v19221_v48 = vld [vmem:[#allocation2 + $0x1fbc] ss:$28 sps:$4 sm:$0xff]   ;;  %v19230_v34 = vld [vmem:[#allocation2 + $0x1e74] ss:$28 sps:$4 sm:$0xff]  }
 0x41d   :  { %v19228_v54 = vld [vmem:[#allocation2 + $0x1e70] ss:$28 sps:$4 sm:$0xff]   ;;  %v19240_v59 = vld [vmem:[#allocation2 + $0x1ee0] ss:$28 sps:$4 sm:$0xff]   ;;  %v21452_v42 = vld [vmem:[%s21843_s0 + $0x18] ss:$28 sps:$4 sm:$0xff]  }
 0x41e   :  { %8167 = vmatpush1.bf16.msra.mxu0 %v19201_v56  ;;  %v21440_v36 = vadd.f32 %v17495_v62, %v21432_v35  ;;  %v19233_v35 = vld [vmem:[#allocation2 + $0x1ff4] ss:$28 sps:$4 sm:$0xff]   ;;  %v19237_v56 = vld [vmem:[#allocation2 + $0x1580] ss:$28 sps:$4 sm:$0xff]  }
 0x41f   :  { %8321 = vmatpush1.bf16.msra.mxu1 %v19198_v55  ;;  %8168 = vmatprep.subr.bf16.mxu0 %v19209_v8  ;;  %v19236_v55 = vld [vmem:[#allocation2 + $0x1eac] ss:$28 sps:$4 sm:$0xff]   ;;  %v19243_v8 = vld [vmem:[#allocation2 + $0x15b8] ss:$28 sps:$4 sm:$0xff]  }
 0x420   :  { %8322 = vmatprep.subr.bf16.mxu1 %v19206_v57  ;;  %v19245_v57 = vld [vmem:[#allocation2 + $0x15bc] ss:$28 sps:$4 sm:$0xff]  }
 0x422   :  { %8169 = vmatpush1.bf16.msra.mxu0 %v19207_v5 }
 0x423   :  { %8323 = vmatpush1.bf16.msra.mxu1 %v19204_v4  ;;  %8170 = vmatprep.subr.bf16.mxu0 %v19215_v37  ;;  %v19248_v4 = vld [vmem:[#allocation2 + $0x1f1c] ss:$28 sps:$4 sm:$0xff]   ;;  %v19251_v37 = vld [vmem:[#allocation2 + $0x15f4] ss:$28 sps:$4 sm:$0xff]  }
 0x424   :  { %8324 = vmatprep.subr.bf16.mxu1 %v19212_v7 }
 0x426   :  { %8171 = vmatpush1.bf16.msra.mxu0 %v19213_v41 }
 0x427   :  { %8325 = vmatpush1.bf16.msra.mxu1 %v19210_v13  ;;  %8172 = vmatprep.subr.bf16.mxu0 %v19221_v48  ;;  %v21460_v48 = vld [vmem:[%s21843_s0 + $0x4] ss:$28 sps:$4 sm:$0xff]  }
 0x428   :  { %8326 = vmatprep.subr.bf16.mxu1 %v19218_v15 }
 0x42a   :  { %8173 = vmatpush1.bf16.msra.mxu0 %v19219_v39  ;;  %v19249_v39 = vld [vmem:[#allocation2 + $0x15f0] ss:$28 sps:$4 sm:$0xff]  }
 0x42b   :  { %8327 = vmatpush1.bf16.msra.mxu1 %v19216_v17  ;;  %8185 = vmatprep.subr.bf16.mxu0 %v19233_v35  ;;  %v19246_v17 = vld [vmem:[#allocation2 + $0x1f18] ss:$28 sps:$4 sm:$0xff]  }
 0x42c   :  { %8328 = vmatprep.subr.bf16.mxu1 %v19224_v18  ;;  %v19254_v35 = vld [vmem:[#allocation2 + $0x1f54] ss:$28 sps:$4 sm:$0xff]  }
 0x42d   :  { %8175 = vmatmul.mubr.bf16.vlgmr.msra.gmra.mrb[28].mxu0 %v21445_v40 }
 0x42e   :  { %8186 = vmatpush1.bf16.msra.mxu0 %v19231_v31  ;;  %8217 = vmatprep.mubr.bf16.mxu0 %v20938_v0  ;;  %v19252_v31 = vld [vmem:[#allocation2 + $0x1f50] ss:$28 sps:$4 sm:$0xff]  }
 0x42f   :  { %8329 = vmatpush1.bf16.msra.mxu1 %v19222_v28  ;;  %8400 = vmatprep.subr.bf16.mxu0 %v19239_v32  ;;  %v19257_v28 = vld [vmem:[#allocation2 + $0x162c] ss:$28 sps:$4 sm:$0xff]  }
 0x430   :  { %8330 = vmatprep.subr.bf16.mxu1 %v19227_v26 }
 0x433   :  { %8331 = vmatpush1.bf16.msra.mxu1 %v19225_v49 }
 0x434   :  { %8332 = vmatprep.subr.bf16.mxu1 %v19230_v34 }
 0x437   :  { %8333 = vmatpush1.bf16.msra.mxu1 %v19228_v54  ;;  %v19260_v54 = vld [vmem:[#allocation2 + $0x1f8c] ss:$28 sps:$4 sm:$0xff]  }
 0x438   :  { %8334 = vmatprep.subr.bf16.mxu1 %v19236_v55  ;;  %v17512_v58 = vpop.f32.mrb[20].mxu0  ;;  %v19263_v55 = vld [vmem:[#allocation2 + $0x1664] ss:$28 sps:$4 sm:$0xff]  }
 0x439   :  { %16550 = vmatmul.mubr.msk.bf16.vlgmr.msra.gmra.mrb[28].mxu0 %vm2364_vm0, %v21452_v42  ;;  %v17513_v62 = vpop.f32.mrb[21].mxu0 }
 0x43a   :  { %8401 = vmatpush1.bf16.msra.mxu0 %v19237_v56  ;;  %v17514_v5 = vadd.f32 %v17513_v62, %v17512_v58  ;;  %v17515_v7 = vpop.f32.mrb[22].mxu0  ;;  %8432 = vmatprep.mubr.bf16.mxu0 %v21460_v48  ;;  %v19261_v58 = vld [vmem:[#allocation2 + $0x1660] ss:$28 sps:$4 sm:$0xff]  }
 0x43b   :  { %8335 = vmatpush1.bf16.msra.mxu1 %v19234_v61  ;;  %8402 = vmatprep.subr.bf16.mxu0 %v19245_v57  ;;  %v17516_v13 = vpop.f32.mrb[23].mxu0  ;;  %v19258_v57 = vld [vmem:[#allocation2 + $0x1f88] ss:$28 sps:$4 sm:$0xff]   ;;  %v19264_v62 = vld [vmem:[#allocation2 + $0x1fc0] ss:$28 sps:$4 sm:$0xff]  }
 0x43c   :  { %8336 = vmatprep.subr.bf16.mxu1 %v19242_v30  ;;  %v17517_v41 = vadd.f32 %v17516_v13, %v17515_v7  ;;  %v5838_v15 = vadd.f32 %v17514_v5, %v21437_v60  ;;  %v19255_v60 = vld [vmem:[#allocation2 + $0x1628] ss:$28 sps:$4 sm:$0xff]   ;;  %v19275_v5 = vld [vmem:[#allocation2 + $0x16d4] ss:$28 sps:$4 sm:$0xff]   ;;  %v19272_v7 = vld [vmem:[#allocation2 + $0x1ffc] ss:$28 sps:$4 sm:$0xff]  }
 0x43d   :  { %v19273_v13 = vld [vmem:[#allocation2 + $0x16d0] ss:$28 sps:$4 sm:$0xff]  }
 0x43e   :  { %8403 = vmatpush1.bf16.msra.mxu0 %v19243_v8  ;;  %v5841_v18 = vadd.f32 %v17517_v41, %v21440_v36  ;;  %v19269_v8 = vld [vmem:[#allocation2 + $0x169c] ss:$28 sps:$4 sm:$0xff]   ;;  %v19278_v41 = vld [vmem:[#allocation2 + $0x170c] ss:$28 sps:$4 sm:$0xff]  }
 0x43f   :  { %8337 = vmatpush1.bf16.msra.mxu1 %v19240_v59  ;;  %8404 = vmatprep.subr.bf16.mxu0 %v19251_v37  ;;  %v19266_v59 = vld [vmem:[#allocation2 + $0x1fc4] ss:$28 sps:$4 sm:$0xff]   ;;  %v19270_v37 = vld [vmem:[#allocation2 + $0x1ff8] ss:$28 sps:$4 sm:$0xff]  }
 0x440   :  { %8338 = vmatprep.subr.bf16.mxu1 %v19248_v4  ;;  %v5878_v26 = vpop.f32.mrb[24].mxu0  ;;  %v19267_v4 = vld [vmem:[#allocation2 + $0x1698] ss:$28 sps:$4 sm:$0xff]  }
 0x441   :  { %v21464_v32 = vadd.f32 %v5878_v26, %v5838_v15  ;;  %v17706_v49 = vpop.f32.mrb[25].mxu0  ;;  %v19282_v15 = vld [vmem:[#allocation2 + $0x1748] ss:$28 sps:$4 sm:$0xff]   ;;  %v19284_v26 = vld [vmem:[#allocation2 + $0x1778] ss:$28 sps:$4 sm:$0xff]  }
 0x442   :  { %8405 = vmatpush1.bf16.msra.mxu0 %v19249_v39  ;;  %v5881_v34 = vpop.f32.mrb[26].mxu0  ;;  %v19281_v39 = vld [vmem:[#allocation2 + $0x1744] ss:$28 sps:$4 sm:$0xff]   ;;  %v19289_v49 = vld [vmem:[#allocation2 + $0x17b0] ss:$28 sps:$4 sm:$0xff]  }
 0x443   :  { %8339 = vmatpush1.bf16.msra.mxu1 %v19246_v17  ;;  %v5891_v61 = vmax.f32 %v21304_v11, %v21464_v32  ;;  %v21468_v56 = vadd.f32 %v5881_v34, %v5841_v18  ;;  %8406 = vmatprep.subr.bf16.mxu0 %v19257_v28  ;;  %v17707_v36 = vpop.f32.mrb[27].mxu0  ;;  %v19276_v17 = vld [vmem:[#allocation2 + $0x1708] ss:$28 sps:$4 sm:$0xff]   ;;  %v19279_v18 = vld [vmem:[#allocation2 + $0x1740] ss:$28 sps:$4 sm:$0xff]  }
 0x444   :  { %8340 = vmatprep.subr.bf16.mxu1 %v19254_v35  ;;  %v19286_v35 = vld [vmem:[#allocation2 + $0x177c] ss:$28 sps:$4 sm:$0xff]   ;;  %v19283_v28 = vld [vmem:[#allocation2 + $0x1588] ss:$28 sps:$4 sm:$0xff]   ;;  %v19735_v11 = vld [vmem:[#allocation2 + $0x2154] ss:$28 sps:$4 sm:$0xff]  }
 0x445   :  { %v5898_v30 = vmax.f32 %v21306_v46, %v21468_v56  ;;  %v19292_v34 = vld [vmem:[#allocation2 + $0x17b8] ss:$28 sps:$4 sm:$0xff]   ;;  %v19294_v36 = vld [vmem:[#allocation2 + $0x17e8] ss:$28 sps:$4 sm:$0xff]  }
 0x446   :  { %8407 = vmatpush1.bf16.msra.mxu0 %v19255_v60  ;;  %v19291_v60 = vld [vmem:[#allocation2 + $0x17b4] ss:$28 sps:$4 sm:$0xff]   ;;  %v19739_v46 = vld [vmem:[#allocation2 + $0x2188] ss:$28 sps:$4 sm:$0xff]  }
 0x447   :  { %8341 = vmatpush1.bf16.msra.mxu1 %v19252_v31  ;;  %8408 = vmatprep.subr.bf16.mxu0 %v19263_v55  ;;  %v19287_v31 = vld [vmem:[#allocation2 + $0x1780] ss:$28 sps:$4 sm:$0xff]   ;;  %v19293_v55 = vld [vmem:[#allocation2 + $0x15f8] ss:$28 sps:$4 sm:$0xff]   ;;  %v19742_v56 = vld [vmem:[#allocation2 + $0x2928] ss:$28 sps:$4 sm:$0xff]  }
 0x448   :  { %8342 = vmatprep.subr.bf16.mxu1 %v19260_v54  ;;  %v19296_v54 = vld [vmem:[#allocation2 + $0x17ec] ss:$28 sps:$4 sm:$0xff]   ;;  %v19738_v32 = vld [vmem:[#allocation2 + $0x28f4] ss:$28 sps:$4 sm:$0xff]  }
 0x44a   :  { %8409 = vmatpush1.bf16.msra.mxu0 %v19261_v58  ;;  %v19301_v58 = vld [vmem:[#allocation2 + $0x1824] ss:$28 sps:$4 sm:$0xff]  }
 0x44b   :  { %8343 = vmatpush1.bf16.msra.mxu1 %v19258_v57  ;;  %8410 = vmatprep.subr.bf16.mxu0 %v19269_v8  ;;  %v19297_v57 = vld [vmem:[#allocation2 + $0x17f0] ss:$28 sps:$4 sm:$0xff]  }
 0x44c   :  { %8344 = vmatprep.subr.bf16.mxu1 %v19266_v59 }
 0x44e   :  { %8411 = vmatpush1.bf16.msra.mxu0 %v19267_v4  ;;  %v19298_v4 = vld [vmem:[#allocation2 + $0x1630] ss:$28 sps:$4 sm:$0xff]  }
 0x44f   :  { %8345 = vmatpush1.bf16.msra.mxu1 %v19264_v62  ;;  %8412 = vmatprep.subr.bf16.mxu0 %v19275_v5  ;;  %v19299_v5 = vld [vmem:[#allocation2 + $0x1820] ss:$28 sps:$4 sm:$0xff]  }
 0x450   :  { %8357 = vmatprep.subr.bf16.mxu1 %v19272_v7 }
 0x452   :  { %8347 = vmatmul.mubr.bf16.vlgmr.msra.gmra.mrb[36].mxu1 %v21445_v40  ;;  %8413 = vmatpush1.bf16.msra.mxu0 %v19273_v13  ;;  %v19288_v40 = vld [vmem:[#allocation2 + $0x15c0] ss:$28 sps:$4 sm:$0xff]   ;;  %v19302_v13 = vld [vmem:[#allocation2 + $0x1828] ss:$28 sps:$4 sm:$0xff]  }
 0x453   :  { %8358 = vmatpush1.bf16.msra.mxu1 %v19270_v37  ;;  %8414 = vmatprep.subr.bf16.mxu0 %v19278_v41  ;;  %v19306_v41 = vld [vmem:[#allocation2 + $0x185c] ss:$28 sps:$4 sm:$0xff]  }
 0x454   :  { %8389 = vmatprep.mubr.bf16.mxu1 %v20938_v0  ;;  %17520 = vmatprep.subr.bf16.mxu1 %v19282_v15 }
 0x456   :  { %8415 = vmatpush1.bf16.msra.mxu0 %v19276_v17  ;;  %v19303_v17 = vld [vmem:[#allocation2 + $0x1668] ss:$28 sps:$4 sm:$0xff]  }
 0x457   :  { %8416 = vmatprep.subr.bf16.mxu0 %v19281_v39  ;;  %v19304_v39 = vld [vmem:[#allocation2 + $0x1858] ss:$28 sps:$4 sm:$0xff]  }
 0x45a   :  { %8417 = vmatpush1.bf16.msra.mxu0 %v19279_v18  ;;  %v19307_v18 = vld [vmem:[#allocation2 + $0x1860] ss:$28 sps:$4 sm:$0xff]  }
 0x45b   :  { %8418 = vmatprep.subr.bf16.mxu0 %v19286_v35  ;;  %v19311_v35 = vld [vmem:[#allocation2 + $0x1894] ss:$28 sps:$4 sm:$0xff]  }
 0x45e   :  { %16551 = vmatmul.mubr.msk.bf16.vlgmr.msra.gmra.mrb[36].mxu1 %vm2364_vm0, %v21452_v42  ;;  %8419 = vmatpush1.bf16.msra.mxu0 %v19284_v26  ;;  %v19309_v26 = vld [vmem:[#allocation2 + $0x1890] ss:$28 sps:$4 sm:$0xff]  }
 0x45f   :  { %17521 = vmatpush3.bf16.msra.mxu1 %v19283_v28  ;;  %8420 = vmatprep.subr.bf16.mxu0 %v19291_v60  ;;  %v19308_v28 = vld [vmem:[#allocation2 + $0x16a0] ss:$28 sps:$4 sm:$0xff]   ;;  %v19316_v60 = vld [vmem:[#allocation2 + $0x18cc] ss:$28 sps:$4 sm:$0xff]  }
 0x460   :  { %17522 = vmatprep.subr.bf16.mxu1 %v19287_v31  ;;  %8604 = vmatprep.mubr.bf16.mxu1 %v21460_v48  ;;  %v19312_v31 = vld [vmem:[#allocation2 + $0x1898] ss:$28 sps:$4 sm:$0xff]  }
 0x462   :  { %8421 = vmatpush1.bf16.msra.mxu0 %v19289_v49  ;;  %v19314_v49 = vld [vmem:[#allocation2 + $0x18c8] ss:$28 sps:$4 sm:$0xff]  }
 0x463   :  { %17523 = vmatpush3.bf16.msra.mxu1 %v19288_v40  ;;  %8422 = vmatprep.subr.bf16.mxu0 %v19296_v54  ;;  %v19313_v40 = vld [vmem:[#allocation2 + $0x16d8] ss:$28 sps:$4 sm:$0xff]   ;;  %v19321_v54 = vld [vmem:[#allocation2 + $0x1904] ss:$28 sps:$4 sm:$0xff]  }
 0x464   :  { %17524 = vmatprep.subr.bf16.mxu1 %v19292_v34  ;;  %v19317_v34 = vld [vmem:[#allocation2 + $0x18d0] ss:$28 sps:$4 sm:$0xff]  }
 0x465   :  { %v21477_v59 = vpop.f32.mrb[32].mxu1 }
 0x466   :  { %v5889_v42 = vmax.f32 %v21326_v21, %v21477_v59  ;;  %v21481_v8 = vpop.f32.mrb[33].mxu1  ;;  %8423 = vmatpush1.bf16.msra.mxu0 %v19294_v36  ;;  %v19319_v36 = vld [vmem:[#allocation2 + $0x1900] ss:$28 sps:$4 sm:$0xff]  }
 0x467   :  { %17525 = vmatpush3.bf16.msra.mxu1 %v19293_v55  ;;  %v5890_v62 = vmax.f32 %v21329_v47, %v21481_v8  ;;  %v21485_v48 = vpop.f32.mrb[34].mxu1  ;;  %8424 = vmatprep.subr.bf16.mxu0 %v19301_v58  ;;  %v19318_v55 = vld [vmem:[#allocation2 + $0x1710] ss:$28 sps:$4 sm:$0xff]   ;;  %v19326_v58 = vld [vmem:[#allocation2 + $0x193c] ss:$28 sps:$4 sm:$0xff]  }
 0x468   :  { %v5896_v7 = vmax.f32 %v21332_v51, %v21485_v48  ;;  %v21489_v37 = vpop.f32.mrb[35].mxu1  ;;  %17526 = vmatprep.subr.bf16.mxu1 %v19297_v57  ;;  %v19322_v57 = vld [vmem:[#allocation2 + $0x1ac8] ss:$28 sps:$4 sm:$0xff]   ;;  %v19815_v59 = vld [vmem:[#allocation2 + $0x249c] ss:$28 sps:$4 sm:$0xff]  }
 0x469   :  { %v5897_v15 = vmax.f32 %v21335_v2, %v21489_v37  ;;  %v19813_v47 = vld [vmem:[#allocation2 + $0x2498] ss:$28 sps:$4 sm:$0xff]   ;;  %v19817_v8 = vld [vmem:[#allocation2 + $0x2120] ss:$28 sps:$4 sm:$0xff]   ;;  %v19818_v51 = vld [vmem:[#allocation2 + $0x24d0] ss:$28 sps:$4 sm:$0xff]  }
 0x46a   :  { %8425 = vmatpush1.bf16.msra.mxu0 %v19299_v5  ;;  %v19324_v5 = vld [vmem:[#allocation2 + $0x1938] ss:$28 sps:$4 sm:$0xff]   ;;  %v19823_v2 = vld [vmem:[#allocation2 + $0x2508] ss:$28 sps:$4 sm:$0xff]   ;;  %v19827_v37 = vld [vmem:[#allocation2 + $0x2190] ss:$28 sps:$4 sm:$0xff]  }
 0x46b   :  { %17527 = vmatpush3.bf16.msra.mxu1 %v19298_v4  ;;  %8426 = vmatprep.subr.bf16.mxu0 %v19306_v41  ;;  %v19323_v4 = vld [vmem:[#allocation2 + $0x1908] ss:$28 sps:$4 sm:$0xff]   ;;  %v19327_v41 = vld [vmem:[#allocation2 + $0x1b00] ss:$28 sps:$4 sm:$0xff]   ;;  %v19822_v48 = vld [vmem:[#allocation2 + $0x2158] ss:$28 sps:$4 sm:$0xff]  }
 0x46c   :  { %17528 = vmatprep.subr.bf16.mxu1 %v19302_v13  ;;  %v20674_v13 = vld [vmem:[%s21843_s0] ss:$28 sps:$4 sm:$0xff]  }
 0x46e   :  { %8427 = vmatpush1.bf16.msra.mxu0 %v19304_v39  ;;  %v19328_v39 = vld [vmem:[#allocation2 + $0x1940] ss:$28 sps:$4 sm:$0xff]  }
 0x46f   :  { %17529 = vmatpush3.bf16.msra.mxu1 %v19303_v17  ;;  %8428 = vmatprep.subr.bf16.mxu0 %v19311_v35  ;;  %v19331_v17 = vld [vmem:[#allocation2 + $0x1974] ss:$28 sps:$4 sm:$0xff]   ;;  %v20675_v35 = vld [vmem:[%s21843_s0 + $0xc] ss:$28 sps:$4 sm:$0xff]  }
 0x470   :  { %17530 = vmatprep.subr.bf16.mxu1 %v19307_v18  ;;  %v19329_v18 = vld [vmem:[#allocation2 + $0x1970] ss:$28 sps:$4 sm:$0xff]  }
 0x472   :  { %8429 = vmatpush1.bf16.msra.mxu0 %v19309_v26  ;;  %v19336_v26 = vld [vmem:[#allocation2 + $0x19ac] ss:$28 sps:$4 sm:$0xff]  }
 0x473   :  { %17531 = vmatpush3.bf16.msra.mxu1 %v19308_v28  ;;  %8430 = vmatprep.subr.bf16.mxu0 %v19316_v60  ;;  %v19332_v28 = vld [vmem:[#allocation2 + $0x1b38] ss:$28 sps:$4 sm:$0xff]   ;;  %v19334_v60 = vld [vmem:[#allocation2 + $0x19a8] ss:$28 sps:$4 sm:$0xff]  }
 0x474   :  { %17532 = vmatprep.subr.bf16.mxu1 %v19312_v31  ;;  %v19333_v31 = vld [vmem:[#allocation2 + $0x1978] ss:$28 sps:$4 sm:$0xff]  }
 0x476   :  { %8431 = vmatpush1.bf16.msra.mxu0 %v19314_v49  ;;  %v19341_v49 = vld [vmem:[#allocation2 + $0x19e4] ss:$28 sps:$4 sm:$0xff]  }
 0x477   :  { %17533 = vmatpush3.bf16.msra.mxu1 %v19313_v40  ;;  %8443 = vmatprep.subr.bf16.mxu0 %v19321_v54  ;;  %v19337_v40 = vld [vmem:[#allocation2 + $0x1b70] ss:$28 sps:$4 sm:$0xff]   ;;  %v19339_v54 = vld [vmem:[#allocation2 + $0x19e0] ss:$28 sps:$4 sm:$0xff]  }
 0x478   :  { %17534 = vmatprep.subr.bf16.mxu1 %v19317_v34  ;;  %v19338_v34 = vld [vmem:[#allocation2 + $0x19b0] ss:$28 sps:$4 sm:$0xff]  }
 0x479   :  { %8433 = vmatmul.mubr.bf16.vlgmr.msra.gmra.mrb[32].mxu0 %v20674_v13 }
 0x47a   :  { %8444 = vmatpush1.bf16.msra.mxu0 %v19319_v36  ;;  %8475 = vmatprep.mubr.bf16.mxu0 %v20675_v35  ;;  %v19346_v36 = vld [vmem:[#allocation2 + $0x1a1c] ss:$28 sps:$4 sm:$0xff]  }
 0x47b   :  { %17535 = vmatpush3.bf16.msra.mxu1 %v19318_v55  ;;  %8445 = vmatprep.subr.bf16.mxu0 %v19326_v58  ;;  %v19342_v55 = vld [vmem:[#allocation2 + $0x1ba8] ss:$28 sps:$4 sm:$0xff]   ;;  %v19344_v58 = vld [vmem:[#allocation2 + $0x1a18] ss:$28 sps:$4 sm:$0xff]  }
 0x47c   :  { %17542 = vmatprep.subr.bf16.mxu1 %v19322_v57  ;;  %v19343_v57 = vld [vmem:[#allocation2 + $0x19e8] ss:$28 sps:$4 sm:$0xff]  }
 0x47e   :  { %8605 = vmatmul.mubr.bf16.vlgmr.msra.gmra.mrb[40].mxu1 %v20674_v13  ;;  %8446 = vmatpush1.bf16.msra.mxu0 %v19324_v5  ;;  %v19351_v5 = vld [vmem:[#allocation2 + $0x1a54] ss:$28 sps:$4 sm:$0xff]   ;;  %v19348_v13 = vld [vmem:[#allocation2 + $0x1a20] ss:$28 sps:$4 sm:$0xff]  }
 0x47f   :  { %17543 = vmatpush3.bf16.msra.mxu1 %v19323_v4  ;;  %8447 = vmatprep.subr.bf16.mxu0 %v19331_v17  ;;  %v19347_v4 = vld [vmem:[#allocation2 + $0x1be0] ss:$28 sps:$4 sm:$0xff]   ;;  %v19352_v17 = vld [vmem:[#allocation2 + $0x1c18] ss:$28 sps:$4 sm:$0xff]  }
 0x480   :  { %17544 = vmatprep.subr.bf16.mxu1 %v19327_v41  ;;  %8645 = vmatprep.mubr.bf16.mxu1 %v20675_v35  ;;  %v19349_v41 = vld [vmem:[#allocation2 + $0x1a50] ss:$28 sps:$4 sm:$0xff]   ;;  %v19354_v35 = vld [vmem:[#allocation2 + $0x1a88] ss:$28 sps:$4 sm:$0xff]  }
 0x482   :  { %8448 = vmatpush1.bf16.msra.mxu0 %v19329_v18  ;;  %v19353_v18 = vld [vmem:[#allocation2 + $0x1a58] ss:$28 sps:$4 sm:$0xff]  }
 0x483   :  { %17545 = vmatpush3.bf16.msra.mxu1 %v19328_v39  ;;  %8449 = vmatprep.subr.bf16.mxu0 %v19336_v26  ;;  %v19356_v39 = vld [vmem:[#allocation2 + $0x1a8c] ss:$28 sps:$4 sm:$0xff]   ;;  %v19361_v26 = vld [vmem:[#allocation2 + $0x1ac4] ss:$28 sps:$4 sm:$0xff]  }
 0x484   :  { %17546 = vmatprep.subr.bf16.mxu1 %v19332_v28  ;;  %v19357_v28 = vld [vmem:[#allocation2 + $0x1c50] ss:$28 sps:$4 sm:$0xff]  }
 0x486   :  { %8450 = vmatpush1.bf16.msra.mxu0 %v19334_v60  ;;  %v19359_v60 = vld [vmem:[#allocation2 + $0x1ac0] ss:$28 sps:$4 sm:$0xff]  }
 0x487   :  { %17547 = vmatpush3.bf16.msra.mxu1 %v19333_v31  ;;  %8451 = vmatprep.subr.bf16.mxu0 %v19341_v49  ;;  %v19358_v31 = vld [vmem:[#allocation2 + $0x1a90] ss:$28 sps:$4 sm:$0xff]   ;;  %v19366_v49 = vld [vmem:[#allocation2 + $0x1afc] ss:$28 sps:$4 sm:$0xff]  }
 0x488   :  { %17548 = vmatprep.subr.bf16.mxu1 %v19337_v40  ;;  %v19362_v40 = vld [vmem:[#allocation2 + $0x1e48] ss:$28 sps:$4 sm:$0xff]  }
 0x48a   :  { %8452 = vmatpush1.bf16.msra.mxu0 %v19339_v54  ;;  %v19364_v54 = vld [vmem:[#allocation2 + $0x1af8] ss:$28 sps:$4 sm:$0xff]  }
 0x48b   :  { %17549 = vmatpush3.bf16.msra.mxu1 %v19338_v34  ;;  %8453 = vmatprep.subr.bf16.mxu0 %v19346_v36  ;;  %v19363_v34 = vld [vmem:[#allocation2 + $0x1c88] ss:$28 sps:$4 sm:$0xff]   ;;  %v19371_v36 = vld [vmem:[#allocation2 + $0x1b34] ss:$28 sps:$4 sm:$0xff]  }
 0x48c   :  { %17550 = vmatprep.subr.bf16.mxu1 %v19342_v55  ;;  %v19367_v55 = vld [vmem:[#allocation2 + $0x1e80] ss:$28 sps:$4 sm:$0xff]  }
 0x48e   :  { %8454 = vmatpush1.bf16.msra.mxu0 %v19344_v58  ;;  %v19368_v58 = vld [vmem:[#allocation2 + $0x1cc0] ss:$28 sps:$4 sm:$0xff]  }
 0x48f   :  { %17551 = vmatpush3.bf16.msra.mxu1 %v19343_v57  ;;  %8455 = vmatprep.subr.bf16.mxu0 %v19351_v5  ;;  %v20676_v57 = vld [vmem:[%s21843_s0 + $0x8] ss:$28 sps:$4 sm:$0xff]   ;;  %v19372_v5 = vld [vmem:[#allocation2 + $0x1eb8] ss:$28 sps:$4 sm:$0xff]  }
 0x490   :  { %17552 = vmatprep.subr.bf16.mxu1 %v19347_v4  ;;  %v19369_v4 = vld [vmem:[#allocation2 + $0x1b30] ss:$28 sps:$4 sm:$0xff]  }
 0x492   :  { %8456 = vmatpush1.bf16.msra.mxu0 %v19349_v41  ;;  %v20677_v41 = vld [vmem:[%s21843_s0 + $0x14] ss:$28 sps:$4 sm:$0xff]  }
 0x493   :  { %17553 = vmatpush3.bf16.msra.mxu1 %v19348_v13  ;;  %8457 = vmatprep.subr.bf16.mxu0 %v19356_v39  ;;  %v19376_v13 = vld [vmem:[#allocation2 + $0x1b6c] ss:$28 sps:$4 sm:$0xff]  }
 0x494   :  { %17554 = vmatprep.subr.bf16.mxu1 %v19352_v17  ;;  %v19373_v17 = vld [vmem:[#allocation2 + $0x1cf8] ss:$28 sps:$4 sm:$0xff]   ;;  %v19374_v39 = vld [vmem:[#allocation2 + $0x1b68] ss:$28 sps:$4 sm:$0xff]  }
 0x496   :  { %8458 = vmatpush1.bf16.msra.mxu0 %v19354_v35  ;;  %v19381_v35 = vld [vmem:[#allocation2 + $0x1ba4] ss:$28 sps:$4 sm:$0xff]  }
 0x497   :  { %17555 = vmatpush3.bf16.msra.mxu1 %v19353_v18  ;;  %8459 = vmatprep.subr.bf16.mxu0 %v19361_v26  ;;  %v19377_v18 = vld [vmem:[#allocation2 + $0x1ef0] ss:$28 sps:$4 sm:$0xff]   ;;  %v19379_v26 = vld [vmem:[#allocation2 + $0x1ba0] ss:$28 sps:$4 sm:$0xff]  }
 0x498   :  { %17556 = vmatprep.subr.bf16.mxu1 %v19357_v28  ;;  %v19378_v28 = vld [vmem:[#allocation2 + $0x1d30] ss:$28 sps:$4 sm:$0xff]  }
 0x49a   :  { %8460 = vmatpush1.bf16.msra.mxu0 %v19359_v60  ;;  %v19386_v60 = vld [vmem:[#allocation2 + $0x1bdc] ss:$28 sps:$4 sm:$0xff]  }
 0x49b   :  { %17557 = vmatpush3.bf16.msra.mxu1 %v19358_v31  ;;  %8461 = vmatprep.subr.bf16.mxu0 %v19366_v49  ;;  %v19382_v31 = vld [vmem:[#allocation2 + $0x1f28] ss:$28 sps:$4 sm:$0xff]   ;;  %v19384_v49 = vld [vmem:[#allocation2 + $0x1bd8] ss:$28 sps:$4 sm:$0xff]  }
 0x49c   :  { %17564 = vmatprep.subr.bf16.mxu1 %v19362_v40  ;;  %v19383_v40 = vld [vmem:[#allocation2 + $0x1d68] ss:$28 sps:$4 sm:$0xff]  }
 0x49e   :  { %8646 = vmatmul.mubr.bf16.vlgmr.msra.gmra.mrb[44].mxu1 %v20676_v57  ;;  %8462 = vmatpush1.bf16.msra.mxu0 %v19364_v54  ;;  %v19391_v54 = vld [vmem:[#allocation2 + $0x1c14] ss:$28 sps:$4 sm:$0xff]  }
 0x49f   :  { %17565 = vmatpush3.bf16.msra.mxu1 %v19363_v34  ;;  %8463 = vmatprep.subr.bf16.mxu0 %v19371_v36  ;;  %v19387_v34 = vld [vmem:[#allocation2 + $0x1f60] ss:$28 sps:$4 sm:$0xff]   ;;  %v19389_v36 = vld [vmem:[#allocation2 + $0x1c10] ss:$28 sps:$4 sm:$0xff]  }
 0x4a0   :  { %17566 = vmatprep.subr.bf16.mxu1 %v19367_v55  ;;  %8686 = vmatprep.mubr.bf16.mxu1 %v20677_v41  ;;  %v19388_v55 = vld [vmem:[#allocation2 + $0x1da0] ss:$28 sps:$4 sm:$0xff]  }
 0x4a2   :  { %8464 = vmatpush1.bf16.msra.mxu0 %v19369_v4  ;;  %v19396_v4 = vld [vmem:[#allocation2 + $0x1c4c] ss:$28 sps:$4 sm:$0xff]  }
 0x4a3   :  { %17567 = vmatpush3.bf16.msra.mxu1 %v19368_v58  ;;  %8465 = vmatprep.subr.bf16.mxu0 %v19376_v13  ;;  %v19392_v58 = vld [vmem:[#allocation2 + $0x1f98] ss:$28 sps:$4 sm:$0xff]   ;;  %v19394_v13 = vld [vmem:[#allocation2 + $0x1c48] ss:$28 sps:$4 sm:$0xff]  }
 0x4a4   :  { %17568 = vmatprep.subr.bf16.mxu1 %v19372_v5  ;;  %v19393_v5 = vld [vmem:[#allocation2 + $0x1dd8] ss:$28 sps:$4 sm:$0xff]  }
 0x4a6   :  { %8466 = vmatpush1.bf16.msra.mxu0 %v19374_v39  ;;  %v19401_v39 = vld [vmem:[#allocation2 + $0x1c84] ss:$28 sps:$4 sm:$0xff]  }
 0x4a7   :  { %17569 = vmatpush3.bf16.msra.mxu1 %v19373_v17  ;;  %8467 = vmatprep.subr.bf16.mxu0 %v19381_v35  ;;  %v19397_v17 = vld [vmem:[#allocation2 + $0x1fd0] ss:$28 sps:$4 sm:$0xff]   ;;  %v19399_v35 = vld [vmem:[#allocation2 + $0x1c80] ss:$28 sps:$4 sm:$0xff]  }
 0x4a8   :  { %17570 = vmatprep.subr.bf16.mxu1 %v19377_v18  ;;  %v19398_v18 = vld [vmem:[#allocation2 + $0x1e10] ss:$28 sps:$4 sm:$0xff]  }
 0x4aa   :  { %8468 = vmatpush1.bf16.msra.mxu0 %v19379_v26  ;;  %v19402_v26 = vld [vmem:[#allocation2 + $0x2008] ss:$28 sps:$4 sm:$0xff]  }
 0x4ab   :  { %17571 = vmatpush3.bf16.msra.mxu1 %v19378_v28  ;;  %8469 = vmatprep.subr.bf16.mxu0 %v19386_v60  ;;  %v19405_v28 = vld [vmem:[#allocation2 + $0x1cbc] ss:$28 sps:$4 sm:$0xff]   ;;  %v19408_v60 = vld [vmem:[#allocation2 + $0x1cf4] ss:$28 sps:$4 sm:$0xff]  }
 0x4ac   :  { %17572 = vmatprep.subr.bf16.mxu1 %v19382_v31  ;;  %v19403_v31 = vld [vmem:[#allocation2 + $0x1cb8] ss:$28 sps:$4 sm:$0xff]  }
 0x4ae   :  { %8470 = vmatpush1.bf16.msra.mxu0 %v19384_v49  ;;  %v21509_v49 = vld [vmem:[%s21843_s0 + $0x10] ss:$28 sps:$4 sm:$0xff]  }
 0x4af   :  { %17573 = vmatpush3.bf16.msra.mxu1 %v19383_v40  ;;  %8471 = vmatprep.subr.bf16.mxu0 %v19391_v54  ;;  %v19411_v40 = vld [vmem:[#allocation2 + $0x202c] ss:$28 sps:$4 sm:$0xff]  }
 0x4b0   :  { %17574 = vmatprep.subr.bf16.mxu1 %v19387_v34  ;;  %v19414_v34 = vld [vmem:[#allocation2 + $0x1d2c] ss:$28 sps:$4 sm:$0xff]  }
 0x4b1   :  { %v19409_v54 = vld [vmem:[#allocation2 + $0x2028] ss:$28 sps:$4 sm:$0xff]  }
 0x4b2   :  { %8472 = vmatpush1.bf16.msra.mxu0 %v19389_v36  ;;  %v19420_v36 = vld [vmem:[#allocation2 + $0x1d64] ss:$28 sps:$4 sm:$0xff]  }
 0x4b3   :  { %17575 = vmatpush3.bf16.msra.mxu1 %v19388_v55  ;;  %8473 = vmatprep.subr.bf16.mxu0 %v19396_v4  ;;  %v19412_v55 = vld [vmem:[#allocation2 + $0x1d28] ss:$28 sps:$4 sm:$0xff]   ;;  %v19415_v4 = vld [vmem:[#allocation2 + $0x2060] ss:$28 sps:$4 sm:$0xff]  }
 0x4b4   :  { %17576 = vmatprep.subr.bf16.mxu1 %v19392_v58  ;;  %v21517_v58 = vld [vmem:[%s21843_s0 + $0x18] ss:$28 sps:$4 sm:$0xff]  }
 0x4b6   :  { %8474 = vmatpush1.bf16.msra.mxu0 %v19394_v13  ;;  %v19423_v13 = vld [vmem:[#allocation2 + $0x209c] ss:$28 sps:$4 sm:$0xff]  }
 0x4b7   :  { %17577 = vmatpush3.bf16.msra.mxu1 %v19393_v5  ;;  %8486 = vmatprep.subr.bf16.mxu0 %v19401_v39  ;;  %v19418_v5 = vld [vmem:[#allocation2 + $0x1d60] ss:$28 sps:$4 sm:$0xff]  }
 0x4b8   :  { %17578 = vmatprep.subr.bf16.mxu1 %v19397_v17  ;;  %v19426_v17 = vld [vmem:[#allocation2 + $0x1d9c] ss:$28 sps:$4 sm:$0xff]   ;;  %v21524_v39 = vld [vmem:[%s21843_s0 + $0x4] ss:$28 sps:$4 sm:$0xff]  }
 0x4b9   :  { %8476 = vmatmul.mubr.bf16.vlgmr.msra.gmra.mrb[32].mxu0 %v20676_v57  ;;  %v19406_v57 = vld [vmem:[#allocation2 + $0x1cf0] ss:$28 sps:$4 sm:$0xff]  }
 0x4ba   :  { %8487 = vmatpush1.bf16.msra.mxu0 %v19399_v35  ;;  %8518 = vmatprep.mubr.bf16.mxu0 %v20677_v41  ;;  %v19417_v41 = vld [vmem:[#allocation2 + $0x2064] ss:$28 sps:$4 sm:$0xff]   ;;  %v19424_v35 = vld [vmem:[#allocation2 + $0x1d98] ss:$28 sps:$4 sm:$0xff]  }
 0x4bb   :  { %17579 = vmatpush3.bf16.msra.mxu1 %v19398_v18  ;;  %8488 = vmatprep.subr.bf16.mxu0 %v19405_v28  ;;  %v19421_v18 = vld [vmem:[#allocation2 + $0x2098] ss:$28 sps:$4 sm:$0xff]  }
 0x4bc   :  { %17708 = vmatprep.subr.bf16.mxu1 %v20939_v23  ;;  %v19429_v28 = vld [vmem:[#allocation2 + $0x20d4] ss:$28 sps:$4 sm:$0xff]  }
 0x4be   :  { %8687 = vmatmul.mubr.bf16.vlgmr.msra.gmra.mrb[48].mxu1 %v21509_v49  ;;  %8489 = vmatpush1.bf16.msra.mxu0 %v19403_v31  ;;  %v19427_v31 = vld [vmem:[#allocation2 + $0x20d0] ss:$28 sps:$4 sm:$0xff]  }
 0x4bf   :  { %17709 = vmatpush3.bf16.msra.mxu1 %v19402_v26  ;;  %8490 = vmatprep.subr.bf16.mxu0 %v19408_v60  ;;  %v19432_v26 = vld [vmem:[#allocation2 + $0x1dd4] ss:$28 sps:$4 sm:$0xff]  }
 0x4c0   :  { %17710 = vmatprep.mubr.msk.bf16.mxu1 %vm20940_vm1, %v20939_v23  ;;  %10907 = vmatprep.subr.bf16.mxu1 %v19411_v40  ;;  %v19430_v60 = vld [vmem:[#allocation2 + $0x1dd0] ss:$28 sps:$4 sm:$0xff]  }
 0x4c1   :  { %v19435_v40 = vld [vmem:[#allocation2 + $0x210c] ss:$28 sps:$4 sm:$0xff]  }
 0x4c2   :  { %8491 = vmatpush1.bf16.msra.mxu0 %v19406_v57  ;;  %v19438_v57 = vld [vmem:[#allocation2 + $0x1e0c] ss:$28 sps:$4 sm:$0xff]  }
 0x4c3   :  { %8492 = vmatprep.subr.bf16.mxu0 %v19414_v34  ;;  %v19433_v34 = vld [vmem:[#allocation2 + $0x2108] ss:$28 sps:$4 sm:$0xff]  }
 0x4c6   :  { %17711 = vmatmul.mubr.msk.bf16.vlgmr.msra.gmra.mrb[52].mxu1 %vm2364_vm0, %v21517_v58  ;;  %8493 = vmatpush1.bf16.msra.mxu0 %v19412_v55  ;;  %v19441_v55 = vld [vmem:[#allocation2 + $0x2144] ss:$28 sps:$4 sm:$0xff]  }
 0x4c7   :  { %10908 = vmatpush1.bf16.msra.mxu1 %v19409_v54  ;;  %8494 = vmatprep.subr.bf16.mxu0 %v19420_v36  ;;  %v19436_v54 = vld [vmem:[#allocation2 + $0x1e08] ss:$28 sps:$4 sm:$0xff]   ;;  %v19439_v36 = vld [vmem:[#allocation2 + $0x2140] ss:$28 sps:$4 sm:$0xff]  }
 0x4c8   :  { %10909 = vmatprep.subr.bf16.mxu1 %v19417_v41  ;;  %10939 = vmatprep.mubr.bf16.mxu1 %v21524_v39  ;;  %v19444_v41 = vld [vmem:[#allocation2 + $0x1e44] ss:$28 sps:$4 sm:$0xff]  }
 0x4ca   :  { %8495 = vmatpush1.bf16.msra.mxu0 %v19418_v5  ;;  %v19447_v5 = vld [vmem:[#allocation2 + $0x217c] ss:$28 sps:$4 sm:$0xff]  }
 0x4cb   :  { %10910 = vmatpush1.bf16.msra.mxu1 %v19415_v4  ;;  %8496 = vmatprep.subr.bf16.mxu0 %v19426_v17  ;;  %v19442_v4 = vld [vmem:[#allocation2 + $0x1e40] ss:$28 sps:$4 sm:$0xff]   ;;  %v19445_v17 = vld [vmem:[#allocation2 + $0x2178] ss:$28 sps:$4 sm:$0xff]  }
 0x4cc   :  { %10911 = vmatprep.subr.bf16.mxu1 %v19423_v13  ;;  %v19450_v13 = vld [vmem:[#allocation2 + $0x1e7c] ss:$28 sps:$4 sm:$0xff]  }
 0x4ce   :  { %8497 = vmatpush1.bf16.msra.mxu0 %v19424_v35  ;;  %v19453_v35 = vld [vmem:[#allocation2 + $0x21b4] ss:$28 sps:$4 sm:$0xff]  }
 0x4cf   :  { %10912 = vmatpush1.bf16.msra.mxu1 %v19421_v18  ;;  %8498 = vmatprep.subr.bf16.mxu0 %v19432_v26  ;;  %v19448_v18 = vld [vmem:[#allocation2 + $0x1e78] ss:$28 sps:$4 sm:$0xff]   ;;  %v19451_v26 = vld [vmem:[#allocation2 + $0x21b0] ss:$28 sps:$4 sm:$0xff]  }
 0x4d0   :  { %10913 = vmatprep.subr.bf16.mxu1 %v19429_v28  ;;  %v19456_v28 = vld [vmem:[#allocation2 + $0x1eb4] ss:$28 sps:$4 sm:$0xff]  }
 0x4d2   :  { %8499 = vmatpush1.bf16.msra.mxu0 %v19430_v60  ;;  %v19459_v60 = vld [vmem:[#allocation2 + $0x21ec] ss:$28 sps:$4 sm:$0xff]  }
 0x4d3   :  { %10914 = vmatpush1.bf16.msra.mxu1 %v19427_v31  ;;  %8500 = vmatprep.subr.bf16.mxu0 %v19438_v57  ;;  %v19454_v31 = vld [vmem:[#allocation2 + $0x1eb0] ss:$28 sps:$4 sm:$0xff]   ;;  %v19457_v57 = vld [vmem:[#allocation2 + $0x21e8] ss:$28 sps:$4 sm:$0xff]  }
 0x4d4   :  { %10915 = vmatprep.subr.bf16.mxu1 %v19435_v40  ;;  %v19462_v40 = vld [vmem:[#allocation2 + $0x1eec] ss:$28 sps:$4 sm:$0xff]  }
 0x4d6   :  { %8501 = vmatpush1.bf16.msra.mxu0 %v19436_v54  ;;  %v19465_v54 = vld [vmem:[#allocation2 + $0x2224] ss:$28 sps:$4 sm:$0xff]  }
 0x4d7   :  { %10916 = vmatpush1.bf16.msra.mxu1 %v19433_v34  ;;  %8502 = vmatprep.subr.bf16.mxu0 %v19444_v41  ;;  %v19460_v34 = vld [vmem:[#allocation2 + $0x1ee8] ss:$28 sps:$4 sm:$0xff]   ;;  %v19463_v41 = vld [vmem:[#allocation2 + $0x2220] ss:$28 sps:$4 sm:$0xff]  }
 0x4d8   :  { %10917 = vmatprep.subr.bf16.mxu1 %v19441_v55  ;;  %v19468_v55 = vld [vmem:[#allocation2 + $0x1f24] ss:$28 sps:$4 sm:$0xff]  }
 0x4da   :  { %8503 = vmatpush1.bf16.msra.mxu0 %v19442_v4  ;;  %v19471_v4 = vld [vmem:[#allocation2 + $0x225c] ss:$28 sps:$4 sm:$0xff]  }
 0x4db   :  { %10918 = vmatpush1.bf16.msra.mxu1 %v19439_v36  ;;  %8504 = vmatprep.subr.bf16.mxu0 %v19450_v13  ;;  %v19466_v36 = vld [vmem:[#allocation2 + $0x1f20] ss:$28 sps:$4 sm:$0xff]   ;;  %v19469_v13 = vld [vmem:[#allocation2 + $0x2258] ss:$28 sps:$4 sm:$0xff]  }
 0x4dc   :  { %10919 = vmatprep.subr.bf16.mxu1 %v19447_v5  ;;  %v19474_v5 = vld [vmem:[#allocation2 + $0x1f5c] ss:$28 sps:$4 sm:$0xff]  }
 0x4de   :  { %8505 = vmatpush1.bf16.msra.mxu0 %v19448_v18  ;;  %v19477_v18 = vld [vmem:[#allocation2 + $0x2294] ss:$28 sps:$4 sm:$0xff]  }
 0x4df   :  { %10920 = vmatpush1.bf16.msra.mxu1 %v19445_v17  ;;  %8506 = vmatprep.subr.bf16.mxu0 %v19456_v28  ;;  %v19472_v17 = vld [vmem:[#allocation2 + $0x1f58] ss:$28 sps:$4 sm:$0xff]   ;;  %v19475_v28 = vld [vmem:[#allocation2 + $0x2290] ss:$28 sps:$4 sm:$0xff]  }
 0x4e0   :  { %10921 = vmatprep.subr.bf16.mxu1 %v19453_v35  ;;  %v19480_v35 = vld [vmem:[#allocation2 + $0x1f94] ss:$28 sps:$4 sm:$0xff]  }
 0x4e2   :  { %8507 = vmatpush1.bf16.msra.mxu0 %v19454_v31  ;;  %v19483_v31 = vld [vmem:[#allocation2 + $0x22cc] ss:$28 sps:$4 sm:$0xff]  }
 0x4e3   :  { %10922 = vmatpush1.bf16.msra.mxu1 %v19451_v26  ;;  %8508 = vmatprep.subr.bf16.mxu0 %v19462_v40  ;;  %v19478_v26 = vld [vmem:[#allocation2 + $0x1f90] ss:$28 sps:$4 sm:$0xff]   ;;  %v19481_v40 = vld [vmem:[#allocation2 + $0x22c8] ss:$28 sps:$4 sm:$0xff]  }
 0x4e4   :  { %10923 = vmatprep.subr.bf16.mxu1 %v19459_v60  ;;  %v19486_v60 = vld [vmem:[#allocation2 + $0x1fcc] ss:$28 sps:$4 sm:$0xff]  }
 0x4e6   :  { %8509 = vmatpush1.bf16.msra.mxu0 %v19460_v34  ;;  %v19489_v34 = vld [vmem:[#allocation2 + $0x2304] ss:$28 sps:$4 sm:$0xff]  }
 0x4e7   :  { %10924 = vmatpush1.bf16.msra.mxu1 %v19457_v57  ;;  %8510 = vmatprep.subr.bf16.mxu0 %v19468_v55  ;;  %v19484_v57 = vld [vmem:[#allocation2 + $0x1fc8] ss:$28 sps:$4 sm:$0xff]   ;;  %v19487_v55 = vld [vmem:[#allocation2 + $0x2300] ss:$28 sps:$4 sm:$0xff]  }
 0x4e8   :  { %10925 = vmatprep.subr.bf16.mxu1 %v19465_v54  ;;  %v19498_v54 = vld [vmem:[#allocation2 + $0x2004] ss:$28 sps:$4 sm:$0xff]  }
 0x4ea   :  { %8511 = vmatpush1.bf16.msra.mxu0 %v19466_v36  ;;  %v19496_v36 = vld [vmem:[#allocation2 + $0x2000] ss:$28 sps:$4 sm:$0xff]  }
 0x4eb   :  { %10926 = vmatpush1.bf16.msra.mxu1 %v19463_v41  ;;  %8512 = vmatprep.subr.bf16.mxu0 %v19474_v5  ;;  %v19492_v41 = vld [vmem:[#allocation2 + $0x233c] ss:$28 sps:$4 sm:$0xff]  }
 0x4ec   :  { %10927 = vmatprep.subr.bf16.mxu1 %v19471_v4  ;;  %v19504_v4 = vld [vmem:[#allocation2 + $0x2034] ss:$28 sps:$4 sm:$0xff]  }
 0x4ed   :  { %v19490_v5 = vld [vmem:[#allocation2 + $0x2338] ss:$28 sps:$4 sm:$0xff]  }
 0x4ee   :  { %8513 = vmatpush1.bf16.msra.mxu0 %v19472_v17  ;;  %v19493_v17 = vld [vmem:[#allocation2 + $0x2370] ss:$28 sps:$4 sm:$0xff]  }
 0x4ef   :  { %10928 = vmatpush1.bf16.msra.mxu1 %v19469_v13  ;;  %8514 = vmatprep.subr.bf16.mxu0 %v19480_v35  ;;  %v19495_v13 = vld [vmem:[#allocation2 + $0x2374] ss:$28 sps:$4 sm:$0xff]   ;;  %v19499_v35 = vld [vmem:[#allocation2 + $0x23a8] ss:$28 sps:$4 sm:$0xff]  }
 0x4f0   :  { %10929 = vmatprep.subr.bf16.mxu1 %v19477_v18  ;;  %v19501_v18 = vld [vmem:[#allocation2 + $0x23ac] ss:$28 sps:$4 sm:$0xff]  }
 0x4f2   :  { %8515 = vmatpush1.bf16.msra.mxu0 %v19478_v26  ;;  %v19507_v26 = vld [vmem:[#allocation2 + $0x23e4] ss:$28 sps:$4 sm:$0xff]  }
 0x4f3   :  { %10930 = vmatpush1.bf16.msra.mxu1 %v19475_v28  ;;  %8516 = vmatprep.subr.bf16.mxu0 %v19486_v60  ;;  %v19502_v28 = vld [vmem:[#allocation2 + $0x2030] ss:$28 sps:$4 sm:$0xff]   ;;  %v19505_v60 = vld [vmem:[#allocation2 + $0x23e0] ss:$28 sps:$4 sm:$0xff]  }
 0x4f4   :  { %10931 = vmatprep.subr.bf16.mxu1 %v19483_v31  ;;  %v19510_v31 = vld [vmem:[#allocation2 + $0x206c] ss:$28 sps:$4 sm:$0xff]  }
 0x4f6   :  { %8517 = vmatpush1.bf16.msra.mxu0 %v19484_v57  ;;  %v19513_v57 = vld [vmem:[#allocation2 + $0x241c] ss:$28 sps:$4 sm:$0xff]  }
 0x4f7   :  { %10932 = vmatpush1.bf16.msra.mxu1 %v19481_v40  ;;  %8529 = vmatprep.subr.bf16.mxu0 %v19498_v54  ;;  %v19508_v40 = vld [vmem:[#allocation2 + $0x2068] ss:$28 sps:$4 sm:$0xff]  }
 0x4f8   :  { %10933 = vmatprep.subr.bf16.mxu1 %v19489_v34  ;;  %v19516_v34 = vld [vmem:[#allocation2 + $0x20a4] ss:$28 sps:$4 sm:$0xff]   ;;  %v21540_v54 = vld [vmem:[%s21843_s0 + $0xc] ss:$28 sps:$4 sm:$0xff]  }
 0x4f9   :  { %8519 = vmatmul.mubr.bf16.vlgmr.msra.gmra.mrb[32].mxu0 %v21509_v49  ;;  %v21532_v49 = vld [vmem:[%s21843_s0] ss:$28 sps:$4 sm:$0xff]  }
 0x4fa   :  { %8530 = vmatpush1.bf16.msra.mxu0 %v19496_v36  ;;  %8561 = vmatprep.mubr.bf16.mxu0 %v20938_v0  ;;  %v19522_v36 = vld [vmem:[#allocation2 + $0x20dc] ss:$28 sps:$4 sm:$0xff]  }
 0x4fb   :  { %10934 = vmatpush1.bf16.msra.mxu1 %v19487_v55  ;;  %11079 = vmatprep.subr.bf16.mxu0 %v19504_v4  ;;  %v19514_v55 = vld [vmem:[#allocation2 + $0x20a0] ss:$28 sps:$4 sm:$0xff]  }
 0x4fc   :  { %10935 = vmatprep.subr.bf16.mxu1 %v19492_v41  ;;  %v19519_v41 = vld [vmem:[#allocation2 + $0x2454] ss:$28 sps:$4 sm:$0xff]  }
 0x4ff   :  { %10936 = vmatpush1.bf16.msra.mxu1 %v19490_v5 }
 0x500   :  { %10937 = vmatprep.subr.bf16.mxu1 %v19495_v13 }
 0x503   :  { %10938 = vmatpush1.bf16.msra.mxu1 %v19493_v17  ;;  %v19517_v17 = vld [vmem:[#allocation2 + $0x2450] ss:$28 sps:$4 sm:$0xff]  }
 0x504   :  { %10950 = vmatprep.subr.bf16.mxu1 %v19501_v18 }
 0x505   :  { %16552 = vmatmul.mubr.msk.bf16.vlgmr.msra.gmra.mrb[32].mxu0 %vm2364_vm0, %v21517_v58  ;;  %v19511_v58 = vld [vmem:[#allocation2 + $0x2418] ss:$28 sps:$4 sm:$0xff]  }
 0x506   :  { %10940 = vmatmul.mubr.bf16.vlgmr.msra.gmra.mrb[56].mxu1 %v21532_v49  ;;  %11080 = vmatpush1.bf16.msra.mxu0 %v19502_v28 }
 0x507   :  { %10951 = vmatpush1.bf16.msra.mxu1 %v19499_v35  ;;  %11081 = vmatprep.subr.bf16.mxu0 %v19510_v31  ;;  %v19520_v35 = vld [vmem:[#allocation2 + $0x20d8] ss:$28 sps:$4 sm:$0xff]   ;;  %v19534_v31 = vld [vmem:[#allocation2 + $0x214c] ss:$28 sps:$4 sm:$0xff]  }
 0x508   :  { %10952 = vmatprep.subr.bf16.mxu1 %v19507_v26  ;;  %10982 = vmatprep.mubr.bf16.mxu1 %v21540_v54 }
 0x509   :  { %11111 = vmatprep.mubr.bf16.mxu0 %v21524_v39 }
 0x50a   :  { %11082 = vmatpush1.bf16.msra.mxu0 %v19508_v40  ;;  %v19546_v40 = vld [vmem:[#allocation2 + $0x21bc] ss:$28 sps:$4 sm:$0xff]  }
 0x50b   :  { %10953 = vmatpush1.bf16.msra.mxu1 %v19505_v60  ;;  %11083 = vmatprep.subr.bf16.mxu0 %v19516_v34  ;;  %v19540_v60 = vld [vmem:[#allocation2 + $0x2184] ss:$28 sps:$4 sm:$0xff]   ;;  %v19544_v34 = vld [vmem:[#allocation2 + $0x21b8] ss:$28 sps:$4 sm:$0xff]  }
 0x50c   :  { %10954 = vmatprep.subr.bf16.mxu1 %v19513_v57  ;;  %v8219_v4 = vpop.f32.mrb[28].mxu0  ;;  %v19541_v57 = vld [vmem:[#allocation2 + $0x2530] ss:$28 sps:$4 sm:$0xff]  }
 0x50d   :  { %v21547_v5 = vmax.f32 %v5885_v33, %v8219_v4  ;;  %v8221_v13 = vpop.f32.mrb[29].mxu0  ;;  %v19528_v33 = vld [vmem:[#allocation2 + $0x2114] ss:$28 sps:$4 sm:$0xff]   ;;  %v19555_v4 = vld [vmem:[#allocation2 + $0x25a4] ss:$28 sps:$4 sm:$0xff]  }
 0x50e   :  { %11084 = vmatpush1.bf16.msra.mxu0 %v19514_v55  ;;  %v21552_v39 = vmax.f32 %v5886_v45, %v8221_v13  ;;  %v8223_v18 = vpop.f32.mrb[30].mxu0  ;;  %v19531_v45 = vld [vmem:[#allocation2 + $0x24c4] ss:$28 sps:$4 sm:$0xff]   ;;  %v19552_v55 = vld [vmem:[#allocation2 + $0x21f4] ss:$28 sps:$4 sm:$0xff]  }
 0x50f   :  { %10955 = vmatpush1.bf16.msra.mxu1 %v19511_v58  ;;  %v21557_v28 = vmax.f32 %v5892_v50, %v8223_v18  ;;  %v8225_v1 = vpop.f32.mrb[31].mxu0  ;;  %11085 = vmatprep.subr.bf16.mxu0 %v19522_v36  ;;  %v19537_v50 = vld [vmem:[#allocation2 + $0x24fc] ss:$28 sps:$4 sm:$0xff]   ;;  %v19549_v58 = vld [vmem:[#allocation2 + $0x256c] ss:$28 sps:$4 sm:$0xff]  }
 0x510   :  { %10956 = vmatprep.subr.bf16.mxu1 %v19519_v41  ;;  %v21562_v26 = vmax.f32 %v5893_v9, %v8225_v1  ;;  %v19543_v9 = vld [vmem:[#allocation2 + $0x2534] ss:$28 sps:$4 sm:$0xff]   ;;  %v19547_v41 = vld [vmem:[#allocation2 + $0x2568] ss:$28 sps:$4 sm:$0xff]  }
 0x511   :  { %v19550_v36 = vld [vmem:[#allocation2 + $0x21f0] ss:$28 sps:$4 sm:$0xff]   ;;  %v19556_v18 = vld [vmem:[#allocation2 + $0x2228] ss:$28 sps:$4 sm:$0xff]  }
 0x512   :  { %11086 = vmatpush1.bf16.msra.mxu0 %v19520_v35  ;;  %v19558_v13 = vld [vmem:[#allocation2 + $0x222c] ss:$28 sps:$4 sm:$0xff]   ;;  %v19561_v35 = vld [vmem:[#allocation2 + $0x25dc] ss:$28 sps:$4 sm:$0xff]   ;;  %v19564_v1 = vld [vmem:[#allocation2 + $0x2264] ss:$28 sps:$4 sm:$0xff]  }
 0x513   :  { %10957 = vmatpush1.bf16.msra.mxu1 %v19517_v17  ;;  %11087 = vmatprep.subr.bf16.mxu0 %v19528_v33  ;;  %v19553_v17 = vld [vmem:[#allocation2 + $0x25a0] ss:$28 sps:$4 sm:$0xff]  }
 0x514   :  { %10958 = vmatprep.subr.bf16.mxu1 %v19525_v53  ;;  %v19559_v53 = vld [vmem:[#allocation2 + $0x25d8] ss:$28 sps:$4 sm:$0xff]   ;;  %v19562_v33 = vld [vmem:[#allocation2 + $0x2260] ss:$28 sps:$4 sm:$0xff]  }
 0x516   :  { %11088 = vmatpush1.bf16.msra.mxu0 %v19526_v38  ;;  %v19570_v38 = vld [vmem:[#allocation2 + $0x229c] ss:$28 sps:$4 sm:$0xff]  }
 0x517   :  { %10959 = vmatpush1.bf16.msra.mxu1 %v19523_v3  ;;  %11089 = vmatprep.subr.bf16.mxu0 %v19534_v31  ;;  %v19567_v3 = vld [vmem:[#allocation2 + $0x2614] ss:$28 sps:$4 sm:$0xff]  }
 0x518   :  { %10960 = vmatprep.subr.bf16.mxu1 %v19531_v45  ;;  %v19565_v45 = vld [vmem:[#allocation2 + $0x2610] ss:$28 sps:$4 sm:$0xff]   ;;  %v19568_v31 = vld [vmem:[#allocation2 + $0x2298] ss:$28 sps:$4 sm:$0xff]  }
 0x51a   :  { %11090 = vmatpush1.bf16.msra.mxu0 %v19532_v63  ;;  %v19576_v63 = vld [vmem:[#allocation2 + $0x22d4] ss:$28 sps:$4 sm:$0xff]  }
 0x51b   :  { %10961 = vmatpush1.bf16.msra.mxu1 %v19529_v6  ;;  %11091 = vmatprep.subr.bf16.mxu0 %v19540_v60  ;;  %v19573_v6 = vld [vmem:[#allocation2 + $0x264c] ss:$28 sps:$4 sm:$0xff]  }
 0x51c   :  { %10962 = vmatprep.subr.bf16.mxu1 %v19537_v50 }
 0x51e   :  { %11092 = vmatpush1.bf16.msra.mxu0 %v19538_v52 }
 0x51f   :  { %10963 = vmatpush1.bf16.msra.mxu1 %v19535_v10  ;;  %11093 = vmatprep.subr.bf16.mxu0 %v19546_v40  ;;  %v19571_v40 = vld [vmem:[#allocation2 + $0x2648] ss:$28 sps:$4 sm:$0xff]  }
 0x520   :  { %10964 = vmatprep.subr.bf16.mxu1 %v19543_v9 }
 0x522   :  { %11094 = vmatpush1.bf16.msra.mxu0 %v19544_v34 }
 0x523   :  { %10965 = vmatpush1.bf16.msra.mxu1 %v19541_v57  ;;  %11095 = vmatprep.subr.bf16.mxu0 %v19552_v55  ;;  %v19574_v57 = vld [vmem:[#allocation2 + $0x22d0] ss:$28 sps:$4 sm:$0xff]  }
 0x524   :  { %10966 = vmatprep.subr.bf16.mxu1 %v19549_v58  ;;  %v19591_v55 = vld [vmem:[#allocation2 + $0x26f4] ss:$28 sps:$4 sm:$0xff]  }
 0x526   :  { %11096 = vmatpush1.bf16.msra.mxu0 %v19550_v36  ;;  %v19600_v36 = vld [vmem:[#allocation2 + $0x23b4] ss:$28 sps:$4 sm:$0xff]  }
 0x527   :  { %10967 = vmatpush1.bf16.msra.mxu1 %v19547_v41  ;;  %11097 = vmatprep.subr.bf16.mxu0 %v19558_v13  ;;  %v19594_v41 = vld [vmem:[#allocation2 + $0x237c] ss:$28 sps:$4 sm:$0xff]   ;;  %v19598_v13 = vld [vmem:[#allocation2 + $0x23b0] ss:$28 sps:$4 sm:$0xff]  }
 0x528   :  { %10968 = vmatprep.subr.bf16.mxu1 %v19555_v4  ;;  %v19595_v4 = vld [vmem:[#allocation2 + $0x2728] ss:$28 sps:$4 sm:$0xff]  }
 0x52a   :  { %11098 = vmatpush1.bf16.msra.mxu0 %v19556_v18  ;;  %v19606_v18 = vld [vmem:[#allocation2 + $0x23ec] ss:$28 sps:$4 sm:$0xff]  }
 0x52b   :  { %10969 = vmatpush1.bf16.msra.mxu1 %v19553_v17  ;;  %11099 = vmatprep.subr.bf16.mxu0 %v19564_v1  ;;  %v19603_v17 = vld [vmem:[#allocation2 + $0x2764] ss:$28 sps:$4 sm:$0xff]  }
 0x52c   :  { %10970 = vmatprep.subr.bf16.mxu1 %v19561_v35  ;;  %v21587_v35 = vld [vmem:[%s21843_s0 + $0x8] ss:$28 sps:$4 sm:$0xff]   ;;  %v19601_v1 = vld [vmem:[#allocation2 + $0x2760] ss:$28 sps:$4 sm:$0xff]  }
 0x52e   :  { %11100 = vmatpush1.bf16.msra.mxu0 %v19562_v33  ;;  %v19609_v33 = vld [vmem:[#allocation2 + $0x279c] ss:$28 sps:$4 sm:$0xff]  }
 0x52f   :  { %10971 = vmatpush1.bf16.msra.mxu1 %v19559_v53  ;;  %11101 = vmatprep.subr.bf16.mxu0 %v19570_v38  ;;  %v19604_v53 = vld [vmem:[#allocation2 + $0x23e8] ss:$28 sps:$4 sm:$0xff]   ;;  %v21594_v38 = vld [vmem:[%s21843_s0 + $0x14] ss:$28 sps:$4 sm:$0xff]  }
 0x530   :  { %10972 = vmatprep.subr.bf16.mxu1 %v19567_v3  ;;  %v19612_v3 = vld [vmem:[#allocation2 + $0x2424] ss:$28 sps:$4 sm:$0xff]  }
 0x531   :  { %v8391_v50 = vpop.f32.mrb[36].mxu1 }
 0x532   :  { %v21567_v60 = vmax.f32 %v5887_v19, %v8391_v50  ;;  %v8393_v10 = vpop.f32.mrb[37].mxu1  ;;  %11102 = vmatpush1.bf16.msra.mxu0 %v19568_v31  ;;  %v19577_v19 = vld [vmem:[#allocation2 + $0x2680] ss:$28 sps:$4 sm:$0xff]   ;;  %v19613_v50 = vld [vmem:[#allocation2 + $0x27d0] ss:$28 sps:$4 sm:$0xff]  }
 0x533   :  { %10973 = vmatpush1.bf16.msra.mxu1 %v19565_v45  ;;  %v21572_v52 = vmax.f32 %v5888_v14, %v8393_v10  ;;  %v8395_v9 = vpop.f32.mrb[38].mxu1  ;;  %11103 = vmatprep.subr.bf16.mxu0 %v19576_v63  ;;  %v19585_v14 = vld [vmem:[#allocation2 + $0x26bc] ss:$28 sps:$4 sm:$0xff]  }
 0x534   :  { %v21577_v34 = vmax.f32 %v5894_v29, %v8395_v9  ;;  %v8397_v58 = vpop.f32.mrb[39].mxu1  ;;  %10974 = vmatprep.subr.bf16.mxu1 %v19573_v6  ;;  %v19586_v29 = vld [vmem:[#allocation2 + $0x2340] ss:$28 sps:$4 sm:$0xff]   ;;  %v19607_v45 = vld [vmem:[#allocation2 + $0x2798] ss:$28 sps:$4 sm:$0xff]  }
 0x535   :  { %v21582_v22 = vmax.f32 %v5895_v12, %v8397_v58  ;;  %v19597_v12 = vld [vmem:[#allocation2 + $0x272c] ss:$28 sps:$4 sm:$0xff]   ;;  %v19610_v31 = vld [vmem:[#allocation2 + $0x2420] ss:$28 sps:$4 sm:$0xff]   ;;  %v19615_v6 = vld [vmem:[#allocation2 + $0x27d4] ss:$28 sps:$4 sm:$0xff]  }
 0x536   :  { %11104 = vmatpush1.bf16.msra.mxu0 %v19574_v57  ;;  %v19618_v63 = vld [vmem:[#allocation2 + $0x245c] ss:$28 sps:$4 sm:$0xff]   ;;  %v19621_v9 = vld [vmem:[#allocation2 + $0x280c] ss:$28 sps:$4 sm:$0xff]  }
 0x537   :  { %10975 = vmatpush1.bf16.msra.mxu1 %v19571_v40  ;;  %11105 = vmatprep.subr.bf16.mxu0 %v19582_v16  ;;  %v19616_v10 = vld [vmem:[#allocation2 + $0x2458] ss:$28 sps:$4 sm:$0xff]  }
 0x538   :  { %10976 = vmatprep.subr.bf16.mxu1 %v19579_v20  ;;  %v19624_v40 = vld [vmem:[#allocation2 + $0x2494] ss:$28 sps:$4 sm:$0xff]  }
 0x53a   :  { %11106 = vmatpush1.bf16.msra.mxu0 %v19580_v25  ;;  %v19622_v25 = vld [vmem:[#allocation2 + $0x2490] ss:$28 sps:$4 sm:$0xff]  }
 0x53b   :  { %10977 = vmatpush1.bf16.msra.mxu1 %v19577_v19  ;;  %11107 = vmatprep.subr.bf16.mxu0 %v19588_v24  ;;  %v19619_v19 = vld [vmem:[#allocation2 + $0x2808] ss:$28 sps:$4 sm:$0xff]  }
 0x53c   :  { %10978 = vmatprep.subr.bf16.mxu1 %v19585_v14  ;;  %v19627_v24 = vld [vmem:[#allocation2 + $0x2844] ss:$28 sps:$4 sm:$0xff]  }
 0x53e   :  { %11108 = vmatpush1.bf16.msra.mxu0 %v19586_v29 }
 0x53f   :  { %10979 = vmatpush1.bf16.msra.mxu1 %v19583_v43  ;;  %11109 = vmatprep.subr.bf16.mxu0 %v19594_v41  ;;  %v19630_v43 = vld [vmem:[#allocation2 + $0x24cc] ss:$28 sps:$4 sm:$0xff]  }
 0x540   :  { %10980 = vmatprep.subr.bf16.mxu1 %v19591_v55  ;;  %v19625_v55 = vld [vmem:[#allocation2 + $0x2840] ss:$28 sps:$4 sm:$0xff]   ;;  %v19628_v41 = vld [vmem:[#allocation2 + $0x24c8] ss:$28 sps:$4 sm:$0xff]  }
 0x542   :  { %11110 = vmatpush1.bf16.msra.mxu0 %v19592_v44  ;;  %v19636_v44 = vld [vmem:[#allocation2 + $0x2504] ss:$28 sps:$4 sm:$0xff]  }
 0x543   :  { %10981 = vmatpush1.bf16.msra.mxu1 %v19589_v27  ;;  %11122 = vmatprep.subr.bf16.mxu0 %v19600_v36  ;;  %v19633_v27 = vld [vmem:[#allocation2 + $0x287c] ss:$28 sps:$4 sm:$0xff]  }
 0x544   :  { %10993 = vmatprep.subr.bf16.mxu1 %v19597_v12  ;;  %v19631_v12 = vld [vmem:[#allocation2 + $0x2878] ss:$28 sps:$4 sm:$0xff]   ;;  %v19634_v36 = vld [vmem:[#allocation2 + $0x2500] ss:$28 sps:$4 sm:$0xff]  }
 0x545   :  { %11112 = vmatmul.mubr.bf16.vlgmr.msra.gmra.mrb[36].mxu0 %v21532_v49 }
 0x546   :  { %10983 = vmatmul.mubr.bf16.vlgmr.msra.gmra.mrb[56].mxu1 %v21587_v35  ;;  %11123 = vmatpush1.bf16.msra.mxu0 %v19598_v13  ;;  %v19642_v13 = vld [vmem:[#allocation2 + $0x253c] ss:$28 sps:$4 sm:$0xff]  }
 0x547   :  { %10994 = vmatpush1.bf16.msra.mxu1 %v19595_v4  ;;  %11124 = vmatprep.subr.bf16.mxu0 %v19606_v18  ;;  %v19639_v4 = vld [vmem:[#allocation2 + $0x28b4] ss:$28 sps:$4 sm:$0xff]  }
 0x548   :  { %10995 = vmatprep.subr.bf16.mxu1 %v19603_v17  ;;  %11025 = vmatprep.mubr.bf16.mxu1 %v21594_v38  ;;  %v19637_v17 = vld [vmem:[#allocation2 + $0x28b0] ss:$28 sps:$4 sm:$0xff]   ;;  %v19640_v18 = vld [vmem:[#allocation2 + $0x2538] ss:$28 sps:$4 sm:$0xff]  }
 0x549   :  { %11154 = vmatprep.mubr.bf16.mxu0 %v21540_v54 }
 0x54a   :  { %11125 = vmatpush1.bf16.msra.mxu0 %v19604_v53  ;;  %v19648_v53 = vld [vmem:[#allocation2 + $0x2574] ss:$28 sps:$4 sm:$0xff]  }
 0x54b   :  { %10996 = vmatpush1.bf16.msra.mxu1 %v19601_v1  ;;  %11126 = vmatprep.subr.bf16.mxu0 %v19612_v3  ;;  %v19645_v1 = vld [vmem:[#allocation2 + $0x28ec] ss:$28 sps:$4 sm:$0xff]  }
 0x54c   :  { %10997 = vmatprep.subr.bf16.mxu1 %v19609_v33  ;;  %v19643_v33 = vld [vmem:[#allocation2 + $0x28e8] ss:$28 sps:$4 sm:$0xff]   ;;  %v19646_v3 = vld [vmem:[#allocation2 + $0x2570] ss:$28 sps:$4 sm:$0xff]  }
 0x54e   :  { %11127 = vmatpush1.bf16.msra.mxu0 %v19610_v31  ;;  %v19654_v31 = vld [vmem:[#allocation2 + $0x25ac] ss:$28 sps:$4 sm:$0xff]  }
 0x54f   :  { %10998 = vmatpush1.bf16.msra.mxu1 %v19607_v45  ;;  %11128 = vmatprep.subr.bf16.mxu0 %v19618_v63  ;;  %v19651_v45 = vld [vmem:[#allocation2 + $0x2924] ss:$28 sps:$4 sm:$0xff]  }
 0x550   :  { %10999 = vmatprep.subr.bf16.mxu1 %v19615_v6  ;;  %v19649_v6 = vld [vmem:[#allocation2 + $0x2920] ss:$28 sps:$4 sm:$0xff]   ;;  %v19652_v63 = vld [vmem:[#allocation2 + $0x25a8] ss:$28 sps:$4 sm:$0xff]  }
 0x551   :  { %v17536_v57 = vpop.f32.mrb[40].mxu1 }
 0x552   :  { %v17537_v58 = vpop.f32.mrb[41].mxu1  ;;  %11129 = vmatpush1.bf16.msra.mxu0 %v19616_v10  ;;  %v19660_v10 = vld [vmem:[#allocation2 + $0x25e4] ss:$28 sps:$4 sm:$0xff]  }
 0x553   :  { %v21598_v20 = vadd.f32 %v17537_v58, %v17536_v57  ;;  %11000 = vmatpush1.bf16.msra.mxu1 %v19613_v50  ;;  %v17539_v16 = vpop.f32.mrb[42].mxu1  ;;  %11130 = vmatprep.subr.bf16.mxu0 %v19624_v40  ;;  %v19657_v50 = vld [vmem:[#allocation2 + $0x295c] ss:$28 sps:$4 sm:$0xff]   ;;  %v19663_v57 = vld [vmem:[#allocation2 + $0x2994] ss:$28 sps:$4 sm:$0xff]  }
 0x554   :  { %v17540_v14 = vpop.f32.mrb[43].mxu1  ;;  %11001 = vmatprep.subr.bf16.mxu1 %v19621_v9  ;;  %v19655_v9 = vld [vmem:[#allocation2 + $0x2958] ss:$28 sps:$4 sm:$0xff]   ;;  %v19658_v40 = vld [vmem:[#allocation2 + $0x25e0] ss:$28 sps:$4 sm:$0xff]  }
 0x555   :  { %v21600_v29 = vadd.f32 %v17540_v14, %v17539_v16  ;;  %v19666_v58 = vld [vmem:[#allocation2 + $0x261c] ss:$28 sps:$4 sm:$0xff]   ;;  %v19661_v16 = vld [vmem:[#allocation2 + $0x2990] ss:$28 sps:$4 sm:$0xff]  }
 0x556   :  { %11131 = vmatpush1.bf16.msra.mxu0 %v19622_v25  ;;  %v19669_v25 = vld [vmem:[#allocation2 + $0x29cc] ss:$28 sps:$4 sm:$0xff]   ;;  %v19672_v14 = vld [vmem:[#allocation2 + $0x2654] ss:$28 sps:$4 sm:$0xff]  }
 0x557   :  { %11002 = vmatpush1.bf16.msra.mxu1 %v19619_v19  ;;  %11132 = vmatprep.subr.bf16.mxu0 %v19630_v43  ;;  %v19664_v19 = vld [vmem:[#allocation2 + $0x2618] ss:$28 sps:$4 sm:$0xff]  }
 0x558   :  { %11003 = vmatprep.subr.bf16.mxu1 %v19627_v24 }
 0x55a   :  { %11133 = vmatpush1.bf16.msra.mxu0 %v19628_v41 }
 0x55b   :  { %11004 = vmatpush1.bf16.msra.mxu1 %v19625_v55  ;;  %11134 = vmatprep.subr.bf16.mxu0 %v19636_v44  ;;  %v19670_v44 = vld [vmem:[#allocation2 + $0x2650] ss:$28 sps:$4 sm:$0xff]  }
 0x55c   :  { %11005 = vmatprep.subr.bf16.mxu1 %v19633_v27  ;;  %v19667_v27 = vld [vmem:[#allocation2 + $0x29c8] ss:$28 sps:$4 sm:$0xff]  }
 0x55e   :  { %11135 = vmatpush1.bf16.msra.mxu0 %v19634_v36  ;;  %v19675_v36 = vld [vmem:[#allocation2 + $0x2a04] ss:$28 sps:$4 sm:$0xff]  }
 0x55f   :  { %11006 = vmatpush1.bf16.msra.mxu1 %v19631_v12  ;;  %11136 = vmatprep.subr.bf16.mxu0 %v19642_v13 }
 0x560   :  { %11007 = vmatprep.subr.bf16.mxu1 %v19639_v4  ;;  %v19678_v4 = vld [vmem:[#allocation2 + $0x268c] ss:$28 sps:$4 sm:$0xff]  }
 0x562   :  { %11137 = vmatpush1.bf16.msra.mxu0 %v19640_v18 }
 0x563   :  { %11008 = vmatpush1.bf16.msra.mxu1 %v19637_v17  ;;  %11138 = vmatprep.subr.bf16.mxu0 %v19648_v53  ;;  %v19676_v53 = vld [vmem:[#allocation2 + $0x2688] ss:$28 sps:$4 sm:$0xff]  }
 0x564   :  { %11009 = vmatprep.subr.bf16.mxu1 %v19645_v1  ;;  %v19673_v1 = vld [vmem:[#allocation2 + $0x2a00] ss:$28 sps:$4 sm:$0xff]  }
 0x566   :  { %11139 = vmatpush1.bf16.msra.mxu0 %v19646_v3  ;;  %v19684_v3 = vld [vmem:[#allocation2 + $0x26c4] ss:$28 sps:$4 sm:$0xff]  }
 0x567   :  { %11010 = vmatpush1.bf16.msra.mxu1 %v19643_v33  ;;  %11140 = vmatprep.subr.bf16.mxu0 %v19654_v31  ;;  %v19681_v33 = vld [vmem:[#allocation2 + $0x2a3c] ss:$28 sps:$4 sm:$0xff]  }
 0x568   :  { %11011 = vmatprep.subr.bf16.mxu1 %v19651_v45  ;;  %v19679_v45 = vld [vmem:[#allocation2 + $0x2a38] ss:$28 sps:$4 sm:$0xff]   ;;  %v19682_v31 = vld [vmem:[#allocation2 + $0x26c0] ss:$28 sps:$4 sm:$0xff]  }
 0x56a   :  { %11141 = vmatpush1.bf16.msra.mxu0 %v19652_v63  ;;  %v19688_v63 = vld [vmem:[#allocation2 + $0x26f8] ss:$28 sps:$4 sm:$0xff]  }
 0x56b   :  { %11012 = vmatpush1.bf16.msra.mxu1 %v19649_v6  ;;  %11142 = vmatprep.subr.bf16.mxu0 %v19660_v10  ;;  %v19690_v6 = vld [vmem:[#allocation2 + $0x26fc] ss:$28 sps:$4 sm:$0xff]   ;;  %v19696_v10 = vld [vmem:[#allocation2 + $0x2734] ss:$28 sps:$4 sm:$0xff]  }
 0x56c   :  { %11013 = vmatprep.subr.bf16.mxu1 %v19657_v50  ;;  %v19693_v50 = vld [vmem:[#allocation2 + $0x2aac] ss:$28 sps:$4 sm:$0xff]  }
 0x56e   :  { %11143 = vmatpush1.bf16.msra.mxu0 %v19658_v40  ;;  %v19694_v40 = vld [vmem:[#allocation2 + $0x2730] ss:$28 sps:$4 sm:$0xff]  }
 0x56f   :  { %11014 = vmatpush1.bf16.msra.mxu1 %v19655_v9  ;;  %11144 = vmatprep.subr.bf16.mxu0 %v19666_v58  ;;  %v19691_v9 = vld [vmem:[#allocation2 + $0x2aa8] ss:$28 sps:$4 sm:$0xff]   ;;  %v19705_v58 = vld [vmem:[#allocation2 + $0x203c] ss:$28 sps:$4 sm:$0xff]  }
 0x570   :  { %11015 = vmatprep.subr.bf16.mxu1 %v19663_v57  ;;  %v19699_v57 = vld [vmem:[#allocation2 + $0x276c] ss:$28 sps:$4 sm:$0xff]  }
 0x571   :  { %v17558_v24 = vpop.f32.mrb[44].mxu1 }
 0x572   :  { %v17559_v43 = vpop.f32.mrb[45].mxu1  ;;  %11145 = vmatpush1.bf16.msra.mxu0 %v19664_v19  ;;  %v19697_v19 = vld [vmem:[#allocation2 + $0x2768] ss:$28 sps:$4 sm:$0xff]  }
 0x573   :  { %v17560_v55 = vadd.f32 %v17559_v43, %v17558_v24  ;;  %11016 = vmatpush1.bf16.msra.mxu1 %v19661_v16  ;;  %v17561_v41 = vpop.f32.mrb[46].mxu1  ;;  %11146 = vmatprep.subr.bf16.mxu0 %v19672_v14  ;;  %v21611_v16 = vld [vmem:[%s21843_s0 + $0x10] ss:$28 sps:$4 sm:$0xff]   ;;  %v19700_v14 = vld [vmem:[#allocation2 + $0x27a0] ss:$28 sps:$4 sm:$0xff]  }
 0x574   :  { %v17562_v12 = vpop.f32.mrb[47].mxu1  ;;  %11017 = vmatprep.subr.bf16.mxu1 %v19669_v25  ;;  %v19702_v25 = vld [vmem:[#allocation2 + $0x27a4] ss:$28 sps:$4 sm:$0xff]   ;;  %v19708_v24 = vld [vmem:[#allocation2 + $0x27dc] ss:$28 sps:$4 sm:$0xff]  }
 0x575   :  { %v21603_v13 = vadd.f32 %v17560_v55, %v21598_v20  ;;  %v17563_v17 = vadd.f32 %v17562_v12, %v17561_v41  ;;  %v19687_v20 = vld [vmem:[#allocation2 + $0x2a74] ss:$28 sps:$4 sm:$0xff]  }
 0x576   :  { %11147 = vmatpush1.bf16.msra.mxu0 %v19670_v44  ;;  %v19703_v43 = vld [vmem:[#allocation2 + $0x2038] ss:$28 sps:$4 sm:$0xff]  }
 0x577   :  { %v21606_v18 = vadd.f32 %v17563_v17, %v21600_v29  ;;  %11018 = vmatpush1.bf16.msra.mxu1 %v19667_v27  ;;  %11148 = vmatprep.subr.bf16.mxu0 %v19678_v4  ;;  %v19685_v29 = vld [vmem:[#allocation2 + $0x2a70] ss:$28 sps:$4 sm:$0xff]   ;;  %v19706_v55 = vld [vmem:[#allocation2 + $0x27d8] ss:$28 sps:$4 sm:$0xff]  }
 0x578   :  { %11019 = vmatprep.subr.bf16.mxu1 %v19675_v36  ;;  %v19711_v41 = vld [vmem:[#allocation2 + $0x2074] ss:$28 sps:$4 sm:$0xff]  }
 0x579   :  { %v19714_v27 = vld [vmem:[#allocation2 + $0x2814] ss:$28 sps:$4 sm:$0xff]  }
 0x57a   :  { %11149 = vmatpush1.bf16.msra.mxu0 %v19676_v53  ;;  %v21620_v12 = vld [vmem:[%s21843_s0 + $0x18] ss:$28 sps:$4 sm:$0xff]   ;;  %v19712_v53 = vld [vmem:[#allocation2 + $0x2810] ss:$28 sps:$4 sm:$0xff]  }
 0x57b   :  { %11020 = vmatpush1.bf16.msra.mxu1 %v19673_v1  ;;  %11150 = vmatprep.subr.bf16.mxu0 %v19684_v3  ;;  %v19709_v1 = vld [vmem:[#allocation2 + $0x2070] ss:$28 sps:$4 sm:$0xff]  }
 0x57c   :  { %11021 = vmatprep.subr.bf16.mxu1 %v19681_v33  ;;  %v19717_v3 = vld [vmem:[#allocation2 + $0x20ac] ss:$28 sps:$4 sm:$0xff]  }
 0x57e   :  { %11151 = vmatpush1.bf16.msra.mxu0 %v19682_v31 }
 0x57f   :  { %11022 = vmatpush1.bf16.msra.mxu1 %v19679_v45  ;;  %11152 = vmatprep.subr.bf16.mxu0 %v19690_v6  ;;  %v19720_v45 = vld [vmem:[#allocation2 + $0x284c] ss:$28 sps:$4 sm:$0xff]   ;;  %v21628_v6 = vld [vmem:[%s21843_s0 + $0x4] ss:$28 sps:$4 sm:$0xff]  }
 0x580   :  { %11023 = vmatprep.subr.bf16.mxu1 %v19687_v20 }
 0x582   :  { %11153 = vmatpush1.bf16.msra.mxu0 %v19688_v63 }
 0x583   :  { %11024 = vmatpush1.bf16.msra.mxu1 %v19685_v29  ;;  %11165 = vmatprep.subr.bf16.mxu0 %v19696_v10  ;;  %v19715_v29 = vld [vmem:[#allocation2 + $0x20a8] ss:$28 sps:$4 sm:$0xff]  }
 0x584   :  { %11036 = vmatprep.subr.bf16.mxu1 %v19693_v50  ;;  %v19718_v50 = vld [vmem:[#allocation2 + $0x2848] ss:$28 sps:$4 sm:$0xff]  }
 0x585   :  { %11155 = vmatmul.mubr.bf16.vlgmr.msra.gmra.mrb[36].mxu0 %v21587_v35  ;;  %v19723_v10 = vld [vmem:[#allocation2 + $0x20e4] ss:$28 sps:$4 sm:$0xff]  }
 0x586   :  { %11026 = vmatmul.mubr.bf16.vlgmr.msra.gmra.mrb[56].mxu1 %v21611_v16  ;;  %11166 = vmatpush1.bf16.msra.mxu0 %v19694_v40 }
 0x587   :  { %11037 = vmatpush1.bf16.msra.mxu1 %v19691_v9  ;;  %11167 = vmatprep.subr.bf16.mxu0 %v19699_v57  ;;  %v19726_v9 = vld [vmem:[#allocation2 + $0x2884] ss:$28 sps:$4 sm:$0xff]  }
 0x588   :  { %11068 = vmatprep.mubr.bf16.mxu1 %v20938_v0  ;;  %11251 = vmatprep.subr.bf16.mxu1 %v19705_v58 }
 0x589   :  { %11197 = vmatprep.mubr.bf16.mxu0 %v21594_v38 }
 0x58a   :  { %11168 = vmatpush1.bf16.msra.mxu0 %v19697_v19  ;;  %v19721_v19 = vld [vmem:[#allocation2 + $0x20e0] ss:$28 sps:$4 sm:$0xff]  }
 0x58b   :  { %11169 = vmatprep.subr.bf16.mxu0 %v19702_v25  ;;  %v19724_v25 = vld [vmem:[#allocation2 + $0x2880] ss:$28 sps:$4 sm:$0xff]  }
 0x58e   :  { %11170 = vmatpush1.bf16.msra.mxu0 %v19700_v14 }
 0x58f   :  { %11171 = vmatprep.subr.bf16.mxu0 %v19708_v24 }
 0x591   :  { %v17580_v44 = vpop.f32.mrb[48].mxu1 }
 0x592   :  { %16897 = vmatmul.mubr.msk.bf16.vlgmr.msra.gmra.mrb[56].mxu1 %vm2364_vm0, %v21620_v12  ;;  %v17581_v36 = vpop.f32.mrb[49].mxu1  ;;  %11172 = vmatpush1.bf16.msra.mxu0 %v19706_v55  ;;  %v19732_v55 = vld [vmem:[#allocation2 + $0x28bc] ss:$28 sps:$4 sm:$0xff]  }
 0x593   :  { %11252 = vmatpush1.bf16.msra.mxu1 %v19703_v43  ;;  %v17582_v4 = vadd.f32 %v17581_v36, %v17580_v44  ;;  %v17583_v17 = vpop.f32.mrb[50].mxu1  ;;  %11173 = vmatprep.subr.bf16.mxu0 %v19714_v27  ;;  %v19729_v43 = vld [vmem:[#allocation2 + $0x211c] ss:$28 sps:$4 sm:$0xff]   ;;  %v19736_v36 = vld [vmem:[#allocation2 + $0x28f0] ss:$28 sps:$4 sm:$0xff]  }
 0x594   :  { %v17584_v33 = vpop.f32.mrb[51].mxu1  ;;  %11253 = vmatprep.subr.bf16.mxu1 %v19711_v41  ;;  %11283 = vmatprep.mubr.bf16.mxu1 %v21628_v6  ;;  %v19727_v27 = vld [vmem:[#allocation2 + $0x2118] ss:$28 sps:$4 sm:$0xff]  }
 0x595   :  { %v17585_v31 = vadd.f32 %v17584_v33, %v17583_v17  ;;  %v8689_v20 = vadd.f32 %v17582_v4, %v21603_v13  ;;  %v19730_v44 = vld [vmem:[#allocation2 + $0x28b8] ss:$28 sps:$4 sm:$0xff]   ;;  %v19741_v4 = vld [vmem:[#allocation2 + $0x218c] ss:$28 sps:$4 sm:$0xff]   ;;  %v19748_v33 = vld [vmem:[#allocation2 + $0x2960] ss:$28 sps:$4 sm:$0xff]  }
 0x596   :  { %11174 = vmatpush1.bf16.msra.mxu0 %v19712_v53  ;;  %v19744_v17 = vld [vmem:[#allocation2 + $0x292c] ss:$28 sps:$4 sm:$0xff]   ;;  %v19745_v53 = vld [vmem:[#allocation2 + $0x21c0] ss:$28 sps:$4 sm:$0xff]  }
 0x597   :  { %11254 = vmatpush1.bf16.msra.mxu1 %v19709_v1  ;;  %v8692_v63 = vadd.f32 %v17585_v31, %v21606_v18  ;;  %11175 = vmatprep.subr.bf16.mxu0 %v19720_v45  ;;  %v19750_v1 = vld [vmem:[#allocation2 + $0x2964] ss:$28 sps:$4 sm:$0xff]   ;;  %v19756_v45 = vld [vmem:[#allocation2 + $0x299c] ss:$28 sps:$4 sm:$0xff]  }
 0x598   :  { %11255 = vmatprep.subr.bf16.mxu1 %v19717_v3  ;;  %v19753_v3 = vld [vmem:[#allocation2 + $0x21fc] ss:$28 sps:$4 sm:$0xff]  }
 0x599   :  { %v8729_v40 = vpop.f32.mrb[52].mxu1  ;;  %v19751_v31 = vld [vmem:[#allocation2 + $0x21f8] ss:$28 sps:$4 sm:$0xff]  }
 0x59a   :  { %v8730_v57 = vadd.f32 %v8729_v40, %v8689_v20  ;;  %v17712_v13 = vpop.f32.mrb[53].mxu1  ;;  %11176 = vmatpush1.bf16.msra.mxu0 %v19718_v50  ;;  %v19754_v20 = vld [vmem:[#allocation2 + $0x2998] ss:$28 sps:$4 sm:$0xff]   ;;  %v19757_v50 = vld [vmem:[#allocation2 + $0x2230] ss:$28 sps:$4 sm:$0xff]  }
 0x59b   :  { %11256 = vmatpush1.bf16.msra.mxu1 %v19715_v29  ;;  %v8732_v58 = vpop.f32.mrb[54].mxu1  ;;  %11177 = vmatprep.subr.bf16.mxu0 %v19726_v9  ;;  %v19759_v29 = vld [vmem:[#allocation2 + $0x2234] ss:$28 sps:$4 sm:$0xff]   ;;  %v19765_v9 = vld [vmem:[#allocation2 + $0x226c] ss:$28 sps:$4 sm:$0xff]  }
 0x59c   :  { %v21635_v14 = vmax.f32 %v5891_v61, %v8730_v57  ;;  %v8733_v24 = vadd.f32 %v8732_v58, %v8692_v63  ;;  %v17713_v18 = vpop.f32.mrb[55].mxu1  ;;  %11257 = vmatprep.subr.bf16.mxu1 %v19723_v10  ;;  %v19733_v61 = vld [vmem:[#allocation2 + $0x2150] ss:$28 sps:$4 sm:$0xff]   ;;  %v19763_v57 = vld [vmem:[#allocation2 + $0x2268] ss:$28 sps:$4 sm:$0xff]  }
 0x59d   :  { %v19762_v63 = vld [vmem:[#allocation2 + $0x29d4] ss:$28 sps:$4 sm:$0xff]   ;;  %v19768_v40 = vld [vmem:[#allocation2 + $0x2a0c] ss:$28 sps:$4 sm:$0xff]   ;;  %v19771_v58 = vld [vmem:[#allocation2 + $0x22a4] ss:$28 sps:$4 sm:$0xff]  }
 0x59e   :  { %v21640_v41 = vmax.f32 %v5898_v30, %v8733_v24  ;;  %11178 = vmatpush1.bf16.msra.mxu0 %v19724_v25  ;;  %v19747_v30 = vld [vmem:[#allocation2 + $0x21c4] ss:$28 sps:$4 sm:$0xff]   ;;  %v19760_v10 = vld [vmem:[#allocation2 + $0x29d0] ss:$28 sps:$4 sm:$0xff]   ;;  %v19777_v18 = vld [vmem:[#allocation2 + $0x22dc] ss:$28 sps:$4 sm:$0xff]  }
 0x59f   :  { %11258 = vmatpush1.bf16.msra.mxu1 %v19721_v19  ;;  %11179 = vmatprep.subr.bf16.mxu0 %v19732_v55  ;;  %v19766_v13 = vld [vmem:[#allocation2 + $0x2a08] ss:$28 sps:$4 sm:$0xff]   ;;  %v19769_v25 = vld [vmem:[#allocation2 + $0x22a0] ss:$28 sps:$4 sm:$0xff]   ;;  %v19775_v55 = vld [vmem:[#allocation2 + $0x22d8] ss:$28 sps:$4 sm:$0xff]  }
 0x5a0   :  { %11259 = vmatprep.subr.bf16.mxu1 %v19729_v43  ;;  %v19774_v19 = vld [vmem:[#allocation2 + $0x2a44] ss:$28 sps:$4 sm:$0xff]   ;;  %v19780_v43 = vld [vmem:[#allocation2 + $0x2a7c] ss:$28 sps:$4 sm:$0xff]  }
 0x5a1   :  { %v19772_v24 = vld [vmem:[#allocation2 + $0x2a40] ss:$28 sps:$4 sm:$0xff]  }
 0x5a2   :  { %11180 = vmatpush1.bf16.msra.mxu0 %v19730_v44  ;;  %v19783_v44 = vld [vmem:[#allocation2 + $0x2314] ss:$28 sps:$4 sm:$0xff]  }
 0x5a3   :  { %11260 = vmatpush1.bf16.msra.mxu1 %v19727_v27  ;;  %11181 = vmatprep.subr.bf16.mxu0 %v19738_v32  ;;  %v19778_v27 = vld [vmem:[#allocation2 + $0x2a78] ss:$28 sps:$4 sm:$0xff]   ;;  %v19781_v32 = vld [vmem:[#allocation2 + $0x2310] ss:$28 sps:$4 sm:$0xff]  }
 0x5a4   :  { %11261 = vmatprep.subr.bf16.mxu1 %v19735_v11  ;;  %v19792_v11 = vld [vmem:[#allocation2 + $0x2ab4] ss:$28 sps:$4 sm:$0xff]  }
 0x5a6   :  { %11182 = vmatpush1.bf16.msra.mxu0 %v19736_v36  ;;  %v19786_v36 = vld [vmem:[#allocation2 + $0x234c] ss:$28 sps:$4 sm:$0xff]  }
 0x5a7   :  { %11262 = vmatpush1.bf16.msra.mxu1 %v19733_v61  ;;  %11183 = vmatprep.subr.bf16.mxu0 %v19744_v17  ;;  %v19790_v61 = vld [vmem:[#allocation2 + $0x2ab0] ss:$28 sps:$4 sm:$0xff]   ;;  %v19784_v17 = vld [vmem:[#allocation2 + $0x2348] ss:$28 sps:$4 sm:$0xff]  }
 0x5a8   :  { %11263 = vmatprep.subr.bf16.mxu1 %v19741_v4  ;;  %v19796_v4 = vld [vmem:[#allocation2 + $0x2200] ss:$28 sps:$4 sm:$0xff]  }
 0x5aa   :  { %11184 = vmatpush1.bf16.msra.mxu0 %v19742_v56  ;;  %v19787_v56 = vld [vmem:[#allocation2 + $0x2380] ss:$28 sps:$4 sm:$0xff]  }
 0x5ab   :  { %11264 = vmatpush1.bf16.msra.mxu1 %v19739_v46  ;;  %11185 = vmatprep.subr.bf16.mxu0 %v19750_v1  ;;  %v19789_v46 = vld [vmem:[#allocation2 + $0x2384] ss:$28 sps:$4 sm:$0xff]   ;;  %v19793_v1 = vld [vmem:[#allocation2 + $0x23b8] ss:$28 sps:$4 sm:$0xff]  }
 0x5ac   :  { %11265 = vmatprep.subr.bf16.mxu1 %v19747_v30  ;;  %v19795_v30 = vld [vmem:[#allocation2 + $0x23bc] ss:$28 sps:$4 sm:$0xff]  }
 0x5ae   :  { %11186 = vmatpush1.bf16.msra.mxu0 %v19748_v33  ;;  %v19800_v33 = vld [vmem:[#allocation2 + $0x23f4] ss:$28 sps:$4 sm:$0xff]  }
 0x5af   :  { %11266 = vmatpush1.bf16.msra.mxu1 %v19745_v53  ;;  %11187 = vmatprep.subr.bf16.mxu0 %v19756_v45  ;;  %v19797_v53 = vld [vmem:[#allocation2 + $0x2040] ss:$28 sps:$4 sm:$0xff]   ;;  %v19798_v45 = vld [vmem:[#allocation2 + $0x23f0] ss:$28 sps:$4 sm:$0xff]  }
 0x5b0   :  { %11267 = vmatprep.subr.bf16.mxu1 %v19753_v3  ;;  %v19801_v3 = vld [vmem:[#allocation2 + $0x2238] ss:$28 sps:$4 sm:$0xff]  }
 0x5b2   :  { %11188 = vmatpush1.bf16.msra.mxu0 %v19754_v20  ;;  %v19805_v20 = vld [vmem:[#allocation2 + $0x242c] ss:$28 sps:$4 sm:$0xff]  }
 0x5b3   :  { %11268 = vmatpush1.bf16.msra.mxu1 %v19751_v31  ;;  %11189 = vmatprep.subr.bf16.mxu0 %v19762_v63  ;;  %v19802_v31 = vld [vmem:[#allocation2 + $0x2078] ss:$28 sps:$4 sm:$0xff]   ;;  %v19803_v63 = vld [vmem:[#allocation2 + $0x2428] ss:$28 sps:$4 sm:$0xff]  }
 0x5b4   :  { %11269 = vmatprep.subr.bf16.mxu1 %v19759_v29  ;;  %v19806_v29 = vld [vmem:[#allocation2 + $0x2270] ss:$28 sps:$4 sm:$0xff]  }
 0x5b6   :  { %11190 = vmatpush1.bf16.msra.mxu0 %v19760_v10  ;;  %v19811_v10 = vld [vmem:[#allocation2 + $0x22a8] ss:$28 sps:$4 sm:$0xff]  }
 0x5b7   :  { %11270 = vmatpush1.bf16.msra.mxu1 %v19757_v50  ;;  %11191 = vmatprep.subr.bf16.mxu0 %v19768_v40  ;;  %v19807_v50 = vld [vmem:[#allocation2 + $0x20b0] ss:$28 sps:$4 sm:$0xff]  }
 0x5b8   :  { %11271 = vmatprep.subr.bf16.mxu1 %v19765_v9 }
 0x5ba   :  { %11192 = vmatpush1.bf16.msra.mxu0 %v19766_v13 }
 0x5bb   :  { %11272 = vmatpush1.bf16.msra.mxu1 %v19763_v57  ;;  %11193 = vmatprep.subr.bf16.mxu0 %v19774_v19 }
 0x5bc   :  { %11273 = vmatprep.subr.bf16.mxu1 %v19771_v58  ;;  %v19812_v58 = vld [vmem:[#allocation2 + $0x20e8] ss:$28 sps:$4 sm:$0xff]  }
 0x5be   :  { %11194 = vmatpush1.bf16.msra.mxu0 %v19772_v24  ;;  %v19821_v24 = vld [vmem:[#allocation2 + $0x2318] ss:$28 sps:$4 sm:$0xff]  }
 0x5bf   :  { %11274 = vmatpush1.bf16.msra.mxu1 %v19769_v25  ;;  %11195 = vmatprep.subr.bf16.mxu0 %v19780_v43  ;;  %v19831_v43 = vld [vmem:[#allocation2 + $0x2388] ss:$28 sps:$4 sm:$0xff]  }
 0x5c0   :  { %11275 = vmatprep.subr.bf16.mxu1 %v19777_v18  ;;  %v19826_v18 = vld [vmem:[#allocation2 + $0x2350] ss:$28 sps:$4 sm:$0xff]  }
 0x5c2   :  { %11196 = vmatpush1.bf16.msra.mxu0 %v19778_v27  ;;  %v19832_v27 = vld [vmem:[#allocation2 + $0x21c8] ss:$28 sps:$4 sm:$0xff]  }
 0x5c3   :  { %11276 = vmatpush1.bf16.msra.mxu1 %v19775_v55  ;;  %11208 = vmatprep.subr.bf16.mxu0 %v19792_v11  ;;  %v19828_v55 = vld [vmem:[#allocation2 + $0x2540] ss:$28 sps:$4 sm:$0xff]  }
 0x5c4   :  { %11277 = vmatprep.subr.bf16.mxu1 %v19783_v44  ;;  %v19835_v44 = vld [vmem:[#allocation2 + $0x257c] ss:$28 sps:$4 sm:$0xff]  }
 0x5c5   :  { %11198 = vmatmul.mubr.bf16.vlgmr.msra.gmra.mrb[36].mxu0 %v21611_v16  ;;  %v19836_v11 = vld [vmem:[#allocation2 + $0x2580] ss:$28 sps:$4 sm:$0xff]  }
 0x5c6   :  { %11209 = vmatpush1.bf16.msra.mxu0 %v19790_v61  ;;  %11240 = vmatprep.mubr.bf16.mxu0 %v20938_v0  ;;  %v19837_v61 = vld [vmem:[#allocation2 + $0x23c0] ss:$28 sps:$4 sm:$0xff]  }
 0x5c7   :  { %11278 = vmatpush1.bf16.msra.mxu1 %v19781_v32  ;;  %17588 = vmatprep.subr.bf16.mxu0 %v19796_v4  ;;  %v19833_v32 = vld [vmem:[#allocation2 + $0x2578] ss:$28 sps:$4 sm:$0xff]  }
 0x5c8   :  { %11279 = vmatprep.subr.bf16.mxu1 %v19786_v36  ;;  %v19840_v36 = vld [vmem:[#allocation2 + $0x25b4] ss:$28 sps:$4 sm:$0xff]  }
 0x5c9   :  { %v19841_v4 = vld [vmem:[#allocation2 + $0x25b8] ss:$28 sps:$4 sm:$0xff]  }
 0x5cb   :  { %11280 = vmatpush1.bf16.msra.mxu1 %v19784_v17  ;;  %v20688_v17 = vld [vmem:[%s21843_s0] ss:$28 sps:$4 sm:$0xff]  }
 0x5cc   :  { %11281 = vmatprep.subr.bf16.mxu1 %v19789_v46  ;;  %v19838_v46 = vld [vmem:[#allocation2 + $0x25b0] ss:$28 sps:$4 sm:$0xff]  }
 0x5cf   :  { %11282 = vmatpush1.bf16.msra.mxu1 %v19787_v56  ;;  %v19842_v56 = vld [vmem:[#allocation2 + $0x23f8] ss:$28 sps:$4 sm:$0xff]  }
 0x5d0   :  { %11294 = vmatprep.subr.bf16.mxu1 %v19795_v30  ;;  %v19845_v30 = vld [vmem:[#allocation2 + $0x25ec] ss:$28 sps:$4 sm:$0xff]  }
 0x5d1   :  { %16898 = vmatmul.mubr.msk.bf16.vlgmr.msra.gmra.mrb[36].mxu0 %vm2364_vm0, %v21620_v12 }
 0x5d2   :  { %11284 = vmatmul.mubr.bf16.vlgmr.msra.gmra.mrb[60].mxu1 %v21532_v49  ;;  %17589 = vmatpush3.bf16.msra.mxu0 %v19797_v53  ;;  %v19810_v49 = vld [vmem:[#allocation2 + $0x2464] ss:$28 sps:$4 sm:$0xff]   ;;  %v20689_v53 = vld [vmem:[%s21843_s0 + $0xc] ss:$28 sps:$4 sm:$0xff]  }
 0x5d3   :  { %11295 = vmatpush1.bf16.msra.mxu1 %v19793_v1  ;;  %17590 = vmatprep.subr.bf16.mxu0 %v19801_v3  ;;  %v19846_v1 = vld [vmem:[#allocation2 + $0x25f0] ss:$28 sps:$4 sm:$0xff]  }
 0x5d4   :  { %11296 = vmatprep.subr.bf16.mxu1 %v19800_v33  ;;  %11455 = vmatprep.mubr.bf16.mxu0 %v21628_v6  ;;  %v19808_v6 = vld [vmem:[#allocation2 + $0x2460] ss:$28 sps:$4 sm:$0xff]   ;;  %v19843_v33 = vld [vmem:[#allocation2 + $0x25e8] ss:$28 sps:$4 sm:$0xff]   ;;  %v19847_v3 = vld [vmem:[#allocation2 + $0x2430] ss:$28 sps:$4 sm:$0xff]  }
 0x5d5   :  { %11326 = vmatprep.mubr.bf16.mxu1 %v21540_v54 }
 0x5d6   :  { %17591 = vmatpush3.bf16.msra.mxu0 %v19802_v31  ;;  %v19851_v31 = vld [vmem:[#allocation2 + $0x2628] ss:$28 sps:$4 sm:$0xff]  }
 0x5d7   :  { %11297 = vmatpush1.bf16.msra.mxu1 %v19798_v45  ;;  %17592 = vmatprep.subr.bf16.mxu0 %v19806_v29  ;;  %v19850_v45 = vld [vmem:[#allocation2 + $0x2624] ss:$28 sps:$4 sm:$0xff]  }
 0x5d8   :  { %11298 = vmatprep.subr.bf16.mxu1 %v19805_v20  ;;  %v8563_v9 = vpop.f32.mrb[32].mxu0  ;;  %v19848_v20 = vld [vmem:[#allocation2 + $0x2620] ss:$28 sps:$4 sm:$0xff]   ;;  %v19852_v29 = vld [vmem:[#allocation2 + $0x2468] ss:$28 sps:$4 sm:$0xff]  }
 0x5d9   :  { %v21652_v40 = vmax.f32 %v5889_v42, %v8563_v9  ;;  %v8565_v57 = vpop.f32.mrb[33].mxu0  ;;  %v19816_v42 = vld [vmem:[#allocation2 + $0x22e0] ss:$28 sps:$4 sm:$0xff]   ;;  %v19860_v9 = vld [vmem:[#allocation2 + $0x2694] ss:$28 sps:$4 sm:$0xff]  }
 0x5da   :  { %17593 = vmatpush3.bf16.msra.mxu0 %v19807_v50  ;;  %v21657_v54 = vmax.f32 %v5890_v62, %v8565_v57  ;;  %v8567_v13 = vpop.f32.mrb[34].mxu0  ;;  %v19820_v62 = vld [vmem:[#allocation2 + $0x24d4] ss:$28 sps:$4 sm:$0xff]   ;;  %v19856_v50 = vld [vmem:[#allocation2 + $0x2660] ss:$28 sps:$4 sm:$0xff]  }
 0x5db   :  { %11299 = vmatpush1.bf16.msra.mxu1 %v19803_v63  ;;  %v21662_v19 = vmax.f32 %v5896_v7, %v8567_v13  ;;  %v8569_v21 = vpop.f32.mrb[35].mxu0  ;;  %17594 = vmatprep.subr.bf16.mxu0 %v19811_v10  ;;  %v19825_v7 = vld [vmem:[#allocation2 + $0x250c] ss:$28 sps:$4 sm:$0xff]   ;;  %v19855_v63 = vld [vmem:[#allocation2 + $0x265c] ss:$28 sps:$4 sm:$0xff]  }
 0x5dc   :  { %11300 = vmatprep.subr.bf16.mxu1 %v19810_v49  ;;  %v21667_v25 = vmax.f32 %v5897_v15, %v8569_v21  ;;  %v19830_v15 = vld [vmem:[#allocation2 + $0x2544] ss:$28 sps:$4 sm:$0xff]   ;;  %v19853_v49 = vld [vmem:[#allocation2 + $0x2658] ss:$28 sps:$4 sm:$0xff]   ;;  %v19866_v21 = vld [vmem:[#allocation2 + $0x26d0] ss:$28 sps:$4 sm:$0xff]  }
 0x5dd   :  { %v19857_v10 = vld [vmem:[#allocation2 + $0x24a0] ss:$28 sps:$4 sm:$0xff]   ;;  %v19861_v57 = vld [vmem:[#allocation2 + $0x2698] ss:$28 sps:$4 sm:$0xff]  }
 0x5de   :  { %17595 = vmatpush3.bf16.msra.mxu0 %v19812_v58  ;;  %v19862_v13 = vld [vmem:[#allocation2 + $0x24d8] ss:$28 sps:$4 sm:$0xff]   ;;  %v19865_v58 = vld [vmem:[#allocation2 + $0x26cc] ss:$28 sps:$4 sm:$0xff]  }
 0x5df   :  { %11301 = vmatpush1.bf16.msra.mxu1 %v19808_v6  ;;  %17596 = vmatprep.subr.bf16.mxu0 %v19816_v42  ;;  %v19858_v6 = vld [vmem:[#allocation2 + $0x2690] ss:$28 sps:$4 sm:$0xff]  }
 0x5e0   :  { %11302 = vmatprep.subr.bf16.mxu1 %v19815_v59  ;;  %v19863_v59 = vld [vmem:[#allocation2 + $0x26c8] ss:$28 sps:$4 sm:$0xff]   ;;  %v19867_v42 = vld [vmem:[#allocation2 + $0x2510] ss:$28 sps:$4 sm:$0xff]  }
 0x5e2   :  { %17597 = vmatpush3.bf16.msra.mxu0 %v19817_v8  ;;  %v19871_v8 = vld [vmem:[#allocation2 + $0x2708] ss:$28 sps:$4 sm:$0xff]  }
 0x5e3   :  { %11303 = vmatpush1.bf16.msra.mxu1 %v19813_v47  ;;  %17598 = vmatprep.subr.bf16.mxu0 %v19821_v24  ;;  %v19870_v47 = vld [vmem:[#allocation2 + $0x2704] ss:$28 sps:$4 sm:$0xff]  }
 0x5e4   :  { %11304 = vmatprep.subr.bf16.mxu1 %v19820_v62  ;;  %v19868_v62 = vld [vmem:[#allocation2 + $0x2700] ss:$28 sps:$4 sm:$0xff]   ;;  %v19872_v24 = vld [vmem:[#allocation2 + $0x2548] ss:$28 sps:$4 sm:$0xff]  }
 0x5e6   :  { %17599 = vmatpush3.bf16.msra.mxu0 %v19822_v48  ;;  %v19876_v48 = vld [vmem:[#allocation2 + $0x2900] ss:$28 sps:$4 sm:$0xff]  }
 0x5e7   :  { %11305 = vmatpush1.bf16.msra.mxu1 %v19818_v51  ;;  %17600 = vmatprep.subr.bf16.mxu0 %v19826_v18  ;;  %v19875_v51 = vld [vmem:[#allocation2 + $0x273c] ss:$28 sps:$4 sm:$0xff]  }
 0x5e8   :  { %11306 = vmatprep.subr.bf16.mxu1 %v19825_v7  ;;  %v19873_v7 = vld [vmem:[#allocation2 + $0x2738] ss:$28 sps:$4 sm:$0xff]   ;;  %v19877_v18 = vld [vmem:[#allocation2 + $0x2740] ss:$28 sps:$4 sm:$0xff]  }
 0x5ea   :  { %17601 = vmatpush3.bf16.msra.mxu0 %v19827_v37  ;;  %v19881_v37 = vld [vmem:[#allocation2 + $0x2938] ss:$28 sps:$4 sm:$0xff]  }
 0x5eb   :  { %11307 = vmatpush1.bf16.msra.mxu1 %v19823_v2  ;;  %17602 = vmatprep.subr.bf16.mxu0 %v19831_v43  ;;  %v19880_v2 = vld [vmem:[#allocation2 + $0x2774] ss:$28 sps:$4 sm:$0xff]  }
 0x5ec   :  { %11308 = vmatprep.subr.bf16.mxu1 %v19830_v15  ;;  %v19878_v15 = vld [vmem:[#allocation2 + $0x2770] ss:$28 sps:$4 sm:$0xff]   ;;  %v19882_v43 = vld [vmem:[#allocation2 + $0x2778] ss:$28 sps:$4 sm:$0xff]  }
 0x5ee   :  { %17603 = vmatpush3.bf16.msra.mxu0 %v19832_v27  ;;  %v19886_v27 = vld [vmem:[#allocation2 + $0x2970] ss:$28 sps:$4 sm:$0xff]  }
 0x5ef   :  { %11309 = vmatpush1.bf16.msra.mxu1 %v19828_v55  ;;  %17610 = vmatprep.subr.bf16.mxu0 %v19836_v11  ;;  %v19885_v55 = vld [vmem:[#allocation2 + $0x27ac] ss:$28 sps:$4 sm:$0xff]  }
 0x5f0   :  { %11310 = vmatprep.subr.bf16.mxu1 %v19835_v44  ;;  %v19883_v44 = vld [vmem:[#allocation2 + $0x27a8] ss:$28 sps:$4 sm:$0xff]   ;;  %v19887_v11 = vld [vmem:[#allocation2 + $0x27b0] ss:$28 sps:$4 sm:$0xff]  }
 0x5f1   :  { %11456 = vmatmul.mubr.bf16.vlgmr.msra.gmra.mrb[40].mxu0 %v20688_v17  ;;  %v19896_v17 = vld [vmem:[#allocation2 + $0x29e0] ss:$28 sps:$4 sm:$0xff]  }
 0x5f2   :  { %17611 = vmatpush3.bf16.msra.mxu0 %v19837_v61  ;;  %11496 = vmatprep.mubr.bf16.mxu0 %v20689_v53  ;;  %v19888_v61 = vld [vmem:[#allocation2 + $0x27e0] ss:$28 sps:$4 sm:$0xff]   ;;  %v19902_v53 = vld [vmem:[#allocation2 + $0x2858] ss:$28 sps:$4 sm:$0xff]  }
 0x5f3   :  { %11311 = vmatpush1.bf16.msra.mxu1 %v19833_v32  ;;  %17612 = vmatprep.subr.bf16.mxu0 %v19841_v4  ;;  %v19890_v32 = vld [vmem:[#allocation2 + $0x27e4] ss:$28 sps:$4 sm:$0xff]   ;;  %v19895_v4 = vld [vmem:[#allocation2 + $0x281c] ss:$28 sps:$4 sm:$0xff]  }
 0x5f4   :  { %11312 = vmatprep.subr.bf16.mxu1 %v19840_v36  ;;  %v19892_v36 = vld [vmem:[#allocation2 + $0x27e8] ss:$28 sps:$4 sm:$0xff]  }
 0x5f6   :  { %17613 = vmatpush3.bf16.msra.mxu0 %v19842_v56  ;;  %v19900_v56 = vld [vmem:[#allocation2 + $0x2854] ss:$28 sps:$4 sm:$0xff]  }
 0x5f7   :  { %11313 = vmatpush1.bf16.msra.mxu1 %v19838_v46  ;;  %17614 = vmatprep.subr.bf16.mxu0 %v19846_v1  ;;  %v19893_v46 = vld [vmem:[#allocation2 + $0x2818] ss:$28 sps:$4 sm:$0xff]   ;;  %v19898_v1 = vld [vmem:[#allocation2 + $0x2850] ss:$28 sps:$4 sm:$0xff]  }
 0x5f8   :  { %11314 = vmatprep.subr.bf16.mxu1 %v19845_v30  ;;  %v19901_v30 = vld [vmem:[#allocation2 + $0x2a18] ss:$28 sps:$4 sm:$0xff]  }
 0x5fa   :  { %17615 = vmatpush3.bf16.msra.mxu0 %v19847_v3  ;;  %v19906_v3 = vld [vmem:[#allocation2 + $0x2a50] ss:$28 sps:$4 sm:$0xff]  }
 0x5fb   :  { %11315 = vmatpush1.bf16.msra.mxu1 %v19843_v33  ;;  %17616 = vmatprep.subr.bf16.mxu0 %v19851_v31  ;;  %v19905_v33 = vld [vmem:[#allocation2 + $0x288c] ss:$28 sps:$4 sm:$0xff]  }
 0x5fc   :  { %11316 = vmatprep.subr.bf16.mxu1 %v19850_v45  ;;  %v19903_v45 = vld [vmem:[#allocation2 + $0x2888] ss:$28 sps:$4 sm:$0xff]   ;;  %v19907_v31 = vld [vmem:[#allocation2 + $0x2890] ss:$28 sps:$4 sm:$0xff]  }
 0x5fe   :  { %17617 = vmatpush3.bf16.msra.mxu0 %v19852_v29  ;;  %v19911_v29 = vld [vmem:[#allocation2 + $0x2a88] ss:$28 sps:$4 sm:$0xff]  }
 0x5ff   :  { %11317 = vmatpush1.bf16.msra.mxu1 %v19848_v20  ;;  %17618 = vmatprep.subr.bf16.mxu0 %v19856_v50  ;;  %v19910_v20 = vld [vmem:[#allocation2 + $0x28c4] ss:$28 sps:$4 sm:$0xff]  }
 0x600   :  { %11318 = vmatprep.subr.bf16.mxu1 %v19855_v63  ;;  %v19908_v63 = vld [vmem:[#allocation2 + $0x28c0] ss:$28 sps:$4 sm:$0xff]   ;;  %v19912_v50 = vld [vmem:[#allocation2 + $0x28c8] ss:$28 sps:$4 sm:$0xff]  }
 0x602   :  { %17619 = vmatpush3.bf16.msra.mxu0 %v19857_v10  ;;  %v19913_v10 = vld [vmem:[#allocation2 + $0x28f8] ss:$28 sps:$4 sm:$0xff]  }
 0x603   :  { %11319 = vmatpush1.bf16.msra.mxu1 %v19853_v49  ;;  %17620 = vmatprep.subr.bf16.mxu0 %v19861_v57  ;;  %v19915_v49 = vld [vmem:[#allocation2 + $0x28fc] ss:$28 sps:$4 sm:$0xff]   ;;  %v19918_v57 = vld [vmem:[#allocation2 + $0x2934] ss:$28 sps:$4 sm:$0xff]  }
 0x604   :  { %11320 = vmatprep.subr.bf16.mxu1 %v19860_v9  ;;  %v19919_v9 = vld [vmem:[#allocation2 + $0x2ac0] ss:$28 sps:$4 sm:$0xff]  }
 0x606   :  { %17621 = vmatpush3.bf16.msra.mxu0 %v19862_v13  ;;  %v19916_v13 = vld [vmem:[#allocation2 + $0x2930] ss:$28 sps:$4 sm:$0xff]  }
 0x607   :  { %11321 = vmatpush1.bf16.msra.mxu1 %v19858_v6  ;;  %17622 = vmatprep.subr.bf16.mxu0 %v19866_v21  ;;  %v19925_v6 = vld [vmem:[#allocation6 + $0x4] ss:$8 sps:$4 sm:$0xff]   ;;  %v19920_v21 = vld [vmem:[#allocation2 + $0x2968] ss:$28 sps:$4 sm:$0xff]  }
 0x608   :  { %11322 = vmatprep.subr.bf16.mxu1 %v19865_v58  ;;  %v19922_v58 = vld [vmem:[#allocation2 + $0x296c] ss:$28 sps:$4 sm:$0xff]  }
 0x60a   :  { %17623 = vmatpush3.bf16.msra.mxu0 %v19867_v42  ;;  %v19928_v42 = vld [vmem:[#allocation2 + $0x29a4] ss:$28 sps:$4 sm:$0xff]  }
 0x60b   :  { %11323 = vmatpush1.bf16.msra.mxu1 %v19863_v59  ;;  %17624 = vmatprep.subr.bf16.mxu0 %v19871_v8  ;;  %v19923_v59 = vld [vmem:[#allocation6] ss:$8 sps:$4 sm:$0xff]   ;;  %v19926_v8 = vld [vmem:[#allocation2 + $0x29a0] ss:$28 sps:$4 sm:$0xff]  }
 0x60c   :  { %11324 = vmatprep.subr.bf16.mxu1 %v19870_v47  ;;  %v19931_v47 = vld [vmem:[#allocation6 + $0x14] ss:$8 sps:$4 sm:$0xff]  }
 0x60e   :  { %17625 = vmatpush3.bf16.msra.mxu0 %v19872_v24  ;;  %v19934_v24 = vld [vmem:[#allocation2 + $0x29dc] ss:$28 sps:$4 sm:$0xff]  }
 0x60f   :  { %11325 = vmatpush1.bf16.msra.mxu1 %v19868_v62  ;;  %17632 = vmatprep.subr.bf16.mxu0 %v19876_v48  ;;  %v19929_v62 = vld [vmem:[#allocation6 + $0x10] ss:$8 sps:$4 sm:$0xff]  }
 0x610   :  { %11337 = vmatprep.subr.bf16.mxu1 %v19875_v51  ;;  %v19937_v51 = vld [vmem:[#allocation6 + $0x24] ss:$8 sps:$4 sm:$0xff]  }
 0x611   :  { %11497 = vmatmul.mubr.bf16.vlgmr.msra.gmra.mrb[44].mxu0 %v21587_v35  ;;  %v19932_v48 = vld [vmem:[#allocation2 + $0x29d8] ss:$28 sps:$4 sm:$0xff]  }
 0x612   :  { %11327 = vmatmul.mubr.bf16.vlgmr.msra.gmra.mrb[60].mxu1 %v21587_v35  ;;  %17633 = vmatpush3.bf16.msra.mxu0 %v19877_v18  ;;  %v19891_v35 = vld [vmem:[#allocation2 + $0x29a8] ss:$28 sps:$4 sm:$0xff]   ;;  %v19940_v18 = vld [vmem:[#allocation2 + $0x2a14] ss:$28 sps:$4 sm:$0xff]  }
 0x613   :  { %11338 = vmatpush1.bf16.msra.mxu1 %v19873_v7  ;;  %17634 = vmatprep.subr.bf16.mxu0 %v19881_v37  ;;  %v19935_v7 = vld [vmem:[#allocation6 + $0x20] ss:$8 sps:$4 sm:$0xff]  }
 0x614   :  { %11339 = vmatprep.subr.bf16.mxu1 %v19880_v2  ;;  %11537 = vmatprep.mubr.bf16.mxu0 %v21594_v38  ;;  %v19943_v2 = vld [vmem:[#allocation6 + $0x34] ss:$8 sps:$4 sm:$0xff]   ;;  %v19938_v37 = vld [vmem:[#allocation2 + $0x2a10] ss:$28 sps:$4 sm:$0xff]  }
 0x615   :  { %11369 = vmatprep.mubr.bf16.mxu1 %v21594_v38  ;;  %v19897_v38 = vld [vmem:[#allocation2 + $0x2820] ss:$28 sps:$4 sm:$0xff]  }
 0x616   :  { %17635 = vmatpush3.bf16.msra.mxu0 %v19882_v43  ;;  %v19946_v43 = vld [vmem:[#allocation2 + $0x2a4c] ss:$28 sps:$4 sm:$0xff]  }
 0x617   :  { %11340 = vmatpush1.bf16.msra.mxu1 %v19878_v15  ;;  %17636 = vmatprep.subr.bf16.mxu0 %v19886_v27  ;;  %v19941_v15 = vld [vmem:[#allocation6 + $0x30] ss:$8 sps:$4 sm:$0xff]   ;;  %v19944_v27 = vld [vmem:[#allocation2 + $0x2a48] ss:$28 sps:$4 sm:$0xff]  }
 0x618   :  { %11341 = vmatprep.subr.bf16.mxu1 %v19885_v55  ;;  %v19949_v55 = vld [vmem:[#allocation6 + $0x44] ss:$8 sps:$4 sm:$0xff]  }
 0x61a   :  { %17637 = vmatpush3.bf16.msra.mxu0 %v19887_v11  ;;  %v19952_v11 = vld [vmem:[#allocation2 + $0x2a84] ss:$28 sps:$4 sm:$0xff]  }
 0x61b   :  { %11342 = vmatpush1.bf16.msra.mxu1 %v19883_v44  ;;  %17638 = vmatprep.subr.bf16.mxu0 %v19891_v35  ;;  %v19947_v44 = vld [vmem:[#allocation6 + $0x40] ss:$8 sps:$4 sm:$0xff]   ;;  %v19950_v35 = vld [vmem:[#allocation2 + $0x2a80] ss:$28 sps:$4 sm:$0xff]  }
 0x61c   :  { %11343 = vmatprep.subr.bf16.mxu1 %v19890_v32  ;;  %v19955_v32 = vld [vmem:[#allocation6 + $0x54] ss:$8 sps:$4 sm:$0xff]  }
 0x61e   :  { %17639 = vmatpush3.bf16.msra.mxu0 %v19892_v36  ;;  %v19958_v36 = vld [vmem:[#allocation2 + $0x2abc] ss:$28 sps:$4 sm:$0xff]  }
 0x61f   :  { %11344 = vmatpush1.bf16.msra.mxu1 %v19888_v61  ;;  %17640 = vmatprep.subr.bf16.mxu0 %v19896_v17  ;;  %v19953_v61 = vld [vmem:[#allocation6 + $0x50] ss:$8 sps:$4 sm:$0xff]  }
 0x620   :  { %11345 = vmatprep.subr.bf16.mxu1 %v19895_v4  ;;  %v19961_v4 = vld [vmem:[#allocation6 + $0x64] ss:$8 sps:$4 sm:$0xff]  }
 0x621   :  { %v19956_v17 = vld [vmem:[#allocation2 + $0x2ab8] ss:$28 sps:$4 sm:$0xff]  }
 0x622   :  { %17641 = vmatpush3.bf16.msra.mxu0 %v19897_v38  ;;  %v19964_v38 = vld [vmem:[#allocation6 + $0x74] ss:$8 sps:$4 sm:$0xff]  }
 0x623   :  { %11346 = vmatpush1.bf16.msra.mxu1 %v19893_v46  ;;  %17642 = vmatprep.subr.bf16.mxu0 %v19901_v30  ;;  %v19959_v46 = vld [vmem:[#allocation6 + $0x60] ss:$8 sps:$4 sm:$0xff]   ;;  %v19962_v30 = vld [vmem:[#allocation6 + $0x70] ss:$8 sps:$4 sm:$0xff]  }
 0x624   :  { %11347 = vmatprep.subr.bf16.mxu1 %v19900_v56  ;;  %v19970_v56 = vld [vmem:[#allocation6 + $0x384] ss:$8 sps:$4 sm:$0xff]  }
 0x626   :  { %17643 = vmatpush3.bf16.msra.mxu0 %v19902_v53  ;;  %v19965_v53 = vld [vmem:[#allocation6 + $0x80] ss:$8 sps:$4 sm:$0xff]  }
 0x627   :  { %11348 = vmatpush1.bf16.msra.mxu1 %v19898_v1  ;;  %17644 = vmatprep.subr.bf16.mxu0 %v19906_v3  ;;  %v19967_v1 = vld [vmem:[#allocation6 + $0x84] ss:$8 sps:$4 sm:$0xff]   ;;  %v11603_v3 = vlaneseq }
 0x628   :  { %11349 = vmatprep.subr.bf16.mxu1 %v19905_v33  ;;  %v19973_v33 = vld [vmem:[#allocation6 + $0x94] ss:$8 sps:$4 sm:$0xff]  }
 0x62a   :  { %17645 = vmatpush3.bf16.msra.mxu0 %v19907_v31  ;;  %v19971_v31 = vld [vmem:[#allocation6 + $0x90] ss:$8 sps:$4 sm:$0xff]  }
 0x62b   :  { %11350 = vmatpush1.bf16.msra.mxu1 %v19903_v45  ;;  %17646 = vmatprep.subr.bf16.mxu0 %v19911_v29  ;;  %v19968_v45 = vld [vmem:[#allocation6 + $0x380] ss:$8 sps:$4 sm:$0xff]   ;;  %v19979_v29 = vld [vmem:[#allocation6 + $0xa4] ss:$8 sps:$4 sm:$0xff]  }
 0x62c   :  { %11351 = vmatprep.subr.bf16.mxu1 %v19910_v20  ;;  %v19976_v20 = vld [vmem:[#allocation6 + $0x394] ss:$8 sps:$4 sm:$0xff]  }
 0x62e   :  { %17647 = vmatpush3.bf16.msra.mxu0 %v19912_v50  ;;  %v19977_v50 = vld [vmem:[#allocation6 + $0xa0] ss:$8 sps:$4 sm:$0xff]  }
 0x62f   :  { %11352 = vmatpush1.bf16.msra.mxu1 %v19908_v63  ;;  %17714 = vmatprep.subr.bf16.mxu0 %v20939_v23  ;;  %v19974_v63 = vld [vmem:[#allocation6 + $0x390] ss:$8 sps:$4 sm:$0xff]  }
 0x630   :  { %11353 = vmatprep.subr.bf16.mxu1 %v19915_v49  ;;  %v19982_v49 = vld [vmem:[#allocation6 + $0x3a4] ss:$8 sps:$4 sm:$0xff]  }
 0x631   :  { %11538 = vmatmul.mubr.bf16.vlgmr.msra.gmra.mrb[48].mxu0 %v21611_v16 }
 0x632   :  { %17715 = vmatpush3.bf16.msra.mxu0 %v19919_v9  ;;  %17716 = vmatprep.mubr.msk.bf16.mxu0 %vm20940_vm1, %v20939_v23  ;;  %v19985_v9 = vld [vmem:[#allocation6 + $0xb4] ss:$8 sps:$4 sm:$0xff]  }
 0x633   :  { %11354 = vmatpush1.bf16.msra.mxu1 %v19913_v10  ;;  %12345 = vmatprep.subr.bf16.mxu0 %v19925_v6 }
 0x634   :  { %11355 = vmatprep.subr.bf16.mxu1 %v19918_v57  ;;  %v21692_v57 = vld [vmem:[#allocation4] sm:$0xff] }
 0x637   :  { %11356 = vmatpush1.bf16.msra.mxu1 %v19916_v13  ;;  %v19980_v13 = vld [vmem:[#allocation6 + $0x3a0] ss:$8 sps:$4 sm:$0xff]  }
 0x638   :  { %11357 = vmatprep.subr.bf16.mxu1 %v19922_v58  ;;  %v19983_v58 = vld [vmem:[#allocation6 + $0xb0] ss:$8 sps:$4 sm:$0xff]  }
 0x639   :  { %17717 = vmatmul.mubr.msk.bf16.vlgmr.msra.gmra.mrb[52].mxu0 %vm2364_vm0, %v21620_v12 }
 0x63a   :  { %12346 = vmatpush1.bf16.msra.mxu0 %v19923_v59  ;;  %v19991_v59 = vld [vmem:[#allocation6 + $0xc4] ss:$8 sps:$4 sm:$0xff]  }
 0x63b   :  { %11358 = vmatpush1.bf16.msra.mxu1 %v19920_v21  ;;  %12347 = vmatprep.subr.bf16.mxu0 %v19931_v47  ;;  %v19988_v21 = vld [vmem:[#allocation6 + $0x3b4] ss:$8 sps:$4 sm:$0xff]  }
 0x63c   :  { %11359 = vmatprep.subr.bf16.mxu1 %v19928_v42 }
 0x63e   :  { %12348 = vmatpush1.bf16.msra.mxu0 %v19929_v62 }
 0x63f   :  { %11360 = vmatpush1.bf16.msra.mxu1 %v19926_v8  ;;  %12349 = vmatprep.subr.bf16.mxu0 %v19937_v51 }
 0x640   :  { %11361 = vmatprep.subr.bf16.mxu1 %v19934_v24 }
 0x642   :  { %12350 = vmatpush1.bf16.msra.mxu0 %v19935_v7  ;;  %v19989_v7 = vld [vmem:[#allocation6 + $0xc0] ss:$8 sps:$4 sm:$0xff]  }
 0x643   :  { %11362 = vmatpush1.bf16.msra.mxu1 %v19932_v48  ;;  %12351 = vmatprep.subr.bf16.mxu0 %v19943_v2  ;;  %v19986_v48 = vld [vmem:[#allocation6 + $0x3b0] ss:$8 sps:$4 sm:$0xff]  }
 0x644   :  { %11363 = vmatprep.subr.bf16.mxu1 %v19940_v18 }
 0x646   :  { %12352 = vmatpush1.bf16.msra.mxu0 %v19941_v15  ;;  %v19994_v15 = vld [vmem:[#allocation6 + $0x3c4] ss:$8 sps:$4 sm:$0xff]  }
 0x647   :  { %11364 = vmatpush1.bf16.msra.mxu1 %v19938_v37  ;;  %12353 = vmatprep.subr.bf16.mxu0 %v19949_v55 }
 0x648   :  { %11365 = vmatprep.subr.bf16.mxu1 %v19946_v43  ;;  %v19997_v43 = vld [vmem:[#allocation6 + $0xd4] ss:$8 sps:$4 sm:$0xff]  }
 0x64a   :  { %12354 = vmatpush1.bf16.msra.mxu0 %v19947_v44 }
 0x64b   :  { %11366 = vmatpush1.bf16.msra.mxu1 %v19944_v27  ;;  %12355 = vmatprep.subr.bf16.mxu0 %v19955_v32 }
 0x64c   :  { %11367 = vmatprep.subr.bf16.mxu1 %v19952_v11  ;;  %v19995_v11 = vld [vmem:[#allocation6 + $0xd0] ss:$8 sps:$4 sm:$0xff]  }
 0x64e   :  { %12356 = vmatpush1.bf16.msra.mxu0 %v19953_v61  ;;  %v20000_v61 = vld [vmem:[#allocation6 + $0x3d4] ss:$8 sps:$4 sm:$0xff]  }
 0x64f   :  { %11368 = vmatpush1.bf16.msra.mxu1 %v19950_v35  ;;  %12357 = vmatprep.subr.bf16.mxu0 %v19961_v4 }
 0x650   :  { %11380 = vmatprep.subr.bf16.mxu1 %v19958_v36 }
 0x652   :  { %11370 = vmatmul.mubr.bf16.vlgmr.msra.gmra.mrb[60].mxu1 %v21611_v16  ;;  %12358 = vmatpush1.bf16.msra.mxu0 %v19959_v46  ;;  %v21687_v16 = vshrl.u32 %v11603_v3, 7  ;;  %v20015_v3 = vld [vmem:[#allocation6 + $0x104] ss:$8 sps:$4 sm:$0xff]  }
 0x653   :  { %11381 = vmatpush1.bf16.msra.mxu1 %v19956_v17  ;;  %12359 = vmatprep.subr.bf16.mxu0 %v19964_v38  ;;  %v20001_v38 = vld [vmem:[#allocation6 + $0xe0] ss:$8 sps:$4 sm:$0xff]  }
 0x654   :  { %11412 = vmatprep.mubr.bf16.mxu1 %v20938_v0  ;;  %13190 = vmatprep.subr.bf16.mxu1 %v19970_v56  ;;  %v11605_v10 = vsub.s32 0, %v21687_v16  ;;  %v11609_v6 = vsub.s32 1, %v21687_v16  ;;  %v20006_v56 = vld [vmem:[#allocation6 + $0x3e4] ss:$8 sps:$4 sm:$0xff]  }
 0x656   :  { %12360 = vmatpush1.bf16.msra.mxu0 %v19962_v30  ;;  %v11610_v47 = vrot.slane %v21692_v57, %v11609_v6  ;;  %v20009_v30 = vld [vmem:[#allocation6 + $0xf4] ss:$8 sps:$4 sm:$0xff]  }
 0x657   :  { %12361 = vmatprep.subr.bf16.mxu0 %v19967_v1  ;;  %v20004_v1 = vld [vmem:[#allocation6 + $0x3e0] ss:$8 sps:$4 sm:$0xff]  }
 0x65a   :  { %12362 = vmatpush1.bf16.msra.mxu0 %v19965_v53  ;;  %v20007_v53 = vld [vmem:[#allocation6 + $0xf0] ss:$8 sps:$4 sm:$0xff]  }
 0x65b   :  { %12363 = vmatprep.subr.bf16.mxu0 %v19973_v33  ;;  %v20012_v33 = vld [vmem:[#allocation6 + $0x3f4] ss:$8 sps:$4 sm:$0xff]  }
 0x65e   :  { %16899 = vmatmul.mubr.msk.bf16.vlgmr.msra.gmra.mrb[60].mxu1 %vm2364_vm0, %v21620_v12  ;;  %12364 = vmatpush1.bf16.msra.mxu0 %v19971_v31  ;;  %v11606_v12 = vrot.slane %v21692_v57, %v11605_v10  ;;  %v20013_v31 = vld [vmem:[#allocation6 + $0x100] ss:$8 sps:$4 sm:$0xff]  }
 0x65f   :  { %13191 = vmatpush1.bf16.msra.mxu1 %v19968_v45  ;;  %12365 = vmatprep.subr.bf16.mxu0 %v19979_v29  ;;  %v20010_v45 = vld [vmem:[#allocation6 + $0x3f0] ss:$8 sps:$4 sm:$0xff]   ;;  %v20021_v29 = vld [vmem:[#allocation6 + $0x114] ss:$8 sps:$4 sm:$0xff]  }
 0x660   :  { %13192 = vmatprep.subr.bf16.mxu1 %v19976_v20  ;;  %v20018_v20 = vld [vmem:[#allocation6 + $0x404] ss:$8 sps:$4 sm:$0xff]  }
 0x662   :  { %12366 = vmatpush1.bf16.msra.mxu0 %v19977_v50  ;;  %v20019_v50 = vld [vmem:[#allocation6 + $0x110] ss:$8 sps:$4 sm:$0xff]  }
 0x663   :  { %13193 = vmatpush1.bf16.msra.mxu1 %v19974_v63  ;;  %12367 = vmatprep.subr.bf16.mxu0 %v19985_v9  ;;  %v20016_v63 = vld [vmem:[#allocation6 + $0x400] ss:$8 sps:$4 sm:$0xff]   ;;  %v20027_v9 = vld [vmem:[#allocation6 + $0x124] ss:$8 sps:$4 sm:$0xff]  }
 0x664   :  { %13194 = vmatprep.subr.bf16.mxu1 %v19982_v49  ;;  %v20024_v49 = vld [vmem:[#allocation6 + $0x414] ss:$8 sps:$4 sm:$0xff]  }
 0x665   :  { %v11070_v42 = vpop.f32.mrb[56].mxu1 }
 0x666   :  { %v11587_v8 = vmax.f32 %v21547_v5, %v11070_v42  ;;  %v11072_v62 = vpop.f32.mrb[57].mxu1  ;;  %12368 = vmatpush1.bf16.msra.mxu0 %v19983_v58  ;;  %v20025_v58 = vld [vmem:[#allocation6 + $0x120] ss:$8 sps:$4 sm:$0xff]   ;;  %v20031_v42 = vld [vmem:[#allocation6 + $0x130] ss:$8 sps:$4 sm:$0xff]  }
 0x667   :  { %13195 = vmatpush1.bf16.msra.mxu1 %v19980_v13  ;;  %v11588_v24 = vmax.f32 %v21552_v39, %v11072_v62  ;;  %v11074_v51 = vpop.f32.mrb[58].mxu1  ;;  %12369 = vmatprep.subr.bf16.mxu0 %v19991_v59  ;;  %v19992_v39 = vld [vmem:[#allocation6 + $0x3c0] ss:$8 sps:$4 sm:$0xff]   ;;  %v20022_v13 = vld [vmem:[#allocation6 + $0x410] ss:$8 sps:$4 sm:$0xff]  }
 0x668   :  { %v11638_v18 = vadd.f32 %v11606_v12, %v11587_v8  ;;  %v11594_v2 = vmax.f32 %v21557_v28, %v11074_v51  ;;  %v11076_v37 = vpop.f32.mrb[59].mxu1  ;;  %13196 = vmatprep.subr.bf16.mxu1 %v19988_v21  ;;  %v20003_v28 = vld [vmem:[#allocation6 + $0xe4] ss:$8 sps:$4 sm:$0xff]   ;;  %v20033_v21 = vld [vmem:[#allocation6 + $0x134] ss:$8 sps:$4 sm:$0xff]  }
 0x669   :  { %v11639_v55 = vadd.f32 %v11610_v47, %v11588_v24  ;;  %v11595_v27 = vmax.f32 %v21562_v26, %v11076_v37  ;;  %v19998_v26 = vld [vmem:[#allocation6 + $0x3d0] ss:$8 sps:$4 sm:$0xff]   ;;  %v20028_v59 = vld [vmem:[#allocation6 + $0x420] ss:$8 sps:$4 sm:$0xff]   ;;  %v20039_v8 = vld [vmem:[#allocation6 + $0x144] ss:$8 sps:$4 sm:$0xff]  }
 0x66a   :  { %v11645_v5 = vadd.f32 %v11606_v12, %v11594_v2  ;;  %12370 = vmatpush1.bf16.msra.mxu0 %v19989_v7  ;;  %v11652_v32 = vmax.f32 %v11638_v18, 0.0  ;;  %v20030_v12 = vld [vmem:[#allocation6 + $0x424] ss:$8 sps:$4 sm:$0xff]   ;;  %v20034_v62 = vld [vmem:[#allocation6 + $0x430] ss:$8 sps:$4 sm:$0xff]  }
 0x66b   :  { %v11646_v44 = vadd.f32 %v11610_v47, %v11595_v27  ;;  %13197 = vmatpush1.bf16.msra.mxu1 %v19986_v48  ;;  %12371 = vmatprep.subr.bf16.mxu0 %v19997_v43  ;;  %v11653_v36 = vmax.f32 %v11639_v55, 0.0  ;;  %v20036_v47 = vld [vmem:[#allocation6 + $0x434] ss:$8 sps:$4 sm:$0xff]   ;;  %v20037_v24 = vld [vmem:[#allocation6 + $0x140] ss:$8 sps:$4 sm:$0xff]  }
 0x66c   :  { %v11659_v35 = vmax.f32 %v11645_v5, 0.0  ;;  %13198 = vmatprep.subr.bf16.mxu1 %v19994_v15  ;;  %v20042_v51 = vld [vmem:[#allocation6 + $0x444] ss:$8 sps:$4 sm:$0xff]   ;;  %v20045_v48 = vld [vmem:[#allocation6 + $0x154] ss:$8 sps:$4 sm:$0xff]  }
 0x66d   :  { %v11660_v4 = vmax.f32 %v11646_v44, 0.0  ;;  %v20040_v7 = vld [vmem:[#allocation6 + $0x440] ss:$8 sps:$4 sm:$0xff]   ;;  %v20043_v18 = vld [vmem:[#allocation6 + $0x150] ss:$8 sps:$4 sm:$0xff]  }
 0x66e   :  { %v21705_v17 = vpack.c.bf16 %v11659_v35, %v11652_v32  ;;  %12372 = vmatpush1.bf16.msra.mxu0 %v19995_v11  ;;  %v20048_v2 = vld [vmem:[#allocation6 + $0x454] ss:$8 sps:$4 sm:$0xff]   ;;  %v20051_v37 = vld [vmem:[#allocation6 + $0x164] ss:$8 sps:$4 sm:$0xff]   ;;  %v20046_v15 = vld [vmem:[#allocation6 + $0x450] ss:$8 sps:$4 sm:$0xff]  }
 0x66f   :  { %v21707_v46 = vpack.c.bf16 %v11660_v4, %v11653_v36  ;;  %13199 = vmatpush1.bf16.msra.mxu1 %v19992_v39  ;;  %12373 = vmatprep.subr.bf16.mxu0 %v20003_v28  ;;  %v20049_v43 = vld [vmem:[#allocation6 + $0x160] ss:$8 sps:$4 sm:$0xff]   ;;  %v20054_v55 = vld [vmem:[#allocation6 + $0x464] ss:$8 sps:$4 sm:$0xff]   ;;  %v20057_v27 = vld [vmem:[#allocation6 + $0x174] ss:$8 sps:$4 sm:$0xff]  }
 0x670   :  { %13200 = vmatprep.subr.bf16.mxu1 %v20000_v61  ;;  %v20052_v5 = vld [vmem:[#allocation6 + $0x460] ss:$8 sps:$4 sm:$0xff]   ;;  %v20055_v44 = vld [vmem:[#allocation6 + $0x170] ss:$8 sps:$4 sm:$0xff]   ;;  %v20060_v39 = vld [vmem:[#allocation6 + $0x474] ss:$8 sps:$4 sm:$0xff]  }
 0x671   :  { %12377 = vmatprep.mubr.bf16.mxu0 %v21707_v46  ;;  %13222 = vmatprep.mubr.bf16.mxu1 %v21707_v46  ;;  %v20063_v11 = vld [vmem:[#allocation6 + $0x184] ss:$8 sps:$4 sm:$0xff]   ;;  %v20058_v32 = vld [vmem:[#allocation6 + $0x470] ss:$8 sps:$4 sm:$0xff]   ;;  %v20061_v35 = vld [vmem:[#allocation6 + $0x180] ss:$8 sps:$4 sm:$0xff]  }
 0x672   :  { %12374 = vmatpush1.bf16.msra.mxu0 %v20001_v38  ;;  %v20066_v61 = vld [vmem:[#allocation6 + $0x484] ss:$8 sps:$4 sm:$0xff]   ;;  %v20069_v28 = vld [vmem:[#allocation6 + $0x194] ss:$8 sps:$4 sm:$0xff]   ;;  %v20064_v36 = vld [vmem:[#allocation6 + $0x480] ss:$8 sps:$4 sm:$0xff]  }
 0x673   :  { %13201 = vmatpush1.bf16.msra.mxu1 %v19998_v26  ;;  %12375 = vmatprep.subr.bf16.mxu0 %v20009_v30  ;;  %v20067_v4 = vld [vmem:[#allocation6 + $0x190] ss:$8 sps:$4 sm:$0xff]   ;;  %v20072_v26 = vld [vmem:[#allocation6 + $0x494] ss:$8 sps:$4 sm:$0xff]   ;;  %v20075_v38 = vld [vmem:[#allocation6 + $0x1a4] ss:$8 sps:$4 sm:$0xff]  }
 0x674   :  { %13202 = vmatprep.subr.bf16.mxu1 %v20006_v56  ;;  %v20070_v56 = vld [vmem:[#allocation6 + $0x490] ss:$8 sps:$4 sm:$0xff]   ;;  %v20073_v30 = vld [vmem:[#allocation6 + $0x1a0] ss:$8 sps:$4 sm:$0xff]  }
 0x676   :  { %12376 = vmatpush1.bf16.msra.mxu0 %v20007_v53  ;;  %v20081_v53 = vld [vmem:[#allocation6 + $0x1b4] ss:$8 sps:$4 sm:$0xff]  }
 0x677   :  { %13203 = vmatpush1.bf16.msra.mxu1 %v20004_v1  ;;  %12388 = vmatprep.subr.bf16.mxu0 %v20015_v3  ;;  %v20078_v1 = vld [vmem:[#allocation6 + $0x4a4] ss:$8 sps:$4 sm:$0xff]   ;;  %v11617_v3 = vsub.s32 3, %v21687_v16 }
 0x678   :  { %13204 = vmatprep.subr.bf16.mxu1 %v20012_v33  ;;  %v11613_v33 = vsub.s32 2, %v21687_v16 }
 0x679   :  { %12378 = vmatmul.mubr.bf16.vlgmr.msra.gmra.mrb[56].mxu0 %v21705_v17 }
 0x67a   :  { %12389 = vmatpush1.bf16.msra.mxu0 %v20013_v31  ;;  %v20079_v31 = vld [vmem:[#allocation6 + $0x1b0] ss:$8 sps:$4 sm:$0xff]  }
 0x67b   :  { %13205 = vmatpush1.bf16.msra.mxu1 %v20010_v45  ;;  %12390 = vmatprep.subr.bf16.mxu0 %v20021_v29  ;;  %v20076_v45 = vld [vmem:[#allocation6 + $0x4a0] ss:$8 sps:$4 sm:$0xff]   ;;  %v20084_v29 = vld [vmem:[#allocation6 + $0x4b4] ss:$8 sps:$4 sm:$0xff]  }
 0x67c   :  { %13206 = vmatprep.subr.bf16.mxu1 %v20018_v20  ;;  %v11614_v20 = vrot.slane %v21692_v57, %v11613_v33  ;;  %v20112_v33 = vld [vmem:[#allocation6 + $0x510] ss:$8 sps:$4 sm:$0xff]  }
 0x67e   :  { %12391 = vmatpush1.bf16.msra.mxu0 %v20019_v50 }
 0x67f   :  { %13207 = vmatpush1.bf16.msra.mxu1 %v20016_v63  ;;  %12392 = vmatprep.subr.bf16.mxu0 %v20027_v9  ;;  %v20087_v63 = vld [vmem:[#allocation6 + $0x1c4] ss:$8 sps:$4 sm:$0xff]  }
 0x680   :  { %13208 = vmatprep.subr.bf16.mxu1 %v20024_v49  ;;  %v11618_v49 = vrot.slane %v21692_v57, %v11617_v3  ;;  %v20145_v3 = vld [vmem:[#allocation6 + $0x220] ss:$8 sps:$4 sm:$0xff]  }
 0x682   :  { %12393 = vmatpush1.bf16.msra.mxu0 %v20025_v58 }
 0x683   :  { %13209 = vmatpush1.bf16.msra.mxu1 %v20022_v13  ;;  %12394 = vmatprep.subr.bf16.mxu0 %v20033_v21 }
 0x684   :  { %13210 = vmatprep.subr.bf16.mxu1 %v20030_v12  ;;  %v20082_v12 = vld [vmem:[#allocation6 + $0x4b0] ss:$8 sps:$4 sm:$0xff]  }
 0x686   :  { %12395 = vmatpush1.bf16.msra.mxu0 %v20031_v42 }
 0x687   :  { %13211 = vmatpush1.bf16.msra.mxu1 %v20028_v59  ;;  %12396 = vmatprep.subr.bf16.mxu0 %v20039_v8  ;;  %v20085_v59 = vld [vmem:[#allocation6 + $0x1c0] ss:$8 sps:$4 sm:$0xff]  }
 0x688   :  { %13212 = vmatprep.subr.bf16.mxu1 %v20036_v47 }
 0x68a   :  { %12397 = vmatpush1.bf16.msra.mxu0 %v20037_v24  ;;  %v20093_v24 = vld [vmem:[#allocation6 + $0x1d4] ss:$8 sps:$4 sm:$0xff]  }
 0x68b   :  { %13213 = vmatpush1.bf16.msra.mxu1 %v20034_v62  ;;  %12398 = vmatprep.subr.bf16.mxu0 %v20045_v48  ;;  %v20090_v62 = vld [vmem:[#allocation6 + $0x4c4] ss:$8 sps:$4 sm:$0xff]  }
 0x68c   :  { %13214 = vmatprep.subr.bf16.mxu1 %v20042_v51 }
 0x68e   :  { %12399 = vmatpush1.bf16.msra.mxu0 %v20043_v18  ;;  %v20088_v18 = vld [vmem:[#allocation6 + $0x4c0] ss:$8 sps:$4 sm:$0xff]  }
 0x68f   :  { %13215 = vmatpush1.bf16.msra.mxu1 %v20040_v7  ;;  %12400 = vmatprep.subr.bf16.mxu0 %v20051_v37 }
 0x690   :  { %13216 = vmatprep.subr.bf16.mxu1 %v20048_v2 }
 0x692   :  { %12401 = vmatpush1.bf16.msra.mxu0 %v20049_v43  ;;  %v20099_v43 = vld [vmem:[#allocation6 + $0x1e4] ss:$8 sps:$4 sm:$0xff]  }
 0x693   :  { %13217 = vmatpush1.bf16.msra.mxu1 %v20046_v15  ;;  %12402 = vmatprep.subr.bf16.mxu0 %v20057_v27  ;;  %v20096_v15 = vld [vmem:[#allocation6 + $0x4d4] ss:$8 sps:$4 sm:$0xff]  }
 0x694   :  { %13218 = vmatprep.subr.bf16.mxu1 %v20054_v55 }
 0x696   :  { %12403 = vmatpush1.bf16.msra.mxu0 %v20055_v44  ;;  %v20097_v44 = vld [vmem:[#allocation6 + $0x1e0] ss:$8 sps:$4 sm:$0xff]  }
 0x697   :  { %13219 = vmatpush1.bf16.msra.mxu1 %v20052_v5  ;;  %12404 = vmatprep.subr.bf16.mxu0 %v20063_v11  ;;  %v20105_v11 = vld [vmem:[#allocation6 + $0x1f4] ss:$8 sps:$4 sm:$0xff]  }
 0x698   :  { %13220 = vmatprep.subr.bf16.mxu1 %v20060_v39  ;;  %v20102_v39 = vld [vmem:[#allocation6 + $0x4e4] ss:$8 sps:$4 sm:$0xff]  }
 0x69a   :  { %12405 = vmatpush1.bf16.msra.mxu0 %v20061_v35  ;;  %v20103_v35 = vld [vmem:[#allocation6 + $0x1f0] ss:$8 sps:$4 sm:$0xff]  }
 0x69b   :  { %13221 = vmatpush1.bf16.msra.mxu1 %v20058_v32  ;;  %12406 = vmatprep.subr.bf16.mxu0 %v20069_v28  ;;  %v20100_v32 = vld [vmem:[#allocation6 + $0x4e0] ss:$8 sps:$4 sm:$0xff]   ;;  %v20135_v28 = vld [vmem:[#allocation6 + $0x204] ss:$8 sps:$4 sm:$0xff]  }
 0x69c   :  { %13233 = vmatprep.subr.bf16.mxu1 %v20066_v61  ;;  %v20108_v61 = vld [vmem:[#allocation6 + $0x4f4] ss:$8 sps:$4 sm:$0xff]  }
 0x69e   :  { %13223 = vmatmul.mubr.bf16.vlgmr.msra.gmra.mrb[64].mxu1 %v21705_v17  ;;  %12407 = vmatpush1.bf16.msra.mxu0 %v20067_v4  ;;  %v20133_v4 = vld [vmem:[#allocation6 + $0x200] ss:$8 sps:$4 sm:$0xff]  }
 0x69f   :  { %13234 = vmatpush1.bf16.msra.mxu1 %v20064_v36  ;;  %12408 = vmatprep.subr.bf16.mxu0 %v20075_v38  ;;  %v20106_v36 = vld [vmem:[#allocation6 + $0x4f0] ss:$8 sps:$4 sm:$0xff]   ;;  %v20141_v38 = vld [vmem:[#allocation6 + $0x214] ss:$8 sps:$4 sm:$0xff]  }
 0x6a0   :  { %13235 = vmatprep.subr.bf16.mxu1 %v20072_v26  ;;  %v20111_v26 = vld [vmem:[#allocation6 + $0x504] ss:$8 sps:$4 sm:$0xff]  }
 0x6a2   :  { %12409 = vmatpush1.bf16.msra.mxu0 %v20073_v30  ;;  %v20139_v30 = vld [vmem:[#allocation6 + $0x210] ss:$8 sps:$4 sm:$0xff]  }
 0x6a3   :  { %13236 = vmatpush1.bf16.msra.mxu1 %v20070_v56  ;;  %12410 = vmatprep.subr.bf16.mxu0 %v20081_v53  ;;  %v20109_v56 = vld [vmem:[#allocation6 + $0x500] ss:$8 sps:$4 sm:$0xff]   ;;  %v20147_v53 = vld [vmem:[#allocation6 + $0x224] ss:$8 sps:$4 sm:$0xff]  }
 0x6a4   :  { %13237 = vmatprep.subr.bf16.mxu1 %v20078_v1  ;;  %v11242_v50 = vpop.f32.mrb[36].mxu0  ;;  %v20114_v1 = vld [vmem:[#allocation6 + $0x514] ss:$8 sps:$4 sm:$0xff]  }
 0x6a5   :  { %v11589_v9 = vmax.f32 %v21567_v60, %v11242_v50  ;;  %v11244_v13 = vpop.f32.mrb[37].mxu0  ;;  %v20159_v50 = vld [vmem:[#allocation6 + $0x244] ss:$8 sps:$4 sm:$0xff]  }
 0x6a6   :  { %12411 = vmatpush1.bf16.msra.mxu0 %v20079_v31  ;;  %v11590_v58 = vmax.f32 %v21572_v52, %v11244_v13  ;;  %v11246_v21 = vpop.f32.mrb[38].mxu0  ;;  %v20091_v52 = vld [vmem:[#allocation6 + $0x1d0] ss:$8 sps:$4 sm:$0xff]   ;;  %v20153_v31 = vld [vmem:[#allocation6 + $0x234] ss:$8 sps:$4 sm:$0xff]  }
 0x6a7   :  { %13238 = vmatpush1.bf16.msra.mxu1 %v20076_v45  ;;  %v11640_v42 = vadd.f32 %v11614_v20, %v11589_v9  ;;  %v11596_v47 = vmax.f32 %v21577_v34, %v11246_v21  ;;  %v11248_v8 = vpop.f32.mrb[39].mxu0  ;;  %12412 = vmatprep.subr.bf16.mxu0 %v20087_v63  ;;  %v20117_v45 = vld [vmem:[#allocation6 + $0x524] ss:$8 sps:$4 sm:$0xff]   ;;  %v20120_v63 = vld [vmem:[#allocation6 + $0x534] ss:$8 sps:$4 sm:$0xff]  }
 0x6a8   :  { %13239 = vmatprep.subr.bf16.mxu1 %v20084_v29  ;;  %v11641_v51 = vadd.f32 %v11618_v49, %v11590_v58  ;;  %v11597_v48 = vmax.f32 %v21582_v22, %v11248_v8  ;;  %v20094_v22 = vld [vmem:[#allocation6 + $0x4d0] ss:$8 sps:$4 sm:$0xff]   ;;  %v20157_v21 = vld [vmem:[#allocation6 + $0x240] ss:$8 sps:$4 sm:$0xff]  }
 0x6a9   :  { %v11647_v60 = vadd.f32 %v11614_v20, %v11596_v47  ;;  %v11654_v2 = vmax.f32 %v11640_v42, 0.0  ;;  %v20115_v20 = vld [vmem:[#allocation6 + $0x520] ss:$8 sps:$4 sm:$0xff]   ;;  %v20151_v29 = vld [vmem:[#allocation6 + $0x230] ss:$8 sps:$4 sm:$0xff]  }
 0x6aa   :  { %v11648_v7 = vadd.f32 %v11618_v49, %v11597_v48  ;;  %12413 = vmatpush1.bf16.msra.mxu0 %v20085_v59  ;;  %v11655_v34 = vmax.f32 %v11641_v51, 0.0  ;;  %v20118_v13 = vld [vmem:[#allocation6 + $0x530] ss:$8 sps:$4 sm:$0xff]   ;;  %v20123_v59 = vld [vmem:[#allocation6 + $0x544] ss:$8 sps:$4 sm:$0xff]  }
 0x6ab   :  { %13240 = vmatpush1.bf16.msra.mxu1 %v20082_v12  ;;  %v11661_v37 = vmax.f32 %v11647_v60, 0.0  ;;  %12414 = vmatprep.subr.bf16.mxu0 %v20093_v24  ;;  %v20165_v47 = vld [vmem:[#allocation6 + $0x254] ss:$8 sps:$4 sm:$0xff]   ;;  %v20163_v24 = vld [vmem:[#allocation6 + $0x250] ss:$8 sps:$4 sm:$0xff]  }
 0x6ac   :  { %13241 = vmatprep.subr.bf16.mxu1 %v20090_v62  ;;  %v11662_v55 = vmax.f32 %v11648_v7, 0.0  ;;  %v20121_v62 = vld [vmem:[#allocation6 + $0x540] ss:$8 sps:$4 sm:$0xff]   ;;  %v20126_v51 = vld [vmem:[#allocation6 + $0x554] ss:$8 sps:$4 sm:$0xff]  }
 0x6ad   :  { %v21721_v27 = vpack.c.bf16 %v11661_v37, %v11654_v2  ;;  %v20171_v48 = vld [vmem:[#allocation6 + $0x264] ss:$8 sps:$4 sm:$0xff]   ;;  %v20124_v60 = vld [vmem:[#allocation6 + $0x550] ss:$8 sps:$4 sm:$0xff]   ;;  %v20169_v7 = vld [vmem:[#allocation6 + $0x260] ss:$8 sps:$4 sm:$0xff]  }
 0x6ae   :  { %v21723_v5 = vpack.c.bf16 %v11662_v55, %v11655_v34  ;;  %12415 = vmatpush1.bf16.msra.mxu0 %v20091_v52  ;;  %v20177_v52 = vld [vmem:[#allocation6 + $0x274] ss:$8 sps:$4 sm:$0xff]   ;;  %v20127_v2 = vld [vmem:[#allocation6 + $0x560] ss:$8 sps:$4 sm:$0xff]   ;;  %v20175_v37 = vld [vmem:[#allocation6 + $0x270] ss:$8 sps:$4 sm:$0xff]  }
 0x6af   :  { %13242 = vmatpush1.bf16.msra.mxu1 %v20088_v18  ;;  %12416 = vmatprep.subr.bf16.mxu0 %v20099_v43  ;;  %v20129_v18 = vld [vmem:[#allocation6 + $0x564] ss:$8 sps:$4 sm:$0xff]   ;;  %v20130_v34 = vld [vmem:[#allocation6 + $0x570] ss:$8 sps:$4 sm:$0xff]   ;;  %v20181_v55 = vld [vmem:[#allocation6 + $0x280] ss:$8 sps:$4 sm:$0xff]  }
 0x6b0   :  { %13243 = vmatprep.subr.bf16.mxu1 %v20096_v15  ;;  %12420 = vmatprep.mubr.bf16.mxu0 %v21723_v5  ;;  %v20132_v15 = vld [vmem:[#allocation6 + $0x574] ss:$8 sps:$4 sm:$0xff]   ;;  %v20183_v43 = vld [vmem:[#allocation6 + $0x284] ss:$8 sps:$4 sm:$0xff]  }
 0x6b1   :  { %13265 = vmatprep.mubr.bf16.mxu1 %v21723_v5 }
 0x6b2   :  { %12417 = vmatpush1.bf16.msra.mxu0 %v20097_v44  ;;  %v20189_v44 = vld [vmem:[#allocation6 + $0x294] ss:$8 sps:$4 sm:$0xff]  }
 0x6b3   :  { %13244 = vmatpush1.bf16.msra.mxu1 %v20094_v22  ;;  %12418 = vmatprep.subr.bf16.mxu0 %v20105_v11  ;;  %v20138_v22 = vld [vmem:[#allocation6 + $0x584] ss:$8 sps:$4 sm:$0xff]   ;;  %v20187_v11 = vld [vmem:[#allocation6 + $0x290] ss:$8 sps:$4 sm:$0xff]  }
 0x6b4   :  { %13245 = vmatprep.subr.bf16.mxu1 %v20102_v39  ;;  %v20136_v39 = vld [vmem:[#allocation6 + $0x580] ss:$8 sps:$4 sm:$0xff]  }
 0x6b6   :  { %12419 = vmatpush1.bf16.msra.mxu0 %v20103_v35  ;;  %v20195_v35 = vld [vmem:[#allocation6 + $0x2a4] ss:$8 sps:$4 sm:$0xff]  }
 0x6b7   :  { %13246 = vmatpush1.bf16.msra.mxu1 %v20100_v32  ;;  %12431 = vmatprep.subr.bf16.mxu0 %v20135_v28  ;;  %v20144_v32 = vld [vmem:[#allocation6 + $0x594] ss:$8 sps:$4 sm:$0xff]   ;;  %v20193_v28 = vld [vmem:[#allocation6 + $0x2a0] ss:$8 sps:$4 sm:$0xff]  }
 0x6b8   :  { %13247 = vmatprep.subr.bf16.mxu1 %v20108_v61  ;;  %v20142_v61 = vld [vmem:[#allocation6 + $0x590] ss:$8 sps:$4 sm:$0xff]  }
 0x6b9   :  { %12421 = vmatmul.mubr.bf16.vlgmr.msra.gmra.mrb[56].mxu0 %v21721_v27 }
 0x6ba   :  { %12432 = vmatpush1.bf16.msra.mxu0 %v20133_v4  ;;  %v20201_v4 = vld [vmem:[#allocation6 + $0x2b4] ss:$8 sps:$4 sm:$0xff]  }
 0x6bb   :  { %13248 = vmatpush1.bf16.msra.mxu1 %v20106_v36  ;;  %12433 = vmatprep.subr.bf16.mxu0 %v20141_v38  ;;  %v20150_v36 = vld [vmem:[#allocation6 + $0x5a4] ss:$8 sps:$4 sm:$0xff]   ;;  %v20199_v38 = vld [vmem:[#allocation6 + $0x2b0] ss:$8 sps:$4 sm:$0xff]  }
 0x6bc   :  { %13249 = vmatprep.subr.bf16.mxu1 %v20111_v26  ;;  %v20148_v26 = vld [vmem:[#allocation6 + $0x5a0] ss:$8 sps:$4 sm:$0xff]  }
 0x6be   :  { %12434 = vmatpush1.bf16.msra.mxu0 %v20139_v30  ;;  %v20207_v30 = vld [vmem:[#allocation6 + $0x2c4] ss:$8 sps:$4 sm:$0xff]  }
 0x6bf   :  { %13250 = vmatpush1.bf16.msra.mxu1 %v20109_v56  ;;  %12435 = vmatprep.subr.bf16.mxu0 %v20147_v53  ;;  %v20156_v56 = vld [vmem:[#allocation6 + $0x5b4] ss:$8 sps:$4 sm:$0xff]  }
 0x6c0   :  { %13251 = vmatprep.subr.bf16.mxu1 %v20114_v1 }
 0x6c2   :  { %12436 = vmatpush1.bf16.msra.mxu0 %v20145_v3 }
 0x6c3   :  { %13252 = vmatpush1.bf16.msra.mxu1 %v20112_v33  ;;  %12437 = vmatprep.subr.bf16.mxu0 %v20153_v31  ;;  %v20205_v31 = vld [vmem:[#allocation6 + $0x2c0] ss:$8 sps:$4 sm:$0xff]  }
 0x6c4   :  { %13253 = vmatprep.subr.bf16.mxu1 %v20117_v45  ;;  %v17604_v49 = vpop.f32.mrb[40].mxu0  ;;  %v20154_v45 = vld [vmem:[#allocation6 + $0x5b0] ss:$8 sps:$4 sm:$0xff]  }
 0x6c5   :  { %v17605_v9 = vpop.f32.mrb[41].mxu0 }
 0x6c6   :  { %v21728_v58 = vadd.f32 %v17605_v9, %v17604_v49  ;;  %v17607_v12 = vpop.f32.mrb[42].mxu0  ;;  %12438 = vmatpush1.bf16.msra.mxu0 %v20151_v29  ;;  %v20162_v29 = vld [vmem:[#allocation6 + $0x5c4] ss:$8 sps:$4 sm:$0xff]  }
 0x6c7   :  { %13254 = vmatpush1.bf16.msra.mxu1 %v20115_v20  ;;  %v17608_v42 = vpop.f32.mrb[43].mxu0  ;;  %12439 = vmatprep.subr.bf16.mxu0 %v20159_v50 }
 0x6c8   :  { %13255 = vmatprep.subr.bf16.mxu1 %v20120_v63  ;;  %v21730_v8 = vadd.f32 %v17608_v42, %v17607_v12  ;;  %v20213_v63 = vld [vmem:[#allocation6 + $0x2d4] ss:$8 sps:$4 sm:$0xff]   ;;  %v20211_v12 = vld [vmem:[#allocation6 + $0x2d0] ss:$8 sps:$4 sm:$0xff]  }
 0x6c9   :  { %v20166_v42 = vld [vmem:[#allocation6 + $0x5d0] ss:$8 sps:$4 sm:$0xff]  }
 0x6ca   :  { %12440 = vmatpush1.bf16.msra.mxu0 %v20157_v21  ;;  %v20168_v21 = vld [vmem:[#allocation6 + $0x5d4] ss:$8 sps:$4 sm:$0xff]  }
 0x6cb   :  { %13256 = vmatpush1.bf16.msra.mxu1 %v20118_v13  ;;  %12441 = vmatprep.subr.bf16.mxu0 %v20165_v47  ;;  %v20160_v13 = vld [vmem:[#allocation6 + $0x5c0] ss:$8 sps:$4 sm:$0xff]  }
 0x6cc   :  { %13257 = vmatprep.subr.bf16.mxu1 %v20123_v59  ;;  %v20219_v59 = vld [vmem:[#allocation6 + $0x2e4] ss:$8 sps:$4 sm:$0xff]   ;;  %v20217_v47 = vld [vmem:[#allocation6 + $0x2e0] ss:$8 sps:$4 sm:$0xff]  }
 0x6ce   :  { %12442 = vmatpush1.bf16.msra.mxu0 %v20163_v24  ;;  %v20225_v24 = vld [vmem:[#allocation6 + $0x2f4] ss:$8 sps:$4 sm:$0xff]  }
 0x6cf   :  { %13258 = vmatpush1.bf16.msra.mxu1 %v20121_v62  ;;  %12443 = vmatprep.subr.bf16.mxu0 %v20171_v48  ;;  %v20174_v62 = vld [vmem:[#allocation6 + $0x5e4] ss:$8 sps:$4 sm:$0xff]  }
 0x6d0   :  { %13259 = vmatprep.subr.bf16.mxu1 %v20126_v51  ;;  %v20180_v51 = vld [vmem:[#allocation6 + $0x5f4] ss:$8 sps:$4 sm:$0xff]   ;;  %v20231_v48 = vld [vmem:[#allocation6 + $0x304] ss:$8 sps:$4 sm:$0xff]  }
 0x6d2   :  { %12444 = vmatpush1.bf16.msra.mxu0 %v20169_v7  ;;  %v20186_v7 = vld [vmem:[#allocation6 + $0x604] ss:$8 sps:$4 sm:$0xff]  }
 0x6d3   :  { %13260 = vmatpush1.bf16.msra.mxu1 %v20124_v60  ;;  %12445 = vmatprep.subr.bf16.mxu0 %v20177_v52  ;;  %v20178_v60 = vld [vmem:[#allocation6 + $0x5f0] ss:$8 sps:$4 sm:$0xff]   ;;  %v20192_v52 = vld [vmem:[#allocation6 + $0x614] ss:$8 sps:$4 sm:$0xff]  }
 0x6d4   :  { %13261 = vmatprep.subr.bf16.mxu1 %v20129_v18  ;;  %v20184_v18 = vld [vmem:[#allocation6 + $0x600] ss:$8 sps:$4 sm:$0xff]  }
 0x6d6   :  { %12446 = vmatpush1.bf16.msra.mxu0 %v20175_v37  ;;  %v20198_v37 = vld [vmem:[#allocation6 + $0x624] ss:$8 sps:$4 sm:$0xff]  }
 0x6d7   :  { %13262 = vmatpush1.bf16.msra.mxu1 %v20127_v2  ;;  %12447 = vmatprep.subr.bf16.mxu0 %v20183_v43  ;;  %v20190_v2 = vld [vmem:[#allocation6 + $0x610] ss:$8 sps:$4 sm:$0xff]   ;;  %v20204_v43 = vld [vmem:[#allocation6 + $0x634] ss:$8 sps:$4 sm:$0xff]  }
 0x6d8   :  { %13263 = vmatprep.subr.bf16.mxu1 %v20132_v15  ;;  %v20196_v15 = vld [vmem:[#allocation6 + $0x620] ss:$8 sps:$4 sm:$0xff]  }
 0x6da   :  { %12448 = vmatpush1.bf16.msra.mxu0 %v20181_v55 }
 0x6db   :  { %13264 = vmatpush1.bf16.msra.mxu1 %v20130_v34  ;;  %12449 = vmatprep.subr.bf16.mxu0 %v20189_v44 }
 0x6dc   :  { %13276 = vmatprep.subr.bf16.mxu1 %v20138_v22 }
 0x6de   :  { %13266 = vmatmul.mubr.bf16.vlgmr.msra.gmra.mrb[64].mxu1 %v21721_v27  ;;  %12450 = vmatpush1.bf16.msra.mxu0 %v20187_v11 }
 0x6df   :  { %13277 = vmatpush1.bf16.msra.mxu1 %v20136_v39  ;;  %12451 = vmatprep.subr.bf16.mxu0 %v20195_v35  ;;  %v20202_v39 = vld [vmem:[#allocation6 + $0x630] ss:$8 sps:$4 sm:$0xff]  }
 0x6e0   :  { %13278 = vmatprep.subr.bf16.mxu1 %v20144_v32  ;;  %v20210_v32 = vld [vmem:[#allocation6 + $0x644] ss:$8 sps:$4 sm:$0xff]  }
 0x6e2   :  { %12452 = vmatpush1.bf16.msra.mxu0 %v20193_v28  ;;  %v11629_v28 = vsub.s32 6, %v21687_v16 }
 0x6e3   :  { %13279 = vmatpush1.bf16.msra.mxu1 %v20142_v61  ;;  %12453 = vmatprep.subr.bf16.mxu0 %v20201_v4  ;;  %v20208_v4 = vld [vmem:[#allocation6 + $0x640] ss:$8 sps:$4 sm:$0xff]  }
 0x6e4   :  { %13280 = vmatprep.subr.bf16.mxu1 %v20150_v36  ;;  %v17626_v1 = vpop.f32.mrb[44].mxu0 }
 0x6e5   :  { %v17627_v53 = vpop.f32.mrb[45].mxu0 }
 0x6e6   :  { %v17628_v33 = vadd.f32 %v17627_v53, %v17626_v1  ;;  %v17629_v3 = vpop.f32.mrb[46].mxu0  ;;  %12454 = vmatpush1.bf16.msra.mxu0 %v20199_v38 }
 0x6e7   :  { %13281 = vmatpush1.bf16.msra.mxu1 %v20148_v26  ;;  %v17630_v20 = vpop.f32.mrb[47].mxu0  ;;  %12455 = vmatprep.subr.bf16.mxu0 %v20207_v30  ;;  %v20216_v26 = vld [vmem:[#allocation6 + $0x654] ss:$8 sps:$4 sm:$0xff]   ;;  %v11630_v30 = vrot.slane %v21692_v57, %v11629_v28  ;;  %v20244_v28 = vld [vmem:[#allocation6 + $0x6a0] ss:$8 sps:$4 sm:$0xff]  }
 0x6e8   :  { %13282 = vmatprep.subr.bf16.mxu1 %v20156_v56  ;;  %v11499_v50 = vadd.f32 %v17628_v33, %v21728_v58  ;;  %v17631_v49 = vadd.f32 %v17630_v20, %v17629_v3  ;;  %v20172_v58 = vld [vmem:[#allocation6 + $0x5e0] ss:$8 sps:$4 sm:$0xff]   ;;  %v20214_v33 = vld [vmem:[#allocation6 + $0x650] ss:$8 sps:$4 sm:$0xff]  }
 0x6ea   :  { %v11502_v9 = vadd.f32 %v17631_v49, %v21730_v8  ;;  %12456 = vmatpush1.bf16.msra.mxu0 %v20205_v31  ;;  %v20223_v8 = vld [vmem:[#allocation6 + $0x2f0] ss:$8 sps:$4 sm:$0xff]   ;;  %v20222_v31 = vld [vmem:[#allocation6 + $0x664] ss:$8 sps:$4 sm:$0xff]  }
 0x6eb   :  { %13283 = vmatpush1.bf16.msra.mxu1 %v20154_v45  ;;  %12457 = vmatprep.subr.bf16.mxu0 %v20213_v63 }
 0x6ec   :  { %13284 = vmatprep.subr.bf16.mxu1 %v20162_v29 }
 0x6ee   :  { %12458 = vmatpush1.bf16.msra.mxu0 %v20211_v12 }
 0x6ef   :  { %13285 = vmatpush1.bf16.msra.mxu1 %v20160_v13  ;;  %12459 = vmatprep.subr.bf16.mxu0 %v20219_v59 }
 0x6f0   :  { %13286 = vmatprep.subr.bf16.mxu1 %v20168_v21  ;;  %v20226_v21 = vld [vmem:[#allocation6 + $0x670] ss:$8 sps:$4 sm:$0xff]  }
 0x6f2   :  { %12460 = vmatpush1.bf16.msra.mxu0 %v20217_v47  ;;  %v11625_v47 = vsub.s32 5, %v21687_v16 }
 0x6f3   :  { %13287 = vmatpush1.bf16.msra.mxu1 %v20166_v42  ;;  %12461 = vmatprep.subr.bf16.mxu0 %v20225_v24  ;;  %v11621_v42 = vsub.s32 4, %v21687_v16 }
 0x6f4   :  { %13288 = vmatprep.subr.bf16.mxu1 %v20174_v62  ;;  %v11626_v24 = vrot.slane %v21692_v57, %v11625_v47  ;;  %v20280_v47 = vld [vmem:[#allocation6 + $0xa80] ss:$8 sps:$4 sm:$0xff]  }
 0x6f6   :  { %12462 = vmatpush1.bf16.msra.mxu0 %v20223_v8 }
 0x6f7   :  { %13289 = vmatpush1.bf16.msra.mxu1 %v20172_v58  ;;  %12474 = vmatprep.subr.bf16.mxu0 %v20231_v48 }
 0x6f8   :  { %13290 = vmatprep.subr.bf16.mxu1 %v20180_v51 }
 0x6fb   :  { %13291 = vmatpush1.bf16.msra.mxu1 %v20178_v60 }
 0x6fc   :  { %13292 = vmatprep.subr.bf16.mxu1 %v20186_v7 }
 0x6ff   :  { %13293 = vmatpush1.bf16.msra.mxu1 %v20184_v18 }
 0x700   :  { %13294 = vmatprep.subr.bf16.mxu1 %v20192_v52 }
 0x703   :  { %13295 = vmatpush1.bf16.msra.mxu1 %v20190_v2 }
 0x704   :  { %13296 = vmatprep.subr.bf16.mxu1 %v20198_v37  ;;  %v17648_v34 = vpop.f32.mrb[48].mxu0 }
 0x705   :  { %v17649_v55 = vpop.f32.mrb[49].mxu0 }
 0x706   :  { %v17650_v22 = vadd.f32 %v17649_v55, %v17648_v34  ;;  %v17651_v44 = vpop.f32.mrb[50].mxu0 }
 0x707   :  { %13297 = vmatpush1.bf16.msra.mxu1 %v20196_v15  ;;  %v17652_v11 = vpop.f32.mrb[51].mxu0 }
 0x708   :  { %13298 = vmatprep.subr.bf16.mxu1 %v20204_v43  ;;  %v17653_v35 = vadd.f32 %v17652_v11, %v17651_v44  ;;  %v11540_v61 = vadd.f32 %v17650_v22, %v11499_v50  ;;  %v20220_v50 = vld [vmem:[#allocation6 + $0x660] ss:$8 sps:$4 sm:$0xff]   ;;  %v20240_v11 = vld [vmem:[#allocation6 + $0x694] ss:$8 sps:$4 sm:$0xff]  }
 0x709   :  { %v20229_v44 = vld [vmem:[#allocation6 + $0x300] ss:$8 sps:$4 sm:$0xff]  }
 0x70a   :  { %v11543_v36 = vadd.f32 %v17653_v35, %v11502_v9  ;;  %v20228_v9 = vld [vmem:[#allocation6 + $0x674] ss:$8 sps:$4 sm:$0xff]   ;;  %v20246_v35 = vld [vmem:[#allocation6 + $0x6a4] ss:$8 sps:$4 sm:$0xff]  }
 0x70b   :  { %13299 = vmatpush1.bf16.msra.mxu1 %v20202_v39  ;;  %v20237_v39 = vld [vmem:[#allocation6 + $0x314] ss:$8 sps:$4 sm:$0xff]  }
 0x70c   :  { %13300 = vmatprep.subr.bf16.mxu1 %v20210_v32  ;;  %v11580_v38 = vpop.f32.mrb[52].mxu0  ;;  %v20243_v32 = vld [vmem:[#allocation6 + $0x324] ss:$8 sps:$4 sm:$0xff]  }
 0x70d   :  { %v11581_v56 = vadd.f32 %v11580_v38, %v11540_v61  ;;  %v17718_v1 = vpop.f32.mrb[53].mxu0  ;;  %v20241_v61 = vld [vmem:[#allocation6 + $0x320] ss:$8 sps:$4 sm:$0xff]   ;;  %v20250_v38 = vld [vmem:[#allocation6 + $0x6b0] ss:$8 sps:$4 sm:$0xff]  }
 0x70e   :  { %v11583_v53 = vpop.f32.mrb[54].mxu0  ;;  %v20253_v1 = vld [vmem:[#allocation6 + $0x340] ss:$8 sps:$4 sm:$0xff]  }
 0x70f   :  { %13301 = vmatpush1.bf16.msra.mxu1 %v20208_v4  ;;  %v11593_v3 = vmax.f32 %v21635_v14, %v11581_v56  ;;  %v11584_v45 = vadd.f32 %v11583_v53, %v11543_v36  ;;  %v17719_v20 = vpop.f32.mrb[55].mxu0  ;;  %v20234_v14 = vld [vmem:[#allocation6 + $0x684] ss:$8 sps:$4 sm:$0xff]   ;;  %v20249_v36 = vld [vmem:[#allocation6 + $0x334] ss:$8 sps:$4 sm:$0xff]  }
 0x710   :  { %13302 = vmatprep.subr.bf16.mxu1 %v20216_v26  ;;  %v20252_v4 = vld [vmem:[#allocation6 + $0x6b4] ss:$8 sps:$4 sm:$0xff]   ;;  %v20247_v26 = vld [vmem:[#allocation6 + $0x330] ss:$8 sps:$4 sm:$0xff]   ;;  %v20255_v56 = vld [vmem:[#allocation6 + $0x344] ss:$8 sps:$4 sm:$0xff]  }
 0x711   :  { %v11644_v29 = vadd.f32 %v11630_v30, %v11593_v3  ;;  %v11600_v63 = vmax.f32 %v21640_v41, %v11584_v45  ;;  %v11622_v41 = vrot.slane %v21692_v57, %v11621_v42  ;;  %v20256_v53 = vld [vmem:[#allocation6 + $0x6c0] ss:$8 sps:$4 sm:$0xff]   ;;  %v20264_v3 = vld [vmem:[#allocation6 + $0x6d4] ss:$8 sps:$4 sm:$0xff]   ;;  %v20259_v45 = vld [vmem:[#allocation6 + $0x350] ss:$8 sps:$4 sm:$0xff]  }
 0x712   :  { %v20267_v20 = vld [vmem:[#allocation6 + $0x364] ss:$8 sps:$4 sm:$0xff]   ;;  %v20277_v42 = vld [vmem:[#allocation6 + $0x700] ss:$8 sps:$4 sm:$0xff]  }
 0x713   :  { %13303 = vmatpush1.bf16.msra.mxu1 %v20214_v33  ;;  %v11651_v49 = vadd.f32 %v11630_v30, %v11600_v63  ;;  %v11658_v13 = vmax.f32 %v11644_v29, 0.0  ;;  %v20258_v30 = vld [vmem:[#allocation6 + $0x6c4] ss:$8 sps:$4 sm:$0xff]   ;;  %v20261_v33 = vld [vmem:[#allocation6 + $0x354] ss:$8 sps:$4 sm:$0xff]  }
 0x714   :  { %13304 = vmatprep.subr.bf16.mxu1 %v20222_v31  ;;  %v20262_v31 = vld [vmem:[#allocation6 + $0x6d0] ss:$8 sps:$4 sm:$0xff]   ;;  %v20270_v29 = vld [vmem:[#allocation6 + $0x6e4] ss:$8 sps:$4 sm:$0xff]   ;;  %v20265_v63 = vld [vmem:[#allocation6 + $0x360] ss:$8 sps:$4 sm:$0xff]  }
 0x715   :  { %v11665_v12 = vmax.f32 %v11651_v49, 0.0  ;;  %v20273_v49 = vld [vmem:[#allocation6 + $0x374] ss:$8 sps:$4 sm:$0xff]  }
 0x717   :  { %13305 = vmatpush1.bf16.msra.mxu1 %v20220_v50  ;;  %v21739_v59 = vpack.c.bf16 %v11665_v12, %v11658_v13  ;;  %v20268_v50 = vld [vmem:[#allocation6 + $0x6e0] ss:$8 sps:$4 sm:$0xff]   ;;  %v20271_v13 = vld [vmem:[#allocation6 + $0x370] ss:$8 sps:$4 sm:$0xff]  }
 0x718   :  { %13306 = vmatprep.subr.bf16.mxu1 %v20228_v9  ;;  %v20276_v9 = vld [vmem:[#allocation6 + $0x6f4] ss:$8 sps:$4 sm:$0xff]   ;;  %v20274_v12 = vld [vmem:[#allocation6 + $0x6f0] ss:$8 sps:$4 sm:$0xff]  }
 0x71b   :  { %13307 = vmatpush1.bf16.msra.mxu1 %v20226_v21  ;;  %v20279_v21 = vld [vmem:[#allocation6 + $0x704] ss:$8 sps:$4 sm:$0xff]  }
 0x71c   :  { %13319 = vmatprep.subr.bf16.mxu1 %v20234_v14  ;;  %v20282_v14 = vld [vmem:[#allocation6 + $0xa84] ss:$8 sps:$4 sm:$0xff]  }
 0x731   :  { %v11414_v62 = vpop.f32.mrb[60].mxu1 }
 0x732   :  { %v11591_v58 = vmax.f32 %v21652_v40, %v11414_v62  ;;  %v11416_v8 = vpop.f32.mrb[61].mxu1  ;;  %v20288_v62 = vld [vmem:[#allocation6 + $0xa94] ss:$8 sps:$4 sm:$0xff]  }
 0x733   :  { %v11592_v51 = vmax.f32 %v21657_v54, %v11416_v8  ;;  %v11418_v48 = vpop.f32.mrb[62].mxu1  ;;  %v20232_v54 = vld [vmem:[#allocation6 + $0x680] ss:$8 sps:$4 sm:$0xff]   ;;  %v20291_v8 = vld [vmem:[#allocation6 + $0x724] ss:$8 sps:$4 sm:$0xff]  }
 0x734   :  { %v11642_v60 = vadd.f32 %v11622_v41, %v11591_v58  ;;  %v11598_v7 = vmax.f32 %v21662_v19, %v11418_v48  ;;  %v11420_v18 = vpop.f32.mrb[63].mxu1  ;;  %v20235_v19 = vld [vmem:[#allocation6 + $0x310] ss:$8 sps:$4 sm:$0xff]   ;;  %v20289_v48 = vld [vmem:[#allocation6 + $0x720] ss:$8 sps:$4 sm:$0xff]  }
 0x735   :  { %v11643_v52 = vadd.f32 %v11626_v24, %v11592_v51  ;;  %v11599_v2 = vmax.f32 %v21667_v25, %v11420_v18  ;;  %v20238_v25 = vld [vmem:[#allocation6 + $0x690] ss:$8 sps:$4 sm:$0xff]   ;;  %v20294_v51 = vld [vmem:[#allocation6 + $0xaa4] ss:$8 sps:$4 sm:$0xff]   ;;  %v20300_v18 = vld [vmem:[#allocation6 + $0xab4] ss:$8 sps:$4 sm:$0xff]  }
 0x736   :  { %v11649_v37 = vadd.f32 %v11622_v41, %v11598_v7  ;;  %v11656_v43 = vmax.f32 %v11642_v60, 0.0  ;;  %v20285_v41 = vld [vmem:[#allocation6 + $0x714] ss:$8 sps:$4 sm:$0xff]   ;;  %v20286_v58 = vld [vmem:[#allocation6 + $0xa90] ss:$8 sps:$4 sm:$0xff]  }
 0x737   :  { %v11650_v15 = vadd.f32 %v11626_v24, %v11599_v2  ;;  %v11657_v55 = vmax.f32 %v11643_v52, 0.0  ;;  %v20283_v24 = vld [vmem:[#allocation6 + $0x710] ss:$8 sps:$4 sm:$0xff]   ;;  %v20292_v60 = vld [vmem:[#allocation6 + $0xaa0] ss:$8 sps:$4 sm:$0xff]  }
 0x738   :  { %v11663_v34 = vmax.f32 %v11649_v37, 0.0  ;;  %v20297_v7 = vld [vmem:[#allocation6 + $0x734] ss:$8 sps:$4 sm:$0xff]   ;;  %v20295_v52 = vld [vmem:[#allocation6 + $0x730] ss:$8 sps:$4 sm:$0xff]  }
 0x739   :  { %v11664_v22 = vmax.f32 %v11650_v15, 0.0  ;;  %v20298_v2 = vld [vmem:[#allocation6 + $0xab0] ss:$8 sps:$4 sm:$0xff]   ;;  %v20303_v37 = vld [vmem:[#allocation6 + $0x744] ss:$8 sps:$4 sm:$0xff]  }
 0x73a   :  { %v21749_v57 = vpack.c.bf16 %v11663_v34, %v11656_v43  ;;  %v20301_v15 = vld [vmem:[#allocation6 + $0x740] ss:$8 sps:$4 sm:$0xff]   ;;  %v20309_v34 = vld [vmem:[#allocation6 + $0x754] ss:$8 sps:$4 sm:$0xff]  }
 0x73b   :  { %v21751_v40 = vpack.c.bf16 %v11664_v22, %v11657_v55  ;;  %v20304_v43 = vld [vmem:[#allocation6 + $0xac0] ss:$8 sps:$4 sm:$0xff]   ;;  %v20312_v55 = vld [vmem:[#allocation6 + $0xad4] ss:$8 sps:$4 sm:$0xff]   ;;  %v20307_v22 = vld [vmem:[#allocation6 + $0x750] ss:$8 sps:$4 sm:$0xff]  }
 0x73d   :  { %12463 = vmatprep.mubr.bf16.mxu0 %v21751_v40  ;;  %13308 = vmatprep.mubr.bf16.mxu1 %v21751_v40 }
 0x73e   :  { %12464 = vmatmul.mubr.bf16.vlgmr.msra.gmra.mrb[56].mxu0 %v21749_v57  ;;  %13309 = vmatmul.mubr.bf16.vlgmr.msra.gmra.mrb[64].mxu1 %v21749_v57 }
 0x73f   :  { %12475 = vmatpush1.bf16.msra.mxu0 %v20229_v44  ;;  %13320 = vmatpush1.bf16.msra.mxu1 %v20232_v54  ;;  %v20310_v44 = vld [vmem:[#allocation6 + $0xad0] ss:$8 sps:$4 sm:$0xff]   ;;  %v20315_v54 = vld [vmem:[#allocation6 + $0x764] ss:$8 sps:$4 sm:$0xff]  }
 0x740   :  { %12476 = vmatprep.subr.bf16.mxu0 %v20237_v39  ;;  %13321 = vmatprep.subr.bf16.mxu1 %v20240_v11  ;;  %v20318_v39 = vld [vmem:[#allocation6 + $0xae4] ss:$8 sps:$4 sm:$0xff]   ;;  %v20313_v11 = vld [vmem:[#allocation6 + $0x760] ss:$8 sps:$4 sm:$0xff]  }
 0x741   :  { %12506 = vmatprep.mubr.bf16.mxu0 %v20938_v0  ;;  %13351 = vmatprep.mubr.bf16.mxu1 %v20938_v0 }
 0x743   :  { %12477 = vmatpush1.bf16.msra.mxu0 %v20235_v19  ;;  %13322 = vmatpush1.bf16.msra.mxu1 %v20238_v25  ;;  %v20316_v19 = vld [vmem:[#allocation6 + $0xae0] ss:$8 sps:$4 sm:$0xff]   ;;  %v20321_v25 = vld [vmem:[#allocation6 + $0x774] ss:$8 sps:$4 sm:$0xff]  }
 0x744   :  { %12478 = vmatprep.subr.bf16.mxu0 %v20243_v32  ;;  %13323 = vmatprep.subr.bf16.mxu1 %v20246_v35  ;;  %v20324_v32 = vld [vmem:[#allocation6 + $0xaf4] ss:$8 sps:$4 sm:$0xff]   ;;  %v20319_v35 = vld [vmem:[#allocation6 + $0x770] ss:$8 sps:$4 sm:$0xff]  }
 0x747   :  { %12479 = vmatpush1.bf16.msra.mxu0 %v20241_v61  ;;  %13324 = vmatpush1.bf16.msra.mxu1 %v20244_v28  ;;  %v20322_v61 = vld [vmem:[#allocation6 + $0xaf0] ss:$8 sps:$4 sm:$0xff]   ;;  %v20327_v28 = vld [vmem:[#allocation6 + $0x784] ss:$8 sps:$4 sm:$0xff]  }
 0x748   :  { %12480 = vmatprep.subr.bf16.mxu0 %v20249_v36  ;;  %13325 = vmatprep.subr.bf16.mxu1 %v20252_v4  ;;  %v20330_v36 = vld [vmem:[#allocation6 + $0xb04] ss:$8 sps:$4 sm:$0xff]   ;;  %v20325_v4 = vld [vmem:[#allocation6 + $0x780] ss:$8 sps:$4 sm:$0xff]  }
 0x74b   :  { %12481 = vmatpush1.bf16.msra.mxu0 %v20247_v26  ;;  %13326 = vmatpush1.bf16.msra.mxu1 %v20250_v38  ;;  %v20328_v26 = vld [vmem:[#allocation6 + $0xb00] ss:$8 sps:$4 sm:$0xff]   ;;  %v20333_v38 = vld [vmem:[#allocation6 + $0x794] ss:$8 sps:$4 sm:$0xff]  }
 0x74c   :  { %12482 = vmatprep.subr.bf16.mxu0 %v20255_v56  ;;  %13327 = vmatprep.subr.bf16.mxu1 %v20258_v30  ;;  %v20336_v56 = vld [vmem:[#allocation6 + $0xb14] ss:$8 sps:$4 sm:$0xff]   ;;  %v20331_v30 = vld [vmem:[#allocation6 + $0x790] ss:$8 sps:$4 sm:$0xff]  }
 0x74f   :  { %12483 = vmatpush1.bf16.msra.mxu0 %v20253_v1  ;;  %13328 = vmatpush1.bf16.msra.mxu1 %v20256_v53  ;;  %v20334_v1 = vld [vmem:[#allocation6 + $0xb10] ss:$8 sps:$4 sm:$0xff]   ;;  %v20339_v53 = vld [vmem:[#allocation6 + $0x7a4] ss:$8 sps:$4 sm:$0xff]  }
 0x750   :  { %12484 = vmatprep.subr.bf16.mxu0 %v20261_v33  ;;  %13329 = vmatprep.subr.bf16.mxu1 %v20264_v3  ;;  %v20342_v33 = vld [vmem:[#allocation6 + $0xb24] ss:$8 sps:$4 sm:$0xff]   ;;  %v20337_v3 = vld [vmem:[#allocation6 + $0x7a0] ss:$8 sps:$4 sm:$0xff]  }
 0x753   :  { %12485 = vmatpush1.bf16.msra.mxu0 %v20259_v45  ;;  %13330 = vmatpush1.bf16.msra.mxu1 %v20262_v31  ;;  %v20340_v45 = vld [vmem:[#allocation6 + $0xb20] ss:$8 sps:$4 sm:$0xff]   ;;  %v20345_v31 = vld [vmem:[#allocation6 + $0x7b4] ss:$8 sps:$4 sm:$0xff]  }
 0x754   :  { %12486 = vmatprep.subr.bf16.mxu0 %v20267_v20  ;;  %13331 = vmatprep.subr.bf16.mxu1 %v20270_v29  ;;  %v20348_v20 = vld [vmem:[#allocation6 + $0xb34] ss:$8 sps:$4 sm:$0xff]   ;;  %v20343_v29 = vld [vmem:[#allocation6 + $0x7b0] ss:$8 sps:$4 sm:$0xff]  }
 0x757   :  { %12487 = vmatpush1.bf16.msra.mxu0 %v20265_v63  ;;  %13332 = vmatpush1.bf16.msra.mxu1 %v20268_v50  ;;  %v20346_v63 = vld [vmem:[#allocation6 + $0xb30] ss:$8 sps:$4 sm:$0xff]   ;;  %v20351_v50 = vld [vmem:[#allocation6 + $0x7c4] ss:$8 sps:$4 sm:$0xff]  }
 0x758   :  { %12488 = vmatprep.subr.bf16.mxu0 %v20273_v49  ;;  %13333 = vmatprep.subr.bf16.mxu1 %v20276_v9  ;;  %v20354_v49 = vld [vmem:[#allocation6 + $0xb44] ss:$8 sps:$4 sm:$0xff]   ;;  %v20349_v9 = vld [vmem:[#allocation6 + $0x7c0] ss:$8 sps:$4 sm:$0xff]  }
 0x75b   :  { %12489 = vmatpush1.bf16.msra.mxu0 %v20271_v13  ;;  %13334 = vmatpush1.bf16.msra.mxu1 %v20274_v12  ;;  %v20352_v13 = vld [vmem:[#allocation6 + $0xb40] ss:$8 sps:$4 sm:$0xff]   ;;  %v20357_v12 = vld [vmem:[#allocation6 + $0x7d4] ss:$8 sps:$4 sm:$0xff]  }
 0x75c   :  { %14039 = vmatprep.subr.bf16.mxu0 %v20279_v21  ;;  %14888 = vmatprep.subr.bf16.mxu1 %v20282_v14  ;;  %v20360_v21 = vld [vmem:[#allocation6 + $0xb54] ss:$8 sps:$4 sm:$0xff]   ;;  %v20355_v14 = vld [vmem:[#allocation6 + $0x7d0] ss:$8 sps:$4 sm:$0xff]  }
 0x75e   :  { %12507 = vmatmul.mubr.bf16.vlgmr.msra.gmra.mrb[56].mxu0 %v21739_v59  ;;  %13352 = vmatmul.mubr.bf16.vlgmr.msra.gmra.mrb[64].mxu1 %v21739_v59 }
 0x75f   :  { %14040 = vmatpush1.bf16.msra.mxu0 %v20277_v42  ;;  %14071 = vmatprep.mubr.bf16.mxu0 %v21707_v46  ;;  %v20358_v42 = vld [vmem:[#allocation6 + $0xb50] ss:$8 sps:$4 sm:$0xff]  }
 0x760   :  { %14889 = vmatpush1.bf16.msra.mxu1 %v20280_v47  ;;  %14920 = vmatprep.mubr.bf16.mxu1 %v21707_v46  ;;  %v20306_v46 = vld [vmem:[#allocation6 + $0xac4] ss:$8 sps:$4 sm:$0xff]  }
 0x761   :  { %14041 = vmatprep.subr.bf16.mxu0 %v20285_v41  ;;  %14890 = vmatprep.subr.bf16.mxu1 %v20288_v62  ;;  %v20363_v47 = vld [vmem:[#allocation6 + $0x7e4] ss:$8 sps:$4 sm:$0xff]   ;;  %v20361_v62 = vld [vmem:[#allocation6 + $0x7e0] ss:$8 sps:$4 sm:$0xff]  }
 0x762   :  { %v20366_v41 = vld [vmem:[#allocation6 + $0xb64] ss:$8 sps:$4 sm:$0xff]  }
 0x763   :  { %14042 = vmatpush1.bf16.msra.mxu0 %v20283_v24  ;;  %v20364_v24 = vld [vmem:[#allocation6 + $0xb60] ss:$8 sps:$4 sm:$0xff]  }
 0x764   :  { %14891 = vmatpush1.bf16.msra.mxu1 %v20286_v58  ;;  %14043 = vmatprep.subr.bf16.mxu0 %v20291_v8  ;;  %v20369_v58 = vld [vmem:[#allocation6 + $0x7f4] ss:$8 sps:$4 sm:$0xff]  }
 0x765   :  { %14892 = vmatprep.subr.bf16.mxu1 %v20294_v51  ;;  %v20372_v8 = vld [vmem:[#allocation6 + $0xb74] ss:$8 sps:$4 sm:$0xff]   ;;  %v20367_v51 = vld [vmem:[#allocation6 + $0x7f0] ss:$8 sps:$4 sm:$0xff]  }
 0x767   :  { %14044 = vmatpush1.bf16.msra.mxu0 %v20289_v48  ;;  %v20370_v48 = vld [vmem:[#allocation6 + $0xb70] ss:$8 sps:$4 sm:$0xff]  }
 0x768   :  { %14893 = vmatpush1.bf16.msra.mxu1 %v20292_v60  ;;  %14045 = vmatprep.subr.bf16.mxu0 %v20297_v7  ;;  %v20375_v60 = vld [vmem:[#allocation6 + $0x804] ss:$8 sps:$4 sm:$0xff]  }
 0x769   :  { %14894 = vmatprep.subr.bf16.mxu1 %v20300_v18  ;;  %v20378_v7 = vld [vmem:[#allocation6 + $0xb84] ss:$8 sps:$4 sm:$0xff]   ;;  %v20373_v18 = vld [vmem:[#allocation6 + $0x800] ss:$8 sps:$4 sm:$0xff]  }
 0x76b   :  { %14046 = vmatpush1.bf16.msra.mxu0 %v20295_v52  ;;  %v20376_v52 = vld [vmem:[#allocation6 + $0xb80] ss:$8 sps:$4 sm:$0xff]  }
 0x76c   :  { %14895 = vmatpush1.bf16.msra.mxu1 %v20298_v2  ;;  %14047 = vmatprep.subr.bf16.mxu0 %v20303_v37  ;;  %v20381_v2 = vld [vmem:[#allocation6 + $0x814] ss:$8 sps:$4 sm:$0xff]  }
 0x76d   :  { %14896 = vmatprep.subr.bf16.mxu1 %v20306_v46  ;;  %v20384_v37 = vld [vmem:[#allocation6 + $0xb94] ss:$8 sps:$4 sm:$0xff]   ;;  %v20379_v46 = vld [vmem:[#allocation6 + $0x810] ss:$8 sps:$4 sm:$0xff]  }
 0x76f   :  { %14048 = vmatpush1.bf16.msra.mxu0 %v20301_v15  ;;  %v20382_v15 = vld [vmem:[#allocation6 + $0xb90] ss:$8 sps:$4 sm:$0xff]  }
 0x770   :  { %14897 = vmatpush1.bf16.msra.mxu1 %v20304_v43  ;;  %14049 = vmatprep.subr.bf16.mxu0 %v20309_v34  ;;  %v20387_v43 = vld [vmem:[#allocation6 + $0x824] ss:$8 sps:$4 sm:$0xff]  }
 0x771   :  { %14898 = vmatprep.subr.bf16.mxu1 %v20312_v55  ;;  %v20390_v34 = vld [vmem:[#allocation6 + $0xba4] ss:$8 sps:$4 sm:$0xff]   ;;  %v20385_v55 = vld [vmem:[#allocation6 + $0x820] ss:$8 sps:$4 sm:$0xff]  }
 0x773   :  { %14050 = vmatpush1.bf16.msra.mxu0 %v20307_v22  ;;  %v20388_v22 = vld [vmem:[#allocation6 + $0xba0] ss:$8 sps:$4 sm:$0xff]  }
 0x774   :  { %14899 = vmatpush1.bf16.msra.mxu1 %v20310_v44  ;;  %14051 = vmatprep.subr.bf16.mxu0 %v20315_v54  ;;  %v20393_v44 = vld [vmem:[#allocation6 + $0x834] ss:$8 sps:$4 sm:$0xff]   ;;  %v20391_v54 = vld [vmem:[#allocation6 + $0x830] ss:$8 sps:$4 sm:$0xff]  }
 0x775   :  { %14900 = vmatprep.subr.bf16.mxu1 %v20318_v39  ;;  %v20394_v39 = vld [vmem:[#allocation6 + $0xbb0] ss:$8 sps:$4 sm:$0xff]  }
 0x777   :  { %14052 = vmatpush1.bf16.msra.mxu0 %v20313_v11  ;;  %v20399_v11 = vld [vmem:[#allocation6 + $0x844] ss:$8 sps:$4 sm:$0xff]  }
 0x778   :  { %14901 = vmatpush1.bf16.msra.mxu1 %v20316_v19  ;;  %14053 = vmatprep.subr.bf16.mxu0 %v20321_v25  ;;  %v20402_v19 = vld [vmem:[#allocation6 + $0xbc4] ss:$8 sps:$4 sm:$0xff]   ;;  %v20400_v25 = vld [vmem:[#allocation6 + $0xbc0] ss:$8 sps:$4 sm:$0xff]  }
 0x779   :  { %14902 = vmatprep.subr.bf16.mxu1 %v20324_v32  ;;  %v20405_v32 = vld [vmem:[#allocation6 + $0x854] ss:$8 sps:$4 sm:$0xff]  }
 0x77b   :  { %14054 = vmatpush1.bf16.msra.mxu0 %v20319_v35  ;;  %v20408_v35 = vld [vmem:[#allocation6 + $0xbd4] ss:$8 sps:$4 sm:$0xff]  }
 0x77c   :  { %14903 = vmatpush1.bf16.msra.mxu1 %v20322_v61  ;;  %14055 = vmatprep.subr.bf16.mxu0 %v20327_v28  ;;  %v20403_v61 = vld [vmem:[#allocation6 + $0x850] ss:$8 sps:$4 sm:$0xff]  }
 0x77d   :  { %14904 = vmatprep.subr.bf16.mxu1 %v20330_v36  ;;  %v20406_v28 = vld [vmem:[#allocation6 + $0xbd0] ss:$8 sps:$4 sm:$0xff]   ;;  %v20411_v36 = vld [vmem:[#allocation6 + $0x864] ss:$8 sps:$4 sm:$0xff]  }
 0x77f   :  { %14056 = vmatpush1.bf16.msra.mxu0 %v20325_v4  ;;  %v20414_v4 = vld [vmem:[#allocation6 + $0xbe4] ss:$8 sps:$4 sm:$0xff]  }
 0x780   :  { %14905 = vmatpush1.bf16.msra.mxu1 %v20328_v26  ;;  %14057 = vmatprep.subr.bf16.mxu0 %v20333_v38  ;;  %v20409_v26 = vld [vmem:[#allocation6 + $0x860] ss:$8 sps:$4 sm:$0xff]  }
 0x781   :  { %14906 = vmatprep.subr.bf16.mxu1 %v20336_v56  ;;  %v20412_v38 = vld [vmem:[#allocation6 + $0xbe0] ss:$8 sps:$4 sm:$0xff]   ;;  %v20417_v56 = vld [vmem:[#allocation6 + $0x874] ss:$8 sps:$4 sm:$0xff]  }
 0x783   :  { %14058 = vmatpush1.bf16.msra.mxu0 %v20331_v30  ;;  %v20420_v30 = vld [vmem:[#allocation6 + $0xbf4] ss:$8 sps:$4 sm:$0xff]  }
 0x784   :  { %14907 = vmatpush1.bf16.msra.mxu1 %v20334_v1  ;;  %14059 = vmatprep.subr.bf16.mxu0 %v20339_v53  ;;  %v20415_v1 = vld [vmem:[#allocation6 + $0x870] ss:$8 sps:$4 sm:$0xff]  }
 0x785   :  { %14908 = vmatprep.subr.bf16.mxu1 %v20342_v33  ;;  %v20418_v53 = vld [vmem:[#allocation6 + $0xbf0] ss:$8 sps:$4 sm:$0xff]   ;;  %v20423_v33 = vld [vmem:[#allocation6 + $0x884] ss:$8 sps:$4 sm:$0xff]  }
 0x787   :  { %14060 = vmatpush1.bf16.msra.mxu0 %v20337_v3  ;;  %v20426_v3 = vld [vmem:[#allocation6 + $0xc04] ss:$8 sps:$4 sm:$0xff]  }
 0x788   :  { %14909 = vmatpush1.bf16.msra.mxu1 %v20340_v45  ;;  %14061 = vmatprep.subr.bf16.mxu0 %v20345_v31  ;;  %v20421_v45 = vld [vmem:[#allocation6 + $0x880] ss:$8 sps:$4 sm:$0xff]  }
 0x789   :  { %14910 = vmatprep.subr.bf16.mxu1 %v20348_v20  ;;  %v20424_v31 = vld [vmem:[#allocation6 + $0xc00] ss:$8 sps:$4 sm:$0xff]   ;;  %v20429_v20 = vld [vmem:[#allocation6 + $0x894] ss:$8 sps:$4 sm:$0xff]  }
 0x78b   :  { %14062 = vmatpush1.bf16.msra.mxu0 %v20343_v29  ;;  %v20432_v29 = vld [vmem:[#allocation6 + $0xc14] ss:$8 sps:$4 sm:$0xff]  }
 0x78c   :  { %14911 = vmatpush1.bf16.msra.mxu1 %v20346_v63  ;;  %14063 = vmatprep.subr.bf16.mxu0 %v20351_v50  ;;  %v20427_v63 = vld [vmem:[#allocation6 + $0x890] ss:$8 sps:$4 sm:$0xff]  }
 0x78d   :  { %14912 = vmatprep.subr.bf16.mxu1 %v20354_v49  ;;  %v20430_v50 = vld [vmem:[#allocation6 + $0xc10] ss:$8 sps:$4 sm:$0xff]   ;;  %v20435_v49 = vld [vmem:[#allocation6 + $0x8a4] ss:$8 sps:$4 sm:$0xff]  }
 0x78f   :  { %14064 = vmatpush1.bf16.msra.mxu0 %v20349_v9  ;;  %v20438_v9 = vld [vmem:[#allocation6 + $0xc24] ss:$8 sps:$4 sm:$0xff]  }
 0x790   :  { %14913 = vmatpush1.bf16.msra.mxu1 %v20352_v13  ;;  %14065 = vmatprep.subr.bf16.mxu0 %v20357_v12  ;;  %v20433_v13 = vld [vmem:[#allocation6 + $0x8a0] ss:$8 sps:$4 sm:$0xff]  }
 0x791   :  { %14914 = vmatprep.subr.bf16.mxu1 %v20360_v21  ;;  %v20436_v12 = vld [vmem:[#allocation6 + $0xc20] ss:$8 sps:$4 sm:$0xff]   ;;  %v20441_v21 = vld [vmem:[#allocation6 + $0x8b4] ss:$8 sps:$4 sm:$0xff]  }
 0x793   :  { %14066 = vmatpush1.bf16.msra.mxu0 %v20355_v14  ;;  %v20444_v14 = vld [vmem:[#allocation6 + $0xc34] ss:$8 sps:$4 sm:$0xff]  }
 0x794   :  { %14915 = vmatpush1.bf16.msra.mxu1 %v20358_v42  ;;  %14067 = vmatprep.subr.bf16.mxu0 %v20363_v47  ;;  %v20439_v42 = vld [vmem:[#allocation6 + $0x8b0] ss:$8 sps:$4 sm:$0xff]  }
 0x795   :  { %14916 = vmatprep.subr.bf16.mxu1 %v20366_v41  ;;  %v20442_v47 = vld [vmem:[#allocation6 + $0xc30] ss:$8 sps:$4 sm:$0xff]   ;;  %v20447_v41 = vld [vmem:[#allocation6 + $0x8c4] ss:$8 sps:$4 sm:$0xff]  }
 0x797   :  { %14068 = vmatpush1.bf16.msra.mxu0 %v20361_v62  ;;  %v20450_v62 = vld [vmem:[#allocation6 + $0xc44] ss:$8 sps:$4 sm:$0xff]  }
 0x798   :  { %14917 = vmatpush1.bf16.msra.mxu1 %v20364_v24  ;;  %14069 = vmatprep.subr.bf16.mxu0 %v20369_v58  ;;  %v20445_v24 = vld [vmem:[#allocation6 + $0x8c0] ss:$8 sps:$4 sm:$0xff]  }
 0x799   :  { %14918 = vmatprep.subr.bf16.mxu1 %v20372_v8  ;;  %v20448_v58 = vld [vmem:[#allocation6 + $0xc40] ss:$8 sps:$4 sm:$0xff]   ;;  %v20453_v8 = vld [vmem:[#allocation6 + $0x8d4] ss:$8 sps:$4 sm:$0xff]  }
 0x79b   :  { %14070 = vmatpush1.bf16.msra.mxu0 %v20367_v51  ;;  %v20456_v51 = vld [vmem:[#allocation6 + $0xc54] ss:$8 sps:$4 sm:$0xff]  }
 0x79c   :  { %14919 = vmatpush1.bf16.msra.mxu1 %v20370_v48  ;;  %14082 = vmatprep.subr.bf16.mxu0 %v20375_v60  ;;  %v20451_v48 = vld [vmem:[#allocation6 + $0x8d0] ss:$8 sps:$4 sm:$0xff]  }
 0x79d   :  { %14931 = vmatprep.subr.bf16.mxu1 %v20378_v7  ;;  %v20454_v60 = vld [vmem:[#allocation6 + $0xc50] ss:$8 sps:$4 sm:$0xff]   ;;  %v20459_v7 = vld [vmem:[#allocation6 + $0x8e4] ss:$8 sps:$4 sm:$0xff]  }
 0x79e   :  { %14072 = vmatmul.mubr.bf16.vlgmr.msra.gmra.mrb[60].mxu0 %v21705_v17 }
 0x79f   :  { %14921 = vmatmul.mubr.bf16.vlgmr.msra.gmra.mrb[68].mxu1 %v21705_v17  ;;  %14083 = vmatpush1.bf16.msra.mxu0 %v20373_v18  ;;  %v20396_v17 = vld [vmem:[#allocation6 + $0xbb4] ss:$8 sps:$4 sm:$0xff]   ;;  %v20462_v18 = vld [vmem:[#allocation6 + $0xc64] ss:$8 sps:$4 sm:$0xff]  }
 0x7a0   :  { %14114 = vmatprep.mubr.bf16.mxu0 %v21723_v5  ;;  %14932 = vmatpush1.bf16.msra.mxu1 %v20376_v52  ;;  %v20457_v52 = vld [vmem:[#allocation6 + $0x8e0] ss:$8 sps:$4 sm:$0xff]  }
 0x7a1   :  { %14963 = vmatprep.mubr.bf16.mxu1 %v21723_v5  ;;  %14084 = vmatprep.subr.bf16.mxu0 %v20381_v2  ;;  %v20397_v5 = vld [vmem:[#allocation6 + $0x840] ss:$8 sps:$4 sm:$0xff]  }
 0x7a2   :  { %14933 = vmatprep.subr.bf16.mxu1 %v20384_v37  ;;  %v20460_v2 = vld [vmem:[#allocation6 + $0xc60] ss:$8 sps:$4 sm:$0xff]   ;;  %v20465_v37 = vld [vmem:[#allocation6 + $0x8f4] ss:$8 sps:$4 sm:$0xff]  }
 0x7a3   :  { %14085 = vmatpush1.bf16.msra.mxu0 %v20379_v46  ;;  %v20468_v46 = vld [vmem:[#allocation6 + $0xc74] ss:$8 sps:$4 sm:$0xff]  }
 0x7a4   :  { %14934 = vmatpush1.bf16.msra.mxu1 %v20382_v15  ;;  %14086 = vmatprep.subr.bf16.mxu0 %v20387_v43  ;;  %v20463_v15 = vld [vmem:[#allocation6 + $0x8f0] ss:$8 sps:$4 sm:$0xff]  }
 0x7a5   :  { %14935 = vmatprep.subr.bf16.mxu1 %v20390_v34  ;;  %v20466_v43 = vld [vmem:[#allocation6 + $0xc70] ss:$8 sps:$4 sm:$0xff]   ;;  %v20471_v34 = vld [vmem:[#allocation6 + $0x904] ss:$8 sps:$4 sm:$0xff]  }
 0x7a7   :  { %14087 = vmatpush1.bf16.msra.mxu0 %v20385_v55  ;;  %v20474_v55 = vld [vmem:[#allocation6 + $0xc84] ss:$8 sps:$4 sm:$0xff]  }
 0x7a8   :  { %14936 = vmatpush1.bf16.msra.mxu1 %v20388_v22  ;;  %14088 = vmatprep.subr.bf16.mxu0 %v20393_v44  ;;  %v20469_v22 = vld [vmem:[#allocation6 + $0x900] ss:$8 sps:$4 sm:$0xff]  }
 0x7a9   :  { %14937 = vmatprep.subr.bf16.mxu1 %v20396_v17  ;;  %v20472_v44 = vld [vmem:[#allocation6 + $0xc80] ss:$8 sps:$4 sm:$0xff]   ;;  %v20477_v17 = vld [vmem:[#allocation6 + $0x914] ss:$8 sps:$4 sm:$0xff]  }
 0x7ab   :  { %14089 = vmatpush1.bf16.msra.mxu0 %v20391_v54  ;;  %v20480_v54 = vld [vmem:[#allocation6 + $0xc94] ss:$8 sps:$4 sm:$0xff]  }
 0x7ac   :  { %14938 = vmatpush1.bf16.msra.mxu1 %v20394_v39  ;;  %14090 = vmatprep.subr.bf16.mxu0 %v20399_v11  ;;  %v20475_v39 = vld [vmem:[#allocation6 + $0x910] ss:$8 sps:$4 sm:$0xff]  }
 0x7ad   :  { %14939 = vmatprep.subr.bf16.mxu1 %v20402_v19  ;;  %v20478_v11 = vld [vmem:[#allocation6 + $0xc90] ss:$8 sps:$4 sm:$0xff]   ;;  %v20483_v19 = vld [vmem:[#allocation6 + $0x924] ss:$8 sps:$4 sm:$0xff]  }
 0x7af   :  { %14091 = vmatpush1.bf16.msra.mxu0 %v20397_v5  ;;  %v20486_v5 = vld [vmem:[#allocation6 + $0xca4] ss:$8 sps:$4 sm:$0xff]  }
 0x7b0   :  { %14940 = vmatpush1.bf16.msra.mxu1 %v20400_v25  ;;  %14092 = vmatprep.subr.bf16.mxu0 %v20405_v32  ;;  %v20481_v25 = vld [vmem:[#allocation6 + $0x920] ss:$8 sps:$4 sm:$0xff]  }
 0x7b1   :  { %14941 = vmatprep.subr.bf16.mxu1 %v20408_v35  ;;  %v20484_v32 = vld [vmem:[#allocation6 + $0xca0] ss:$8 sps:$4 sm:$0xff]   ;;  %v20489_v35 = vld [vmem:[#allocation6 + $0x934] ss:$8 sps:$4 sm:$0xff]  }
 0x7b3   :  { %14093 = vmatpush1.bf16.msra.mxu0 %v20403_v61  ;;  %v20487_v61 = vld [vmem:[#allocation6 + $0x930] ss:$8 sps:$4 sm:$0xff]  }
 0x7b4   :  { %14942 = vmatpush1.bf16.msra.mxu1 %v20406_v28  ;;  %14094 = vmatprep.subr.bf16.mxu0 %v20411_v36  ;;  %v20490_v28 = vld [vmem:[#allocation6 + $0xcb0] ss:$8 sps:$4 sm:$0xff]   ;;  %v20495_v36 = vld [vmem:[#allocation6 + $0x944] ss:$8 sps:$4 sm:$0xff]  }
 0x7b5   :  { %14943 = vmatprep.subr.bf16.mxu1 %v20414_v4  ;;  %v20498_v4 = vld [vmem:[#allocation6 + $0xcc4] ss:$8 sps:$4 sm:$0xff]  }
 0x7b7   :  { %14095 = vmatpush1.bf16.msra.mxu0 %v20409_v26  ;;  %v20496_v26 = vld [vmem:[#allocation6 + $0xcc0] ss:$8 sps:$4 sm:$0xff]  }
 0x7b8   :  { %14944 = vmatpush1.bf16.msra.mxu1 %v20412_v38  ;;  %14096 = vmatprep.subr.bf16.mxu0 %v20417_v56  ;;  %v20501_v38 = vld [vmem:[#allocation6 + $0x954] ss:$8 sps:$4 sm:$0xff]  }
 0x7b9   :  { %14945 = vmatprep.subr.bf16.mxu1 %v20420_v30  ;;  %v20504_v56 = vld [vmem:[#allocation6 + $0xcd4] ss:$8 sps:$4 sm:$0xff]   ;;  %v20499_v30 = vld [vmem:[#allocation6 + $0x950] ss:$8 sps:$4 sm:$0xff]  }
 0x7bb   :  { %14097 = vmatpush1.bf16.msra.mxu0 %v20415_v1  ;;  %v20502_v1 = vld [vmem:[#allocation6 + $0xcd0] ss:$8 sps:$4 sm:$0xff]  }
 0x7bc   :  { %14946 = vmatpush1.bf16.msra.mxu1 %v20418_v53  ;;  %14098 = vmatprep.subr.bf16.mxu0 %v20423_v33  ;;  %v20507_v53 = vld [vmem:[#allocation6 + $0x964] ss:$8 sps:$4 sm:$0xff]  }
 0x7bd   :  { %14947 = vmatprep.subr.bf16.mxu1 %v20426_v3  ;;  %v20510_v33 = vld [vmem:[#allocation6 + $0xce4] ss:$8 sps:$4 sm:$0xff]   ;;  %v20505_v3 = vld [vmem:[#allocation6 + $0x960] ss:$8 sps:$4 sm:$0xff]  }
 0x7bf   :  { %14099 = vmatpush1.bf16.msra.mxu0 %v20421_v45  ;;  %v20508_v45 = vld [vmem:[#allocation6 + $0xce0] ss:$8 sps:$4 sm:$0xff]  }
 0x7c0   :  { %14948 = vmatpush1.bf16.msra.mxu1 %v20424_v31  ;;  %14100 = vmatprep.subr.bf16.mxu0 %v20429_v20  ;;  %v20513_v31 = vld [vmem:[#allocation6 + $0x974] ss:$8 sps:$4 sm:$0xff]  }
 0x7c1   :  { %14949 = vmatprep.subr.bf16.mxu1 %v20432_v29  ;;  %v20516_v20 = vld [vmem:[#allocation6 + $0xcf4] ss:$8 sps:$4 sm:$0xff]   ;;  %v20511_v29 = vld [vmem:[#allocation6 + $0x970] ss:$8 sps:$4 sm:$0xff]  }
 0x7c3   :  { %14101 = vmatpush1.bf16.msra.mxu0 %v20427_v63  ;;  %v20514_v63 = vld [vmem:[#allocation6 + $0xcf0] ss:$8 sps:$4 sm:$0xff]  }
 0x7c4   :  { %14950 = vmatpush1.bf16.msra.mxu1 %v20430_v50  ;;  %14102 = vmatprep.subr.bf16.mxu0 %v20435_v49  ;;  %v20519_v50 = vld [vmem:[#allocation6 + $0x984] ss:$8 sps:$4 sm:$0xff]  }
 0x7c5   :  { %14951 = vmatprep.subr.bf16.mxu1 %v20438_v9  ;;  %v20522_v49 = vld [vmem:[#allocation6 + $0xd04] ss:$8 sps:$4 sm:$0xff]   ;;  %v20517_v9 = vld [vmem:[#allocation6 + $0x980] ss:$8 sps:$4 sm:$0xff]  }
 0x7c7   :  { %14103 = vmatpush1.bf16.msra.mxu0 %v20433_v13  ;;  %v20520_v13 = vld [vmem:[#allocation6 + $0xd00] ss:$8 sps:$4 sm:$0xff]  }
 0x7c8   :  { %14952 = vmatpush1.bf16.msra.mxu1 %v20436_v12  ;;  %14104 = vmatprep.subr.bf16.mxu0 %v20441_v21  ;;  %v20525_v12 = vld [vmem:[#allocation6 + $0x994] ss:$8 sps:$4 sm:$0xff]  }
 0x7c9   :  { %14953 = vmatprep.subr.bf16.mxu1 %v20444_v14  ;;  %v20528_v21 = vld [vmem:[#allocation6 + $0xd14] ss:$8 sps:$4 sm:$0xff]   ;;  %v20523_v14 = vld [vmem:[#allocation6 + $0x990] ss:$8 sps:$4 sm:$0xff]  }
 0x7cb   :  { %14105 = vmatpush1.bf16.msra.mxu0 %v20439_v42  ;;  %v20526_v42 = vld [vmem:[#allocation6 + $0xd10] ss:$8 sps:$4 sm:$0xff]  }
 0x7cc   :  { %14954 = vmatpush1.bf16.msra.mxu1 %v20442_v47  ;;  %14106 = vmatprep.subr.bf16.mxu0 %v20447_v41  ;;  %v20531_v47 = vld [vmem:[#allocation6 + $0x9a4] ss:$8 sps:$4 sm:$0xff]  }
 0x7cd   :  { %14955 = vmatprep.subr.bf16.mxu1 %v20450_v62  ;;  %v20534_v41 = vld [vmem:[#allocation6 + $0xd24] ss:$8 sps:$4 sm:$0xff]   ;;  %v20529_v62 = vld [vmem:[#allocation6 + $0x9a0] ss:$8 sps:$4 sm:$0xff]  }
 0x7cf   :  { %14107 = vmatpush1.bf16.msra.mxu0 %v20445_v24  ;;  %v20532_v24 = vld [vmem:[#allocation6 + $0xd20] ss:$8 sps:$4 sm:$0xff]  }
 0x7d0   :  { %14956 = vmatpush1.bf16.msra.mxu1 %v20448_v58  ;;  %14108 = vmatprep.subr.bf16.mxu0 %v20453_v8  ;;  %v20537_v58 = vld [vmem:[#allocation6 + $0x9b4] ss:$8 sps:$4 sm:$0xff]  }
 0x7d1   :  { %14957 = vmatprep.subr.bf16.mxu1 %v20456_v51  ;;  %v20540_v8 = vld [vmem:[#allocation6 + $0xd34] ss:$8 sps:$4 sm:$0xff]   ;;  %v20535_v51 = vld [vmem:[#allocation6 + $0x9b0] ss:$8 sps:$4 sm:$0xff]  }
 0x7d3   :  { %14109 = vmatpush1.bf16.msra.mxu0 %v20451_v48  ;;  %v20538_v48 = vld [vmem:[#allocation6 + $0xd30] ss:$8 sps:$4 sm:$0xff]  }
 0x7d4   :  { %14958 = vmatpush1.bf16.msra.mxu1 %v20454_v60  ;;  %14110 = vmatprep.subr.bf16.mxu0 %v20459_v7  ;;  %v20543_v60 = vld [vmem:[#allocation6 + $0x9c4] ss:$8 sps:$4 sm:$0xff]  }
 0x7d5   :  { %14959 = vmatprep.subr.bf16.mxu1 %v20462_v18  ;;  %v20546_v7 = vld [vmem:[#allocation6 + $0xd44] ss:$8 sps:$4 sm:$0xff]   ;;  %v20541_v18 = vld [vmem:[#allocation6 + $0x9c0] ss:$8 sps:$4 sm:$0xff]  }
 0x7d7   :  { %14111 = vmatpush1.bf16.msra.mxu0 %v20457_v52  ;;  %v20544_v52 = vld [vmem:[#allocation6 + $0xd40] ss:$8 sps:$4 sm:$0xff]  }
 0x7d8   :  { %14960 = vmatpush1.bf16.msra.mxu1 %v20460_v2  ;;  %14112 = vmatprep.subr.bf16.mxu0 %v20465_v37  ;;  %v20549_v2 = vld [vmem:[#allocation6 + $0x9d4] ss:$8 sps:$4 sm:$0xff]  }
 0x7d9   :  { %14961 = vmatprep.subr.bf16.mxu1 %v20468_v46  ;;  %v20552_v37 = vld [vmem:[#allocation6 + $0xd54] ss:$8 sps:$4 sm:$0xff]   ;;  %v20547_v46 = vld [vmem:[#allocation6 + $0x9d0] ss:$8 sps:$4 sm:$0xff]  }
 0x7db   :  { %14113 = vmatpush1.bf16.msra.mxu0 %v20463_v15  ;;  %v20550_v15 = vld [vmem:[#allocation6 + $0xd50] ss:$8 sps:$4 sm:$0xff]  }
 0x7dc   :  { %14962 = vmatpush1.bf16.msra.mxu1 %v20466_v43  ;;  %14125 = vmatprep.subr.bf16.mxu0 %v20471_v34  ;;  %v20555_v43 = vld [vmem:[#allocation6 + $0x9e4] ss:$8 sps:$4 sm:$0xff]  }
 0x7dd   :  { %14974 = vmatprep.subr.bf16.mxu1 %v20474_v55  ;;  %v20558_v34 = vld [vmem:[#allocation6 + $0xd64] ss:$8 sps:$4 sm:$0xff]   ;;  %v20553_v55 = vld [vmem:[#allocation6 + $0x9e0] ss:$8 sps:$4 sm:$0xff]  }
 0x7de   :  { %14115 = vmatmul.mubr.bf16.vlgmr.msra.gmra.mrb[60].mxu0 %v21721_v27 }
 0x7df   :  { %14964 = vmatmul.mubr.bf16.vlgmr.msra.gmra.mrb[68].mxu1 %v21721_v27  ;;  %14126 = vmatpush1.bf16.msra.mxu0 %v20469_v22  ;;  %v20492_v27 = vld [vmem:[#allocation6 + $0xcb4] ss:$8 sps:$4 sm:$0xff]   ;;  %v20556_v22 = vld [vmem:[#allocation6 + $0xd60] ss:$8 sps:$4 sm:$0xff]  }
 0x7e0   :  { %14157 = vmatprep.mubr.bf16.mxu0 %v21751_v40  ;;  %14975 = vmatpush1.bf16.msra.mxu1 %v20472_v44  ;;  %v20561_v44 = vld [vmem:[#allocation6 + $0x9f4] ss:$8 sps:$4 sm:$0xff]  }
 0x7e1   :  { %15006 = vmatprep.mubr.bf16.mxu1 %v21751_v40  ;;  %14127 = vmatprep.subr.bf16.mxu0 %v20477_v17  ;;  %v20493_v40 = vld [vmem:[#allocation6 + $0x940] ss:$8 sps:$4 sm:$0xff]   ;;  %v20564_v17 = vld [vmem:[#allocation6 + $0xd74] ss:$8 sps:$4 sm:$0xff]  }
 0x7e2   :  { %14976 = vmatprep.subr.bf16.mxu1 %v20480_v54  ;;  %v20559_v54 = vld [vmem:[#allocation6 + $0x9f0] ss:$8 sps:$4 sm:$0xff]  }
 0x7e3   :  { %14128 = vmatpush1.bf16.msra.mxu0 %v20475_v39  ;;  %v20562_v39 = vld [vmem:[#allocation6 + $0xd70] ss:$8 sps:$4 sm:$0xff]  }
 0x7e4   :  { %14977 = vmatpush1.bf16.msra.mxu1 %v20478_v11  ;;  %14129 = vmatprep.subr.bf16.mxu0 %v20483_v19  ;;  %v20567_v11 = vld [vmem:[#allocation6 + $0xa04] ss:$8 sps:$4 sm:$0xff]  }
 0x7e5   :  { %14978 = vmatprep.subr.bf16.mxu1 %v20486_v5  ;;  %v20570_v19 = vld [vmem:[#allocation6 + $0xd84] ss:$8 sps:$4 sm:$0xff]   ;;  %v20565_v5 = vld [vmem:[#allocation6 + $0xa00] ss:$8 sps:$4 sm:$0xff]  }
 0x7e7   :  { %14130 = vmatpush1.bf16.msra.mxu0 %v20481_v25  ;;  %v20568_v25 = vld [vmem:[#allocation6 + $0xd80] ss:$8 sps:$4 sm:$0xff]  }
 0x7e8   :  { %14979 = vmatpush1.bf16.msra.mxu1 %v20484_v32  ;;  %14131 = vmatprep.subr.bf16.mxu0 %v20489_v35  ;;  %v20573_v32 = vld [vmem:[#allocation6 + $0xa14] ss:$8 sps:$4 sm:$0xff]  }
 0x7e9   :  { %14980 = vmatprep.subr.bf16.mxu1 %v20492_v27  ;;  %v20576_v35 = vld [vmem:[#allocation6 + $0xd94] ss:$8 sps:$4 sm:$0xff]   ;;  %v20571_v27 = vld [vmem:[#allocation6 + $0xa10] ss:$8 sps:$4 sm:$0xff]  }
 0x7eb   :  { %14132 = vmatpush1.bf16.msra.mxu0 %v20487_v61  ;;  %v20574_v61 = vld [vmem:[#allocation6 + $0xd90] ss:$8 sps:$4 sm:$0xff]  }
 0x7ec   :  { %14981 = vmatpush1.bf16.msra.mxu1 %v20490_v28  ;;  %14133 = vmatprep.subr.bf16.mxu0 %v20495_v36  ;;  %v20579_v28 = vld [vmem:[#allocation6 + $0xa24] ss:$8 sps:$4 sm:$0xff]  }
 0x7ed   :  { %14982 = vmatprep.subr.bf16.mxu1 %v20498_v4  ;;  %v20582_v36 = vld [vmem:[#allocation6 + $0xda4] ss:$8 sps:$4 sm:$0xff]   ;;  %v20577_v4 = vld [vmem:[#allocation6 + $0xa20] ss:$8 sps:$4 sm:$0xff]  }
 0x7ef   :  { %14134 = vmatpush1.bf16.msra.mxu0 %v20493_v40  ;;  %v20580_v40 = vld [vmem:[#allocation6 + $0xda0] ss:$8 sps:$4 sm:$0xff]  }
 0x7f0   :  { %14983 = vmatpush1.bf16.msra.mxu1 %v20496_v26  ;;  %14135 = vmatprep.subr.bf16.mxu0 %v20501_v38  ;;  %v20585_v26 = vld [vmem:[#allocation6 + $0xa34] ss:$8 sps:$4 sm:$0xff]   ;;  %v20583_v38 = vld [vmem:[#allocation6 + $0xa30] ss:$8 sps:$4 sm:$0xff]  }
 0x7f1   :  { %14984 = vmatprep.subr.bf16.mxu1 %v20504_v56  ;;  %v20586_v56 = vld [vmem:[#allocation6 + $0xdb0] ss:$8 sps:$4 sm:$0xff]  }
 0x7f3   :  { %14136 = vmatpush1.bf16.msra.mxu0 %v20499_v30  ;;  %v20591_v30 = vld [vmem:[#allocation6 + $0xa44] ss:$8 sps:$4 sm:$0xff]  }
 0x7f4   :  { %14985 = vmatpush1.bf16.msra.mxu1 %v20502_v1  ;;  %14137 = vmatprep.subr.bf16.mxu0 %v20507_v53  ;;  %v20594_v1 = vld [vmem:[#allocation6 + $0xdc4] ss:$8 sps:$4 sm:$0xff]   ;;  %v20589_v53 = vld [vmem:[#allocation6 + $0xa40] ss:$8 sps:$4 sm:$0xff]  }
 0x7f5   :  { %14986 = vmatprep.subr.bf16.mxu1 %v20510_v33  ;;  %v20597_v33 = vld [vmem:[#allocation6 + $0xa54] ss:$8 sps:$4 sm:$0xff]  }
 0x7f7   :  { %14138 = vmatpush1.bf16.msra.mxu0 %v20505_v3  ;;  %v20600_v3 = vld [vmem:[#allocation6 + $0xdd4] ss:$8 sps:$4 sm:$0xff]  }
 0x7f8   :  { %14987 = vmatpush1.bf16.msra.mxu1 %v20508_v45  ;;  %14139 = vmatprep.subr.bf16.mxu0 %v20513_v31  ;;  %v20595_v45 = vld [vmem:[#allocation6 + $0xa50] ss:$8 sps:$4 sm:$0xff]  }
 0x7f9   :  { %14988 = vmatprep.subr.bf16.mxu1 %v20516_v20  ;;  %v20598_v31 = vld [vmem:[#allocation6 + $0xdd0] ss:$8 sps:$4 sm:$0xff]   ;;  %v20603_v20 = vld [vmem:[#allocation6 + $0xa64] ss:$8 sps:$4 sm:$0xff]  }
 0x7fb   :  { %14140 = vmatpush1.bf16.msra.mxu0 %v20511_v29 }
 0x7fc   :  { %14989 = vmatpush1.bf16.msra.mxu1 %v20514_v63  ;;  %14141 = vmatprep.subr.bf16.mxu0 %v20519_v50  ;;  %v20606_v50 = vld [vmem:[#allocation6 + $0xde4] ss:$8 sps:$4 sm:$0xff]  }
 0x7fd   :  { %14990 = vmatprep.subr.bf16.mxu1 %v20522_v49 }
 0x7ff   :  { %14142 = vmatpush1.bf16.msra.mxu0 %v20517_v9 }
 0x800   :  { %14991 = vmatpush1.bf16.msra.mxu1 %v20520_v13  ;;  %14143 = vmatprep.subr.bf16.mxu0 %v20525_v12 }
 0x801   :  { %14992 = vmatprep.subr.bf16.mxu1 %v20528_v21 }
 0x803   :  { %14144 = vmatpush1.bf16.msra.mxu0 %v20523_v14 }
 0x804   :  { %14993 = vmatpush1.bf16.msra.mxu1 %v20526_v42  ;;  %14145 = vmatprep.subr.bf16.mxu0 %v20531_v47  ;;  %v20601_v42 = vld [vmem:[#allocation6 + $0xa60] ss:$8 sps:$4 sm:$0xff]  }
 0x805   :  { %14994 = vmatprep.subr.bf16.mxu1 %v20534_v41 }
 0x807   :  { %14146 = vmatpush1.bf16.msra.mxu0 %v20529_v62 }
 0x808   :  { %14995 = vmatpush1.bf16.msra.mxu1 %v20532_v24  ;;  %14147 = vmatprep.subr.bf16.mxu0 %v20537_v58  ;;  %v20604_v24 = vld [vmem:[#allocation6 + $0xde0] ss:$8 sps:$4 sm:$0xff]   ;;  %v20609_v58 = vld [vmem:[#allocation6 + $0xa74] ss:$8 sps:$4 sm:$0xff]  }
 0x809   :  { %14996 = vmatprep.subr.bf16.mxu1 %v20540_v8 }
 0x80b   :  { %14148 = vmatpush1.bf16.msra.mxu0 %v20535_v51  ;;  %v20612_v51 = vld [vmem:[#allocation6 + $0xdf4] ss:$8 sps:$4 sm:$0xff]  }
 0x80c   :  { %14997 = vmatpush1.bf16.msra.mxu1 %v20538_v48  ;;  %14149 = vmatprep.subr.bf16.mxu0 %v20543_v60  ;;  %v20607_v48 = vld [vmem:[#allocation6 + $0xa70] ss:$8 sps:$4 sm:$0xff]  }
 0x80d   :  { %14998 = vmatprep.subr.bf16.mxu1 %v20546_v7  ;;  %v20610_v60 = vld [vmem:[#allocation6 + $0xdf0] ss:$8 sps:$4 sm:$0xff]   ;;  %v20613_v7 = vld [vmem:[#allocation9 + $0x40] sm:$0xff]  }
 0x80f   :  { %14150 = vmatpush1.bf16.msra.mxu0 %v20541_v18  ;;  %v20614_v18 = vld [vmem:[#allocation9] sm:$0xff]  }
 0x810   :  { %14999 = vmatpush1.bf16.msra.mxu1 %v20544_v52  ;;  %14151 = vmatprep.subr.bf16.mxu0 %v20549_v2  ;;  %v20615_v52 = vld [vmem:[#allocation9 + $0x48] sm:$0xff]  }
 0x811   :  { %15000 = vmatprep.subr.bf16.mxu1 %v20552_v37  ;;  %v20616_v2 = vld [vmem:[#allocation9 + $0x8] sm:$0xff]   ;;  %v20617_v37 = vld [vmem:[#allocation9 + $0x50] sm:$0xff]  }
 0x813   :  { %14152 = vmatpush1.bf16.msra.mxu0 %v20547_v46  ;;  %v20618_v46 = vld [vmem:[#allocation9 + $0x10] sm:$0xff]  }
 0x814   :  { %15001 = vmatpush1.bf16.msra.mxu1 %v20550_v15  ;;  %14153 = vmatprep.subr.bf16.mxu0 %v20555_v43  ;;  %v20619_v15 = vld [vmem:[#allocation9 + $0x58] sm:$0xff]  }
 0x815   :  { %15002 = vmatprep.subr.bf16.mxu1 %v20558_v34  ;;  %v20620_v43 = vld [vmem:[#allocation9 + $0x18] sm:$0xff]   ;;  %v20621_v34 = vld [vmem:[#allocation9 + $0x60] sm:$0xff]  }
 0x817   :  { %14154 = vmatpush1.bf16.msra.mxu0 %v20553_v55  ;;  %v20622_v55 = vld [vmem:[#allocation9 + $0x20] sm:$0xff]  }
 0x818   :  { %15003 = vmatpush1.bf16.msra.mxu1 %v20556_v22  ;;  %14155 = vmatprep.subr.bf16.mxu0 %v20561_v44  ;;  %v20624_v22 = vld [vmem:[#allocation9 + $0x28] sm:$0xff]   ;;  %v20625_v44 = vld [vmem:[#allocation9 + $0x70] sm:$0xff]  }
 0x819   :  { %15004 = vmatprep.subr.bf16.mxu1 %v20564_v17  ;;  %v20626_v17 = vld [vmem:[#allocation9 + $0x30] sm:$0xff]  }
 0x81b   :  { %14156 = vmatpush1.bf16.msra.mxu0 %v20559_v54  ;;  %v20627_v54 = vld [vmem:[#allocation9 + $0x78] sm:$0xff]  }
 0x81c   :  { %15005 = vmatpush1.bf16.msra.mxu1 %v20562_v39  ;;  %14168 = vmatprep.subr.bf16.mxu0 %v20567_v11  ;;  %v20628_v39 = vld [vmem:[#allocation9 + $0x38] sm:$0xff]   ;;  %v20629_v11 = vld [vmem:[#allocation12] sm:$0xff]  }
 0x81d   :  { %15017 = vmatprep.subr.bf16.mxu1 %v20570_v19  ;;  %v20630_v19 = vld [vmem:[#allocation12 + $0x8] sm:$0xff]  }
 0x81e   :  { %14158 = vmatmul.mubr.bf16.vlgmr.msra.gmra.mrb[60].mxu0 %v21749_v57 }
 0x81f   :  { %15007 = vmatmul.mubr.bf16.vlgmr.msra.gmra.mrb[68].mxu1 %v21749_v57  ;;  %14169 = vmatpush1.bf16.msra.mxu0 %v20565_v5  ;;  %v20588_v57 = vld [vmem:[#allocation6 + $0xdb4] ss:$8 sps:$4 sm:$0xff]  }
 0x820   :  { %15018 = vmatpush1.bf16.msra.mxu1 %v20568_v25  ;;  %14170 = vmatprep.subr.bf16.mxu0 %v20573_v32  ;;  %v20631_v5 = vld [vmem:[#allocation12 + $0x10] sm:$0xff]   ;;  %v20632_v25 = vld [vmem:[#allocation12 + $0x18] sm:$0xff]   ;;  %v20633_v32 = vld [vmem:[#allocation12 + $0x20] sm:$0xff]  }
 0x821   :  { %15019 = vmatprep.subr.bf16.mxu1 %v20576_v35  ;;  %14200 = vmatprep.mubr.bf16.mxu0 %v20938_v0  ;;  %v15064_v35 = vld [vmem:[#allocation7] sm:$0x3] }
 0x822   :  { %15049 = vmatprep.mubr.bf16.mxu1 %v20938_v0  ;;  %v20592_v0 = vld [vmem:[#allocation6 + $0xdc0] ss:$8 sps:$4 sm:$0xff]  }
 0x823   :  { %14171 = vmatpush1.bf16.msra.mxu0 %v20571_v27 }
 0x824   :  { %15020 = vmatpush1.bf16.msra.mxu1 %v20574_v61  ;;  %14172 = vmatprep.subr.bf16.mxu0 %v20579_v28 }
 0x825   :  { %15021 = vmatprep.subr.bf16.mxu1 %v20582_v36  ;;  %v15069_v36 = vrot.slane %v15064_v35, %v11605_v10 }
 0x827   :  { %14173 = vmatpush1.bf16.msra.mxu0 %v20577_v4 }
 0x828   :  { %15022 = vmatpush1.bf16.msra.mxu1 %v20580_v40  ;;  %14174 = vmatprep.subr.bf16.mxu0 %v20585_v26 }
 0x829   :  { %15023 = vmatprep.subr.bf16.mxu1 %v20588_v57  ;;  %v15073_v57 = vrot.slane %v15064_v35, %v11609_v6 }
 0x82b   :  { %14175 = vmatpush1.bf16.msra.mxu0 %v20583_v38 }
 0x82c   :  { %15024 = vmatpush1.bf16.msra.mxu1 %v20586_v56  ;;  %14176 = vmatprep.subr.bf16.mxu0 %v20591_v30 }
 0x82d   :  { %15025 = vmatprep.subr.bf16.mxu1 %v20594_v1 }
 0x82f   :  { %14177 = vmatpush1.bf16.msra.mxu0 %v20589_v53 }
 0x830   :  { %15026 = vmatpush1.bf16.msra.mxu1 %v20592_v0  ;;  %14178 = vmatprep.subr.bf16.mxu0 %v20597_v33 }
 0x831   :  { %v21775_v29 = vpop.f32.mrb[56].mxu0  ;;  %v21777_v63 = vpop.f32.mrb[64].mxu1  ;;  %15027 = vmatprep.subr.bf16.mxu1 %v20600_v3 }
 0x832   :  { %v13362_v49 = vmax.f32 %v21775_v29, %v21777_v63  ;;  %v21781_v9 = vpop.f32.mrb[57].mxu0  ;;  %v21783_v13 = vpop.f32.mrb[65].mxu1 }
 0x833   :  { %v13363_v12 = vmax.f32 %v21781_v9, %v21783_v13  ;;  %v21787_v21 = vpop.f32.mrb[58].mxu0  ;;  %v21789_v14 = vpop.f32.mrb[66].mxu1  ;;  %14179 = vmatpush1.bf16.msra.mxu0 %v20595_v45 }
 0x834   :  { %v13364_v47 = vmax.f32 %v21787_v21, %v21789_v14  ;;  %15028 = vmatpush1.bf16.msra.mxu1 %v20598_v31  ;;  %v21793_v41 = vpop.f32.mrb[59].mxu0  ;;  %v21795_v62 = vpop.f32.mrb[67].mxu1  ;;  %14180 = vmatprep.subr.bf16.mxu0 %v20603_v20  ;;  %v20635_v21 = vld [vmem:[#allocation12 + $0x30] sm:$0xff]   ;;  %v20636_v14 = vld [vmem:[#allocation12 + $0x38] sm:$0xff]  }
 0x835   :  { %v13365_v8 = vmax.f32 %v21793_v41, %v21795_v62  ;;  %15029 = vmatprep.subr.bf16.mxu1 %v20606_v50  ;;  %v20639_v41 = vld [vmem:[#allocation15 + $0x10] sm:$0xff]   ;;  %v20640_v62 = vld [vmem:[#allocation15 + $0x18] sm:$0xff]  }
 0x837   :  { %14181 = vmatpush1.bf16.msra.mxu0 %v20601_v42  ;;  %v20637_v42 = vld [vmem:[#allocation15] sm:$0xff]  }
 0x838   :  { %15030 = vmatpush1.bf16.msra.mxu1 %v20604_v24  ;;  %14182 = vmatprep.subr.bf16.mxu0 %v20609_v58  ;;  %v20641_v24 = vld [vmem:[#allocation15 + $0x20] sm:$0xff]   ;;  %v20642_v58 = vld [vmem:[#allocation15 + $0x28] sm:$0xff]  }
 0x839   :  { %15031 = vmatprep.subr.bf16.mxu1 %v20612_v51  ;;  %v17349_v51 = vld [vmem:[#allocation10] ss:$0 sm:$0xff] }
 0x83b   :  { %14183 = vmatpush1.bf16.msra.mxu0 %v20607_v48 }
 0x83c   :  { %15032 = vmatpush1.bf16.msra.mxu1 %v20610_v60  ;;  %17656 = vmatprep.subr.bf16.mxu0 %v20613_v7 }
 0x83d   :  { %17720 = vmatprep.subr.bf16.mxu1 %v20939_v23 }
 0x83e   :  { %14201 = vmatmul.mubr.bf16.vlgmr.msra.gmra.mrb[60].mxu0 %v21739_v59 }
 0x83f   :  { %15050 = vmatmul.mubr.bf16.vlgmr.msra.gmra.mrb[68].mxu1 %v21739_v59  ;;  %17657 = vmatpush3.bf16.msra.mxu0 %v20614_v18  ;;  %v20623_v59 = vld [vmem:[#allocation9 + $0x68] sm:$0xff]  }
 0x840   :  { %17658 = vmatprep.subr.bf16.mxu0 %v20615_v52  ;;  %17736 = vmatprep.mubr.msk.bf16.mxu1 %vm20940_vm1, %v20939_v23 }
 0x841   :  { %17721 = vmatpush3.bf16.msra.mxu1 %v20629_v11 }
 0x842   :  { %17722 = vmatprep.subr.bf16.mxu1 %v20939_v23 }
 0x843   :  { %17659 = vmatpush3.bf16.msra.mxu0 %v20616_v2 }
 0x844   :  { %17660 = vmatprep.subr.bf16.mxu0 %v20617_v37 }
 0x845   :  { %17723 = vmatpush3.bf16.msra.mxu1 %v20630_v19 }
 0x846   :  { %17724 = vmatprep.subr.bf16.mxu1 %v20939_v23 }
 0x847   :  { %17661 = vmatpush3.bf16.msra.mxu0 %v20618_v46 }
 0x848   :  { %17662 = vmatprep.subr.bf16.mxu0 %v20619_v15 }
 0x849   :  { %17725 = vmatpush3.bf16.msra.mxu1 %v20631_v5 }
 0x84a   :  { %17726 = vmatprep.subr.bf16.mxu1 %v20939_v23 }
 0x84b   :  { %17663 = vmatpush3.bf16.msra.mxu0 %v20620_v43 }
 0x84c   :  { %17664 = vmatprep.subr.bf16.mxu0 %v20621_v34  ;;  %v20643_v34 = vld [vmem:[#allocation15 + $0x30] sm:$0xff]  }
 0x84d   :  { %17727 = vmatpush3.bf16.msra.mxu1 %v20632_v25 }
 0x84e   :  { %17728 = vmatprep.subr.bf16.mxu1 %v20939_v23 }
 0x84f   :  { %17665 = vmatpush3.bf16.msra.mxu0 %v20622_v55  ;;  %v20644_v55 = vld [vmem:[#allocation15 + $0x38] sm:$0xff]  }
 0x850   :  { %17666 = vmatprep.subr.bf16.mxu0 %v20623_v59  ;;  %v17366_v59 = vld [vmem:[#allocation13] ss:$0 sm:$0xff] }
 0x851   :  { %17729 = vmatpush3.bf16.msra.mxu1 %v20633_v32  ;;  %v17375_v32 = vld [vmem:[#allocation16] ss:$0 sm:$0xff] }
 0x852   :  { %17730 = vmatprep.subr.bf16.mxu1 %v20939_v23 }
 0x853   :  { %17667 = vmatpush3.bf16.msra.mxu0 %v20624_v22 }
 0x854   :  { %17668 = vmatprep.subr.bf16.mxu0 %v20625_v44 }
 0x857   :  { %17669 = vmatpush3.bf16.msra.mxu0 %v20626_v17 }
 0x858   :  { %17670 = vmatprep.subr.bf16.mxu0 %v20627_v54 }
 0x85b   :  { %17671 = vmatpush3.bf16.msra.mxu0 %v20628_v39 }
 0x85c   :  { %17740 = vmatprep.subr.bf16.mxu0 %v20939_v23 }
 0x911   :  { %v14202_v27 = vpop.f32.mrb[60].mxu0 }
 0x912   :  { %v14211_v61 = vmax.f32 %v13362_v49, %v14202_v27  ;;  %v15051_v28 = vpop.f32.mrb[68].mxu1  ;;  %v14204_v4 = vpop.f32.mrb[61].mxu0 }
 0x913   :  { %v14212_v40 = vmax.f32 %v13363_v12, %v14204_v4  ;;  %v15053_v26 = vpop.f32.mrb[69].mxu1  ;;  %v14206_v38 = vpop.f32.mrb[62].mxu0  ;;  %v20634_v12 = vld [vmem:[#allocation12 + $0x28] sm:$0xff]  }
 0x914   :  { %v15060_v56 = vmax.f32 %v14211_v61, %v15051_v28  ;;  %v14213_v30 = vmax.f32 %v13364_v47, %v14206_v38  ;;  %v15055_v1 = vpop.f32.mrb[70].mxu1  ;;  %v14208_v53 = vpop.f32.mrb[63].mxu0  ;;  %17731 = vmatpush3.bf16.msra.mxu1 %v20634_v12  ;;  %v20638_v47 = vld [vmem:[#allocation15 + $0x8] sm:$0xff]  }
 0x915   :  { %v15061_v0 = vmax.f32 %v14212_v40, %v15053_v26  ;;  %v14214_v10 = vmax.f32 %v13365_v8, %v14208_v53  ;;  %v15057_v33 = vpop.f32.mrb[71].mxu1  ;;  %17732 = vmatprep.subr.bf16.mxu1 %v20939_v23 }
 0x916   :  { %v15076_v3 = vadd.f32 %v15069_v36, %v15060_v56  ;;  %v15062_v45 = vmax.f32 %v14213_v30, %v15055_v1 }
 0x917   :  { %v15077_v31 = vadd.f32 %v15073_v57, %v15061_v0  ;;  %v15063_v20 = vmax.f32 %v14214_v10, %v15057_v33 }
 0x918   :  { %v15078_v16 = vadd.f32 %v15069_v36, %v15062_v45  ;;  %v15080_v29 = vmax.f32 %v15076_v3, 0.0  ;;  %17733 = vmatpush3.bf16.msra.mxu1 %v20635_v21 }
 0x919   :  { %v15079_v6 = vadd.f32 %v15073_v57, %v15063_v20  ;;  %v15081_v50 = vmax.f32 %v15077_v31, 0.0  ;;  %17734 = vmatprep.subr.bf16.mxu1 %v20939_v23 }
 0x91a   :  { %v15082_v63 = vmax.f32 %v15078_v16, 0.0 }
 0x91b   :  { %v15083_v49 = vmax.f32 %v15079_v6, 0.0 }
 0x91c   :  { %v15084_v9 = vpack.c.bf16 %v15082_v63, %v15080_v29  ;;  %17735 = vmatpush3.bf16.msra.mxu1 %v20636_v14 }
 0x91d   :  { %v15085_v13 = vpack.c.bf16 %v15083_v49, %v15081_v50 }
 0x91f   :  { %15253 = vmatprep.mubr.bf16.mxu0 %v15085_v13 }
 0x920   :  { %15254 = vmatmul.mubr.bf16.vlgmr.msra.gmra.mrb[64].mxu0 %v15084_v9 }
 0x921   :  { %17756 = vmatprep.mubr.msk.bf16.mxu0 %vm20940_vm1, %v20939_v23  ;;  %17741 = vmatpush3.bf16.msra.mxu0 %v20637_v42 }
 0x922   :  { %17742 = vmatprep.subr.bf16.mxu0 %v20939_v23 }
 0x925   :  { %17743 = vmatpush3.bf16.msra.mxu0 %v20638_v47 }
 0x926   :  { %17744 = vmatprep.subr.bf16.mxu0 %v20939_v23 }
 0x929   :  { %17745 = vmatpush3.bf16.msra.mxu0 %v20639_v41 }
 0x92a   :  { %17746 = vmatprep.subr.bf16.mxu0 %v20939_v23 }
 0x92d   :  { %17747 = vmatpush3.bf16.msra.mxu0 %v20640_v62 }
 0x92e   :  { %17748 = vmatprep.subr.bf16.mxu0 %v20939_v23 }
 0x931   :  { %17749 = vmatpush3.bf16.msra.mxu0 %v20641_v24 }
 0x932   :  { %17750 = vmatprep.subr.bf16.mxu0 %v20939_v23 }
 0x935   :  { %17751 = vmatpush3.bf16.msra.mxu0 %v20642_v58 }
 0x936   :  { %17752 = vmatprep.subr.bf16.mxu0 %v20939_v23 }
 0x939   :  { %17753 = vmatpush3.bf16.msra.mxu0 %v20643_v34 }
 0x93a   :  { %17754 = vmatprep.subr.bf16.mxu0 %v20939_v23 }
 0x93d   :  { %17755 = vmatpush3.bf16.msra.mxu0 %v20644_v55 }
 0x9f3   :  { %v17672_v8 = vpop.f32.mrb[64].mxu0 }
 0x9f4   :  { %v17673_v48 = vpop.f32.mrb[65].mxu0 }
 0x9f5   :  { %v17674_v60 = vadd.f32 %v17673_v48, %v17672_v8  ;;  %v17675_v7 = vpop.f32.mrb[66].mxu0 }
 0x9f6   :  { %v17676_v18 = vpop.f32.mrb[67].mxu0 }
 0x9f7   :  { %v15256_v52 = vadd.f32 %v17674_v60, %v17349_v51  ;;  %v17677_v2 = vadd.f32 %v17676_v18, %v17675_v7 }
 0x9f9   :  { %v15259_v37 = vadd.f32 %v17677_v2, %v17349_v51  ;;  %v15262_v46 = vmax.f32 %v15256_v52, 0.0 }
 0x9fb   :  { %v15263_v15 = vmax.f32 %v15259_v37, 0.0 }
 0x9fd   :  { %v15264_v43 = vpack.c.bf16 %v15263_v15, %v15262_v46 }
 0x9ff   :  { %17737 = vmatmul.mubr.bf16.vlgmr.msra.gmra.mrb[72].mxu1 %v15264_v43 }
 0xad2   :  { %v15370_v22 = vpop.f32.mrb[72].mxu1 }
 0xad3   :  { %v15371_v44 = vadd.f32 %v17366_v59, %v15370_v22  ;;  %v17738_v17 = vpop.f32.mrb[73].mxu1 }
 0xad4   :  { %v15373_v54 = vpop.f32.mrb[74].mxu1 }
 0xad5   :  { %v15374_v39 = vadd.f32 %v17366_v59, %v15373_v54  ;;  %v17739_v11 = vpop.f32.mrb[75].mxu1  ;;  %v15377_v19 = vmax.f32 %v15371_v44, 0.0 }
 0xad7   :  { %v15378_v5 = vmax.f32 %v15374_v39, 0.0 }
 0xad9   :  { %v15379_v25 = vpack.c.bf16 %v15378_v5, %v15377_v19 }
 0xadb   :  { %17757 = vmatmul.mubr.bf16.vlgmr.msra.gmra.mrb[68].mxu0 %v15379_v25 }
 0xbae   :  { %v15485_v35 = vpop.f32.mrb[68].mxu0 }
 0xbaf   :  { %v15486_v27 = vadd.f32 %v17375_v32, %v15485_v35  ;;  %v17758_v61 = vpop.f32.mrb[69].mxu0 }
 0xbb0   :  { %v15488_v28 = vpop.f32.mrb[70].mxu0 }
 0xbb1   :  { %v15492_v36 = vmax.f32 %v15486_v27, 0.0  ;;  %v15489_v23 = vadd.f32 %v17375_v32, %v15488_v28  ;;  %v17759_v4 = vpop.f32.mrb[71].mxu0 }
 0xbb3   :  { %15494 = vst [vmem:[%s21854_s11] sm:$0xff] %v15492_v36  ;;  %v15493_v40 = vmax.f32 %v15489_v23, 0.0 }
 0xbb5   :  { %15495 = vst [vmem:[%s21854_s11 + $0x8] sm:$0xff] %v15493_v40 }
 0xbb6   :  { %15500 = vsyncpa [#allocation3], 1 }
 0xbb7   :  { %15501 = vsyncpa [#allocation5], 1 }
 0xbb8   :  { %15502 = vsyncpa [#allocation8], 1 }
 0xbb9   :  { %15503 = vsyncpa [#allocation11], 1 }
 0xbba   :  { %15504 = vsyncpa [#allocation14], 1 }
 0xbbb   :  { %15505 = vsyncpa [#allocation17], 1 }

</bundles_post_ra>
